<compile_context>
chip_gen: v7x
topology: tpu7x:2x2x1
jax: 0.10.0
libtpu: 0.0.40
codegen_flags: <defaults>
</compile_context>

<pallas_src>
import jax
import jax.numpy as jnp
from jax.experimental import pallas as pl
from jax.experimental.pallas import tpu as pltpu


# K-tile for the FC matmul: 86528 = 13 * 6656, 6656 = 52 * 128.
# Weight tile (6656, 10) lane-pads to ~3.4 MB in VMEM -> ~7 MB double-buffered.
FC_TK = 6656


# ----------------------------------------------------------------------------
# Pallas kernels
# ----------------------------------------------------------------------------
def _mm_bias_single_kernel(a_ref, b_ref, bias_ref, o_ref):
    """Single K-step: out = a @ b + bias (no accumulator round-trip)."""
    o_ref[...] = (
        jnp.dot(a_ref[...], b_ref[...], preferred_element_type=jnp.float32)
        + bias_ref[...]
    ).astype(o_ref.dtype)


def _mm_bias_acc_kernel(a_ref, b_ref, bias_ref, o_ref, acc_ref):
    """Multi K-step: accumulate partial products, add bias on the last step."""
    k = pl.program_id(1)

    @pl.when(k == 0)
    def _():
        acc_ref[...] = jnp.zeros_like(acc_ref)

    acc_ref[...] += jnp.dot(a_ref[...], b_ref[...],
                            preferred_element_type=jnp.float32)

    @pl.when(k == pl.num_programs(1) - 1)
    def _():
        o_ref[...] = (acc_ref[...] + bias_ref[...]).astype(o_ref.dtype)


# ----------------------------------------------------------------------------
# Tiled matmul + bias wrapper
# ----------------------------------------------------------------------------
def matmul_bias(a, b, bias, *, tm=None, tk=None):
    """out = a @ b + bias on the MXU.

    Blocks: (tm, tk) x (tk, N) -> (tm, N).  N is never padded (a full-N block
    is legal for any N).  M and K are padded only if tm / tk do not divide
    them; the callers in this file always pick exact divisors so no padding or
    extra HBM copies happen in practice.
    """
    M, K = a.shape
    K2, N = b.shape
    assert K == K2 and bias.shape == (N,)

    a = a.astype(jnp.float32)
    b = b.astype(jnp.float32)
    bias_row = bias.astype(jnp.float32).reshape(1, N)

    tm = M if tm is None else min(tm, M)
    tk = K if tk is None else min(tk, K)

    nm = pl.cdiv(M, tm)
    nk = pl.cdiv(K, tk)
    Mp, Kp = nm * tm, nk * tk
    if Mp != M or Kp != K:
        a = jnp.pad(a, ((0, Mp - M), (0, Kp - K)))
    if Kp != K:
        b = jnp.pad(b, ((0, Kp - K), (0, 0)))

    if nk == 1:
        kernel = _mm_bias_single_kernel
        scratch = []
    else:
        kernel = _mm_bias_acc_kernel
        scratch = [pltpu.VMEM((tm, N), jnp.float32)]

    out = pl.pallas_call(
        kernel,
        out_shape=jax.ShapeDtypeStruct((Mp, N), jnp.float32),
        grid_spec=pltpu.PrefetchScalarGridSpec(
            num_scalar_prefetch=0,
            grid=(nm, nk),
            in_specs=[
                pl.BlockSpec((tm, tk), lambda i, k: (i, k)),
                pl.BlockSpec((tk, N), lambda i, k: (k, 0)),
                pl.BlockSpec((1, N), lambda i, k: (0, 0)),
            ],
            out_specs=pl.BlockSpec((tm, N), lambda i, k: (i, 0)),
            scratch_shapes=scratch,
        ),
        compiler_params=pltpu.CompilerParams(
            dimension_semantics=("parallel", "arbitrary")),
    )(a, b, bias_row)

    return out[:M] if Mp != M else out


# ----------------------------------------------------------------------------
# Conv lowering (im2col glue in XLA; matmul in Pallas)
# ----------------------------------------------------------------------------
def _im2col(x, kh, kw):
    # x: (N, H, W, C) -> (N*Ho*Wo, kh*kw*C); patch flattening order (kh, kw, C)
    # TODO(synk): patch extraction is pure data movement done in XLA glue, not Pallas.
    N, H, W, C = x.shape
    Ho, Wo = H - kh + 1, W - kw + 1
    cols = [x[:, i:i + Ho, j:j + Wo, :] for i in range(kh) for j in range(kw)]
    patches = jnp.stack(cols, axis=3)                      # (N, Ho, Wo, kh*kw, C)
    return patches.reshape(N * Ho * Wo, kh * kw * C), Ho, Wo


def conv2d_valid(x_nhwc, w_hwio, bias):
    # VALID conv, stride 1 (== PyTorch Conv2d default padding=0, stride=1).
    # Runs as ONE grid step: full (M, K) x (K, Cout) block, everything in VMEM.
    kh, kw, Cin, Cout = w_hwio.shape
    n = x_nhwc.shape[0]
    a, Ho, Wo = _im2col(x_nhwc, kh, kw)                    # (N*Ho*Wo, kh*kw*Cin)
    b = w_hwio.reshape(kh * kw * Cin, Cout)
    y = matmul_bias(a, b, bias)                            # no M/K/N padding
    return y.reshape(n, Ho, Wo, Cout)


# ----------------------------------------------------------------------------
# Full forward pass
# ----------------------------------------------------------------------------
def dummy_cnn_forward(x_nchw, params):
    # PyTorch NCHW -> NHWC for the conv lowering (tiny transpose: ~21 KB input).
    x = jnp.transpose(x_nchw, (0, 2, 3, 1))
    x = conv2d_valid(x, params["w1"], params["b1"])        # (N, 28, 28, 64)
    x = conv2d_valid(x, params["w2"], params["b2"])        # (N, 26, 26, 128)
    # nn.Flatten acts on NCHW ordering; wfc was pre-permuted to NHWC-flatten
    # order at init, so we flatten NHWC directly (contiguous reshape, no copy).
    n = x.shape[0]
    x = x.reshape(n, -1)                                   # (N, 26*26*128 = 86528)
    # FC: tm = full M (2), tk = 6656 -> 13 K steps, N = 10 unpadded.
    return matmul_bias(x, params["wfc"], params["bfc"], tk=FC_TK)


# ----------------------------------------------------------------------------
# Parameters (PyTorch layouts -> kernel layouts)
# ----------------------------------------------------------------------------
def init_torch_params(key):
    # Same shapes/layouts as the nn.Module:
    #   conv1: (64, 3, 3, 3), conv2: (128, 64, 3, 3), fc: (10, 86528)
    k = jax.random.split(key, 6)
    return {
        "conv1_w": jax.random.normal(k[0], (64, 3, 3, 3), jnp.float32) * 0.05,
        "conv1_b": jax.random.normal(k[1], (64,), jnp.float32) * 0.05,
        "conv2_w": jax.random.normal(k[2], (128, 64, 3, 3), jnp.float32) * 0.02,
        "conv2_b": jax.random.normal(k[3], (128,), jnp.float32) * 0.02,
        "fc_w": jax.random.normal(k[4], (10, 86528), jnp.float32) * 0.003,
        "fc_b": jax.random.normal(k[5], (10,), jnp.float32) * 0.01,
    }


def torch_params_to_kernel(tp):
    """One-time conversion from PyTorch layouts to kernel layouts.

    conv weight (Cout, Cin, kh, kw) -> (kh, kw, Cin, Cout).
    fc weight (10, 86528), columns in NCHW-flatten (C, H, W) order
      -> (86528, 10), rows in NHWC-flatten (H, W, C) order, so the runtime
         transpose of the conv2 output before flattening can be dropped while
         producing math identical to `flatten(NCHW) @ fc_w.T`.
    """
    C, H, W = 128, 26, 26
    wfc = tp["fc_w"].reshape(10, C, H, W)
    wfc = jnp.transpose(wfc, (2, 3, 1, 0)).reshape(H * W * C, 10)
    return {
        "w1": jnp.transpose(tp["conv1_w"], (2, 3, 1, 0)),
        "b1": tp["conv1_b"],
        "w2": jnp.transpose(tp["conv2_w"], (2, 3, 1, 0)),
        "b2": tp["conv2_b"],
        "wfc": wfc,
        "bfc": tp["fc_b"],
    }


# ----------------------------------------------------------------------------
# Pure-JAX reference (exact PyTorch semantics) for a correctness check
# ----------------------------------------------------------------------------
def reference_forward(x_nchw, tp):
    y = jax.lax.conv_general_dilated(
        x_nchw, tp["conv1_w"], window_strides=(1, 1), padding="VALID",
        dimension_numbers=("NCHW", "OIHW", "NCHW"))
    y = y + tp["conv1_b"][None, :, None, None]
    y = jax.lax.conv_general_dilated(
        y, tp["conv2_w"], window_strides=(1, 1), padding="VALID",
        dimension_numbers=("NCHW", "OIHW", "NCHW"))
    y = y + tp["conv2_b"][None, :, None, None]
    y = y.reshape(y.shape[0], -1)                          # NCHW flatten
    return y @ tp["fc_w"].T + tp["fc_b"]


if __name__ == "__main__":
    key = jax.random.PRNGKey(0)
    kx, kp = jax.random.split(key)
    # Input NCHW (2, 3, 30, 30): conv1 -> 28x28, conv2 -> 26x26, 128*26*26 =
    # 86528, exactly the fc in_features the module requires (spatial size is
    # fixed by the module; batch kept small at 2).
    x = jax.random.normal(kx, (2, 3, 30, 30), jnp.float32)
    torch_params = init_torch_params(kp)
    params = torch_params_to_kernel(torch_params)

    fwd = jax.jit(dummy_cnn_forward)
    out = jax.block_until_ready(fwd(x, params))

    assert out.shape == (2, 10) and out.dtype == jnp.float32
    assert bool(jnp.all(jnp.isfinite(out)))

    # Correctness vs pure-JAX reference (loose tolerance: MXU f32 path).
    ref = jax.block_until_ready(reference_forward(x, torch_params))
    rel_err = float(jnp.max(jnp.abs(out - ref)) / (jnp.max(jnp.abs(ref)) + 1e-6))
    assert rel_err < 5e-2, f"mismatch vs reference: rel_err={rel_err}"

    print("KERNEL_OK")
</pallas_src>

<mosaic_0001>
module attributes {stable_mosaic.version = 11 : i64} {
  func.func @_mm_bias_single_kernel(%arg0: i32, %arg1: i32, %arg2: memref<1568x27xf32, #tpu.memory_space<vmem>>, %arg3: memref<27x64xf32, #tpu.memory_space<vmem>>, %arg4: memref<1x64xf32, #tpu.memory_space<vmem>>, %arg5: memref<1568x64xf32, #tpu.memory_space<vmem>>) attributes {dimension_semantics = [#tpu.dimension_semantics<parallel>, #tpu.dimension_semantics<arbitrary>], iteration_bounds = array<i64: 1, 1>, scalar_prefetch = 0 : i64, scratch_operands = 0 : i64, tpu.core_type = #tpu.core_type<tc>, window_params = [{transform_indices = @transform_0, window_bounds = array<i64: 1568, 27>}, {transform_indices = @transform_1, window_bounds = array<i64: 27, 64>}, {pipeline_mode = #tpu.pipeline_mode<synchronous>, transform_indices = @transform_2, window_bounds = array<i64: 1, 64>}, {transform_indices = @transform_3, window_bounds = array<i64: 1568, 64>}]} {
    %c0 = arith.constant 0 : index
    %c0_0 = arith.constant 0 : index
    %0 = vector.load %arg2[%c0, %c0_0] : memref<1568x27xf32, #tpu.memory_space<vmem>>, vector<1568x27xf32>
    %c0_1 = arith.constant 0 : index
    %c0_2 = arith.constant 0 : index
    %1 = vector.load %arg3[%c0_1, %c0_2] : memref<27x64xf32, #tpu.memory_space<vmem>>, vector<27x64xf32>
    %cst = arith.constant dense<0.000000e+00> : vector<1568x64xf32>
    %2 = tpu.matmul %0, %1, %cst {dimension_numbers = #tpu.dot_dimension_numbers<[1], [0], [0], [1], [0, 0, 1, 1], [], []>} : vector<1568x27xf32>, vector<27x64xf32>, vector<1568x64xf32> -> vector<1568x64xf32>
    %c0_3 = arith.constant 0 : index
    %c0_4 = arith.constant 0 : index
    %3 = vector.load %arg4[%c0_3, %c0_4] : memref<1x64xf32, #tpu.memory_space<vmem>>, vector<1x64xf32>
    %4 = vector.broadcast %3 : vector<1x64xf32> to vector<1568x64xf32>
    %5 = arith.addf %2, %4 : vector<1568x64xf32>
    %c0_5 = arith.constant 0 : index
    %c0_6 = arith.constant 0 : index
    %6 = vector.load %arg5[%c0_5, %c0_6] : memref<1568x64xf32, #tpu.memory_space<vmem>>, vector<1568x64xf32>
    tpu.vector_store %arg5[%c0_5, %c0_6], %5 {strides = array<i32>} : memref<1568x64xf32, #tpu.memory_space<vmem>>, vector<1568x64xf32>,
    return
  }
  func.func @transform_0(%arg0: i32, %arg1: i32) -> (i32, i32) {
    %c0_i32 = arith.constant 0 : i32
    return %arg0, %arg1 : i32, i32
  }
  func.func @transform_1(%arg0: i32, %arg1: i32) -> (i32, i32) {
    %c0_i32 = arith.constant 0 : i32
    %c0_i32_0 = arith.constant 0 : i32
    return %arg1, %c0_i32 : i32, i32
  }
  func.func @transform_2(%arg0: i32, %arg1: i32) -> (i32, i32) {
    %c0_i32 = arith.constant 0 : i32
    %c0_i32_0 = arith.constant 0 : i32
    %c0_i32_1 = arith.constant 0 : i32
    return %c0_i32, %c0_i32_0 : i32, i32
  }
  func.func @transform_3(%arg0: i32, %arg1: i32) -> (i32, i32) {
    %c0_i32 = arith.constant 0 : i32
    %c0_i32_0 = arith.constant 0 : i32
    return %arg0, %c0_i32 : i32, i32
  }
}

module attributes {stable_mosaic.version = 11 : i64} {
  func.func @_mm_bias_single_kernel(%arg0: i32, %arg1: i32, %arg2: memref<1352x576xf32, #tpu.memory_space<vmem>>, %arg3: memref<576x128xf32, #tpu.memory_space<vmem>>, %arg4: memref<1x128xf32, #tpu.memory_space<vmem>>, %arg5: memref<1352x128xf32, #tpu.memory_space<vmem>>) attributes {dimension_semantics = [#tpu.dimension_semantics<parallel>, #tpu.dimension_semantics<arbitrary>], iteration_bounds = array<i64: 1, 1>, scalar_prefetch = 0 : i64, scratch_operands = 0 : i64, tpu.core_type = #tpu.core_type<tc>, window_params = [{transform_indices = @transform_0, window_bounds = array<i64: 1352, 576>}, {transform_indices = @transform_1, window_bounds = array<i64: 576, 128>}, {pipeline_mode = #tpu.pipeline_mode<synchronous>, transform_indices = @transform_2, window_bounds = array<i64: 1, 128>}, {transform_indices = @transform_3, window_bounds = array<i64: 1352, 128>}]} {
    %c0 = arith.constant 0 : index
    %c0_0 = arith.constant 0 : index
    %0 = vector.load %arg2[%c0, %c0_0] : memref<1352x576xf32, #tpu.memory_space<vmem>>, vector<1352x576xf32>
    %c0_1 = arith.constant 0 : index
    %c0_2 = arith.constant 0 : index
    %1 = vector.load %arg3[%c0_1, %c0_2] : memref<576x128xf32, #tpu.memory_space<vmem>>, vector<576x128xf32>
    %cst = arith.constant dense<0.000000e+00> : vector<1352x128xf32>
    %2 = tpu.matmul %0, %1, %cst {dimension_numbers = #tpu.dot_dimension_numbers<[1], [0], [0], [1], [0, 0, 1, 1], [], []>} : vector<1352x576xf32>, vector<576x128xf32>, vector<1352x128xf32> -> vector<1352x128xf32>
    %c0_3 = arith.constant 0 : index
    %c0_4 = arith.constant 0 : index
    %3 = vector.load %arg4[%c0_3, %c0_4] : memref<1x128xf32, #tpu.memory_space<vmem>>, vector<1x128xf32>
    %4 = vector.broadcast %3 : vector<1x128xf32> to vector<1352x128xf32>
    %5 = arith.addf %2, %4 : vector<1352x128xf32>
    %c0_5 = arith.constant 0 : index
    %c0_6 = arith.constant 0 : index
    %6 = vector.load %arg5[%c0_5, %c0_6] : memref<1352x128xf32, #tpu.memory_space<vmem>>, vector<1352x128xf32>
    tpu.vector_store %arg5[%c0_5, %c0_6], %5 {strides = array<i32>} : memref<1352x128xf32, #tpu.memory_space<vmem>>, vector<1352x128xf32>,
    return
  }
  func.func @transform_0(%arg0: i32, %arg1: i32) -> (i32, i32) {
    %c0_i32 = arith.constant 0 : i32
    return %arg0, %arg1 : i32, i32
  }
  func.func @transform_1(%arg0: i32, %arg1: i32) -> (i32, i32) {
    %c0_i32 = arith.constant 0 : i32
    %c0_i32_0 = arith.constant 0 : i32
    return %arg1, %c0_i32 : i32, i32
  }
  func.func @transform_2(%arg0: i32, %arg1: i32) -> (i32, i32) {
    %c0_i32 = arith.constant 0 : i32
    %c0_i32_0 = arith.constant 0 : i32
    %c0_i32_1 = arith.constant 0 : i32
    return %c0_i32, %c0_i32_0 : i32, i32
  }
  func.func @transform_3(%arg0: i32, %arg1: i32) -> (i32, i32) {
    %c0_i32 = arith.constant 0 : i32
    %c0_i32_0 = arith.constant 0 : i32
    return %arg0, %c0_i32 : i32, i32
  }
}

module attributes {stable_mosaic.version = 11 : i64} {
  func.func @_mm_bias_acc_kernel(%arg0: i32, %arg1: i32, %arg2: memref<2x6656xf32, #tpu.memory_space<vmem>>, %arg3: memref<6656x10xf32, #tpu.memory_space<vmem>>, %arg4: memref<1x10xf32, #tpu.memory_space<vmem>>, %arg5: memref<2x10xf32, #tpu.memory_space<vmem>>, %arg6: memref<2x10xf32, #tpu.memory_space<vmem>>) attributes {dimension_semantics = [#tpu.dimension_semantics<parallel>, #tpu.dimension_semantics<arbitrary>], iteration_bounds = array<i64: 1, 13>, scalar_prefetch = 0 : i64, scratch_operands = 1 : i64, tpu.core_type = #tpu.core_type<tc>, window_params = [{transform_indices = @transform_0, window_bounds = array<i64: 2, 6656>}, {transform_indices = @transform_1, window_bounds = array<i64: 6656, 10>}, {pipeline_mode = #tpu.pipeline_mode<synchronous>, transform_indices = @transform_2, window_bounds = array<i64: 1, 10>}, {transform_indices = @transform_3, window_bounds = array<i64: 2, 10>}]} {
    %c0_i32 = arith.constant 0 : i32
    %0 = arith.cmpi eq, %arg1, %c0_i32 : i32
    %1 = arith.extui %0 : i1 to i32
    %c0_i32_0 = arith.constant 0 : i32
    %2 = arith.cmpi ne, %1, %c0_i32_0 : i32
    scf.if %2 {
      %cst_9 = arith.constant 0.000000e+00 : f32
      %12 = vector.broadcast %cst_9 : f32 to vector<2x10xf32>
      %c0_10 = arith.constant 0 : index
      %c0_11 = arith.constant 0 : index
      %13 = vector.load %arg6[%c0_10, %c0_11] : memref<2x10xf32, #tpu.memory_space<vmem>>, vector<2x10xf32>
      tpu.vector_store %arg6[%c0_10, %c0_11], %12 {strides = array<i32>} : memref<2x10xf32, #tpu.memory_space<vmem>>, vector<2x10xf32>,
    } else {
    }
    %c0 = arith.constant 0 : index
    %c0_1 = arith.constant 0 : index
    %3 = vector.load %arg6[%c0, %c0_1] : memref<2x10xf32, #tpu.memory_space<vmem>>, vector<2x10xf32>
    %c0_2 = arith.constant 0 : index
    %c0_3 = arith.constant 0 : index
    %4 = vector.load %arg2[%c0_2, %c0_3] : memref<2x6656xf32, #tpu.memory_space<vmem>>, vector<2x6656xf32>
    %c0_4 = arith.constant 0 : index
    %c0_5 = arith.constant 0 : index
    %5 = vector.load %arg3[%c0_4, %c0_5] : memref<6656x10xf32, #tpu.memory_space<vmem>>, vector<6656x10xf32>
    %cst = arith.constant dense<0.000000e+00> : vector<2x10xf32>
    %6 = tpu.matmul %4, %5, %cst {dimension_numbers = #tpu.dot_dimension_numbers<[1], [0], [0], [1], [0, 0, 1, 1], [], []>} : vector<2x6656xf32>, vector<6656x10xf32>, vector<2x10xf32> -> vector<2x10xf32>
    %7 = arith.addf %3, %6 : vector<2x10xf32>
    %c0_6 = arith.constant 0 : index
    %c0_7 = arith.constant 0 : index
    %8 = vector.load %arg6[%c0_6, %c0_7] : memref<2x10xf32, #tpu.memory_space<vmem>>, vector<2x10xf32>
    tpu.vector_store %arg6[%c0_6, %c0_7], %7 {strides = array<i32>} : memref<2x10xf32, #tpu.memory_space<vmem>>, vector<2x10xf32>,
    %c12_i32 = arith.constant 12 : i32
    %9 = arith.cmpi eq, %arg1, %c12_i32 : i32
    %10 = arith.extui %9 : i1 to i32
    %c0_i32_8 = arith.constant 0 : i32
    %11 = arith.cmpi ne, %10, %c0_i32_8 : i32
    scf.if %11 {
      %c0_9 = arith.constant 0 : index
      %c0_10 = arith.constant 0 : index
      %12 = vector.load %arg6[%c0_9, %c0_10] : memref<2x10xf32, #tpu.memory_space<vmem>>, vector<2x10xf32>
      %c0_11 = arith.constant 0 : index
      %c0_12 = arith.constant 0 : index
      %13 = vector.load %arg4[%c0_11, %c0_12] : memref<1x10xf32, #tpu.memory_space<vmem>>, vector<1x10xf32>
      %14 = vector.broadcast %13 : vector<1x10xf32> to vector<2x10xf32>
      %15 = arith.addf %12, %14 : vector<2x10xf32>
      %c0_13 = arith.constant 0 : index
      %c0_14 = arith.constant 0 : index
      %16 = vector.load %arg5[%c0_13, %c0_14] : memref<2x10xf32, #tpu.memory_space<vmem>>, vector<2x10xf32>
      tpu.vector_store %arg5[%c0_13, %c0_14], %15 {strides = array<i32>} : memref<2x10xf32, #tpu.memory_space<vmem>>, vector<2x10xf32>,
    } else {
    }
    return
  }
  func.func @transform_0(%arg0: i32, %arg1: i32) -> (i32, i32) {
    %c0_i32 = arith.constant 0 : i32
    return %arg0, %arg1 : i32, i32
  }
  func.func @transform_1(%arg0: i32, %arg1: i32) -> (i32, i32) {
    %c0_i32 = arith.constant 0 : i32
    %c0_i32_0 = arith.constant 0 : i32
    return %arg1, %c0_i32 : i32, i32
  }
  func.func @transform_2(%arg0: i32, %arg1: i32) -> (i32, i32) {
    %c0_i32 = arith.constant 0 : i32
    %c0_i32_0 = arith.constant 0 : i32
    %c0_i32_1 = arith.constant 0 : i32
    return %c0_i32, %c0_i32_0 : i32, i32
  }
  func.func @transform_3(%arg0: i32, %arg1: i32) -> (i32, i32) {
    %c0_i32 = arith.constant 0 : i32
    %c0_i32_0 = arith.constant 0 : i32
    return %arg0, %c0_i32 : i32, i32
  }
}

</mosaic_0001>

<bundles_post_ra>
// kernel: dummy_cnn_forward.3
= control target key start
LH: loop header
LB: loop body
LE: loop exit
PB: predicated region body
PF: predicated region fallthrough
CT: control target
= control target key end

     0   :  { %8 = vsyncpa [#allocation3], 0  ;;  %s2814_s12 = smov [#allocation2]   ;;  %s4628_s0 = inlined_call_operand.vmem [shape: f32[1568,27], index: 0, kind: input, shape index: {}]   ;;  %s4629_s1 = inlined_call_operand.vmem [shape: f32[27,64], index: 1, kind: input, shape index: {}]   ;;  %s4630_s2 = inlined_call_operand.hbm [shape: f32[1,64], index: 2, kind: input, shape index: {}]   ;;  %s4631_s3 = inlined_call_operand.vmem [shape: f32[1568,64], index: 3, kind: output, shape index: {}]  }
   0x1   :  { %s19_s13 = sshll.u32 %s2814_s12, 4  ;;  %s2790_s16 = scalar_lea.hbm %s4630_s2, 16  ;;  %s20_s13 = int_to_ptr.vmem [resolvable:$true] %s19_s13 }
   0x2   :  { %p2791_p0 = scmp.ne.s32.totalorder %s4630_s2, %s2790_s16  ;;  %p2794_p1 = scmp.lt.u32.totalorder %s2790_s16, %s4630_s2 }
   0x4   :  { %p2796_p2 = pnand %p2794_p1, %p2791_p0 }
   0x6   :  { %2799 = shalt.err (!%p2796_p2)
}
   0x7   :  { %s2800_s21 = scalar_lea.vmem %s20_s13, 16  ;;  %s2804_s22 = scalar_lea.vmem %s20_s13, 32 }
   0x8   :  { %p2801_p3 = scmp.ne.s32.totalorder %s20_s13, %s2800_s21  ;;  %p2805_p4 = scmp.lt.s32.totalorder %s20_s13, %s20_s13 }
   0x9   :  { %p2806_p5 = scmp.lt.s32.totalorder %s2804_s22, %s2800_s21 }
   0xb   :  { %p2807_p6 = por %p2806_p5, %p2805_p4 }
   0xd   :  { %p2808_p7 = pnand %p2807_p6, %p2801_p3 }
   0xf   :  { %2811 = shalt.err (!%p2808_p7)
}
  0x10   :  { %22 = dma.hbm_to_vmem [thread:$0]  %s4630_s2, 16, %s20_s13, [#allocation3]  }
  0x11   :  { %2812 = dma.done.wait [#allocation3], 16  }
  0x12   :  { %2813 = vsyncadd [#allocation3], 4294967280  ;;  %vm822_vm0 = vcmask 1042432   ;;  %vm233_vm1 = vcmask 220160   ;;  %v222_v0 = vld [vmem:[%s4629_s1] sm:$0xff]  ;;  %v223_v1 = vld [vmem:[%s4629_s1 + $0x8] sm:$0xff] }
  0x13   :  { %v224_v2 = vld [vmem:[%s4629_s1 + $0x10] sm:$0xff]  ;;  %v2773_v3 = vpack.c.bf16 %v223_v1, %v222_v0  ;;  %v225_v4 = vld [vmem:[%s4629_s1 + $0x18] sm:$0x7]  ;;  %v26_v5 = vld [vmem:[%s4628_s0] sm:$0xff]  ;;  %vm2815_vm2 = vmmov 1   ;;  %vm1871_vm4 = vcmask 523264  }
  0x14   :  { %v124_v6 = vld [vmem:[%s4628_s0 + $0x310] sm:$0xff]  ;;  %v2777_v7 = vpack.c.bf16 %v225_v4, %v224_v2  ;;  %vm2778_vm3 = vmpackc.low %vm822_vm0, %vm2815_vm2  ;;  %2479 = vmatprep.mubr.msk.f32.mxu0 %vm233_vm1, %v26_v5  ;;  %v27_v8 = vld [vmem:[%s4628_s0 + $0x8] sm:$0xff] }
  0x15   :  { %2626 = vmatprep.mubr.msk.f32.mxu1 %vm233_vm1, %v124_v6  ;;  %2774 = vmatprep.subr.bf16.mxu0 %v2773_v3  ;;  %v125_v9 = vld [vmem:[%s4628_s0 + $0x318] sm:$0xff]  ;;  %v28_v10 = vld [vmem:[%s4628_s0 + $0x10] sm:$0xff]  ;;  %v126_v11 = vld [vmem:[%s4628_s0 + $0x320] sm:$0xff] }
  0x16   :  { %2783 = vmatprep.subr.bf16.mxu1 %v2773_v3  ;;  %2776 = vmatpush3.bf16.msra.mxu0 %v2773_v3  ;;  %v29_v12 = vld [vmem:[%s4628_s0 + $0x18] sm:$0xff]  ;;  %v127_v13 = vld [vmem:[%s4628_s0 + $0x328] sm:$0xff]  ;;  %v30_v14 = vld [vmem:[%s4628_s0 + $0x20] sm:$0xff] }
  0x17   :  { %2785 = vmatpush3.bf16.msra.mxu1 %v2773_v3  ;;  %2779 = vmatprep.subr.msk.bf16.mxu0 %vm2778_vm3, %v2777_v7  ;;  %v128_v15 = vld [vmem:[%s4628_s0 + $0x330] sm:$0xff]  ;;  %v31_v16 = vld [vmem:[%s4628_s0 + $0x28] sm:$0xff]  ;;  %v129_v17 = vld [vmem:[%s4628_s0 + $0x338] sm:$0xff] }
  0x18   :  { %2784 = vmatprep.subr.msk.bf16.mxu1 %vm2778_vm3, %v2777_v7  ;;  %v32_v18 = vld [vmem:[%s4628_s0 + $0x30] sm:$0xff]  ;;  %v130_v19 = vld [vmem:[%s4628_s0 + $0x340] sm:$0xff]  ;;  %v33_v20 = vld [vmem:[%s4628_s0 + $0x38] sm:$0xff] }
  0x19   :  { %v131_v21 = vld [vmem:[%s4628_s0 + $0x348] sm:$0xff]  ;;  %v34_v22 = vld [vmem:[%s4628_s0 + $0x40] sm:$0xff]  ;;  %v132_v23 = vld [vmem:[%s4628_s0 + $0x350] sm:$0xff] }
  0x1a   :  { %2782 = vmatpush3.bf16.msk.msra.mxu0 %vm2778_vm3, %v2777_v7  ;;  %v35_v24 = vld [vmem:[%s4628_s0 + $0x48] sm:$0xff]  ;;  %v133_v25 = vld [vmem:[%s4628_s0 + $0x358] sm:$0xff]  ;;  %v36_v26 = vld [vmem:[%s4628_s0 + $0x50] sm:$0xff] }
  0x1b   :  { %2786 = vmatpush3.bf16.msk.msra.mxu1 %vm2778_vm3, %v2777_v7  ;;  %v134_v27 = vld [vmem:[%s4628_s0 + $0x360] sm:$0xff]  ;;  %v37_v28 = vld [vmem:[%s4628_s0 + $0x58] sm:$0xff]  ;;  %v135_v29 = vld [vmem:[%s4628_s0 + $0x368] sm:$0xff] }
  0x1c   :  { %v38_v30 = vld [vmem:[%s4628_s0 + $0x60] sm:$0xff]  ;;  %v136_v31 = vld [vmem:[%s4628_s0 + $0x370] sm:$0xff]  ;;  %v39_v32 = vld [vmem:[%s4628_s0 + $0x68] sm:$0xff] }
  0x1d   :  { %2480 = vmatmul.mubr.msk.f32.vlgmr.msra.gmra.mrb[0].mxu0 %vm233_vm1, %v27_v8  ;;  %v137_v33 = vld [vmem:[%s4628_s0 + $0x378] sm:$0xff]  ;;  %v40_v34 = vld [vmem:[%s4628_s0 + $0x70] sm:$0xff]  ;;  %v138_v35 = vld [vmem:[%s4628_s0 + $0x380] sm:$0xff] }
  0x1e   :  { %2627 = vmatmul.mubr.msk.f32.vlgmr.msra.gmra.mrb[0].mxu1 %vm233_vm1, %v125_v9  ;;  %2482 = vmatprep.mubr.msk.f32.mxu0 %vm233_vm1, %v28_v10  ;;  %v41_v36 = vld [vmem:[%s4628_s0 + $0x78] sm:$0xff]  ;;  %v139_v37 = vld [vmem:[%s4628_s0 + $0x388] sm:$0xff]  ;;  %v42_v38 = vld [vmem:[%s4628_s0 + $0x80] sm:$0xff] }
  0x1f   :  { %2629 = vmatprep.mubr.msk.f32.mxu1 %vm233_vm1, %v126_v11  ;;  %v140_v39 = vld [vmem:[%s4628_s0 + $0x390] sm:$0xff]  ;;  %v43_v40 = vld [vmem:[%s4628_s0 + $0x88] sm:$0xff]  ;;  %v141_v41 = vld [vmem:[%s4628_s0 + $0x398] sm:$0xff] }
  0x20   :  { %v44_v42 = vld [vmem:[%s4628_s0 + $0x90] sm:$0xff]  ;;  %v142_v43 = vld [vmem:[%s4628_s0 + $0x3a0] sm:$0xff]  ;;  %v45_v44 = vld [vmem:[%s4628_s0 + $0x98] sm:$0xff] }
  0x21   :  { %2483 = vmatmul.mubr.msk.f32.gmra.mrb[2].mxu0 %vm233_vm1, %v29_v12  ;;  %v143_v45 = vld [vmem:[%s4628_s0 + $0x3a8] sm:$0xff]  ;;  %v46_v46 = vld [vmem:[%s4628_s0 + $0xa0] sm:$0xff]  ;;  %v144_v47 = vld [vmem:[%s4628_s0 + $0x3b0] sm:$0xff] }
  0x22   :  { %2630 = vmatmul.mubr.msk.f32.gmra.mrb[2].mxu1 %vm233_vm1, %v127_v13  ;;  %2485 = vmatprep.mubr.msk.f32.mxu0 %vm233_vm1, %v30_v14  ;;  %v47_v48 = vld [vmem:[%s4628_s0 + $0xa8] sm:$0xff]  ;;  %v145_v49 = vld [vmem:[%s4628_s0 + $0x3b8] sm:$0xff]  ;;  %v48_v50 = vld [vmem:[%s4628_s0 + $0xb0] sm:$0xff] }
  0x23   :  { %2632 = vmatprep.mubr.msk.f32.mxu1 %vm233_vm1, %v128_v15  ;;  %v146_v51 = vld [vmem:[%s4628_s0 + $0x3c0] sm:$0xff]  ;;  %v49_v52 = vld [vmem:[%s4628_s0 + $0xb8] sm:$0xff]  ;;  %v147_v53 = vld [vmem:[%s4628_s0 + $0x3c8] sm:$0xff] }
  0x24   :  { %v50_v54 = vld [vmem:[%s4628_s0 + $0xc0] sm:$0xff]  ;;  %v148_v55 = vld [vmem:[%s4628_s0 + $0x3d0] sm:$0xff]  ;;  %v51_v56 = vld [vmem:[%s4628_s0 + $0xc8] sm:$0xff] }
  0x25   :  { %2486 = vmatmul.mubr.msk.f32.gmra.mrb[4].mxu0 %vm233_vm1, %v31_v16  ;;  %v149_v57 = vld [vmem:[%s4628_s0 + $0x3d8] sm:$0xff]  ;;  %v52_v58 = vld [vmem:[%s4628_s0 + $0xd0] sm:$0xff]  ;;  %v150_v59 = vld [vmem:[%s4628_s0 + $0x3e0] sm:$0xff] }
  0x26   :  { %2633 = vmatmul.mubr.msk.f32.gmra.mrb[4].mxu1 %vm233_vm1, %v129_v17  ;;  %2488 = vmatprep.mubr.msk.f32.mxu0 %vm233_vm1, %v32_v18  ;;  %v53_v60 = vld [vmem:[%s4628_s0 + $0xd8] sm:$0xff]  ;;  %v151_v61 = vld [vmem:[%s4628_s0 + $0x3e8] sm:$0xff]  ;;  %v54_v62 = vld [vmem:[%s4628_s0 + $0xe0] sm:$0xff] }
  0x27   :  { %2635 = vmatprep.mubr.msk.f32.mxu1 %vm233_vm1, %v130_v19  ;;  %v152_v63 = vld [vmem:[%s4628_s0 + $0x3f0] sm:$0xff]  ;;  %v55_v0 = vld [vmem:[%s4628_s0 + $0xe8] sm:$0xff]  ;;  %v153_v1 = vld [vmem:[%s4628_s0 + $0x3f8] sm:$0xff] }
  0x28   :  { %v56_v2 = vld [vmem:[%s4628_s0 + $0xf0] sm:$0xff]  ;;  %v154_v3 = vld [vmem:[%s4628_s0 + $0x400] sm:$0xff]  ;;  %v57_v4 = vld [vmem:[%s4628_s0 + $0xf8] sm:$0xff] }
  0x29   :  { %2489 = vmatmul.mubr.msk.f32.gmra.mrb[6].mxu0 %vm233_vm1, %v33_v20  ;;  %v155_v5 = vld [vmem:[%s4628_s0 + $0x408] sm:$0xff]  ;;  %v58_v6 = vld [vmem:[%s4628_s0 + $0x100] sm:$0xff]  ;;  %v156_v7 = vld [vmem:[%s4628_s0 + $0x410] sm:$0xff] }
  0x2a   :  { %2636 = vmatmul.mubr.msk.f32.gmra.mrb[6].mxu1 %vm233_vm1, %v131_v21  ;;  %2491 = vmatprep.mubr.msk.f32.mxu0 %vm233_vm1, %v34_v22  ;;  %v59_v8 = vld [vmem:[%s4628_s0 + $0x108] sm:$0xff]  ;;  %v157_v9 = vld [vmem:[%s4628_s0 + $0x418] sm:$0xff]  ;;  %v60_v10 = vld [vmem:[%s4628_s0 + $0x110] sm:$0xff] }
  0x2b   :  { %2638 = vmatprep.mubr.msk.f32.mxu1 %vm233_vm1, %v132_v23  ;;  %v158_v11 = vld [vmem:[%s4628_s0 + $0x420] sm:$0xff]  ;;  %v61_v12 = vld [vmem:[%s4628_s0 + $0x118] sm:$0xff]  ;;  %v159_v13 = vld [vmem:[%s4628_s0 + $0x428] sm:$0xff] }
  0x2c   :  { %v62_v14 = vld [vmem:[%s4628_s0 + $0x120] sm:$0xff]  ;;  %v160_v15 = vld [vmem:[%s4628_s0 + $0x430] sm:$0xff]  ;;  %v63_v16 = vld [vmem:[%s4628_s0 + $0x128] sm:$0xff] }
  0x2d   :  { %2492 = vmatmul.mubr.msk.f32.gmra.mrb[8].mxu0 %vm233_vm1, %v35_v24  ;;  %v161_v17 = vld [vmem:[%s4628_s0 + $0x438] sm:$0xff]  ;;  %v64_v18 = vld [vmem:[%s4628_s0 + $0x130] sm:$0xff]  ;;  %v162_v19 = vld [vmem:[%s4628_s0 + $0x440] sm:$0xff] }
  0x2e   :  { %2639 = vmatmul.mubr.msk.f32.gmra.mrb[8].mxu1 %vm233_vm1, %v133_v25  ;;  %2494 = vmatprep.mubr.msk.f32.mxu0 %vm233_vm1, %v36_v26  ;;  %v65_v20 = vld [vmem:[%s4628_s0 + $0x138] sm:$0xff]  ;;  %v163_v21 = vld [vmem:[%s4628_s0 + $0x448] sm:$0xff]  ;;  %v66_v22 = vld [vmem:[%s4628_s0 + $0x140] sm:$0xff] }
  0x2f   :  { %2641 = vmatprep.mubr.msk.f32.mxu1 %vm233_vm1, %v134_v27  ;;  %v164_v23 = vld [vmem:[%s4628_s0 + $0x450] sm:$0xff]  ;;  %v67_v24 = vld [vmem:[%s4628_s0 + $0x148] sm:$0xff]  ;;  %v165_v25 = vld [vmem:[%s4628_s0 + $0x458] sm:$0xff] }
  0x30   :  { %v68_v26 = vld [vmem:[%s4628_s0 + $0x150] sm:$0xff]  ;;  %v166_v27 = vld [vmem:[%s4628_s0 + $0x460] sm:$0xff] }
  0x31   :  { %2495 = vmatmul.mubr.msk.f32.gmra.mrb[10].mxu0 %vm233_vm1, %v37_v28  ;;  %v69_v28 = vld [vmem:[%s4628_s0 + $0x158] sm:$0xff] }
  0x32   :  { %2642 = vmatmul.mubr.msk.f32.gmra.mrb[10].mxu1 %vm233_vm1, %v135_v29  ;;  %2497 = vmatprep.mubr.msk.f32.mxu0 %vm233_vm1, %v38_v30  ;;  %v167_v29 = vld [vmem:[%s4628_s0 + $0x468] sm:$0xff]  ;;  %v70_v30 = vld [vmem:[%s4628_s0 + $0x160] sm:$0xff] }
  0x33   :  { %2644 = vmatprep.mubr.msk.f32.mxu1 %vm233_vm1, %v136_v31  ;;  %v168_v31 = vld [vmem:[%s4628_s0 + $0x470] sm:$0xff] }
  0x35   :  { %2498 = vmatmul.mubr.msk.f32.gmra.mrb[12].mxu0 %vm233_vm1, %v39_v32  ;;  %v71_v32 = vld [vmem:[%s4628_s0 + $0x168] sm:$0xff] }
  0x36   :  { %2645 = vmatmul.mubr.msk.f32.gmra.mrb[12].mxu1 %vm233_vm1, %v137_v33  ;;  %2500 = vmatprep.mubr.msk.f32.mxu0 %vm233_vm1, %v40_v34  ;;  %v169_v33 = vld [vmem:[%s4628_s0 + $0x478] sm:$0xff]  ;;  %v72_v34 = vld [vmem:[%s4628_s0 + $0x170] sm:$0xff] }
  0x37   :  { %2647 = vmatprep.mubr.msk.f32.mxu1 %vm233_vm1, %v138_v35  ;;  %v170_v35 = vld [vmem:[%s4628_s0 + $0x480] sm:$0xff] }
  0x39   :  { %2501 = vmatmul.mubr.msk.f32.gmra.mrb[14].mxu0 %vm233_vm1, %v41_v36  ;;  %v73_v36 = vld [vmem:[%s4628_s0 + $0x178] sm:$0xff] }
  0x3a   :  { %2648 = vmatmul.mubr.msk.f32.gmra.mrb[14].mxu1 %vm233_vm1, %v139_v37  ;;  %2503 = vmatprep.mubr.msk.f32.mxu0 %vm233_vm1, %v42_v38  ;;  %v171_v37 = vld [vmem:[%s4628_s0 + $0x488] sm:$0xff]  ;;  %v74_v38 = vld [vmem:[%s4628_s0 + $0x180] sm:$0xff] }
  0x3b   :  { %2650 = vmatprep.mubr.msk.f32.mxu1 %vm233_vm1, %v140_v39  ;;  %v172_v39 = vld [vmem:[%s4628_s0 + $0x490] sm:$0xff] }
  0x3d   :  { %2504 = vmatmul.mubr.msk.f32.gmra.mrb[16].mxu0 %vm233_vm1, %v43_v40  ;;  %v75_v40 = vld [vmem:[%s4628_s0 + $0x188] sm:$0xff] }
  0x3e   :  { %2651 = vmatmul.mubr.msk.f32.gmra.mrb[16].mxu1 %vm233_vm1, %v141_v41  ;;  %2506 = vmatprep.mubr.msk.f32.mxu0 %vm233_vm1, %v44_v42  ;;  %v173_v41 = vld [vmem:[%s4628_s0 + $0x498] sm:$0xff]  ;;  %v76_v42 = vld [vmem:[%s4628_s0 + $0x190] sm:$0xff] }
  0x3f   :  { %2653 = vmatprep.mubr.msk.f32.mxu1 %vm233_vm1, %v142_v43  ;;  %v174_v43 = vld [vmem:[%s4628_s0 + $0x4a0] sm:$0xff] }
  0x41   :  { %2507 = vmatmul.mubr.msk.f32.gmra.mrb[18].mxu0 %vm233_vm1, %v45_v44  ;;  %v77_v44 = vld [vmem:[%s4628_s0 + $0x198] sm:$0xff] }
  0x42   :  { %2654 = vmatmul.mubr.msk.f32.gmra.mrb[18].mxu1 %vm233_vm1, %v143_v45  ;;  %2509 = vmatprep.mubr.msk.f32.mxu0 %vm233_vm1, %v46_v46  ;;  %v175_v45 = vld [vmem:[%s4628_s0 + $0x4a8] sm:$0xff]  ;;  %v78_v46 = vld [vmem:[%s4628_s0 + $0x1a0] sm:$0xff] }
  0x43   :  { %2656 = vmatprep.mubr.msk.f32.mxu1 %vm233_vm1, %v144_v47  ;;  %v176_v47 = vld [vmem:[%s4628_s0 + $0x4b0] sm:$0xff] }
  0x45   :  { %2510 = vmatmul.mubr.msk.f32.gmra.mrb[20].mxu0 %vm233_vm1, %v47_v48  ;;  %v79_v48 = vld [vmem:[%s4628_s0 + $0x1a8] sm:$0xff] }
  0x46   :  { %2657 = vmatmul.mubr.msk.f32.gmra.mrb[20].mxu1 %vm233_vm1, %v145_v49  ;;  %2512 = vmatprep.mubr.msk.f32.mxu0 %vm233_vm1, %v48_v50  ;;  %v177_v49 = vld [vmem:[%s4628_s0 + $0x4b8] sm:$0xff]  ;;  %v80_v50 = vld [vmem:[%s4628_s0 + $0x1b0] sm:$0xff] }
  0x47   :  { %2659 = vmatprep.mubr.msk.f32.mxu1 %vm233_vm1, %v146_v51  ;;  %v178_v51 = vld [vmem:[%s4628_s0 + $0x4c0] sm:$0xff] }
  0x49   :  { %2513 = vmatmul.mubr.msk.f32.gmra.mrb[22].mxu0 %vm233_vm1, %v49_v52  ;;  %v81_v52 = vld [vmem:[%s4628_s0 + $0x1b8] sm:$0xff] }
  0x4a   :  { %2660 = vmatmul.mubr.msk.f32.gmra.mrb[22].mxu1 %vm233_vm1, %v147_v53  ;;  %2515 = vmatprep.mubr.msk.f32.mxu0 %vm233_vm1, %v50_v54  ;;  %v179_v53 = vld [vmem:[%s4628_s0 + $0x4c8] sm:$0xff]  ;;  %v82_v54 = vld [vmem:[%s4628_s0 + $0x1c0] sm:$0xff] }
  0x4b   :  { %2662 = vmatprep.mubr.msk.f32.mxu1 %vm233_vm1, %v148_v55  ;;  %v180_v55 = vld [vmem:[%s4628_s0 + $0x4d0] sm:$0xff] }
  0x4d   :  { %2516 = vmatmul.mubr.msk.f32.gmra.mrb[24].mxu0 %vm233_vm1, %v51_v56  ;;  %v83_v56 = vld [vmem:[%s4628_s0 + $0x1c8] sm:$0xff] }
  0x4e   :  { %2663 = vmatmul.mubr.msk.f32.gmra.mrb[24].mxu1 %vm233_vm1, %v149_v57  ;;  %2518 = vmatprep.mubr.msk.f32.mxu0 %vm233_vm1, %v52_v58  ;;  %v181_v57 = vld [vmem:[%s4628_s0 + $0x4d8] sm:$0xff]  ;;  %v84_v58 = vld [vmem:[%s4628_s0 + $0x1d0] sm:$0xff] }
  0x4f   :  { %2665 = vmatprep.mubr.msk.f32.mxu1 %vm233_vm1, %v150_v59  ;;  %v182_v59 = vld [vmem:[%s4628_s0 + $0x4e0] sm:$0xff] }
  0x51   :  { %2519 = vmatmul.mubr.msk.f32.gmra.mrb[26].mxu0 %vm233_vm1, %v53_v60  ;;  %v85_v60 = vld [vmem:[%s4628_s0 + $0x1d8] sm:$0xff] }
  0x52   :  { %2666 = vmatmul.mubr.msk.f32.gmra.mrb[26].mxu1 %vm233_vm1, %v151_v61  ;;  %2521 = vmatprep.mubr.msk.f32.mxu0 %vm233_vm1, %v54_v62  ;;  %v183_v61 = vld [vmem:[%s4628_s0 + $0x4e8] sm:$0xff]  ;;  %v86_v62 = vld [vmem:[%s4628_s0 + $0x1e0] sm:$0xff] }
  0x53   :  { %2668 = vmatprep.mubr.msk.f32.mxu1 %vm233_vm1, %v152_v63  ;;  %v184_v63 = vld [vmem:[%s4628_s0 + $0x4f0] sm:$0xff] }
  0x55   :  { %2522 = vmatmul.mubr.msk.f32.gmra.mrb[28].mxu0 %vm233_vm1, %v55_v0  ;;  %v87_v0 = vld [vmem:[%s4628_s0 + $0x1e8] sm:$0xff] }
  0x56   :  { %2669 = vmatmul.mubr.msk.f32.gmra.mrb[28].mxu1 %vm233_vm1, %v153_v1  ;;  %2524 = vmatprep.mubr.msk.f32.mxu0 %vm233_vm1, %v56_v2  ;;  %v185_v1 = vld [vmem:[%s4628_s0 + $0x4f8] sm:$0xff]  ;;  %v88_v2 = vld [vmem:[%s4628_s0 + $0x1f0] sm:$0xff] }
  0x57   :  { %2671 = vmatprep.mubr.msk.f32.mxu1 %vm233_vm1, %v154_v3  ;;  %v186_v3 = vld [vmem:[%s4628_s0 + $0x500] sm:$0xff] }
  0x59   :  { %2525 = vmatmul.mubr.msk.f32.gmra.mrb[30].mxu0 %vm233_vm1, %v57_v4  ;;  %v89_v4 = vld [vmem:[%s4628_s0 + $0x1f8] sm:$0xff] }
  0x5a   :  { %2672 = vmatmul.mubr.msk.f32.gmra.mrb[30].mxu1 %vm233_vm1, %v155_v5  ;;  %2527 = vmatprep.mubr.msk.f32.mxu0 %vm233_vm1, %v58_v6  ;;  %v187_v5 = vld [vmem:[%s4628_s0 + $0x508] sm:$0xff]  ;;  %v90_v6 = vld [vmem:[%s4628_s0 + $0x200] sm:$0xff] }
  0x5b   :  { %2674 = vmatprep.mubr.msk.f32.mxu1 %vm233_vm1, %v156_v7  ;;  %v188_v7 = vld [vmem:[%s4628_s0 + $0x510] sm:$0xff] }
  0x5d   :  { %2528 = vmatmul.mubr.msk.f32.gmra.mrb[32].mxu0 %vm233_vm1, %v59_v8  ;;  %v91_v8 = vld [vmem:[%s4628_s0 + $0x208] sm:$0xff] }
  0x5e   :  { %2675 = vmatmul.mubr.msk.f32.gmra.mrb[32].mxu1 %vm233_vm1, %v157_v9  ;;  %2530 = vmatprep.mubr.msk.f32.mxu0 %vm233_vm1, %v60_v10  ;;  %v189_v9 = vld [vmem:[%s4628_s0 + $0x518] sm:$0xff]  ;;  %v92_v10 = vld [vmem:[%s4628_s0 + $0x210] sm:$0xff] }
  0x5f   :  { %2677 = vmatprep.mubr.msk.f32.mxu1 %vm233_vm1, %v158_v11  ;;  %v190_v11 = vld [vmem:[%s4628_s0 + $0x520] sm:$0xff] }
  0x61   :  { %2531 = vmatmul.mubr.msk.f32.gmra.mrb[34].mxu0 %vm233_vm1, %v61_v12  ;;  %v93_v12 = vld [vmem:[%s4628_s0 + $0x218] sm:$0xff] }
  0x62   :  { %2678 = vmatmul.mubr.msk.f32.gmra.mrb[34].mxu1 %vm233_vm1, %v159_v13  ;;  %2533 = vmatprep.mubr.msk.f32.mxu0 %vm233_vm1, %v62_v14  ;;  %v191_v13 = vld [vmem:[%s4628_s0 + $0x528] sm:$0xff]  ;;  %v94_v14 = vld [vmem:[%s4628_s0 + $0x220] sm:$0xff] }
  0x63   :  { %2680 = vmatprep.mubr.msk.f32.mxu1 %vm233_vm1, %v160_v15  ;;  %v192_v15 = vld [vmem:[%s4628_s0 + $0x530] sm:$0xff] }
  0x65   :  { %2534 = vmatmul.mubr.msk.f32.gmra.mrb[36].mxu0 %vm233_vm1, %v63_v16  ;;  %v95_v16 = vld [vmem:[%s4628_s0 + $0x228] sm:$0xff] }
  0x66   :  { %2681 = vmatmul.mubr.msk.f32.gmra.mrb[36].mxu1 %vm233_vm1, %v161_v17  ;;  %2536 = vmatprep.mubr.msk.f32.mxu0 %vm233_vm1, %v64_v18  ;;  %v193_v17 = vld [vmem:[%s4628_s0 + $0x538] sm:$0xff]  ;;  %v96_v18 = vld [vmem:[%s4628_s0 + $0x230] sm:$0xff] }
  0x67   :  { %2683 = vmatprep.mubr.msk.f32.mxu1 %vm233_vm1, %v162_v19  ;;  %v194_v19 = vld [vmem:[%s4628_s0 + $0x540] sm:$0xff] }
  0x69   :  { %2537 = vmatmul.mubr.msk.f32.gmra.mrb[38].mxu0 %vm233_vm1, %v65_v20  ;;  %v97_v20 = vld [vmem:[%s4628_s0 + $0x238] sm:$0xff] }
  0x6a   :  { %2684 = vmatmul.mubr.msk.f32.gmra.mrb[38].mxu1 %vm233_vm1, %v163_v21  ;;  %2539 = vmatprep.mubr.msk.f32.mxu0 %vm233_vm1, %v66_v22  ;;  %v195_v21 = vld [vmem:[%s4628_s0 + $0x548] sm:$0xff]  ;;  %v98_v22 = vld [vmem:[%s4628_s0 + $0x240] sm:$0xff] }
  0x6b   :  { %2686 = vmatprep.mubr.msk.f32.mxu1 %vm233_vm1, %v164_v23  ;;  %v196_v23 = vld [vmem:[%s4628_s0 + $0x550] sm:$0xff] }
  0x6d   :  { %2540 = vmatmul.mubr.msk.f32.gmra.mrb[40].mxu0 %vm233_vm1, %v67_v24  ;;  %v99_v24 = vld [vmem:[%s4628_s0 + $0x248] sm:$0xff] }
  0x6e   :  { %2687 = vmatmul.mubr.msk.f32.gmra.mrb[40].mxu1 %vm233_vm1, %v165_v25  ;;  %2542 = vmatprep.mubr.msk.f32.mxu0 %vm233_vm1, %v68_v26  ;;  %v197_v25 = vld [vmem:[%s4628_s0 + $0x558] sm:$0xff]  ;;  %v100_v26 = vld [vmem:[%s4628_s0 + $0x250] sm:$0xff] }
  0x6f   :  { %2689 = vmatprep.mubr.msk.f32.mxu1 %vm233_vm1, %v166_v27  ;;  %v198_v27 = vld [vmem:[%s4628_s0 + $0x560] sm:$0xff] }
  0x71   :  { %2543 = vmatmul.mubr.msk.f32.gmra.mrb[42].mxu0 %vm233_vm1, %v69_v28  ;;  %v101_v28 = vld [vmem:[%s4628_s0 + $0x258] sm:$0xff] }
  0x72   :  { %2690 = vmatmul.mubr.msk.f32.gmra.mrb[42].mxu1 %vm233_vm1, %v167_v29  ;;  %2545 = vmatprep.mubr.msk.f32.mxu0 %vm233_vm1, %v70_v30  ;;  %v199_v29 = vld [vmem:[%s4628_s0 + $0x568] sm:$0xff]  ;;  %v102_v30 = vld [vmem:[%s4628_s0 + $0x260] sm:$0xff] }
  0x73   :  { %2692 = vmatprep.mubr.msk.f32.mxu1 %vm233_vm1, %v168_v31  ;;  %v200_v31 = vld [vmem:[%s4628_s0 + $0x570] sm:$0xff] }
  0x75   :  { %2546 = vmatmul.mubr.msk.f32.gmra.mrb[44].mxu0 %vm233_vm1, %v71_v32  ;;  %v103_v32 = vld [vmem:[%s4628_s0 + $0x268] sm:$0xff] }
  0x76   :  { %2693 = vmatmul.mubr.msk.f32.gmra.mrb[44].mxu1 %vm233_vm1, %v169_v33  ;;  %2548 = vmatprep.mubr.msk.f32.mxu0 %vm233_vm1, %v72_v34  ;;  %v201_v33 = vld [vmem:[%s4628_s0 + $0x578] sm:$0xff]  ;;  %v104_v34 = vld [vmem:[%s4628_s0 + $0x270] sm:$0xff] }
  0x77   :  { %2695 = vmatprep.mubr.msk.f32.mxu1 %vm233_vm1, %v170_v35  ;;  %v202_v35 = vld [vmem:[%s4628_s0 + $0x580] sm:$0xff] }
  0x79   :  { %2549 = vmatmul.mubr.msk.f32.gmra.mrb[46].mxu0 %vm233_vm1, %v73_v36  ;;  %v105_v36 = vld [vmem:[%s4628_s0 + $0x278] sm:$0xff] }
  0x7a   :  { %2696 = vmatmul.mubr.msk.f32.gmra.mrb[46].mxu1 %vm233_vm1, %v171_v37  ;;  %2551 = vmatprep.mubr.msk.f32.mxu0 %vm233_vm1, %v74_v38  ;;  %v203_v37 = vld [vmem:[%s4628_s0 + $0x588] sm:$0xff]  ;;  %v106_v38 = vld [vmem:[%s4628_s0 + $0x280] sm:$0xff] }
  0x7b   :  { %2698 = vmatprep.mubr.msk.f32.mxu1 %vm233_vm1, %v172_v39  ;;  %v204_v39 = vld [vmem:[%s4628_s0 + $0x590] sm:$0xff] }
  0x7d   :  { %2552 = vmatmul.mubr.msk.f32.gmra.mrb[48].mxu0 %vm233_vm1, %v75_v40  ;;  %v107_v40 = vld [vmem:[%s4628_s0 + $0x288] sm:$0xff] }
  0x7e   :  { %2699 = vmatmul.mubr.msk.f32.gmra.mrb[48].mxu1 %vm233_vm1, %v173_v41  ;;  %2554 = vmatprep.mubr.msk.f32.mxu0 %vm233_vm1, %v76_v42  ;;  %v205_v41 = vld [vmem:[%s4628_s0 + $0x598] sm:$0xff]  ;;  %v108_v42 = vld [vmem:[%s4628_s0 + $0x290] sm:$0xff] }
  0x7f   :  { %2701 = vmatprep.mubr.msk.f32.mxu1 %vm233_vm1, %v174_v43  ;;  %v206_v43 = vld [vmem:[%s4628_s0 + $0x5a0] sm:$0xff] }
  0x81   :  { %2555 = vmatmul.mubr.msk.f32.gmra.mrb[50].mxu0 %vm233_vm1, %v77_v44  ;;  %v109_v44 = vld [vmem:[%s4628_s0 + $0x298] sm:$0xff] }
  0x82   :  { %2702 = vmatmul.mubr.msk.f32.gmra.mrb[50].mxu1 %vm233_vm1, %v175_v45  ;;  %2557 = vmatprep.mubr.msk.f32.mxu0 %vm233_vm1, %v78_v46  ;;  %v207_v45 = vld [vmem:[%s4628_s0 + $0x5a8] sm:$0xff]  ;;  %v110_v46 = vld [vmem:[%s4628_s0 + $0x2a0] sm:$0xff] }
  0x83   :  { %2704 = vmatprep.mubr.msk.f32.mxu1 %vm233_vm1, %v176_v47  ;;  %v208_v47 = vld [vmem:[%s4628_s0 + $0x5b0] sm:$0xff] }
  0x85   :  { %2558 = vmatmul.mubr.msk.f32.gmra.mrb[52].mxu0 %vm233_vm1, %v79_v48  ;;  %v111_v48 = vld [vmem:[%s4628_s0 + $0x2a8] sm:$0xff] }
  0x86   :  { %2705 = vmatmul.mubr.msk.f32.gmra.mrb[52].mxu1 %vm233_vm1, %v177_v49  ;;  %2560 = vmatprep.mubr.msk.f32.mxu0 %vm233_vm1, %v80_v50  ;;  %v209_v49 = vld [vmem:[%s4628_s0 + $0x5b8] sm:$0xff]  ;;  %v112_v50 = vld [vmem:[%s4628_s0 + $0x2b0] sm:$0xff] }
  0x87   :  { %2707 = vmatprep.mubr.msk.f32.mxu1 %vm233_vm1, %v178_v51  ;;  %v210_v51 = vld [vmem:[%s4628_s0 + $0x5c0] sm:$0xff] }
  0x89   :  { %2561 = vmatmul.mubr.msk.f32.gmra.mrb[54].mxu0 %vm233_vm1, %v81_v52  ;;  %v113_v52 = vld [vmem:[%s4628_s0 + $0x2b8] sm:$0xff] }
  0x8a   :  { %2708 = vmatmul.mubr.msk.f32.gmra.mrb[54].mxu1 %vm233_vm1, %v179_v53  ;;  %2563 = vmatprep.mubr.msk.f32.mxu0 %vm233_vm1, %v82_v54  ;;  %v211_v53 = vld [vmem:[%s4628_s0 + $0x5c8] sm:$0xff]  ;;  %v114_v54 = vld [vmem:[%s4628_s0 + $0x2c0] sm:$0xff] }
  0x8b   :  { %2710 = vmatprep.mubr.msk.f32.mxu1 %vm233_vm1, %v180_v55  ;;  %v212_v55 = vld [vmem:[%s4628_s0 + $0x5d0] sm:$0xff] }
  0x8d   :  { %2564 = vmatmul.mubr.msk.f32.gmra.mrb[56].mxu0 %vm233_vm1, %v83_v56  ;;  %v115_v56 = vld [vmem:[%s4628_s0 + $0x2c8] sm:$0xff] }
  0x8e   :  { %2711 = vmatmul.mubr.msk.f32.gmra.mrb[56].mxu1 %vm233_vm1, %v181_v57  ;;  %2566 = vmatprep.mubr.msk.f32.mxu0 %vm233_vm1, %v84_v58  ;;  %v213_v57 = vld [vmem:[%s4628_s0 + $0x5d8] sm:$0xff]  ;;  %v116_v58 = vld [vmem:[%s4628_s0 + $0x2d0] sm:$0xff] }
  0x8f   :  { %2713 = vmatprep.mubr.msk.f32.mxu1 %vm233_vm1, %v182_v59  ;;  %v214_v59 = vld [vmem:[%s4628_s0 + $0x5e0] sm:$0xff] }
  0x91   :  { %2567 = vmatmul.mubr.msk.f32.gmra.mrb[58].mxu0 %vm233_vm1, %v85_v60  ;;  %v117_v60 = vld [vmem:[%s4628_s0 + $0x2d8] sm:$0xff] }
  0x92   :  { %2714 = vmatmul.mubr.msk.f32.gmra.mrb[58].mxu1 %vm233_vm1, %v183_v61  ;;  %2569 = vmatprep.mubr.msk.f32.mxu0 %vm233_vm1, %v86_v62  ;;  %v215_v61 = vld [vmem:[%s4628_s0 + $0x5e8] sm:$0xff]  ;;  %v118_v62 = vld [vmem:[%s4628_s0 + $0x2e0] sm:$0xff] }
  0x93   :  { %2716 = vmatprep.mubr.msk.f32.mxu1 %vm233_vm1, %v184_v63  ;;  %v216_v63 = vld [vmem:[%s4628_s0 + $0x5f0] sm:$0xff] }
  0x95   :  { %2570 = vmatmul.mubr.msk.f32.gmra.mrb[60].mxu0 %vm233_vm1, %v87_v0  ;;  %v119_v0 = vld [vmem:[%s4628_s0 + $0x2e8] sm:$0xff] }
  0x96   :  { %2717 = vmatmul.mubr.msk.f32.gmra.mrb[60].mxu1 %vm233_vm1, %v185_v1  ;;  %2572 = vmatprep.mubr.msk.f32.mxu0 %vm233_vm1, %v88_v2  ;;  %v217_v1 = vld [vmem:[%s4628_s0 + $0x5f8] sm:$0xff]  ;;  %v120_v2 = vld [vmem:[%s4628_s0 + $0x2f0] sm:$0xff] }
  0x97   :  { %2719 = vmatprep.mubr.msk.f32.mxu1 %vm233_vm1, %v186_v3  ;;  %v218_v3 = vld [vmem:[%s4628_s0 + $0x600] sm:$0xff] }
  0x99   :  { %2573 = vmatmul.mubr.msk.f32.gmra.mrb[62].mxu0 %vm233_vm1, %v89_v4  ;;  %v121_v4 = vld [vmem:[%s4628_s0 + $0x2f8] sm:$0xff] }
  0x9a   :  { %2720 = vmatmul.mubr.msk.f32.gmra.mrb[62].mxu1 %vm233_vm1, %v187_v5  ;;  %2575 = vmatprep.mubr.msk.f32.mxu0 %vm233_vm1, %v90_v6  ;;  %v219_v5 = vld [vmem:[%s4628_s0 + $0x608] sm:$0xff]  ;;  %v122_v6 = vld [vmem:[%s4628_s0 + $0x300] sm:$0xff] }
  0x9b   :  { %2722 = vmatprep.mubr.msk.f32.mxu1 %vm233_vm1, %v188_v7  ;;  %v220_v7 = vld [vmem:[%s4628_s0 + $0x610] sm:$0xff] }
  0x9d   :  { %2576 = vmatmul.mubr.msk.f32.gmra.mrb[64].mxu0 %vm233_vm1, %v91_v8  ;;  %v123_v8 = vld [vmem:[%s4628_s0 + $0x308] sm:$0xff] }
  0x9e   :  { %2723 = vmatmul.mubr.msk.f32.gmra.mrb[64].mxu1 %vm233_vm1, %v189_v9  ;;  %2578 = vmatprep.mubr.msk.f32.mxu0 %vm233_vm1, %v92_v10  ;;  %v221_v9 = vld [vmem:[%s4628_s0 + $0x618] sm:$0xff]  ;;  %v3644_v10 = vld [vmem:[#allocation2] ss:$0 sm:$0xff] }
  0x9f   :  { %2725 = vmatprep.mubr.msk.f32.mxu1 %vm233_vm1, %v190_v11 }
  0xa1   :  { %2579 = vmatmul.mubr.msk.f32.gmra.mrb[66].mxu0 %vm233_vm1, %v93_v12 }
  0xa2   :  { %2726 = vmatmul.mubr.msk.f32.gmra.mrb[66].mxu1 %vm233_vm1, %v191_v13  ;;  %2581 = vmatprep.mubr.msk.f32.mxu0 %vm233_vm1, %v94_v14 }
  0xa3   :  { %2728 = vmatprep.mubr.msk.f32.mxu1 %vm233_vm1, %v192_v15 }
  0xa5   :  { %2582 = vmatmul.mubr.msk.f32.gmra.mrb[68].mxu0 %vm233_vm1, %v95_v16 }
  0xa6   :  { %2729 = vmatmul.mubr.msk.f32.gmra.mrb[68].mxu1 %vm233_vm1, %v193_v17  ;;  %2584 = vmatprep.mubr.msk.f32.mxu0 %vm233_vm1, %v96_v18 }
  0xa7   :  { %2731 = vmatprep.mubr.msk.f32.mxu1 %vm233_vm1, %v194_v19 }
  0xa9   :  { %2585 = vmatmul.mubr.msk.f32.gmra.mrb[70].mxu0 %vm233_vm1, %v97_v20 }
  0xaa   :  { %2732 = vmatmul.mubr.msk.f32.gmra.mrb[70].mxu1 %vm233_vm1, %v195_v21  ;;  %2587 = vmatprep.mubr.msk.f32.mxu0 %vm233_vm1, %v98_v22 }
  0xab   :  { %2734 = vmatprep.mubr.msk.f32.mxu1 %vm233_vm1, %v196_v23 }
  0xad   :  { %2588 = vmatmul.mubr.msk.f32.gmra.mrb[72].mxu0 %vm233_vm1, %v99_v24 }
  0xae   :  { %2735 = vmatmul.mubr.msk.f32.gmra.mrb[72].mxu1 %vm233_vm1, %v197_v25  ;;  %2590 = vmatprep.mubr.msk.f32.mxu0 %vm233_vm1, %v100_v26 }
  0xaf   :  { %2737 = vmatprep.mubr.msk.f32.mxu1 %vm233_vm1, %v198_v27 }
  0xb1   :  { %2591 = vmatmul.mubr.msk.f32.gmra.mrb[74].mxu0 %vm233_vm1, %v101_v28 }
  0xb2   :  { %2738 = vmatmul.mubr.msk.f32.gmra.mrb[74].mxu1 %vm233_vm1, %v199_v29  ;;  %2593 = vmatprep.mubr.msk.f32.mxu0 %vm233_vm1, %v102_v30 }
  0xb3   :  { %2740 = vmatprep.mubr.msk.f32.mxu1 %vm233_vm1, %v200_v31 }
  0xb5   :  { %2594 = vmatmul.mubr.msk.f32.gmra.mrb[76].mxu0 %vm233_vm1, %v103_v32 }
  0xb6   :  { %2741 = vmatmul.mubr.msk.f32.gmra.mrb[76].mxu1 %vm233_vm1, %v201_v33  ;;  %2596 = vmatprep.mubr.msk.f32.mxu0 %vm233_vm1, %v104_v34 }
  0xb7   :  { %2743 = vmatprep.mubr.msk.f32.mxu1 %vm233_vm1, %v202_v35 }
  0xb9   :  { %2597 = vmatmul.mubr.msk.f32.gmra.mrb[78].mxu0 %vm233_vm1, %v105_v36 }
  0xba   :  { %2744 = vmatmul.mubr.msk.f32.gmra.mrb[78].mxu1 %vm233_vm1, %v203_v37  ;;  %2599 = vmatprep.mubr.msk.f32.mxu0 %vm233_vm1, %v106_v38 }
  0xbb   :  { %2746 = vmatprep.mubr.msk.f32.mxu1 %vm233_vm1, %v204_v39 }
  0xbd   :  { %2600 = vmatmul.mubr.msk.f32.gmra.mrb[80].mxu0 %vm233_vm1, %v107_v40 }
  0xbe   :  { %2747 = vmatmul.mubr.msk.f32.gmra.mrb[80].mxu1 %vm233_vm1, %v205_v41  ;;  %2602 = vmatprep.mubr.msk.f32.mxu0 %vm233_vm1, %v108_v42 }
  0xbf   :  { %2749 = vmatprep.mubr.msk.f32.mxu1 %vm233_vm1, %v206_v43 }
  0xc1   :  { %2603 = vmatmul.mubr.msk.f32.gmra.mrb[82].mxu0 %vm233_vm1, %v109_v44 }
  0xc2   :  { %2750 = vmatmul.mubr.msk.f32.gmra.mrb[82].mxu1 %vm233_vm1, %v207_v45  ;;  %2605 = vmatprep.mubr.msk.f32.mxu0 %vm233_vm1, %v110_v46 }
  0xc3   :  { %2752 = vmatprep.mubr.msk.f32.mxu1 %vm233_vm1, %v208_v47 }
  0xc5   :  { %2606 = vmatmul.mubr.msk.f32.gmra.mrb[84].mxu0 %vm233_vm1, %v111_v48 }
  0xc6   :  { %2753 = vmatmul.mubr.msk.f32.gmra.mrb[84].mxu1 %vm233_vm1, %v209_v49  ;;  %2608 = vmatprep.mubr.msk.f32.mxu0 %vm233_vm1, %v112_v50 }
  0xc7   :  { %2755 = vmatprep.mubr.msk.f32.mxu1 %vm233_vm1, %v210_v51 }
  0xc9   :  { %2609 = vmatmul.mubr.msk.f32.gmra.mrb[86].mxu0 %vm233_vm1, %v113_v52 }
  0xca   :  { %2756 = vmatmul.mubr.msk.f32.gmra.mrb[86].mxu1 %vm233_vm1, %v211_v53  ;;  %2611 = vmatprep.mubr.msk.f32.mxu0 %vm233_vm1, %v114_v54 }
  0xcb   :  { %2758 = vmatprep.mubr.msk.f32.mxu1 %vm233_vm1, %v212_v55 }
  0xcd   :  { %2612 = vmatmul.mubr.msk.f32.gmra.mrb[88].mxu0 %vm233_vm1, %v115_v56 }
  0xce   :  { %2759 = vmatmul.mubr.msk.f32.gmra.mrb[88].mxu1 %vm233_vm1, %v213_v57  ;;  %2614 = vmatprep.mubr.msk.f32.mxu0 %vm233_vm1, %v116_v58 }
  0xcf   :  { %2761 = vmatprep.mubr.msk.f32.mxu1 %vm233_vm1, %v214_v59 }
  0xd1   :  { %2615 = vmatmul.mubr.msk.f32.gmra.mrb[90].mxu0 %vm233_vm1, %v117_v60 }
  0xd2   :  { %2762 = vmatmul.mubr.msk.f32.gmra.mrb[90].mxu1 %vm233_vm1, %v215_v61  ;;  %2617 = vmatprep.mubr.msk.f32.mxu0 %vm233_vm1, %v118_v62 }
  0xd3   :  { %2764 = vmatprep.mubr.msk.f32.mxu1 %vm233_vm1, %v216_v63 }
  0xd5   :  { %2618 = vmatmul.mubr.msk.f32.gmra.mrb[92].mxu0 %vm233_vm1, %v119_v0 }
  0xd6   :  { %2765 = vmatmul.mubr.msk.f32.gmra.mrb[92].mxu1 %vm233_vm1, %v217_v1  ;;  %2620 = vmatprep.mubr.msk.f32.mxu0 %vm233_vm1, %v120_v2 }
  0xd7   :  { %2767 = vmatprep.mubr.msk.f32.mxu1 %vm233_vm1, %v218_v3 }
  0xd9   :  { %2621 = vmatmul.mubr.msk.f32.gmra.mrb[94].mxu0 %vm233_vm1, %v121_v4 }
  0xda   :  { %2768 = vmatmul.mubr.msk.f32.gmra.mrb[94].mxu1 %vm233_vm1, %v219_v5  ;;  %2623 = vmatprep.mubr.msk.f32.mxu0 %vm233_vm1, %v122_v6 }
  0xdb   :  { %2770 = vmatprep.mubr.msk.f32.mxu1 %vm233_vm1, %v220_v7 }
  0xdd   :  { %2624 = vmatmul.mubr.msk.f32.gmra.mrb[96].mxu0 %vm233_vm1, %v123_v8 }
  0xde   :  { %2771 = vmatmul.mubr.msk.f32.gmra.mrb[96].mxu1 %vm233_vm1, %v221_v9 }
  0xf0   :  { %v2481_v11 = vpop.f32.mrb[0].mxu0 }
  0xf1   :  { %v2628_v12 = vpop.f32.mrb[0].mxu1  ;;  %v898_v13 = vadd.f32 %v2481_v11, %v3644_v10  ;;  %v892_v15 = vpop.f32.mrb[1].mxu0 }
  0xf2   :  { %v1388_v14 = vadd.f32 %v2628_v12, %v3644_v10  ;;  %v1382_v16 = vpop.f32.mrb[1].mxu1  ;;  %v893_v17 = vadd.f32 %v3644_v10, %v892_v15 }
  0xf3   :  { %v1383_v18 = vadd.f32 %v3644_v10, %v1382_v16  ;;  %1873 = vst.msk [vmem:[%s4631_s3 + $0x8] sm:$0xff] %vm1871_vm4, %v898_v13 }
  0xf4   :  { %1971 = vst.msk [vmem:[%s4631_s3 + $0x318] sm:$0xff] %vm1871_vm4, %v1388_v14  ;;  %1872 = vst.msk [vmem:[%s4631_s3] sm:$0xff] %vm1871_vm4, %v893_v17  ;;  %v2484_v19 = vpop.f32.mrb[2].mxu0 }
  0xf5   :  { %1970 = vst.msk [vmem:[%s4631_s3 + $0x310] sm:$0xff] %vm1871_vm4, %v1383_v18  ;;  %v2631_v20 = vpop.f32.mrb[2].mxu1  ;;  %v908_v21 = vadd.f32 %v2484_v19, %v3644_v10  ;;  %v902_v23 = vpop.f32.mrb[3].mxu0 }
  0xf6   :  { %v1398_v22 = vadd.f32 %v2631_v20, %v3644_v10  ;;  %v1392_v24 = vpop.f32.mrb[3].mxu1  ;;  %v903_v25 = vadd.f32 %v3644_v10, %v902_v23 }
  0xf7   :  { %v1393_v26 = vadd.f32 %v3644_v10, %v1392_v24  ;;  %1875 = vst.msk [vmem:[%s4631_s3 + $0x18] sm:$0xff] %vm1871_vm4, %v908_v21 }
  0xf8   :  { %1973 = vst.msk [vmem:[%s4631_s3 + $0x328] sm:$0xff] %vm1871_vm4, %v1398_v22  ;;  %1874 = vst.msk [vmem:[%s4631_s3 + $0x10] sm:$0xff] %vm1871_vm4, %v903_v25  ;;  %v2487_v27 = vpop.f32.mrb[4].mxu0 }
  0xf9   :  { %1972 = vst.msk [vmem:[%s4631_s3 + $0x320] sm:$0xff] %vm1871_vm4, %v1393_v26  ;;  %v2634_v28 = vpop.f32.mrb[4].mxu1  ;;  %v918_v29 = vadd.f32 %v2487_v27, %v3644_v10  ;;  %v912_v31 = vpop.f32.mrb[5].mxu0 }
  0xfa   :  { %v1408_v30 = vadd.f32 %v2634_v28, %v3644_v10  ;;  %v1402_v32 = vpop.f32.mrb[5].mxu1  ;;  %v913_v33 = vadd.f32 %v3644_v10, %v912_v31 }
  0xfb   :  { %v1403_v34 = vadd.f32 %v3644_v10, %v1402_v32  ;;  %1877 = vst.msk [vmem:[%s4631_s3 + $0x28] sm:$0xff] %vm1871_vm4, %v918_v29 }
  0xfc   :  { %1975 = vst.msk [vmem:[%s4631_s3 + $0x338] sm:$0xff] %vm1871_vm4, %v1408_v30  ;;  %1876 = vst.msk [vmem:[%s4631_s3 + $0x20] sm:$0xff] %vm1871_vm4, %v913_v33  ;;  %v2490_v35 = vpop.f32.mrb[6].mxu0 }
  0xfd   :  { %1974 = vst.msk [vmem:[%s4631_s3 + $0x330] sm:$0xff] %vm1871_vm4, %v1403_v34  ;;  %v2637_v36 = vpop.f32.mrb[6].mxu1  ;;  %v928_v37 = vadd.f32 %v2490_v35, %v3644_v10  ;;  %v922_v39 = vpop.f32.mrb[7].mxu0 }
  0xfe   :  { %v1418_v38 = vadd.f32 %v2637_v36, %v3644_v10  ;;  %v1412_v40 = vpop.f32.mrb[7].mxu1  ;;  %v923_v41 = vadd.f32 %v3644_v10, %v922_v39 }
  0xff   :  { %v1413_v42 = vadd.f32 %v3644_v10, %v1412_v40  ;;  %1879 = vst.msk [vmem:[%s4631_s3 + $0x38] sm:$0xff] %vm1871_vm4, %v928_v37 }
 0x100   :  { %1977 = vst.msk [vmem:[%s4631_s3 + $0x348] sm:$0xff] %vm1871_vm4, %v1418_v38  ;;  %1878 = vst.msk [vmem:[%s4631_s3 + $0x30] sm:$0xff] %vm1871_vm4, %v923_v41  ;;  %v2493_v43 = vpop.f32.mrb[8].mxu0 }
 0x101   :  { %1976 = vst.msk [vmem:[%s4631_s3 + $0x340] sm:$0xff] %vm1871_vm4, %v1413_v42  ;;  %v2640_v44 = vpop.f32.mrb[8].mxu1  ;;  %v938_v45 = vadd.f32 %v2493_v43, %v3644_v10  ;;  %v932_v47 = vpop.f32.mrb[9].mxu0 }
 0x102   :  { %v1428_v46 = vadd.f32 %v2640_v44, %v3644_v10  ;;  %v1422_v48 = vpop.f32.mrb[9].mxu1  ;;  %v933_v49 = vadd.f32 %v3644_v10, %v932_v47 }
 0x103   :  { %v1423_v50 = vadd.f32 %v3644_v10, %v1422_v48  ;;  %1881 = vst.msk [vmem:[%s4631_s3 + $0x48] sm:$0xff] %vm1871_vm4, %v938_v45 }
 0x104   :  { %1979 = vst.msk [vmem:[%s4631_s3 + $0x358] sm:$0xff] %vm1871_vm4, %v1428_v46  ;;  %1880 = vst.msk [vmem:[%s4631_s3 + $0x40] sm:$0xff] %vm1871_vm4, %v933_v49  ;;  %v2496_v51 = vpop.f32.mrb[10].mxu0 }
 0x105   :  { %1978 = vst.msk [vmem:[%s4631_s3 + $0x350] sm:$0xff] %vm1871_vm4, %v1423_v50  ;;  %v2643_v52 = vpop.f32.mrb[10].mxu1  ;;  %v948_v53 = vadd.f32 %v2496_v51, %v3644_v10  ;;  %v942_v55 = vpop.f32.mrb[11].mxu0 }
 0x106   :  { %v1438_v54 = vadd.f32 %v2643_v52, %v3644_v10  ;;  %v1432_v56 = vpop.f32.mrb[11].mxu1  ;;  %v943_v57 = vadd.f32 %v3644_v10, %v942_v55 }
 0x107   :  { %v1433_v58 = vadd.f32 %v3644_v10, %v1432_v56  ;;  %1883 = vst.msk [vmem:[%s4631_s3 + $0x58] sm:$0xff] %vm1871_vm4, %v948_v53 }
 0x108   :  { %1981 = vst.msk [vmem:[%s4631_s3 + $0x368] sm:$0xff] %vm1871_vm4, %v1438_v54  ;;  %1882 = vst.msk [vmem:[%s4631_s3 + $0x50] sm:$0xff] %vm1871_vm4, %v943_v57  ;;  %v2499_v59 = vpop.f32.mrb[12].mxu0 }
 0x109   :  { %1980 = vst.msk [vmem:[%s4631_s3 + $0x360] sm:$0xff] %vm1871_vm4, %v1433_v58  ;;  %v2646_v60 = vpop.f32.mrb[12].mxu1  ;;  %v958_v61 = vadd.f32 %v2499_v59, %v3644_v10  ;;  %v952_v63 = vpop.f32.mrb[13].mxu0 }
 0x10a   :  { %v1448_v62 = vadd.f32 %v2646_v60, %v3644_v10  ;;  %v1442_v0 = vpop.f32.mrb[13].mxu1  ;;  %v953_v1 = vadd.f32 %v3644_v10, %v952_v63 }
 0x10b   :  { %v1443_v2 = vadd.f32 %v3644_v10, %v1442_v0  ;;  %1885 = vst.msk [vmem:[%s4631_s3 + $0x68] sm:$0xff] %vm1871_vm4, %v958_v61 }
 0x10c   :  { %1983 = vst.msk [vmem:[%s4631_s3 + $0x378] sm:$0xff] %vm1871_vm4, %v1448_v62  ;;  %1884 = vst.msk [vmem:[%s4631_s3 + $0x60] sm:$0xff] %vm1871_vm4, %v953_v1  ;;  %v2502_v3 = vpop.f32.mrb[14].mxu0 }
 0x10d   :  { %1982 = vst.msk [vmem:[%s4631_s3 + $0x370] sm:$0xff] %vm1871_vm4, %v1443_v2  ;;  %v2649_v4 = vpop.f32.mrb[14].mxu1  ;;  %v968_v5 = vadd.f32 %v2502_v3, %v3644_v10  ;;  %v962_v7 = vpop.f32.mrb[15].mxu0 }
 0x10e   :  { %v1458_v6 = vadd.f32 %v2649_v4, %v3644_v10  ;;  %v1452_v8 = vpop.f32.mrb[15].mxu1  ;;  %v963_v9 = vadd.f32 %v3644_v10, %v962_v7 }
 0x10f   :  { %v1453_v11 = vadd.f32 %v3644_v10, %v1452_v8  ;;  %1887 = vst.msk [vmem:[%s4631_s3 + $0x78] sm:$0xff] %vm1871_vm4, %v968_v5 }
 0x110   :  { %1985 = vst.msk [vmem:[%s4631_s3 + $0x388] sm:$0xff] %vm1871_vm4, %v1458_v6  ;;  %1886 = vst.msk [vmem:[%s4631_s3 + $0x70] sm:$0xff] %vm1871_vm4, %v963_v9  ;;  %v2505_v12 = vpop.f32.mrb[16].mxu0 }
 0x111   :  { %1984 = vst.msk [vmem:[%s4631_s3 + $0x380] sm:$0xff] %vm1871_vm4, %v1453_v11  ;;  %v2652_v13 = vpop.f32.mrb[16].mxu1  ;;  %v978_v14 = vadd.f32 %v2505_v12, %v3644_v10  ;;  %v972_v16 = vpop.f32.mrb[17].mxu0 }
 0x112   :  { %v1468_v15 = vadd.f32 %v2652_v13, %v3644_v10  ;;  %v1462_v17 = vpop.f32.mrb[17].mxu1  ;;  %v973_v18 = vadd.f32 %v3644_v10, %v972_v16 }
 0x113   :  { %v1463_v19 = vadd.f32 %v3644_v10, %v1462_v17  ;;  %1889 = vst.msk [vmem:[%s4631_s3 + $0x88] sm:$0xff] %vm1871_vm4, %v978_v14 }
 0x114   :  { %1987 = vst.msk [vmem:[%s4631_s3 + $0x398] sm:$0xff] %vm1871_vm4, %v1468_v15  ;;  %1888 = vst.msk [vmem:[%s4631_s3 + $0x80] sm:$0xff] %vm1871_vm4, %v973_v18  ;;  %v2508_v20 = vpop.f32.mrb[18].mxu0 }
 0x115   :  { %1986 = vst.msk [vmem:[%s4631_s3 + $0x390] sm:$0xff] %vm1871_vm4, %v1463_v19  ;;  %v2655_v21 = vpop.f32.mrb[18].mxu1  ;;  %v988_v22 = vadd.f32 %v2508_v20, %v3644_v10  ;;  %v982_v24 = vpop.f32.mrb[19].mxu0 }
 0x116   :  { %v1478_v23 = vadd.f32 %v2655_v21, %v3644_v10  ;;  %v1472_v25 = vpop.f32.mrb[19].mxu1  ;;  %v983_v26 = vadd.f32 %v3644_v10, %v982_v24 }
 0x117   :  { %v1473_v27 = vadd.f32 %v3644_v10, %v1472_v25  ;;  %1891 = vst.msk [vmem:[%s4631_s3 + $0x98] sm:$0xff] %vm1871_vm4, %v988_v22 }
 0x118   :  { %1989 = vst.msk [vmem:[%s4631_s3 + $0x3a8] sm:$0xff] %vm1871_vm4, %v1478_v23  ;;  %1890 = vst.msk [vmem:[%s4631_s3 + $0x90] sm:$0xff] %vm1871_vm4, %v983_v26  ;;  %v2511_v28 = vpop.f32.mrb[20].mxu0 }
 0x119   :  { %1988 = vst.msk [vmem:[%s4631_s3 + $0x3a0] sm:$0xff] %vm1871_vm4, %v1473_v27  ;;  %v2658_v29 = vpop.f32.mrb[20].mxu1  ;;  %v998_v30 = vadd.f32 %v2511_v28, %v3644_v10  ;;  %v992_v32 = vpop.f32.mrb[21].mxu0 }
 0x11a   :  { %v1488_v31 = vadd.f32 %v2658_v29, %v3644_v10  ;;  %v1482_v33 = vpop.f32.mrb[21].mxu1  ;;  %v993_v34 = vadd.f32 %v3644_v10, %v992_v32 }
 0x11b   :  { %v1483_v35 = vadd.f32 %v3644_v10, %v1482_v33  ;;  %1893 = vst.msk [vmem:[%s4631_s3 + $0xa8] sm:$0xff] %vm1871_vm4, %v998_v30 }
 0x11c   :  { %1991 = vst.msk [vmem:[%s4631_s3 + $0x3b8] sm:$0xff] %vm1871_vm4, %v1488_v31  ;;  %1892 = vst.msk [vmem:[%s4631_s3 + $0xa0] sm:$0xff] %vm1871_vm4, %v993_v34  ;;  %v2514_v36 = vpop.f32.mrb[22].mxu0 }
 0x11d   :  { %1990 = vst.msk [vmem:[%s4631_s3 + $0x3b0] sm:$0xff] %vm1871_vm4, %v1483_v35  ;;  %v2661_v37 = vpop.f32.mrb[22].mxu1  ;;  %v1008_v38 = vadd.f32 %v2514_v36, %v3644_v10  ;;  %v1002_v40 = vpop.f32.mrb[23].mxu0 }
 0x11e   :  { %v1498_v39 = vadd.f32 %v2661_v37, %v3644_v10  ;;  %v1492_v41 = vpop.f32.mrb[23].mxu1  ;;  %v1003_v42 = vadd.f32 %v3644_v10, %v1002_v40 }
 0x11f   :  { %v1493_v43 = vadd.f32 %v3644_v10, %v1492_v41  ;;  %1895 = vst.msk [vmem:[%s4631_s3 + $0xb8] sm:$0xff] %vm1871_vm4, %v1008_v38 }
 0x120   :  { %1993 = vst.msk [vmem:[%s4631_s3 + $0x3c8] sm:$0xff] %vm1871_vm4, %v1498_v39  ;;  %1894 = vst.msk [vmem:[%s4631_s3 + $0xb0] sm:$0xff] %vm1871_vm4, %v1003_v42  ;;  %v2517_v44 = vpop.f32.mrb[24].mxu0 }
 0x121   :  { %1992 = vst.msk [vmem:[%s4631_s3 + $0x3c0] sm:$0xff] %vm1871_vm4, %v1493_v43  ;;  %v2664_v45 = vpop.f32.mrb[24].mxu1  ;;  %v1018_v46 = vadd.f32 %v2517_v44, %v3644_v10  ;;  %v1012_v48 = vpop.f32.mrb[25].mxu0 }
 0x122   :  { %v1508_v47 = vadd.f32 %v2664_v45, %v3644_v10  ;;  %v1502_v49 = vpop.f32.mrb[25].mxu1  ;;  %v1013_v50 = vadd.f32 %v3644_v10, %v1012_v48 }
 0x123   :  { %v1503_v51 = vadd.f32 %v3644_v10, %v1502_v49  ;;  %1897 = vst.msk [vmem:[%s4631_s3 + $0xc8] sm:$0xff] %vm1871_vm4, %v1018_v46 }
 0x124   :  { %1995 = vst.msk [vmem:[%s4631_s3 + $0x3d8] sm:$0xff] %vm1871_vm4, %v1508_v47  ;;  %1896 = vst.msk [vmem:[%s4631_s3 + $0xc0] sm:$0xff] %vm1871_vm4, %v1013_v50  ;;  %v2520_v52 = vpop.f32.mrb[26].mxu0 }
 0x125   :  { %1994 = vst.msk [vmem:[%s4631_s3 + $0x3d0] sm:$0xff] %vm1871_vm4, %v1503_v51  ;;  %v2667_v53 = vpop.f32.mrb[26].mxu1  ;;  %v1028_v54 = vadd.f32 %v2520_v52, %v3644_v10  ;;  %v1022_v56 = vpop.f32.mrb[27].mxu0 }
 0x126   :  { %v1518_v55 = vadd.f32 %v2667_v53, %v3644_v10  ;;  %v1512_v57 = vpop.f32.mrb[27].mxu1  ;;  %v1023_v58 = vadd.f32 %v3644_v10, %v1022_v56 }
 0x127   :  { %v1513_v59 = vadd.f32 %v3644_v10, %v1512_v57  ;;  %1899 = vst.msk [vmem:[%s4631_s3 + $0xd8] sm:$0xff] %vm1871_vm4, %v1028_v54 }
 0x128   :  { %1997 = vst.msk [vmem:[%s4631_s3 + $0x3e8] sm:$0xff] %vm1871_vm4, %v1518_v55  ;;  %1898 = vst.msk [vmem:[%s4631_s3 + $0xd0] sm:$0xff] %vm1871_vm4, %v1023_v58  ;;  %v2523_v60 = vpop.f32.mrb[28].mxu0 }
 0x129   :  { %1996 = vst.msk [vmem:[%s4631_s3 + $0x3e0] sm:$0xff] %vm1871_vm4, %v1513_v59  ;;  %v2670_v61 = vpop.f32.mrb[28].mxu1  ;;  %v1038_v62 = vadd.f32 %v2523_v60, %v3644_v10  ;;  %v1032_v0 = vpop.f32.mrb[29].mxu0 }
 0x12a   :  { %v1528_v63 = vadd.f32 %v2670_v61, %v3644_v10  ;;  %v1522_v1 = vpop.f32.mrb[29].mxu1  ;;  %v1033_v2 = vadd.f32 %v3644_v10, %v1032_v0 }
 0x12b   :  { %v1523_v3 = vadd.f32 %v3644_v10, %v1522_v1  ;;  %1901 = vst.msk [vmem:[%s4631_s3 + $0xe8] sm:$0xff] %vm1871_vm4, %v1038_v62 }
 0x12c   :  { %1999 = vst.msk [vmem:[%s4631_s3 + $0x3f8] sm:$0xff] %vm1871_vm4, %v1528_v63  ;;  %1900 = vst.msk [vmem:[%s4631_s3 + $0xe0] sm:$0xff] %vm1871_vm4, %v1033_v2  ;;  %v2526_v4 = vpop.f32.mrb[30].mxu0 }
 0x12d   :  { %1998 = vst.msk [vmem:[%s4631_s3 + $0x3f0] sm:$0xff] %vm1871_vm4, %v1523_v3  ;;  %v2673_v5 = vpop.f32.mrb[30].mxu1  ;;  %v1048_v6 = vadd.f32 %v2526_v4, %v3644_v10  ;;  %v1042_v8 = vpop.f32.mrb[31].mxu0 }
 0x12e   :  { %v1538_v7 = vadd.f32 %v2673_v5, %v3644_v10  ;;  %v1532_v9 = vpop.f32.mrb[31].mxu1  ;;  %v1043_v11 = vadd.f32 %v3644_v10, %v1042_v8 }
 0x12f   :  { %v1533_v12 = vadd.f32 %v3644_v10, %v1532_v9  ;;  %1903 = vst.msk [vmem:[%s4631_s3 + $0xf8] sm:$0xff] %vm1871_vm4, %v1048_v6 }
 0x130   :  { %2001 = vst.msk [vmem:[%s4631_s3 + $0x408] sm:$0xff] %vm1871_vm4, %v1538_v7  ;;  %1902 = vst.msk [vmem:[%s4631_s3 + $0xf0] sm:$0xff] %vm1871_vm4, %v1043_v11  ;;  %v2529_v13 = vpop.f32.mrb[32].mxu0 }
 0x131   :  { %2000 = vst.msk [vmem:[%s4631_s3 + $0x400] sm:$0xff] %vm1871_vm4, %v1533_v12  ;;  %v2676_v14 = vpop.f32.mrb[32].mxu1  ;;  %v1058_v15 = vadd.f32 %v2529_v13, %v3644_v10  ;;  %v1052_v17 = vpop.f32.mrb[33].mxu0 }
 0x132   :  { %v1548_v16 = vadd.f32 %v2676_v14, %v3644_v10  ;;  %v1542_v18 = vpop.f32.mrb[33].mxu1  ;;  %v1053_v19 = vadd.f32 %v3644_v10, %v1052_v17 }
 0x133   :  { %v1543_v20 = vadd.f32 %v3644_v10, %v1542_v18  ;;  %1905 = vst.msk [vmem:[%s4631_s3 + $0x108] sm:$0xff] %vm1871_vm4, %v1058_v15 }
 0x134   :  { %2003 = vst.msk [vmem:[%s4631_s3 + $0x418] sm:$0xff] %vm1871_vm4, %v1548_v16  ;;  %1904 = vst.msk [vmem:[%s4631_s3 + $0x100] sm:$0xff] %vm1871_vm4, %v1053_v19  ;;  %v2532_v21 = vpop.f32.mrb[34].mxu0 }
 0x135   :  { %2002 = vst.msk [vmem:[%s4631_s3 + $0x410] sm:$0xff] %vm1871_vm4, %v1543_v20  ;;  %v2679_v22 = vpop.f32.mrb[34].mxu1  ;;  %v1068_v23 = vadd.f32 %v2532_v21, %v3644_v10  ;;  %v1062_v25 = vpop.f32.mrb[35].mxu0 }
 0x136   :  { %v1558_v24 = vadd.f32 %v2679_v22, %v3644_v10  ;;  %v1552_v26 = vpop.f32.mrb[35].mxu1  ;;  %v1063_v27 = vadd.f32 %v3644_v10, %v1062_v25 }
 0x137   :  { %v1553_v28 = vadd.f32 %v3644_v10, %v1552_v26  ;;  %1907 = vst.msk [vmem:[%s4631_s3 + $0x118] sm:$0xff] %vm1871_vm4, %v1068_v23 }
 0x138   :  { %2005 = vst.msk [vmem:[%s4631_s3 + $0x428] sm:$0xff] %vm1871_vm4, %v1558_v24  ;;  %1906 = vst.msk [vmem:[%s4631_s3 + $0x110] sm:$0xff] %vm1871_vm4, %v1063_v27  ;;  %v2535_v29 = vpop.f32.mrb[36].mxu0 }
 0x139   :  { %2004 = vst.msk [vmem:[%s4631_s3 + $0x420] sm:$0xff] %vm1871_vm4, %v1553_v28  ;;  %v2682_v30 = vpop.f32.mrb[36].mxu1  ;;  %v1078_v31 = vadd.f32 %v2535_v29, %v3644_v10  ;;  %v1072_v33 = vpop.f32.mrb[37].mxu0 }
 0x13a   :  { %v1568_v32 = vadd.f32 %v2682_v30, %v3644_v10  ;;  %v1562_v34 = vpop.f32.mrb[37].mxu1  ;;  %v1073_v35 = vadd.f32 %v3644_v10, %v1072_v33 }
 0x13b   :  { %v1563_v36 = vadd.f32 %v3644_v10, %v1562_v34  ;;  %1909 = vst.msk [vmem:[%s4631_s3 + $0x128] sm:$0xff] %vm1871_vm4, %v1078_v31 }
 0x13c   :  { %2007 = vst.msk [vmem:[%s4631_s3 + $0x438] sm:$0xff] %vm1871_vm4, %v1568_v32  ;;  %1908 = vst.msk [vmem:[%s4631_s3 + $0x120] sm:$0xff] %vm1871_vm4, %v1073_v35  ;;  %v2538_v37 = vpop.f32.mrb[38].mxu0 }
 0x13d   :  { %2006 = vst.msk [vmem:[%s4631_s3 + $0x430] sm:$0xff] %vm1871_vm4, %v1563_v36  ;;  %v2685_v38 = vpop.f32.mrb[38].mxu1  ;;  %v1088_v39 = vadd.f32 %v2538_v37, %v3644_v10  ;;  %v1082_v41 = vpop.f32.mrb[39].mxu0 }
 0x13e   :  { %v1578_v40 = vadd.f32 %v2685_v38, %v3644_v10  ;;  %v1572_v42 = vpop.f32.mrb[39].mxu1  ;;  %v1083_v43 = vadd.f32 %v3644_v10, %v1082_v41 }
 0x13f   :  { %v1573_v44 = vadd.f32 %v3644_v10, %v1572_v42  ;;  %1911 = vst.msk [vmem:[%s4631_s3 + $0x138] sm:$0xff] %vm1871_vm4, %v1088_v39 }
 0x140   :  { %2009 = vst.msk [vmem:[%s4631_s3 + $0x448] sm:$0xff] %vm1871_vm4, %v1578_v40  ;;  %1910 = vst.msk [vmem:[%s4631_s3 + $0x130] sm:$0xff] %vm1871_vm4, %v1083_v43  ;;  %v2541_v45 = vpop.f32.mrb[40].mxu0 }
 0x141   :  { %2008 = vst.msk [vmem:[%s4631_s3 + $0x440] sm:$0xff] %vm1871_vm4, %v1573_v44  ;;  %v2688_v46 = vpop.f32.mrb[40].mxu1  ;;  %v1098_v47 = vadd.f32 %v2541_v45, %v3644_v10  ;;  %v1092_v49 = vpop.f32.mrb[41].mxu0 }
 0x142   :  { %v1588_v48 = vadd.f32 %v2688_v46, %v3644_v10  ;;  %v1582_v50 = vpop.f32.mrb[41].mxu1  ;;  %v1093_v51 = vadd.f32 %v3644_v10, %v1092_v49 }
 0x143   :  { %v1583_v52 = vadd.f32 %v3644_v10, %v1582_v50  ;;  %1913 = vst.msk [vmem:[%s4631_s3 + $0x148] sm:$0xff] %vm1871_vm4, %v1098_v47 }
 0x144   :  { %2011 = vst.msk [vmem:[%s4631_s3 + $0x458] sm:$0xff] %vm1871_vm4, %v1588_v48  ;;  %1912 = vst.msk [vmem:[%s4631_s3 + $0x140] sm:$0xff] %vm1871_vm4, %v1093_v51  ;;  %v2544_v53 = vpop.f32.mrb[42].mxu0 }
 0x145   :  { %2010 = vst.msk [vmem:[%s4631_s3 + $0x450] sm:$0xff] %vm1871_vm4, %v1583_v52  ;;  %v2691_v54 = vpop.f32.mrb[42].mxu1  ;;  %v1108_v55 = vadd.f32 %v2544_v53, %v3644_v10  ;;  %v1102_v57 = vpop.f32.mrb[43].mxu0 }
 0x146   :  { %v1598_v56 = vadd.f32 %v2691_v54, %v3644_v10  ;;  %v1592_v58 = vpop.f32.mrb[43].mxu1  ;;  %v1103_v59 = vadd.f32 %v3644_v10, %v1102_v57 }
 0x147   :  { %v1593_v60 = vadd.f32 %v3644_v10, %v1592_v58  ;;  %1915 = vst.msk [vmem:[%s4631_s3 + $0x158] sm:$0xff] %vm1871_vm4, %v1108_v55 }
 0x148   :  { %2013 = vst.msk [vmem:[%s4631_s3 + $0x468] sm:$0xff] %vm1871_vm4, %v1598_v56  ;;  %1914 = vst.msk [vmem:[%s4631_s3 + $0x150] sm:$0xff] %vm1871_vm4, %v1103_v59  ;;  %v2547_v61 = vpop.f32.mrb[44].mxu0 }
 0x149   :  { %2012 = vst.msk [vmem:[%s4631_s3 + $0x460] sm:$0xff] %vm1871_vm4, %v1593_v60  ;;  %v2694_v62 = vpop.f32.mrb[44].mxu1  ;;  %v1118_v63 = vadd.f32 %v2547_v61, %v3644_v10  ;;  %v1112_v1 = vpop.f32.mrb[45].mxu0 }
 0x14a   :  { %v1608_v0 = vadd.f32 %v2694_v62, %v3644_v10  ;;  %v1602_v2 = vpop.f32.mrb[45].mxu1  ;;  %v1113_v3 = vadd.f32 %v3644_v10, %v1112_v1 }
 0x14b   :  { %v1603_v4 = vadd.f32 %v3644_v10, %v1602_v2  ;;  %1917 = vst.msk [vmem:[%s4631_s3 + $0x168] sm:$0xff] %vm1871_vm4, %v1118_v63 }
 0x14c   :  { %2015 = vst.msk [vmem:[%s4631_s3 + $0x478] sm:$0xff] %vm1871_vm4, %v1608_v0  ;;  %1916 = vst.msk [vmem:[%s4631_s3 + $0x160] sm:$0xff] %vm1871_vm4, %v1113_v3  ;;  %v2550_v5 = vpop.f32.mrb[46].mxu0 }
 0x14d   :  { %2014 = vst.msk [vmem:[%s4631_s3 + $0x470] sm:$0xff] %vm1871_vm4, %v1603_v4  ;;  %v2697_v6 = vpop.f32.mrb[46].mxu1  ;;  %v1128_v7 = vadd.f32 %v2550_v5, %v3644_v10  ;;  %v1122_v9 = vpop.f32.mrb[47].mxu0 }
 0x14e   :  { %v1618_v8 = vadd.f32 %v2697_v6, %v3644_v10  ;;  %v1612_v11 = vpop.f32.mrb[47].mxu1  ;;  %v1123_v12 = vadd.f32 %v3644_v10, %v1122_v9 }
 0x14f   :  { %v1613_v13 = vadd.f32 %v3644_v10, %v1612_v11  ;;  %1919 = vst.msk [vmem:[%s4631_s3 + $0x178] sm:$0xff] %vm1871_vm4, %v1128_v7 }
 0x150   :  { %2017 = vst.msk [vmem:[%s4631_s3 + $0x488] sm:$0xff] %vm1871_vm4, %v1618_v8  ;;  %1918 = vst.msk [vmem:[%s4631_s3 + $0x170] sm:$0xff] %vm1871_vm4, %v1123_v12  ;;  %v2553_v14 = vpop.f32.mrb[48].mxu0 }
 0x151   :  { %2016 = vst.msk [vmem:[%s4631_s3 + $0x480] sm:$0xff] %vm1871_vm4, %v1613_v13  ;;  %v2700_v15 = vpop.f32.mrb[48].mxu1  ;;  %v1138_v16 = vadd.f32 %v2553_v14, %v3644_v10  ;;  %v1132_v18 = vpop.f32.mrb[49].mxu0 }
 0x152   :  { %v1628_v17 = vadd.f32 %v2700_v15, %v3644_v10  ;;  %v1622_v19 = vpop.f32.mrb[49].mxu1  ;;  %v1133_v20 = vadd.f32 %v3644_v10, %v1132_v18 }
 0x153   :  { %v1623_v21 = vadd.f32 %v3644_v10, %v1622_v19  ;;  %1921 = vst.msk [vmem:[%s4631_s3 + $0x188] sm:$0xff] %vm1871_vm4, %v1138_v16 }
 0x154   :  { %2019 = vst.msk [vmem:[%s4631_s3 + $0x498] sm:$0xff] %vm1871_vm4, %v1628_v17  ;;  %1920 = vst.msk [vmem:[%s4631_s3 + $0x180] sm:$0xff] %vm1871_vm4, %v1133_v20  ;;  %v2556_v22 = vpop.f32.mrb[50].mxu0 }
 0x155   :  { %2018 = vst.msk [vmem:[%s4631_s3 + $0x490] sm:$0xff] %vm1871_vm4, %v1623_v21  ;;  %v2703_v23 = vpop.f32.mrb[50].mxu1  ;;  %v1148_v24 = vadd.f32 %v2556_v22, %v3644_v10  ;;  %v1142_v26 = vpop.f32.mrb[51].mxu0 }
 0x156   :  { %v1638_v25 = vadd.f32 %v2703_v23, %v3644_v10  ;;  %v1632_v27 = vpop.f32.mrb[51].mxu1  ;;  %v1143_v28 = vadd.f32 %v3644_v10, %v1142_v26 }
 0x157   :  { %v1633_v29 = vadd.f32 %v3644_v10, %v1632_v27  ;;  %1923 = vst.msk [vmem:[%s4631_s3 + $0x198] sm:$0xff] %vm1871_vm4, %v1148_v24 }
 0x158   :  { %2021 = vst.msk [vmem:[%s4631_s3 + $0x4a8] sm:$0xff] %vm1871_vm4, %v1638_v25  ;;  %1922 = vst.msk [vmem:[%s4631_s3 + $0x190] sm:$0xff] %vm1871_vm4, %v1143_v28  ;;  %v2559_v30 = vpop.f32.mrb[52].mxu0 }
 0x159   :  { %2020 = vst.msk [vmem:[%s4631_s3 + $0x4a0] sm:$0xff] %vm1871_vm4, %v1633_v29  ;;  %v2706_v31 = vpop.f32.mrb[52].mxu1  ;;  %v1158_v32 = vadd.f32 %v2559_v30, %v3644_v10  ;;  %v1152_v34 = vpop.f32.mrb[53].mxu0 }
 0x15a   :  { %v1648_v33 = vadd.f32 %v2706_v31, %v3644_v10  ;;  %v1642_v35 = vpop.f32.mrb[53].mxu1  ;;  %v1153_v36 = vadd.f32 %v3644_v10, %v1152_v34 }
 0x15b   :  { %v1643_v37 = vadd.f32 %v3644_v10, %v1642_v35  ;;  %1925 = vst.msk [vmem:[%s4631_s3 + $0x1a8] sm:$0xff] %vm1871_vm4, %v1158_v32 }
 0x15c   :  { %2023 = vst.msk [vmem:[%s4631_s3 + $0x4b8] sm:$0xff] %vm1871_vm4, %v1648_v33  ;;  %1924 = vst.msk [vmem:[%s4631_s3 + $0x1a0] sm:$0xff] %vm1871_vm4, %v1153_v36  ;;  %v2562_v38 = vpop.f32.mrb[54].mxu0 }
 0x15d   :  { %2022 = vst.msk [vmem:[%s4631_s3 + $0x4b0] sm:$0xff] %vm1871_vm4, %v1643_v37  ;;  %v2709_v39 = vpop.f32.mrb[54].mxu1  ;;  %v1168_v40 = vadd.f32 %v2562_v38, %v3644_v10  ;;  %v1162_v42 = vpop.f32.mrb[55].mxu0 }
 0x15e   :  { %v1658_v41 = vadd.f32 %v2709_v39, %v3644_v10  ;;  %v1652_v43 = vpop.f32.mrb[55].mxu1  ;;  %v1163_v44 = vadd.f32 %v3644_v10, %v1162_v42 }
 0x15f   :  { %v1653_v45 = vadd.f32 %v3644_v10, %v1652_v43  ;;  %1927 = vst.msk [vmem:[%s4631_s3 + $0x1b8] sm:$0xff] %vm1871_vm4, %v1168_v40 }
 0x160   :  { %2025 = vst.msk [vmem:[%s4631_s3 + $0x4c8] sm:$0xff] %vm1871_vm4, %v1658_v41  ;;  %1926 = vst.msk [vmem:[%s4631_s3 + $0x1b0] sm:$0xff] %vm1871_vm4, %v1163_v44  ;;  %v2565_v46 = vpop.f32.mrb[56].mxu0 }
 0x161   :  { %2024 = vst.msk [vmem:[%s4631_s3 + $0x4c0] sm:$0xff] %vm1871_vm4, %v1653_v45  ;;  %v2712_v47 = vpop.f32.mrb[56].mxu1  ;;  %v1178_v48 = vadd.f32 %v2565_v46, %v3644_v10  ;;  %v1172_v50 = vpop.f32.mrb[57].mxu0 }
 0x162   :  { %v1668_v49 = vadd.f32 %v2712_v47, %v3644_v10  ;;  %v1662_v51 = vpop.f32.mrb[57].mxu1  ;;  %v1173_v52 = vadd.f32 %v3644_v10, %v1172_v50 }
 0x163   :  { %v1663_v53 = vadd.f32 %v3644_v10, %v1662_v51  ;;  %1929 = vst.msk [vmem:[%s4631_s3 + $0x1c8] sm:$0xff] %vm1871_vm4, %v1178_v48 }
 0x164   :  { %2027 = vst.msk [vmem:[%s4631_s3 + $0x4d8] sm:$0xff] %vm1871_vm4, %v1668_v49  ;;  %1928 = vst.msk [vmem:[%s4631_s3 + $0x1c0] sm:$0xff] %vm1871_vm4, %v1173_v52  ;;  %v2568_v54 = vpop.f32.mrb[58].mxu0 }
 0x165   :  { %2026 = vst.msk [vmem:[%s4631_s3 + $0x4d0] sm:$0xff] %vm1871_vm4, %v1663_v53  ;;  %v2715_v55 = vpop.f32.mrb[58].mxu1  ;;  %v1188_v56 = vadd.f32 %v2568_v54, %v3644_v10  ;;  %v1182_v58 = vpop.f32.mrb[59].mxu0 }
 0x166   :  { %v1678_v57 = vadd.f32 %v2715_v55, %v3644_v10  ;;  %v1672_v59 = vpop.f32.mrb[59].mxu1  ;;  %v1183_v60 = vadd.f32 %v3644_v10, %v1182_v58 }
 0x167   :  { %v1673_v61 = vadd.f32 %v3644_v10, %v1672_v59  ;;  %1931 = vst.msk [vmem:[%s4631_s3 + $0x1d8] sm:$0xff] %vm1871_vm4, %v1188_v56 }
 0x168   :  { %2029 = vst.msk [vmem:[%s4631_s3 + $0x4e8] sm:$0xff] %vm1871_vm4, %v1678_v57  ;;  %1930 = vst.msk [vmem:[%s4631_s3 + $0x1d0] sm:$0xff] %vm1871_vm4, %v1183_v60  ;;  %v2571_v62 = vpop.f32.mrb[60].mxu0 }
 0x169   :  { %2028 = vst.msk [vmem:[%s4631_s3 + $0x4e0] sm:$0xff] %vm1871_vm4, %v1673_v61  ;;  %v2718_v63 = vpop.f32.mrb[60].mxu1  ;;  %v1198_v0 = vadd.f32 %v2571_v62, %v3644_v10  ;;  %v1192_v2 = vpop.f32.mrb[61].mxu0 }
 0x16a   :  { %v1688_v1 = vadd.f32 %v2718_v63, %v3644_v10  ;;  %v1682_v3 = vpop.f32.mrb[61].mxu1  ;;  %v1193_v4 = vadd.f32 %v3644_v10, %v1192_v2 }
 0x16b   :  { %v1683_v5 = vadd.f32 %v3644_v10, %v1682_v3  ;;  %1933 = vst.msk [vmem:[%s4631_s3 + $0x1e8] sm:$0xff] %vm1871_vm4, %v1198_v0 }
 0x16c   :  { %2031 = vst.msk [vmem:[%s4631_s3 + $0x4f8] sm:$0xff] %vm1871_vm4, %v1688_v1  ;;  %1932 = vst.msk [vmem:[%s4631_s3 + $0x1e0] sm:$0xff] %vm1871_vm4, %v1193_v4  ;;  %v2574_v6 = vpop.f32.mrb[62].mxu0 }
 0x16d   :  { %2030 = vst.msk [vmem:[%s4631_s3 + $0x4f0] sm:$0xff] %vm1871_vm4, %v1683_v5  ;;  %v2721_v7 = vpop.f32.mrb[62].mxu1  ;;  %v1208_v8 = vadd.f32 %v2574_v6, %v3644_v10  ;;  %v1202_v11 = vpop.f32.mrb[63].mxu0 }
 0x16e   :  { %v1698_v9 = vadd.f32 %v2721_v7, %v3644_v10  ;;  %v1692_v12 = vpop.f32.mrb[63].mxu1  ;;  %v1203_v13 = vadd.f32 %v3644_v10, %v1202_v11 }
 0x16f   :  { %v1693_v14 = vadd.f32 %v3644_v10, %v1692_v12  ;;  %1935 = vst.msk [vmem:[%s4631_s3 + $0x1f8] sm:$0xff] %vm1871_vm4, %v1208_v8 }
 0x170   :  { %2033 = vst.msk [vmem:[%s4631_s3 + $0x508] sm:$0xff] %vm1871_vm4, %v1698_v9  ;;  %1934 = vst.msk [vmem:[%s4631_s3 + $0x1f0] sm:$0xff] %vm1871_vm4, %v1203_v13  ;;  %v2577_v15 = vpop.f32.mrb[64].mxu0 }
 0x171   :  { %2032 = vst.msk [vmem:[%s4631_s3 + $0x500] sm:$0xff] %vm1871_vm4, %v1693_v14  ;;  %v2724_v16 = vpop.f32.mrb[64].mxu1  ;;  %v1218_v17 = vadd.f32 %v2577_v15, %v3644_v10  ;;  %v1212_v19 = vpop.f32.mrb[65].mxu0 }
 0x172   :  { %v1708_v18 = vadd.f32 %v2724_v16, %v3644_v10  ;;  %v1702_v20 = vpop.f32.mrb[65].mxu1  ;;  %v1213_v21 = vadd.f32 %v3644_v10, %v1212_v19 }
 0x173   :  { %v1703_v22 = vadd.f32 %v3644_v10, %v1702_v20  ;;  %1937 = vst.msk [vmem:[%s4631_s3 + $0x208] sm:$0xff] %vm1871_vm4, %v1218_v17 }
 0x174   :  { %2035 = vst.msk [vmem:[%s4631_s3 + $0x518] sm:$0xff] %vm1871_vm4, %v1708_v18  ;;  %1936 = vst.msk [vmem:[%s4631_s3 + $0x200] sm:$0xff] %vm1871_vm4, %v1213_v21  ;;  %v2580_v23 = vpop.f32.mrb[66].mxu0 }
 0x175   :  { %2034 = vst.msk [vmem:[%s4631_s3 + $0x510] sm:$0xff] %vm1871_vm4, %v1703_v22  ;;  %v2727_v24 = vpop.f32.mrb[66].mxu1  ;;  %v1228_v25 = vadd.f32 %v2580_v23, %v3644_v10  ;;  %v1222_v27 = vpop.f32.mrb[67].mxu0 }
 0x176   :  { %v1718_v26 = vadd.f32 %v2727_v24, %v3644_v10  ;;  %v1712_v28 = vpop.f32.mrb[67].mxu1  ;;  %v1223_v29 = vadd.f32 %v3644_v10, %v1222_v27 }
 0x177   :  { %v1713_v30 = vadd.f32 %v3644_v10, %v1712_v28  ;;  %1939 = vst.msk [vmem:[%s4631_s3 + $0x218] sm:$0xff] %vm1871_vm4, %v1228_v25 }
 0x178   :  { %2037 = vst.msk [vmem:[%s4631_s3 + $0x528] sm:$0xff] %vm1871_vm4, %v1718_v26  ;;  %1938 = vst.msk [vmem:[%s4631_s3 + $0x210] sm:$0xff] %vm1871_vm4, %v1223_v29  ;;  %v2583_v31 = vpop.f32.mrb[68].mxu0 }
 0x179   :  { %2036 = vst.msk [vmem:[%s4631_s3 + $0x520] sm:$0xff] %vm1871_vm4, %v1713_v30  ;;  %v2730_v32 = vpop.f32.mrb[68].mxu1  ;;  %v1238_v33 = vadd.f32 %v2583_v31, %v3644_v10  ;;  %v1232_v35 = vpop.f32.mrb[69].mxu0 }
 0x17a   :  { %v1728_v34 = vadd.f32 %v2730_v32, %v3644_v10  ;;  %v1722_v36 = vpop.f32.mrb[69].mxu1  ;;  %v1233_v37 = vadd.f32 %v3644_v10, %v1232_v35 }
 0x17b   :  { %v1723_v38 = vadd.f32 %v3644_v10, %v1722_v36  ;;  %1941 = vst.msk [vmem:[%s4631_s3 + $0x228] sm:$0xff] %vm1871_vm4, %v1238_v33 }
 0x17c   :  { %2039 = vst.msk [vmem:[%s4631_s3 + $0x538] sm:$0xff] %vm1871_vm4, %v1728_v34  ;;  %1940 = vst.msk [vmem:[%s4631_s3 + $0x220] sm:$0xff] %vm1871_vm4, %v1233_v37  ;;  %v2586_v39 = vpop.f32.mrb[70].mxu0 }
 0x17d   :  { %2038 = vst.msk [vmem:[%s4631_s3 + $0x530] sm:$0xff] %vm1871_vm4, %v1723_v38  ;;  %v2733_v40 = vpop.f32.mrb[70].mxu1  ;;  %v1248_v41 = vadd.f32 %v2586_v39, %v3644_v10  ;;  %v1242_v43 = vpop.f32.mrb[71].mxu0  ;;  %v4488_v38 = vld [vmem:[#allocation2] ss:$0 sm:$0xff] }
 0x17e   :  { %v1738_v42 = vadd.f32 %v2733_v40, %v3644_v10  ;;  %v1732_v44 = vpop.f32.mrb[71].mxu1  ;;  %v1243_v45 = vadd.f32 %v3644_v10, %v1242_v43 }
 0x17f   :  { %v1733_v46 = vadd.f32 %v3644_v10, %v1732_v44  ;;  %1943 = vst.msk [vmem:[%s4631_s3 + $0x238] sm:$0xff] %vm1871_vm4, %v1248_v41 }
 0x180   :  { %2041 = vst.msk [vmem:[%s4631_s3 + $0x548] sm:$0xff] %vm1871_vm4, %v1738_v42  ;;  %1942 = vst.msk [vmem:[%s4631_s3 + $0x230] sm:$0xff] %vm1871_vm4, %v1243_v45  ;;  %v2589_v47 = vpop.f32.mrb[72].mxu0 }
 0x181   :  { %2040 = vst.msk [vmem:[%s4631_s3 + $0x540] sm:$0xff] %vm1871_vm4, %v1733_v46  ;;  %v2736_v48 = vpop.f32.mrb[72].mxu1  ;;  %v1258_v49 = vadd.f32 %v2589_v47, %v3644_v10  ;;  %v1252_v51 = vpop.f32.mrb[73].mxu0 }
 0x182   :  { %v1748_v50 = vadd.f32 %v2736_v48, %v3644_v10  ;;  %v1742_v52 = vpop.f32.mrb[73].mxu1  ;;  %v1253_v53 = vadd.f32 %v3644_v10, %v1252_v51 }
 0x183   :  { %v1743_v54 = vadd.f32 %v3644_v10, %v1742_v52  ;;  %1945 = vst.msk [vmem:[%s4631_s3 + $0x248] sm:$0xff] %vm1871_vm4, %v1258_v49 }
 0x184   :  { %2043 = vst.msk [vmem:[%s4631_s3 + $0x558] sm:$0xff] %vm1871_vm4, %v1748_v50  ;;  %1944 = vst.msk [vmem:[%s4631_s3 + $0x240] sm:$0xff] %vm1871_vm4, %v1253_v53  ;;  %v2592_v55 = vpop.f32.mrb[74].mxu0 }
 0x185   :  { %2042 = vst.msk [vmem:[%s4631_s3 + $0x550] sm:$0xff] %vm1871_vm4, %v1743_v54  ;;  %v2739_v56 = vpop.f32.mrb[74].mxu1  ;;  %v1268_v57 = vadd.f32 %v2592_v55, %v3644_v10  ;;  %v1262_v59 = vpop.f32.mrb[75].mxu0 }
 0x186   :  { %v1758_v58 = vadd.f32 %v2739_v56, %v3644_v10  ;;  %v1752_v60 = vpop.f32.mrb[75].mxu1  ;;  %v1263_v61 = vadd.f32 %v3644_v10, %v1262_v59 }
 0x187   :  { %v1753_v62 = vadd.f32 %v3644_v10, %v1752_v60  ;;  %1947 = vst.msk [vmem:[%s4631_s3 + $0x258] sm:$0xff] %vm1871_vm4, %v1268_v57 }
 0x188   :  { %2045 = vst.msk [vmem:[%s4631_s3 + $0x568] sm:$0xff] %vm1871_vm4, %v1758_v58  ;;  %1946 = vst.msk [vmem:[%s4631_s3 + $0x250] sm:$0xff] %vm1871_vm4, %v1263_v61  ;;  %v2595_v63 = vpop.f32.mrb[76].mxu0 }
 0x189   :  { %2044 = vst.msk [vmem:[%s4631_s3 + $0x560] sm:$0xff] %vm1871_vm4, %v1753_v62  ;;  %v2742_v0 = vpop.f32.mrb[76].mxu1  ;;  %v1278_v1 = vadd.f32 %v2595_v63, %v3644_v10  ;;  %v1272_v3 = vpop.f32.mrb[77].mxu0 }
 0x18a   :  { %v1768_v2 = vadd.f32 %v2742_v0, %v3644_v10  ;;  %v1762_v4 = vpop.f32.mrb[77].mxu1  ;;  %v1273_v5 = vadd.f32 %v3644_v10, %v1272_v3 }
 0x18b   :  { %v1763_v6 = vadd.f32 %v3644_v10, %v1762_v4  ;;  %1949 = vst.msk [vmem:[%s4631_s3 + $0x268] sm:$0xff] %vm1871_vm4, %v1278_v1 }
 0x18c   :  { %2047 = vst.msk [vmem:[%s4631_s3 + $0x578] sm:$0xff] %vm1871_vm4, %v1768_v2  ;;  %1948 = vst.msk [vmem:[%s4631_s3 + $0x260] sm:$0xff] %vm1871_vm4, %v1273_v5  ;;  %v2598_v7 = vpop.f32.mrb[78].mxu0 }
 0x18d   :  { %2046 = vst.msk [vmem:[%s4631_s3 + $0x570] sm:$0xff] %vm1871_vm4, %v1763_v6  ;;  %v2745_v8 = vpop.f32.mrb[78].mxu1  ;;  %v1288_v9 = vadd.f32 %v2598_v7, %v3644_v10  ;;  %v1282_v12 = vpop.f32.mrb[79].mxu0 }
 0x18e   :  { %v1778_v11 = vadd.f32 %v2745_v8, %v3644_v10  ;;  %v1772_v13 = vpop.f32.mrb[79].mxu1  ;;  %v1283_v14 = vadd.f32 %v3644_v10, %v1282_v12 }
 0x18f   :  { %v1773_v15 = vadd.f32 %v3644_v10, %v1772_v13  ;;  %1951 = vst.msk [vmem:[%s4631_s3 + $0x278] sm:$0xff] %vm1871_vm4, %v1288_v9 }
 0x190   :  { %2049 = vst.msk [vmem:[%s4631_s3 + $0x588] sm:$0xff] %vm1871_vm4, %v1778_v11  ;;  %1950 = vst.msk [vmem:[%s4631_s3 + $0x270] sm:$0xff] %vm1871_vm4, %v1283_v14  ;;  %v2601_v16 = vpop.f32.mrb[80].mxu0 }
 0x191   :  { %2048 = vst.msk [vmem:[%s4631_s3 + $0x580] sm:$0xff] %vm1871_vm4, %v1773_v15  ;;  %v2748_v17 = vpop.f32.mrb[80].mxu1  ;;  %v1298_v18 = vadd.f32 %v2601_v16, %v3644_v10  ;;  %v1292_v20 = vpop.f32.mrb[81].mxu0 }
 0x192   :  { %v1788_v19 = vadd.f32 %v2748_v17, %v3644_v10  ;;  %v1782_v21 = vpop.f32.mrb[81].mxu1  ;;  %v1293_v22 = vadd.f32 %v3644_v10, %v1292_v20 }
 0x193   :  { %v1783_v23 = vadd.f32 %v3644_v10, %v1782_v21  ;;  %1953 = vst.msk [vmem:[%s4631_s3 + $0x288] sm:$0xff] %vm1871_vm4, %v1298_v18 }
 0x194   :  { %2051 = vst.msk [vmem:[%s4631_s3 + $0x598] sm:$0xff] %vm1871_vm4, %v1788_v19  ;;  %1952 = vst.msk [vmem:[%s4631_s3 + $0x280] sm:$0xff] %vm1871_vm4, %v1293_v22  ;;  %v2604_v24 = vpop.f32.mrb[82].mxu0 }
 0x195   :  { %2050 = vst.msk [vmem:[%s4631_s3 + $0x590] sm:$0xff] %vm1871_vm4, %v1783_v23  ;;  %v2751_v25 = vpop.f32.mrb[82].mxu1  ;;  %v1308_v26 = vadd.f32 %v2604_v24, %v3644_v10  ;;  %v1302_v28 = vpop.f32.mrb[83].mxu0 }
 0x196   :  { %v1798_v27 = vadd.f32 %v2751_v25, %v3644_v10  ;;  %v1792_v29 = vpop.f32.mrb[83].mxu1  ;;  %v1303_v30 = vadd.f32 %v3644_v10, %v1302_v28 }
 0x197   :  { %v1793_v31 = vadd.f32 %v3644_v10, %v1792_v29  ;;  %1955 = vst.msk [vmem:[%s4631_s3 + $0x298] sm:$0xff] %vm1871_vm4, %v1308_v26 }
 0x198   :  { %2053 = vst.msk [vmem:[%s4631_s3 + $0x5a8] sm:$0xff] %vm1871_vm4, %v1798_v27  ;;  %1954 = vst.msk [vmem:[%s4631_s3 + $0x290] sm:$0xff] %vm1871_vm4, %v1303_v30  ;;  %v2607_v32 = vpop.f32.mrb[84].mxu0 }
 0x199   :  { %2052 = vst.msk [vmem:[%s4631_s3 + $0x5a0] sm:$0xff] %vm1871_vm4, %v1793_v31  ;;  %v2754_v33 = vpop.f32.mrb[84].mxu1  ;;  %v1318_v34 = vadd.f32 %v2607_v32, %v3644_v10  ;;  %v1312_v36 = vpop.f32.mrb[85].mxu0 }
 0x19a   :  { %v1808_v35 = vadd.f32 %v2754_v33, %v3644_v10  ;;  %v1802_v37 = vpop.f32.mrb[85].mxu1  ;;  %v1313_v39 = vadd.f32 %v4488_v38, %v1312_v36 }
 0x19b   :  { %v1803_v40 = vadd.f32 %v4488_v38, %v1802_v37  ;;  %1957 = vst.msk [vmem:[%s4631_s3 + $0x2a8] sm:$0xff] %vm1871_vm4, %v1318_v34 }
 0x19c   :  { %2055 = vst.msk [vmem:[%s4631_s3 + $0x5b8] sm:$0xff] %vm1871_vm4, %v1808_v35  ;;  %1956 = vst.msk [vmem:[%s4631_s3 + $0x2a0] sm:$0xff] %vm1871_vm4, %v1313_v39  ;;  %v2610_v10 = vpop.f32.mrb[86].mxu0 }
 0x19d   :  { %2054 = vst.msk [vmem:[%s4631_s3 + $0x5b0] sm:$0xff] %vm1871_vm4, %v1803_v40  ;;  %v2757_v41 = vpop.f32.mrb[86].mxu1  ;;  %v1328_v42 = vadd.f32 %v4488_v38, %v2610_v10  ;;  %v1322_v44 = vpop.f32.mrb[87].mxu0 }
 0x19e   :  { %v1818_v43 = vadd.f32 %v4488_v38, %v2757_v41  ;;  %v1812_v45 = vpop.f32.mrb[87].mxu1  ;;  %v1323_v46 = vadd.f32 %v4488_v38, %v1322_v44 }
 0x19f   :  { %v1813_v47 = vadd.f32 %v4488_v38, %v1812_v45  ;;  %1959 = vst.msk [vmem:[%s4631_s3 + $0x2b8] sm:$0xff] %vm1871_vm4, %v1328_v42 }
 0x1a0   :  { %2057 = vst.msk [vmem:[%s4631_s3 + $0x5c8] sm:$0xff] %vm1871_vm4, %v1818_v43  ;;  %1958 = vst.msk [vmem:[%s4631_s3 + $0x2b0] sm:$0xff] %vm1871_vm4, %v1323_v46  ;;  %v2613_v48 = vpop.f32.mrb[88].mxu0 }
 0x1a1   :  { %2056 = vst.msk [vmem:[%s4631_s3 + $0x5c0] sm:$0xff] %vm1871_vm4, %v1813_v47  ;;  %v2760_v49 = vpop.f32.mrb[88].mxu1  ;;  %v1338_v50 = vadd.f32 %v4488_v38, %v2613_v48  ;;  %v1332_v52 = vpop.f32.mrb[89].mxu0 }
 0x1a2   :  { %v1828_v51 = vadd.f32 %v4488_v38, %v2760_v49  ;;  %v1822_v53 = vpop.f32.mrb[89].mxu1  ;;  %v1333_v54 = vadd.f32 %v4488_v38, %v1332_v52 }
 0x1a3   :  { %v1823_v55 = vadd.f32 %v4488_v38, %v1822_v53  ;;  %1961 = vst.msk [vmem:[%s4631_s3 + $0x2c8] sm:$0xff] %vm1871_vm4, %v1338_v50 }
 0x1a4   :  { %2059 = vst.msk [vmem:[%s4631_s3 + $0x5d8] sm:$0xff] %vm1871_vm4, %v1828_v51  ;;  %1960 = vst.msk [vmem:[%s4631_s3 + $0x2c0] sm:$0xff] %vm1871_vm4, %v1333_v54  ;;  %v2616_v56 = vpop.f32.mrb[90].mxu0 }
 0x1a5   :  { %2058 = vst.msk [vmem:[%s4631_s3 + $0x5d0] sm:$0xff] %vm1871_vm4, %v1823_v55  ;;  %v2763_v57 = vpop.f32.mrb[90].mxu1  ;;  %v1348_v58 = vadd.f32 %v4488_v38, %v2616_v56  ;;  %v1342_v60 = vpop.f32.mrb[91].mxu0 }
 0x1a6   :  { %v1838_v59 = vadd.f32 %v4488_v38, %v2763_v57  ;;  %v1832_v61 = vpop.f32.mrb[91].mxu1  ;;  %v1343_v62 = vadd.f32 %v4488_v38, %v1342_v60 }
 0x1a7   :  { %v1833_v63 = vadd.f32 %v4488_v38, %v1832_v61  ;;  %1963 = vst.msk [vmem:[%s4631_s3 + $0x2d8] sm:$0xff] %vm1871_vm4, %v1348_v58 }
 0x1a8   :  { %2061 = vst.msk [vmem:[%s4631_s3 + $0x5e8] sm:$0xff] %vm1871_vm4, %v1838_v59  ;;  %1962 = vst.msk [vmem:[%s4631_s3 + $0x2d0] sm:$0xff] %vm1871_vm4, %v1343_v62  ;;  %v2619_v0 = vpop.f32.mrb[92].mxu0 }
 0x1a9   :  { %2060 = vst.msk [vmem:[%s4631_s3 + $0x5e0] sm:$0xff] %vm1871_vm4, %v1833_v63  ;;  %v2766_v1 = vpop.f32.mrb[92].mxu1  ;;  %v1358_v2 = vadd.f32 %v4488_v38, %v2619_v0  ;;  %v1352_v4 = vpop.f32.mrb[93].mxu0 }
 0x1aa   :  { %v1848_v3 = vadd.f32 %v4488_v38, %v2766_v1  ;;  %v1842_v5 = vpop.f32.mrb[93].mxu1  ;;  %v1353_v6 = vadd.f32 %v4488_v38, %v1352_v4 }
 0x1ab   :  { %v1843_v7 = vadd.f32 %v4488_v38, %v1842_v5  ;;  %1965 = vst.msk [vmem:[%s4631_s3 + $0x2e8] sm:$0xff] %vm1871_vm4, %v1358_v2 }
 0x1ac   :  { %2063 = vst.msk [vmem:[%s4631_s3 + $0x5f8] sm:$0xff] %vm1871_vm4, %v1848_v3  ;;  %1964 = vst.msk [vmem:[%s4631_s3 + $0x2e0] sm:$0xff] %vm1871_vm4, %v1353_v6  ;;  %v2622_v8 = vpop.f32.mrb[94].mxu0 }
 0x1ad   :  { %2062 = vst.msk [vmem:[%s4631_s3 + $0x5f0] sm:$0xff] %vm1871_vm4, %v1843_v7  ;;  %v2769_v9 = vpop.f32.mrb[94].mxu1  ;;  %v1368_v11 = vadd.f32 %v4488_v38, %v2622_v8  ;;  %v1362_v13 = vpop.f32.mrb[95].mxu0 }
 0x1ae   :  { %v1858_v12 = vadd.f32 %v4488_v38, %v2769_v9  ;;  %v1852_v14 = vpop.f32.mrb[95].mxu1  ;;  %v1363_v15 = vadd.f32 %v4488_v38, %v1362_v13 }
 0x1af   :  { %v1853_v16 = vadd.f32 %v4488_v38, %v1852_v14  ;;  %1967 = vst.msk [vmem:[%s4631_s3 + $0x2f8] sm:$0xff] %vm1871_vm4, %v1368_v11 }
 0x1b0   :  { %2065 = vst.msk [vmem:[%s4631_s3 + $0x608] sm:$0xff] %vm1871_vm4, %v1858_v12  ;;  %1966 = vst.msk [vmem:[%s4631_s3 + $0x2f0] sm:$0xff] %vm1871_vm4, %v1363_v15  ;;  %v2625_v17 = vpop.f32.mrb[96].mxu0 }
 0x1b1   :  { %2064 = vst.msk [vmem:[%s4631_s3 + $0x600] sm:$0xff] %vm1871_vm4, %v1853_v16  ;;  %v2772_v18 = vpop.f32.mrb[96].mxu1  ;;  %v1378_v19 = vadd.f32 %v4488_v38, %v2625_v17  ;;  %v1372_v21 = vpop.f32.mrb[97].mxu0 }
 0x1b2   :  { %v1868_v20 = vadd.f32 %v4488_v38, %v2772_v18  ;;  %v1862_v22 = vpop.f32.mrb[97].mxu1  ;;  %v1373_v23 = vadd.f32 %v4488_v38, %v1372_v21 }
 0x1b3   :  { %v1863_v24 = vadd.f32 %v4488_v38, %v1862_v22  ;;  %1969 = vst.msk [vmem:[%s4631_s3 + $0x308] sm:$0xff] %vm1871_vm4, %v1378_v19 }
 0x1b4   :  { %2067 = vst.msk [vmem:[%s4631_s3 + $0x618] sm:$0xff] %vm1871_vm4, %v1868_v20  ;;  %1968 = vst.msk [vmem:[%s4631_s3 + $0x300] sm:$0xff] %vm1871_vm4, %v1373_v23 }
 0x1b5   :  { %2066 = vst.msk [vmem:[%s4631_s3 + $0x610] sm:$0xff] %vm1871_vm4, %v1863_v24 }
 0x1b6   :  { %2072 = vsyncpa [#allocation3], 1 }

// kernel: dummy_cnn_forward.4
= control target key start
LH: loop header
LB: loop body
LE: loop exit
PB: predicated region body
PF: predicated region fallthrough
CT: control target
= control target key end

     0   :  { %v6010_v0 = vmov 0.0|0.0   ;;  %vm6011_vm0 = vmmov 0   ;;  %vm938_vm1 = vcmask 523264   ;;  %s10451_s1 = inlined_call_operand.vmem [shape: f32[576,128], index: 1, kind: input, shape index: {}]   ;;  %s10452_s0 = inlined_call_operand.vmem [shape: f32[1352,576], index: 0, kind: input, shape index: {}]   ;;  %s10453_s2 = inlined_call_operand.vmem [shape: f32[1,128], index: 2, kind: input, shape index: {}]   ;;  %s10454_s3 = inlined_call_operand.vmem [shape: f32[1352,128], index: 3, kind: output, shape index: {}]  }
   0x1   :  { %5219 = vmatprep.subr.bf16.mxu1 %v6010_v0  ;;  %5267 = vmatprep.subr.bf16.mxu0 %v6010_v0  ;;  %v859_v1 = vld [vmem:[%s10451_s1] sm:$0xff]  ;;  %v860_v2 = vld [vmem:[%s10451_s1 + $0x8] sm:$0xff]  ;;  %v861_v6 = vld [vmem:[%s10451_s1 + $0x10] sm:$0xff] }
   0x2   :  { %v891_v3 = vld [vmem:[%s10451_s1 + $0x100] sm:$0xff]  ;;  %v5220_v4 = vpack.c.bf16 %v860_v2, %v859_v1  ;;  %v892_v5 = vld [vmem:[%s10451_s1 + $0x108] sm:$0xff]  ;;  %v862_v7 = vld [vmem:[%s10451_s1 + $0x18] sm:$0xff] }
   0x3   :  { %v6053_v8 = vpack.c.bf16 %v892_v5, %v891_v3  ;;  %v893_v9 = vld [vmem:[%s10451_s1 + $0x110] sm:$0xff]  ;;  %v894_v10 = vld [vmem:[%s10451_s1 + $0x118] sm:$0xff]  ;;  %v5223_v11 = vpack.c.bf16 %v862_v7, %v861_v6  ;;  %v863_v13 = vld [vmem:[%s10451_s1 + $0x20] sm:$0xff] }
   0x4   :  { %5221 = vmatpush1.bf16.msra.mxu1 %v5220_v4  ;;  %v6063_v12 = vpack.c.bf16 %v894_v10, %v893_v9  ;;  %v864_v14 = vld [vmem:[%s10451_s1 + $0x28] sm:$0xff]  ;;  %v895_v15 = vld [vmem:[%s10451_s1 + $0x120] sm:$0xff]  ;;  %v865_v19 = vld [vmem:[%s10451_s1 + $0x30] sm:$0xff] }
   0x5   :  { %5269 = vmatpush1.bf16.msra.mxu0 %v6053_v8  ;;  %5222 = vmatprep.subr.bf16.mxu1 %v6010_v0  ;;  %v896_v16 = vld [vmem:[%s10451_s1 + $0x128] sm:$0xff]  ;;  %v5226_v17 = vpack.c.bf16 %v864_v14, %v863_v13  ;;  %v866_v20 = vld [vmem:[%s10451_s1 + $0x38] sm:$0xff]  ;;  %v897_v21 = vld [vmem:[%s10451_s1 + $0x130] sm:$0xff] }
   0x6   :  { %5270 = vmatprep.subr.bf16.mxu0 %v6010_v0  ;;  %v6080_v18 = vpack.c.bf16 %v896_v16, %v895_v15  ;;  %v898_v22 = vld [vmem:[%s10451_s1 + $0x138] sm:$0xff]  ;;  %v5229_v23 = vpack.c.bf16 %v866_v20, %v865_v19  ;;  %v867_v25 = vld [vmem:[%s10451_s1 + $0x40] sm:$0xff]  ;;  %v868_v26 = vld [vmem:[%s10451_s1 + $0x48] sm:$0xff] }
   0x7   :  { %v6097_v24 = vpack.c.bf16 %v898_v22, %v897_v21  ;;  %v899_v27 = vld [vmem:[%s10451_s1 + $0x140] sm:$0xff]  ;;  %v900_v28 = vld [vmem:[%s10451_s1 + $0x148] sm:$0xff]  ;;  %v5232_v29 = vpack.c.bf16 %v868_v26, %v867_v25  ;;  %v869_v31 = vld [vmem:[%s10451_s1 + $0x50] sm:$0xff] }
   0x8   :  { %5224 = vmatpush1.bf16.msra.mxu1 %v5223_v11  ;;  %v6114_v30 = vpack.c.bf16 %v900_v28, %v899_v27  ;;  %v870_v32 = vld [vmem:[%s10451_s1 + $0x58] sm:$0xff]  ;;  %v901_v33 = vld [vmem:[%s10451_s1 + $0x150] sm:$0xff]  ;;  %v871_v37 = vld [vmem:[%s10451_s1 + $0x60] sm:$0xff] }
   0x9   :  { %5272 = vmatpush1.bf16.msra.mxu0 %v6063_v12  ;;  %5225 = vmatprep.subr.bf16.mxu1 %v6010_v0  ;;  %v902_v34 = vld [vmem:[%s10451_s1 + $0x158] sm:$0xff]  ;;  %v5235_v35 = vpack.c.bf16 %v870_v32, %v869_v31  ;;  %v872_v38 = vld [vmem:[%s10451_s1 + $0x68] sm:$0xff]  ;;  %v903_v39 = vld [vmem:[%s10451_s1 + $0x160] sm:$0xff] }
   0xa   :  { %5273 = vmatprep.subr.bf16.mxu0 %v6010_v0  ;;  %v6131_v36 = vpack.c.bf16 %v902_v34, %v901_v33  ;;  %v904_v40 = vld [vmem:[%s10451_s1 + $0x168] sm:$0xff]  ;;  %v17_v42 = vld [vmem:[%s10452_s0 + $0x18] sm:$0xff]  ;;  %v5238_v43 = vpack.c.bf16 %v872_v38, %v871_v37  ;;  %v873_v45 = vld [vmem:[%s10451_s1 + $0x70] sm:$0xff] }
   0xb   :  { %v15_v41 = vld [vmem:[%s10452_s0 + $0x8] sm:$0xff]  ;;  %2420 = vmatprep.mubr.f32.mxu0 %v17_v42  ;;  %v6154_v44 = vpack.c.bf16 %v904_v40, %v903_v39  ;;  %v874_v46 = vld [vmem:[%s10451_s1 + $0x78] sm:$0xff]  ;;  %v905_v47 = vld [vmem:[%s10451_s1 + $0x170] sm:$0xff] }
   0xc   :  { %5227 = vmatpush1.bf16.msra.mxu1 %v5226_v17  ;;  %1510 = vmatprep.mubr.f32.mxu1 %v15_v41  ;;  %v906_v48 = vld [vmem:[%s10451_s1 + $0x178] sm:$0xff]  ;;  %v5241_v49 = vpack.c.bf16 %v874_v46, %v873_v45  ;;  %v875_v51 = vld [vmem:[%s10451_s1 + $0x80] sm:$0xff]  ;;  %v876_v52 = vld [vmem:[%s10451_s1 + $0x88] sm:$0xff] }
   0xd   :  { %5275 = vmatpush1.bf16.msra.mxu0 %v6080_v18  ;;  %5228 = vmatprep.subr.bf16.mxu1 %v6010_v0  ;;  %v6171_v50 = vpack.c.bf16 %v906_v48, %v905_v47  ;;  %v907_v53 = vld [vmem:[%s10451_s1 + $0x180] sm:$0xff]  ;;  %v908_v54 = vld [vmem:[%s10451_s1 + $0x188] sm:$0xff]  ;;  %v5244_v55 = vpack.c.bf16 %v876_v52, %v875_v51  ;;  %v877_v57 = vld [vmem:[%s10451_s1 + $0x90] sm:$0xff] }
   0xe   :  { %5276 = vmatprep.subr.bf16.mxu0 %v6010_v0  ;;  %v6188_v56 = vpack.c.bf16 %v908_v54, %v907_v53  ;;  %v878_v58 = vld [vmem:[%s10451_s1 + $0x98] sm:$0xff]  ;;  %v909_v59 = vld [vmem:[%s10451_s1 + $0x190] sm:$0xff]  ;;  %v879_v63 = vld [vmem:[%s10451_s1 + $0xa0] sm:$0xff] }
   0xf   :  { %v910_v60 = vld [vmem:[%s10451_s1 + $0x198] sm:$0xff]  ;;  %v5247_v61 = vpack.c.bf16 %v878_v58, %v877_v57  ;;  %v880_v1 = vld [vmem:[%s10451_s1 + $0xa8] sm:$0xff]  ;;  %v911_v2 = vld [vmem:[%s10451_s1 + $0x1a0] sm:$0xff] }
  0x10   :  { %5230 = vmatpush1.bf16.msra.mxu1 %v5229_v23  ;;  %v6205_v62 = vpack.c.bf16 %v910_v60, %v909_v59  ;;  %v912_v3 = vld [vmem:[%s10451_s1 + $0x1a8] sm:$0xff]  ;;  %v5250_v4 = vpack.c.bf16 %v880_v1, %v879_v63  ;;  %v881_v6 = vld [vmem:[%s10451_s1 + $0xb0] sm:$0xff]  ;;  %v882_v7 = vld [vmem:[%s10451_s1 + $0xb8] sm:$0xff] }
  0x11   :  { %5278 = vmatpush1.bf16.msra.mxu0 %v6097_v24  ;;  %5231 = vmatprep.subr.bf16.mxu1 %v6010_v0  ;;  %v6222_v5 = vpack.c.bf16 %v912_v3, %v911_v2  ;;  %v913_v9 = vld [vmem:[%s10451_s1 + $0x1b0] sm:$0xff]  ;;  %v914_v10 = vld [vmem:[%s10451_s1 + $0x1b8] sm:$0xff]  ;;  %v5253_v11 = vpack.c.bf16 %v882_v7, %v881_v6  ;;  %v883_v14 = vld [vmem:[%s10451_s1 + $0xc0] sm:$0xff] }
  0x12   :  { %5279 = vmatprep.subr.bf16.mxu0 %v6010_v0  ;;  %v6239_v13 = vpack.c.bf16 %v914_v10, %v913_v9  ;;  %v884_v15 = vld [vmem:[%s10451_s1 + $0xc8] sm:$0xff]  ;;  %v915_v16 = vld [vmem:[%s10451_s1 + $0x1c0] sm:$0xff]  ;;  %v885_v21 = vld [vmem:[%s10451_s1 + $0xd0] sm:$0xff] }
  0x13   :  { %v916_v17 = vld [vmem:[%s10451_s1 + $0x1c8] sm:$0xff]  ;;  %v5256_v19 = vpack.c.bf16 %v884_v15, %v883_v14  ;;  %v886_v22 = vld [vmem:[%s10451_s1 + $0xd8] sm:$0xff]  ;;  %v917_v23 = vld [vmem:[%s10451_s1 + $0x1d0] sm:$0xff] }
  0x14   :  { %5233 = vmatpush1.bf16.msra.mxu1 %v5232_v29  ;;  %v6256_v20 = vpack.c.bf16 %v916_v17, %v915_v16  ;;  %v918_v25 = vld [vmem:[%s10451_s1 + $0x1d8] sm:$0xff]  ;;  %v5259_v26 = vpack.c.bf16 %v886_v22, %v885_v21  ;;  %v887_v28 = vld [vmem:[%s10451_s1 + $0xe0] sm:$0xff]  ;;  %v888_v29 = vld [vmem:[%s10451_s1 + $0xe8] sm:$0xff] }
  0x15   :  { %5281 = vmatpush1.bf16.msra.mxu0 %v6114_v30  ;;  %5234 = vmatprep.subr.bf16.mxu1 %v6010_v0  ;;  %v6273_v27 = vpack.c.bf16 %v918_v25, %v917_v23  ;;  %v919_v31 = vld [vmem:[%s10451_s1 + $0x1e0] sm:$0xff]  ;;  %v920_v32 = vld [vmem:[%s10451_s1 + $0x1e8] sm:$0xff]  ;;  %v5262_v33 = vpack.c.bf16 %v888_v29, %v887_v28  ;;  %v890_v37 = vld [vmem:[%s10451_s1 + $0xf8] sm:$0xff] }
  0x16   :  { %5282 = vmatprep.subr.bf16.mxu0 %v6010_v0  ;;  %v6290_v34 = vpack.c.bf16 %v920_v32, %v919_v31  ;;  %v921_v38 = vld [vmem:[%s10451_s1 + $0x1f0] sm:$0xff]  ;;  %v922_v39 = vld [vmem:[%s10451_s1 + $0x1f8] sm:$0xff]  ;;  %v923_v42 = vld [vmem:[%s10451_s1 + $0x200] sm:$0xff] }
  0x17   :  { %v6307_v41 = vpack.c.bf16 %v922_v39, %v921_v38  ;;  %v14_v45 = vld [vmem:[%s10452_s0] sm:$0xff]  ;;  %v16_v46 = vld [vmem:[%s10452_s0 + $0x10] sm:$0xff]  ;;  %v926_v52 = vld [vmem:[%s10451_s1 + $0x218] sm:$0xff] }
  0x18   :  { %5236 = vmatpush1.bf16.msra.mxu1 %v5235_v35  ;;  %v889_v35 = vld [vmem:[%s10451_s1 + $0xf0] sm:$0xff]  ;;  %v19_v53 = vld [vmem:[%s10452_s0 + $0x28] sm:$0xff]  ;;  %v21_v54 = vld [vmem:[%s10452_s0 + $0x38] sm:$0xff] }
  0x19   :  { %5284 = vmatpush1.bf16.msra.mxu0 %v6131_v36  ;;  %5237 = vmatprep.subr.bf16.mxu1 %v6010_v0  ;;  %v5265_v40 = vpack.c.bf16 %v890_v37, %v889_v35  ;;  %v20_v48 = vld [vmem:[%s10452_s0 + $0x30] sm:$0xff]  ;;  %v27_v57 = vld [vmem:[%s10452_s0 + $0x68] sm:$0xff]  ;;  %v26_v59 = vld [vmem:[%s10452_s0 + $0x60] sm:$0xff] }
  0x1a   :  { %5285 = vmatprep.subr.bf16.mxu0 %v6010_v0  ;;  %v925_v51 = vld [vmem:[%s10451_s1 + $0x210] sm:$0xff]  ;;  %v30_v60 = vld [vmem:[%s10452_s0 + $0x80] sm:$0xff]  ;;  %v29_v63 = vld [vmem:[%s10452_s0 + $0x78] sm:$0xff] }
  0x1b   :  { %v5319_v58 = vpack.c.bf16 %v926_v52, %v925_v51  ;;  %v35_v1 = vld [vmem:[%s10452_s0 + $0xa8] sm:$0xff]  ;;  %v37_v2 = vld [vmem:[%s10452_s0 + $0xb8] sm:$0xff]  ;;  %v34_v3 = vld [vmem:[%s10452_s0 + $0xa0] sm:$0xff] }
  0x1c   :  { %5239 = vmatpush1.bf16.msra.mxu1 %v5238_v43  ;;  %v924_v43 = vld [vmem:[%s10451_s1 + $0x208] sm:$0xff]  ;;  %v42_v6 = vld [vmem:[%s10452_s0 + $0xe0] sm:$0xff]  ;;  %v41_v9 = vld [vmem:[%s10452_s0 + $0xd8] sm:$0xff] }
  0x1d   :  { %5287 = vmatpush1.bf16.msra.mxu0 %v6154_v44  ;;  %5240 = vmatprep.subr.bf16.mxu1 %v6010_v0  ;;  %v5316_v47 = vpack.c.bf16 %v924_v43, %v923_v42  ;;  %v39_v7 = vld [vmem:[%s10452_s0 + $0xc8] sm:$0xff]  ;;  %v46_v14 = vld [vmem:[%s10452_s0 + $0x100] sm:$0xff]  ;;  %v52_v15 = vld [vmem:[%s10452_s0 + $0x130] sm:$0xff] }
  0x1e   :  { %5288 = vmatprep.subr.bf16.mxu0 %v6010_v0  ;;  %v47_v10 = vld [vmem:[%s10452_s0 + $0x108] sm:$0xff]  ;;  %v49_v16 = vld [vmem:[%s10452_s0 + $0x118] sm:$0xff]  ;;  %v54_v21 = vld [vmem:[%s10452_s0 + $0x140] sm:$0xff] }
  0x1f   :  { %v51_v17 = vld [vmem:[%s10452_s0 + $0x128] sm:$0xff]  ;;  %v56_v22 = vld [vmem:[%s10452_s0 + $0x150] sm:$0xff]  ;;  %v62_v23 = vld [vmem:[%s10452_s0 + $0x180] sm:$0xff] }
  0x20   :  { %5242 = vmatpush1.bf16.msra.mxu1 %v5241_v49  ;;  %v22_v49 = vld [vmem:[%s10452_s0 + $0x40] sm:$0xff]  ;;  %v59_v25 = vld [vmem:[%s10452_s0 + $0x168] sm:$0xff]  ;;  %v64_v29 = vld [vmem:[%s10452_s0 + $0x190] sm:$0xff] }
  0x21   :  { %5290 = vmatpush1.bf16.msra.mxu0 %v6171_v50  ;;  %5243 = vmatprep.subr.bf16.mxu1 %v6010_v0  ;;  %v67_v28 = vld [vmem:[%s10452_s0 + $0x1a8] sm:$0xff]  ;;  %v66_v31 = vld [vmem:[%s10452_s0 + $0x1a0] sm:$0xff]  ;;  %v72_v32 = vld [vmem:[%s10452_s0 + $0x1d0] sm:$0xff] }
  0x22   :  { %5291 = vmatprep.subr.bf16.mxu0 %v6010_v0  ;;  %v71_v35 = vld [vmem:[%s10452_s0 + $0x1c8] sm:$0xff]  ;;  %v927_v37 = vld [vmem:[%s10451_s1 + $0x220] sm:$0xff]  ;;  %v77_v39 = vld [vmem:[%s10452_s0 + $0x1f8] sm:$0xff] }
  0x23   :  { %v928_v38 = vld [vmem:[%s10451_s1 + $0x228] sm:$0xff]  ;;  %v74_v42 = vld [vmem:[%s10452_s0 + $0x1e0] sm:$0xff]  ;;  %v76_v43 = vld [vmem:[%s10452_s0 + $0x1f0] sm:$0xff] }
  0x24   :  { %5245 = vmatpush1.bf16.msra.mxu1 %v5244_v55  ;;  %v25_v55 = vld [vmem:[%s10452_s0 + $0x58] sm:$0xff]  ;;  %v86_v51 = vld [vmem:[%s10452_s0 + $0x240] sm:$0xff] }
  0x25   :  { %5293 = vmatpush1.bf16.msra.mxu0 %v6188_v56  ;;  %5246 = vmatprep.subr.bf16.mxu1 %v6010_v0  ;;  %v90_v52 = vld [vmem:[%s10452_s0 + $0x260] sm:$0xff] }
  0x26   :  { %5294 = vmatprep.subr.bf16.mxu0 %v6010_v0 }
  0x28   :  { %5248 = vmatpush1.bf16.msra.mxu1 %v5247_v61  ;;  %v32_v61 = vld [vmem:[%s10452_s0 + $0x90] sm:$0xff] }
  0x29   :  { %5296 = vmatpush1.bf16.msra.mxu0 %v6205_v62  ;;  %5249 = vmatprep.subr.bf16.mxu1 %v6010_v0 }
  0x2a   :  { %5297 = vmatprep.subr.bf16.mxu0 %v6010_v0 }
  0x2c   :  { %5251 = vmatpush1.bf16.msra.mxu1 %v5250_v4  ;;  %v36_v4 = vld [vmem:[%s10452_s0 + $0xb0] sm:$0xff] }
  0x2d   :  { %5299 = vmatpush1.bf16.msra.mxu0 %v6222_v5  ;;  %5252 = vmatprep.subr.bf16.mxu1 %v6010_v0 }
  0x2e   :  { %5300 = vmatprep.subr.bf16.mxu0 %v6010_v0 }
  0x30   :  { %5254 = vmatpush1.bf16.msra.mxu1 %v5253_v11  ;;  %v44_v11 = vld [vmem:[%s10452_s0 + $0xf0] sm:$0xff] }
  0x31   :  { %5302 = vmatpush1.bf16.msra.mxu0 %v6239_v13  ;;  %5255 = vmatprep.subr.bf16.mxu1 %v6010_v0 }
  0x32   :  { %5303 = vmatprep.subr.bf16.mxu0 %v6010_v0 }
  0x34   :  { %5257 = vmatpush1.bf16.msra.mxu1 %v5256_v19  ;;  %v57_v19 = vld [vmem:[%s10452_s0 + $0x158] sm:$0xff] }
  0x35   :  { %5305 = vmatpush1.bf16.msra.mxu0 %v6256_v20  ;;  %5258 = vmatprep.subr.bf16.mxu1 %v6010_v0 }
  0x36   :  { %5306 = vmatprep.subr.bf16.mxu0 %v6010_v0 }
  0x38   :  { %5260 = vmatpush1.bf16.msra.mxu1 %v5259_v26  ;;  %v61_v26 = vld [vmem:[%s10452_s0 + $0x178] sm:$0xff] }
  0x39   :  { %5308 = vmatpush1.bf16.msra.mxu0 %v6273_v27  ;;  %5261 = vmatprep.subr.bf16.mxu1 %v6010_v0 }
  0x3a   :  { %5309 = vmatprep.subr.bf16.mxu0 %v6010_v0 }
  0x3c   :  { %5263 = vmatpush1.bf16.msra.mxu1 %v5262_v33  ;;  %v69_v33 = vld [vmem:[%s10452_s0 + $0x1b8] sm:$0xff] }
  0x3d   :  { %5311 = vmatpush1.bf16.msra.mxu0 %v6290_v34  ;;  %5264 = vmatprep.subr.bf16.mxu1 %v6010_v0 }
  0x3e   :  { %5312 = vmatprep.subr.bf16.mxu0 %v6010_v0 }
  0x40   :  { %5266 = vmatpush1.bf16.msra.mxu1 %v5265_v40  ;;  %v5322_v40 = vpack.c.bf16 %v928_v38, %v927_v37  ;;  %v149_v37 = vld [vmem:[%s10452_s0 + $0x438] sm:$0xff]  ;;  %v151_v38 = vld [vmem:[%s10452_s0 + $0x448] sm:$0xff] }
  0x41   :  { %5314 = vmatpush1.bf16.msra.mxu0 %v6307_v41  ;;  %5327 = vmatprep.subr.bf16.mxu1 %v6010_v0 }
  0x42   :  { %5315 = vmatprep.subr.bf16.mxu0 %v6010_v0 }
  0x43   :  { %1511 = vmatmul.mubr.f32.vlgmr.msra.gmra.mrb[0].mxu1 %v14_v45  ;;  %v82_v45 = vld [vmem:[%s10452_s0 + $0x220] sm:$0xff] }
  0x44   :  { %2421 = vmatmul.mubr.f32.vlgmr.msra.gmra.mrb[0].mxu0 %v16_v46  ;;  %1515 = vmatprep.mubr.f32.mxu1 %v20_v48  ;;  %v79_v46 = vld [vmem:[%s10452_s0 + $0x208] sm:$0xff]  ;;  %v85_v48 = vld [vmem:[%s10452_s0 + $0x238] sm:$0xff] }
  0x45   :  { %5317 = vmatpush3.bf16.msra.mxu0 %v5316_v47  ;;  %5343 = vmatpush1.bf16.msra.mxu1 %v6053_v8  ;;  %v24_v8 = vld [vmem:[%s10452_s0 + $0x50] sm:$0xff]  ;;  %v81_v47 = vld [vmem:[%s10452_s0 + $0x218] sm:$0xff] }
  0x46   :  { %2425 = vmatprep.mubr.f32.mxu0 %v22_v49  ;;  %5328 = vmatprep.subr.bf16.mxu1 %v6010_v0  ;;  %v84_v49 = vld [vmem:[%s10452_s0 + $0x230] sm:$0xff] }
  0x47   :  { %1516 = vmatmul.mubr.f32.gmra.mrb[2].mxu1 %v19_v53  ;;  %5318 = vmatprep.subr.bf16.mxu0 %v6010_v0  ;;  %v89_v53 = vld [vmem:[%s10452_s0 + $0x258] sm:$0xff] }
  0x48   :  { %2426 = vmatmul.mubr.f32.gmra.mrb[2].mxu0 %v21_v54  ;;  %1520 = vmatprep.mubr.f32.mxu1 %v25_v55  ;;  %v91_v54 = vld [vmem:[%s10452_s0 + $0x268] sm:$0xff] }
  0x49   :  { %2430 = vmatprep.mubr.f32.mxu0 %v27_v57  ;;  %5344 = vmatpush1.bf16.msra.mxu1 %v6063_v12  ;;  %v31_v12 = vld [vmem:[%s10452_s0 + $0x88] sm:$0xff]  ;;  %v94_v57 = vld [vmem:[%s10452_s0 + $0x280] sm:$0xff] }
  0x4a   :  { %5320 = vmatpush3.bf16.msra.mxu0 %v5319_v58  ;;  %5329 = vmatprep.subr.bf16.mxu1 %v6010_v0  ;;  %v95_v55 = vld [vmem:[%s10452_s0 + $0x288] sm:$0xff]  ;;  %v96_v58 = vld [vmem:[%s10452_s0 + $0x290] sm:$0xff] }
  0x4b   :  { %1521 = vmatmul.mubr.f32.gmra.mrb[4].mxu1 %v24_v8  ;;  %5321 = vmatprep.subr.bf16.mxu0 %v6010_v0  ;;  %v100_v8 = vld [vmem:[%s10452_s0 + $0x2b0] sm:$0xff] }
  0x4c   :  { %2431 = vmatmul.mubr.f32.gmra.mrb[4].mxu0 %v26_v59  ;;  %1525 = vmatprep.mubr.f32.mxu1 %v30_v60  ;;  %v101_v59 = vld [vmem:[%s10452_s0 + $0x2b8] sm:$0xff] }
  0x4d   :  { %2435 = vmatprep.mubr.f32.mxu0 %v32_v61  ;;  %5345 = vmatpush1.bf16.msra.mxu1 %v6080_v18  ;;  %v40_v18 = vld [vmem:[%s10452_s0 + $0xd0] sm:$0xff]  ;;  %v105_v60 = vld [vmem:[%s10452_s0 + $0x2d8] sm:$0xff] }
  0x4e   :  { %5330 = vmatprep.subr.bf16.mxu1 %v6010_v0  ;;  %5323 = vmatpush3.bf16.msra.mxu0 %v5322_v40  ;;  %v104_v61 = vld [vmem:[%s10452_s0 + $0x2d0] sm:$0xff]  ;;  %v157_v40 = vld [vmem:[%s10452_s0 + $0x478] sm:$0xff] }
  0x4f   :  { %1526 = vmatmul.mubr.f32.gmra.mrb[6].mxu1 %v29_v63  ;;  %5324 = vmatprep.subr.bf16.mxu0 %v6010_v0  ;;  %v106_v63 = vld [vmem:[%s10452_s0 + $0x2e0] sm:$0xff] }
  0x50   :  { %2436 = vmatmul.mubr.f32.gmra.mrb[6].mxu0 %v31_v12  ;;  %1530 = vmatprep.mubr.f32.mxu1 %v35_v1  ;;  %v110_v12 = vld [vmem:[%s10452_s0 + $0x300] sm:$0xff]  ;;  %v112_v1 = vld [vmem:[%s10452_s0 + $0x310] sm:$0xff] }
  0x51   :  { %2440 = vmatprep.mubr.f32.mxu0 %v37_v2  ;;  %5346 = vmatpush1.bf16.msra.mxu1 %v6097_v24  ;;  %v45_v24 = vld [vmem:[%s10452_s0 + $0xf8] sm:$0xff] }
  0x52   :  { %5331 = vmatprep.subr.bf16.mxu1 %v6010_v0  ;;  %v109_v2 = vld [vmem:[%s10452_s0 + $0x2f8] sm:$0xff] }
  0x53   :  { %1531 = vmatmul.mubr.f32.gmra.mrb[8].mxu1 %v34_v3  ;;  %v111_v3 = vld [vmem:[%s10452_s0 + $0x308] sm:$0xff] }
  0x54   :  { %2441 = vmatmul.mubr.f32.gmra.mrb[8].mxu0 %v36_v4  ;;  %1535 = vmatprep.mubr.f32.mxu1 %v40_v18  ;;  %v115_v4 = vld [vmem:[%s10452_s0 + $0x328] sm:$0xff]  ;;  %v117_v18 = vld [vmem:[%s10452_s0 + $0x338] sm:$0xff] }
  0x55   :  { %2445 = vmatprep.mubr.f32.mxu0 %v42_v6  ;;  %5347 = vmatpush1.bf16.msra.mxu1 %v6114_v30  ;;  %v50_v30 = vld [vmem:[%s10452_s0 + $0x120] sm:$0xff] }
  0x56   :  { %5332 = vmatprep.subr.bf16.mxu1 %v6010_v0  ;;  %v114_v6 = vld [vmem:[%s10452_s0 + $0x320] sm:$0xff] }
  0x57   :  { %1536 = vmatmul.mubr.f32.gmra.mrb[10].mxu1 %v39_v7  ;;  %v116_v7 = vld [vmem:[%s10452_s0 + $0x330] sm:$0xff] }
  0x58   :  { %2446 = vmatmul.mubr.f32.gmra.mrb[10].mxu0 %v41_v9  ;;  %1540 = vmatprep.mubr.f32.mxu1 %v45_v24  ;;  %v120_v9 = vld [vmem:[%s10452_s0 + $0x350] sm:$0xff]  ;;  %v122_v24 = vld [vmem:[%s10452_s0 + $0x360] sm:$0xff] }
  0x59   :  { %2450 = vmatprep.mubr.f32.mxu0 %v47_v10  ;;  %5348 = vmatpush1.bf16.msra.mxu1 %v6131_v36  ;;  %v55_v36 = vld [vmem:[%s10452_s0 + $0x148] sm:$0xff] }
  0x5a   :  { %5333 = vmatprep.subr.bf16.mxu1 %v6010_v0  ;;  %v119_v10 = vld [vmem:[%s10452_s0 + $0x348] sm:$0xff] }
  0x5b   :  { %1541 = vmatmul.mubr.f32.gmra.mrb[12].mxu1 %v44_v11  ;;  %v121_v11 = vld [vmem:[%s10452_s0 + $0x358] sm:$0xff] }
  0x5c   :  { %2451 = vmatmul.mubr.f32.gmra.mrb[12].mxu0 %v46_v14  ;;  %1545 = vmatprep.mubr.f32.mxu1 %v50_v30  ;;  %v125_v14 = vld [vmem:[%s10452_s0 + $0x378] sm:$0xff]  ;;  %v127_v30 = vld [vmem:[%s10452_s0 + $0x388] sm:$0xff] }
  0x5d   :  { %2455 = vmatprep.mubr.f32.mxu0 %v52_v15  ;;  %5349 = vmatpush1.bf16.msra.mxu1 %v6154_v44  ;;  %v60_v44 = vld [vmem:[%s10452_s0 + $0x170] sm:$0xff] }
  0x5e   :  { %5334 = vmatprep.subr.bf16.mxu1 %v6010_v0  ;;  %v124_v15 = vld [vmem:[%s10452_s0 + $0x370] sm:$0xff] }
  0x5f   :  { %1546 = vmatmul.mubr.f32.gmra.mrb[14].mxu1 %v49_v16  ;;  %v126_v16 = vld [vmem:[%s10452_s0 + $0x380] sm:$0xff] }
  0x60   :  { %2456 = vmatmul.mubr.f32.gmra.mrb[14].mxu0 %v51_v17  ;;  %1550 = vmatprep.mubr.f32.mxu1 %v55_v36  ;;  %v130_v17 = vld [vmem:[%s10452_s0 + $0x3a0] sm:$0xff]  ;;  %v132_v36 = vld [vmem:[%s10452_s0 + $0x3b0] sm:$0xff] }
  0x61   :  { %2460 = vmatprep.mubr.f32.mxu0 %v57_v19  ;;  %5350 = vmatpush1.bf16.msra.mxu1 %v6171_v50  ;;  %v65_v50 = vld [vmem:[%s10452_s0 + $0x198] sm:$0xff] }
  0x62   :  { %5335 = vmatprep.subr.bf16.mxu1 %v6010_v0  ;;  %v129_v19 = vld [vmem:[%s10452_s0 + $0x398] sm:$0xff] }
  0x63   :  { %1551 = vmatmul.mubr.f32.gmra.mrb[16].mxu1 %v54_v21  ;;  %v131_v21 = vld [vmem:[%s10452_s0 + $0x3a8] sm:$0xff] }
  0x64   :  { %2461 = vmatmul.mubr.f32.gmra.mrb[16].mxu0 %v56_v22  ;;  %1555 = vmatprep.mubr.f32.mxu1 %v60_v44  ;;  %v135_v22 = vld [vmem:[%s10452_s0 + $0x3c8] sm:$0xff]  ;;  %v137_v44 = vld [vmem:[%s10452_s0 + $0x3d8] sm:$0xff] }
  0x65   :  { %2465 = vmatprep.mubr.f32.mxu0 %v62_v23  ;;  %5351 = vmatpush1.bf16.msra.mxu1 %v6188_v56  ;;  %v70_v56 = vld [vmem:[%s10452_s0 + $0x1c0] sm:$0xff] }
  0x66   :  { %5336 = vmatprep.subr.bf16.mxu1 %v6010_v0  ;;  %v134_v23 = vld [vmem:[%s10452_s0 + $0x3c0] sm:$0xff] }
  0x67   :  { %1556 = vmatmul.mubr.f32.gmra.mrb[18].mxu1 %v59_v25  ;;  %v136_v25 = vld [vmem:[%s10452_s0 + $0x3d0] sm:$0xff] }
  0x68   :  { %2466 = vmatmul.mubr.f32.gmra.mrb[18].mxu0 %v61_v26  ;;  %1560 = vmatprep.mubr.f32.mxu1 %v65_v50  ;;  %v140_v26 = vld [vmem:[%s10452_s0 + $0x3f0] sm:$0xff]  ;;  %v142_v50 = vld [vmem:[%s10452_s0 + $0x400] sm:$0xff] }
  0x69   :  { %2470 = vmatprep.mubr.f32.mxu0 %v67_v28  ;;  %5352 = vmatpush1.bf16.msra.mxu1 %v6205_v62  ;;  %v75_v62 = vld [vmem:[%s10452_s0 + $0x1e8] sm:$0xff] }
  0x6a   :  { %5337 = vmatprep.subr.bf16.mxu1 %v6010_v0  ;;  %v139_v28 = vld [vmem:[%s10452_s0 + $0x3e8] sm:$0xff] }
  0x6b   :  { %1561 = vmatmul.mubr.f32.gmra.mrb[20].mxu1 %v64_v29  ;;  %v141_v29 = vld [vmem:[%s10452_s0 + $0x3f8] sm:$0xff] }
  0x6c   :  { %2471 = vmatmul.mubr.f32.gmra.mrb[20].mxu0 %v66_v31  ;;  %1565 = vmatprep.mubr.f32.mxu1 %v70_v56  ;;  %v145_v31 = vld [vmem:[%s10452_s0 + $0x418] sm:$0xff]  ;;  %v147_v56 = vld [vmem:[%s10452_s0 + $0x428] sm:$0xff] }
  0x6d   :  { %2475 = vmatprep.mubr.f32.mxu0 %v72_v32  ;;  %5353 = vmatpush1.bf16.msra.mxu1 %v6222_v5  ;;  %v80_v5 = vld [vmem:[%s10452_s0 + $0x210] sm:$0xff] }
  0x6e   :  { %5338 = vmatprep.subr.bf16.mxu1 %v6010_v0  ;;  %v144_v32 = vld [vmem:[%s10452_s0 + $0x410] sm:$0xff] }
  0x6f   :  { %1566 = vmatmul.mubr.f32.gmra.mrb[22].mxu1 %v69_v33  ;;  %v146_v33 = vld [vmem:[%s10452_s0 + $0x420] sm:$0xff] }
  0x70   :  { %2476 = vmatmul.mubr.f32.gmra.mrb[22].mxu0 %v71_v35  ;;  %1570 = vmatprep.mubr.f32.mxu1 %v75_v62  ;;  %v150_v35 = vld [vmem:[%s10452_s0 + $0x440] sm:$0xff]  ;;  %v152_v62 = vld [vmem:[%s10452_s0 + $0x450] sm:$0xff] }
  0x71   :  { %2480 = vmatprep.mubr.f32.mxu0 %v77_v39  ;;  %5354 = vmatpush1.bf16.msra.mxu1 %v6239_v13  ;;  %v87_v13 = vld [vmem:[%s10452_s0 + $0x248] sm:$0xff] }
  0x72   :  { %5339 = vmatprep.subr.bf16.mxu1 %v6010_v0  ;;  %v155_v39 = vld [vmem:[%s10452_s0 + $0x468] sm:$0xff] }
  0x73   :  { %1571 = vmatmul.mubr.f32.gmra.mrb[24].mxu1 %v74_v42  ;;  %v154_v42 = vld [vmem:[%s10452_s0 + $0x460] sm:$0xff] }
  0x74   :  { %2481 = vmatmul.mubr.f32.gmra.mrb[24].mxu0 %v76_v43  ;;  %1575 = vmatprep.mubr.f32.mxu1 %v80_v5  ;;  %v156_v43 = vld [vmem:[%s10452_s0 + $0x470] sm:$0xff] }
  0x75   :  { %2485 = vmatprep.mubr.f32.mxu0 %v82_v45  ;;  %5355 = vmatpush1.bf16.msra.mxu1 %v6256_v20  ;;  %v92_v20 = vld [vmem:[%s10452_s0 + $0x270] sm:$0xff]  ;;  %v162_v45 = vld [vmem:[%s10452_s0 + $0x4a0] sm:$0xff] }
  0x76   :  { %5340 = vmatprep.subr.bf16.mxu1 %v6010_v0  ;;  %v160_v5 = vld [vmem:[%s10452_s0 + $0x490] sm:$0xff] }
  0x77   :  { %1576 = vmatmul.mubr.f32.gmra.mrb[26].mxu1 %v79_v46  ;;  %v159_v46 = vld [vmem:[%s10452_s0 + $0x488] sm:$0xff] }
  0x78   :  { %2486 = vmatmul.mubr.f32.gmra.mrb[26].mxu0 %v81_v47  ;;  %1580 = vmatprep.mubr.f32.mxu1 %v85_v48  ;;  %v161_v47 = vld [vmem:[%s10452_s0 + $0x498] sm:$0xff] }
  0x79   :  { %2490 = vmatprep.mubr.f32.mxu0 %v87_v13  ;;  %5356 = vmatpush1.bf16.msra.mxu1 %v6273_v27  ;;  %v97_v27 = vld [vmem:[%s10452_s0 + $0x298] sm:$0xff]  ;;  %v167_v13 = vld [vmem:[%s10452_s0 + $0x4c8] sm:$0xff] }
  0x7a   :  { %5341 = vmatprep.subr.bf16.mxu1 %v6010_v0  ;;  %v165_v48 = vld [vmem:[%s10452_s0 + $0x4b8] sm:$0xff] }
  0x7b   :  { %1581 = vmatmul.mubr.f32.gmra.mrb[28].mxu1 %v84_v49  ;;  %v164_v49 = vld [vmem:[%s10452_s0 + $0x4b0] sm:$0xff] }
  0x7c   :  { %2491 = vmatmul.mubr.f32.gmra.mrb[28].mxu0 %v86_v51  ;;  %1585 = vmatprep.mubr.f32.mxu1 %v90_v52  ;;  %v166_v51 = vld [vmem:[%s10452_s0 + $0x4c0] sm:$0xff] }
  0x7d   :  { %2495 = vmatprep.mubr.f32.mxu0 %v92_v20  ;;  %5357 = vmatpush1.bf16.msra.mxu1 %v6290_v34  ;;  %v102_v34 = vld [vmem:[%s10452_s0 + $0x2c0] sm:$0xff]  ;;  %v172_v20 = vld [vmem:[%s10452_s0 + $0x4f0] sm:$0xff] }
  0x7e   :  { %5342 = vmatprep.subr.bf16.mxu1 %v6010_v0  ;;  %v99_v0 = vld [vmem:[%s10452_s0 + $0x2a8] sm:$0xff]  ;;  %v170_v52 = vld [vmem:[%s10452_s0 + $0x4e0] sm:$0xff] }
  0x7f   :  { %1586 = vmatmul.mubr.f32.gmra.mrb[30].mxu1 %v89_v53  ;;  %v169_v53 = vld [vmem:[%s10452_s0 + $0x4d8] sm:$0xff] }
  0x80   :  { %2496 = vmatmul.mubr.f32.gmra.mrb[30].mxu0 %v91_v54  ;;  %1590 = vmatprep.mubr.f32.mxu1 %v95_v55  ;;  %v171_v54 = vld [vmem:[%s10452_s0 + $0x4e8] sm:$0xff] }
  0x81   :  { %2500 = vmatprep.mubr.f32.mxu0 %v97_v27  ;;  %5358 = vmatpush1.bf16.msra.mxu1 %v6307_v41  ;;  %v107_v41 = vld [vmem:[%s10452_s0 + $0x2e8] sm:$0xff]  ;;  %v177_v27 = vld [vmem:[%s10452_s0 + $0x518] sm:$0xff] }
  0x82   :  { %v175_v55 = vld [vmem:[%s10452_s0 + $0x508] sm:$0xff] }
  0x83   :  { %1591 = vmatmul.mubr.f32.gmra.mrb[32].mxu1 %v94_v57  ;;  %v174_v57 = vld [vmem:[%s10452_s0 + $0x500] sm:$0xff] }
  0x84   :  { %2501 = vmatmul.mubr.f32.gmra.mrb[32].mxu0 %v96_v58  ;;  %1595 = vmatprep.mubr.f32.mxu1 %v100_v8  ;;  %v176_v58 = vld [vmem:[%s10452_s0 + $0x510] sm:$0xff] }
  0x85   :  { %2505 = vmatprep.mubr.f32.mxu0 %v102_v34  ;;  %v180_v8 = vld [vmem:[%s10452_s0 + $0x530] sm:$0xff]  ;;  %v182_v34 = vld [vmem:[%s10452_s0 + $0x540] sm:$0xff] }
  0x87   :  { %1596 = vmatmul.mubr.f32.gmra.mrb[34].mxu1 %v99_v0  ;;  %v179_v0 = vld [vmem:[%s10452_s0 + $0x528] sm:$0xff] }
  0x88   :  { %2506 = vmatmul.mubr.f32.gmra.mrb[34].mxu0 %v101_v59  ;;  %1600 = vmatprep.mubr.f32.mxu1 %v105_v60  ;;  %v929_v59 = vld [vmem:[%s10451_s1 + $0x230] sm:$0xff]  ;;  %v930_v60 = vld [vmem:[%s10451_s1 + $0x238] sm:$0xff] }
  0x89   :  { %2510 = vmatprep.mubr.f32.mxu0 %v107_v41  ;;  %v181_v41 = vld [vmem:[%s10452_s0 + $0x538] sm:$0xff] }
  0x8b   :  { %1601 = vmatmul.mubr.f32.gmra.mrb[36].mxu1 %v104_v61  ;;  %v185_v61 = vld [vmem:[%s10452_s0 + $0x558] sm:$0xff] }
  0x8c   :  { %2511 = vmatmul.mubr.f32.gmra.mrb[36].mxu0 %v106_v63  ;;  %1605 = vmatprep.mubr.f32.mxu1 %v110_v12  ;;  %v5325_v63 = vpack.c.bf16 %v930_v60, %v929_v59  ;;  %v187_v12 = vld [vmem:[%s10452_s0 + $0x568] sm:$0xff]  ;;  %v260_v59 = vld [vmem:[%s10452_s0 + $0x7b0] sm:$0xff]  ;;  %v262_v60 = vld [vmem:[%s10452_s0 + $0x7c0] sm:$0xff] }
  0x8d   :  { %2515 = vmatprep.mubr.f32.mxu0 %v112_v1  ;;  %v184_v1 = vld [vmem:[%s10452_s0 + $0x550] sm:$0xff] }
  0x8e   :  { %5326 = vmatpush3.bf16.msra.mxu0 %v5325_v63  ;;  %v265_v63 = vld [vmem:[%s10452_s0 + $0x7d8] sm:$0xff] }
  0x8f   :  { %1606 = vmatmul.mubr.f32.gmra.mrb[38].mxu1 %v109_v2  ;;  %v186_v2 = vld [vmem:[%s10452_s0 + $0x560] sm:$0xff] }
  0x90   :  { %2516 = vmatmul.mubr.f32.gmra.mrb[38].mxu0 %v111_v3  ;;  %1610 = vmatprep.mubr.f32.mxu1 %v115_v4  ;;  %v190_v3 = vld [vmem:[%s10452_s0 + $0x580] sm:$0xff]  ;;  %v192_v4 = vld [vmem:[%s10452_s0 + $0x590] sm:$0xff] }
  0x91   :  { %2520 = vmatprep.mubr.f32.mxu0 %v117_v18  ;;  %v189_v18 = vld [vmem:[%s10452_s0 + $0x578] sm:$0xff] }
  0x93   :  { %1611 = vmatmul.mubr.f32.gmra.mrb[40].mxu1 %v114_v6  ;;  %v191_v6 = vld [vmem:[%s10452_s0 + $0x588] sm:$0xff] }
  0x94   :  { %2521 = vmatmul.mubr.f32.gmra.mrb[40].mxu0 %v116_v7  ;;  %1615 = vmatprep.mubr.f32.mxu1 %v120_v9  ;;  %v195_v7 = vld [vmem:[%s10452_s0 + $0x5a8] sm:$0xff]  ;;  %v197_v9 = vld [vmem:[%s10452_s0 + $0x5b8] sm:$0xff] }
  0x95   :  { %2525 = vmatprep.mubr.f32.mxu0 %v122_v24  ;;  %v194_v24 = vld [vmem:[%s10452_s0 + $0x5a0] sm:$0xff] }
  0x97   :  { %1616 = vmatmul.mubr.f32.gmra.mrb[42].mxu1 %v119_v10  ;;  %v196_v10 = vld [vmem:[%s10452_s0 + $0x5b0] sm:$0xff] }
  0x98   :  { %2526 = vmatmul.mubr.f32.gmra.mrb[42].mxu0 %v121_v11  ;;  %1620 = vmatprep.mubr.f32.mxu1 %v125_v14  ;;  %v200_v11 = vld [vmem:[%s10452_s0 + $0x5d0] sm:$0xff]  ;;  %v202_v14 = vld [vmem:[%s10452_s0 + $0x5e0] sm:$0xff] }
  0x99   :  { %2530 = vmatprep.mubr.f32.mxu0 %v127_v30  ;;  %v199_v30 = vld [vmem:[%s10452_s0 + $0x5c8] sm:$0xff] }
  0x9b   :  { %1621 = vmatmul.mubr.f32.gmra.mrb[44].mxu1 %v124_v15  ;;  %v201_v15 = vld [vmem:[%s10452_s0 + $0x5d8] sm:$0xff] }
  0x9c   :  { %2531 = vmatmul.mubr.f32.gmra.mrb[44].mxu0 %v126_v16  ;;  %1625 = vmatprep.mubr.f32.mxu1 %v130_v17  ;;  %v205_v16 = vld [vmem:[%s10452_s0 + $0x5f8] sm:$0xff]  ;;  %v207_v17 = vld [vmem:[%s10452_s0 + $0x608] sm:$0xff] }
  0x9d   :  { %2535 = vmatprep.mubr.f32.mxu0 %v132_v36  ;;  %v204_v36 = vld [vmem:[%s10452_s0 + $0x5f0] sm:$0xff] }
  0x9f   :  { %1626 = vmatmul.mubr.f32.gmra.mrb[46].mxu1 %v129_v19  ;;  %v206_v19 = vld [vmem:[%s10452_s0 + $0x600] sm:$0xff] }
  0xa0   :  { %2536 = vmatmul.mubr.f32.gmra.mrb[46].mxu0 %v131_v21  ;;  %1630 = vmatprep.mubr.f32.mxu1 %v135_v22  ;;  %v210_v21 = vld [vmem:[%s10452_s0 + $0x620] sm:$0xff]  ;;  %v212_v22 = vld [vmem:[%s10452_s0 + $0x630] sm:$0xff] }
  0xa1   :  { %2540 = vmatprep.mubr.f32.mxu0 %v137_v44  ;;  %v209_v44 = vld [vmem:[%s10452_s0 + $0x618] sm:$0xff] }
  0xa3   :  { %1631 = vmatmul.mubr.f32.gmra.mrb[48].mxu1 %v134_v23  ;;  %v211_v23 = vld [vmem:[%s10452_s0 + $0x628] sm:$0xff] }
  0xa4   :  { %2541 = vmatmul.mubr.f32.gmra.mrb[48].mxu0 %v136_v25  ;;  %1635 = vmatprep.mubr.f32.mxu1 %v140_v26  ;;  %v215_v25 = vld [vmem:[%s10452_s0 + $0x648] sm:$0xff]  ;;  %v217_v26 = vld [vmem:[%s10452_s0 + $0x658] sm:$0xff] }
  0xa5   :  { %2545 = vmatprep.mubr.f32.mxu0 %v142_v50  ;;  %v214_v50 = vld [vmem:[%s10452_s0 + $0x640] sm:$0xff] }
  0xa7   :  { %1636 = vmatmul.mubr.f32.gmra.mrb[50].mxu1 %v139_v28  ;;  %v216_v28 = vld [vmem:[%s10452_s0 + $0x650] sm:$0xff] }
  0xa8   :  { %2546 = vmatmul.mubr.f32.gmra.mrb[50].mxu0 %v141_v29  ;;  %1640 = vmatprep.mubr.f32.mxu1 %v145_v31  ;;  %v220_v29 = vld [vmem:[%s10452_s0 + $0x670] sm:$0xff]  ;;  %v222_v31 = vld [vmem:[%s10452_s0 + $0x680] sm:$0xff] }
  0xa9   :  { %2550 = vmatprep.mubr.f32.mxu0 %v147_v56  ;;  %v219_v56 = vld [vmem:[%s10452_s0 + $0x668] sm:$0xff] }
  0xab   :  { %1641 = vmatmul.mubr.f32.gmra.mrb[52].mxu1 %v144_v32  ;;  %v221_v32 = vld [vmem:[%s10452_s0 + $0x678] sm:$0xff] }
  0xac   :  { %2551 = vmatmul.mubr.f32.gmra.mrb[52].mxu0 %v146_v33  ;;  %1645 = vmatprep.mubr.f32.mxu1 %v150_v35  ;;  %v225_v33 = vld [vmem:[%s10452_s0 + $0x698] sm:$0xff]  ;;  %v227_v35 = vld [vmem:[%s10452_s0 + $0x6a8] sm:$0xff] }
  0xad   :  { %2555 = vmatprep.mubr.f32.mxu0 %v152_v62  ;;  %v224_v62 = vld [vmem:[%s10452_s0 + $0x690] sm:$0xff] }
  0xaf   :  { %1646 = vmatmul.mubr.f32.gmra.mrb[54].mxu1 %v149_v37  ;;  %v226_v37 = vld [vmem:[%s10452_s0 + $0x6a0] sm:$0xff] }
  0xb0   :  { %2556 = vmatmul.mubr.f32.gmra.mrb[54].mxu0 %v151_v38  ;;  %1650 = vmatprep.mubr.f32.mxu1 %v155_v39  ;;  %v230_v38 = vld [vmem:[%s10452_s0 + $0x6c0] sm:$0xff]  ;;  %v232_v39 = vld [vmem:[%s10452_s0 + $0x6d0] sm:$0xff] }
  0xb1   :  { %2560 = vmatprep.mubr.f32.mxu0 %v157_v40  ;;  %v229_v40 = vld [vmem:[%s10452_s0 + $0x6b8] sm:$0xff] }
  0xb3   :  { %1651 = vmatmul.mubr.f32.gmra.mrb[56].mxu1 %v154_v42  ;;  %v231_v42 = vld [vmem:[%s10452_s0 + $0x6c8] sm:$0xff] }
  0xb4   :  { %2561 = vmatmul.mubr.f32.gmra.mrb[56].mxu0 %v156_v43  ;;  %1655 = vmatprep.mubr.f32.mxu1 %v160_v5  ;;  %v235_v43 = vld [vmem:[%s10452_s0 + $0x6e8] sm:$0xff]  ;;  %v237_v5 = vld [vmem:[%s10452_s0 + $0x6f8] sm:$0xff] }
  0xb5   :  { %2565 = vmatprep.mubr.f32.mxu0 %v162_v45  ;;  %v234_v45 = vld [vmem:[%s10452_s0 + $0x6e0] sm:$0xff] }
  0xb7   :  { %1656 = vmatmul.mubr.f32.gmra.mrb[58].mxu1 %v159_v46  ;;  %v236_v46 = vld [vmem:[%s10452_s0 + $0x6f0] sm:$0xff] }
  0xb8   :  { %2566 = vmatmul.mubr.f32.gmra.mrb[58].mxu0 %v161_v47  ;;  %1660 = vmatprep.mubr.f32.mxu1 %v165_v48  ;;  %v240_v47 = vld [vmem:[%s10452_s0 + $0x710] sm:$0xff]  ;;  %v242_v48 = vld [vmem:[%s10452_s0 + $0x720] sm:$0xff] }
  0xb9   :  { %2570 = vmatprep.mubr.f32.mxu0 %v167_v13  ;;  %v239_v13 = vld [vmem:[%s10452_s0 + $0x708] sm:$0xff] }
  0xbb   :  { %1661 = vmatmul.mubr.f32.gmra.mrb[60].mxu1 %v164_v49  ;;  %v241_v49 = vld [vmem:[%s10452_s0 + $0x718] sm:$0xff] }
  0xbc   :  { %2571 = vmatmul.mubr.f32.gmra.mrb[60].mxu0 %v166_v51  ;;  %1665 = vmatprep.mubr.f32.mxu1 %v170_v52  ;;  %v245_v51 = vld [vmem:[%s10452_s0 + $0x738] sm:$0xff]  ;;  %v247_v52 = vld [vmem:[%s10452_s0 + $0x748] sm:$0xff] }
  0xbd   :  { %2575 = vmatprep.mubr.f32.mxu0 %v172_v20  ;;  %v244_v20 = vld [vmem:[%s10452_s0 + $0x730] sm:$0xff] }
  0xbf   :  { %1666 = vmatmul.mubr.f32.gmra.mrb[62].mxu1 %v169_v53  ;;  %v246_v53 = vld [vmem:[%s10452_s0 + $0x740] sm:$0xff] }
  0xc0   :  { %2576 = vmatmul.mubr.f32.gmra.mrb[62].mxu0 %v171_v54  ;;  %1670 = vmatprep.mubr.f32.mxu1 %v175_v55  ;;  %v250_v54 = vld [vmem:[%s10452_s0 + $0x760] sm:$0xff]  ;;  %v252_v55 = vld [vmem:[%s10452_s0 + $0x770] sm:$0xff] }
  0xc1   :  { %2580 = vmatprep.mubr.f32.mxu0 %v177_v27  ;;  %v249_v27 = vld [vmem:[%s10452_s0 + $0x758] sm:$0xff] }
  0xc3   :  { %1671 = vmatmul.mubr.f32.gmra.mrb[64].mxu1 %v174_v57  ;;  %v251_v57 = vld [vmem:[%s10452_s0 + $0x768] sm:$0xff] }
  0xc4   :  { %2581 = vmatmul.mubr.f32.gmra.mrb[64].mxu0 %v176_v58  ;;  %1675 = vmatprep.mubr.f32.mxu1 %v180_v8  ;;  %v255_v58 = vld [vmem:[%s10452_s0 + $0x788] sm:$0xff]  ;;  %v257_v8 = vld [vmem:[%s10452_s0 + $0x798] sm:$0xff] }
  0xc5   :  { %2585 = vmatprep.mubr.f32.mxu0 %v182_v34  ;;  %v254_v34 = vld [vmem:[%s10452_s0 + $0x780] sm:$0xff] }
  0xc7   :  { %1676 = vmatmul.mubr.f32.gmra.mrb[66].mxu1 %v179_v0  ;;  %v256_v0 = vld [vmem:[%s10452_s0 + $0x790] sm:$0xff] }
  0xc8   :  { %2586 = vmatmul.mubr.f32.gmra.mrb[66].mxu0 %v181_v41  ;;  %1680 = vmatprep.mubr.f32.mxu1 %v185_v61  ;;  %v259_v41 = vld [vmem:[%s10452_s0 + $0x7a8] sm:$0xff]  ;;  %v261_v61 = vld [vmem:[%s10452_s0 + $0x7b8] sm:$0xff] }
  0xc9   :  { %2590 = vmatprep.mubr.f32.mxu0 %v187_v12  ;;  %v267_v12 = vld [vmem:[%s10452_s0 + $0x7e8] sm:$0xff] }
  0xcb   :  { %1681 = vmatmul.mubr.f32.gmra.mrb[68].mxu1 %v184_v1  ;;  %v264_v1 = vld [vmem:[%s10452_s0 + $0x7d0] sm:$0xff] }
  0xcc   :  { %2591 = vmatmul.mubr.f32.gmra.mrb[68].mxu0 %v186_v2  ;;  %1685 = vmatprep.mubr.f32.mxu1 %v190_v3  ;;  %v266_v2 = vld [vmem:[%s10452_s0 + $0x7e0] sm:$0xff] }
  0xcd   :  { %2595 = vmatprep.mubr.f32.mxu0 %v192_v4  ;;  %v270_v3 = vld [vmem:[%s10452_s0 + $0x800] sm:$0xff]  ;;  %v272_v4 = vld [vmem:[%s10452_s0 + $0x810] sm:$0xff] }
  0xcf   :  { %1686 = vmatmul.mubr.f32.gmra.mrb[70].mxu1 %v189_v18  ;;  %v269_v18 = vld [vmem:[%s10452_s0 + $0x7f8] sm:$0xff] }
  0xd0   :  { %2596 = vmatmul.mubr.f32.gmra.mrb[70].mxu0 %v191_v6  ;;  %1690 = vmatprep.mubr.f32.mxu1 %v195_v7  ;;  %v271_v6 = vld [vmem:[%s10452_s0 + $0x808] sm:$0xff] }
  0xd1   :  { %2600 = vmatprep.mubr.f32.mxu0 %v197_v9  ;;  %v275_v7 = vld [vmem:[%s10452_s0 + $0x828] sm:$0xff]  ;;  %v277_v9 = vld [vmem:[%s10452_s0 + $0x838] sm:$0xff] }
  0xd3   :  { %1691 = vmatmul.mubr.f32.gmra.mrb[72].mxu1 %v194_v24  ;;  %v274_v24 = vld [vmem:[%s10452_s0 + $0x820] sm:$0xff] }
  0xd4   :  { %2601 = vmatmul.mubr.f32.gmra.mrb[72].mxu0 %v196_v10  ;;  %1695 = vmatprep.mubr.f32.mxu1 %v200_v11  ;;  %v276_v10 = vld [vmem:[%s10452_s0 + $0x830] sm:$0xff] }
  0xd5   :  { %2605 = vmatprep.mubr.f32.mxu0 %v202_v14  ;;  %v280_v11 = vld [vmem:[%s10452_s0 + $0x850] sm:$0xff]  ;;  %v282_v14 = vld [vmem:[%s10452_s0 + $0x860] sm:$0xff] }
  0xd7   :  { %1696 = vmatmul.mubr.f32.gmra.mrb[74].mxu1 %v199_v30  ;;  %v279_v30 = vld [vmem:[%s10452_s0 + $0x848] sm:$0xff] }
  0xd8   :  { %2606 = vmatmul.mubr.f32.gmra.mrb[74].mxu0 %v201_v15  ;;  %1700 = vmatprep.mubr.f32.mxu1 %v205_v16  ;;  %v281_v15 = vld [vmem:[%s10452_s0 + $0x858] sm:$0xff] }
  0xd9   :  { %2610 = vmatprep.mubr.f32.mxu0 %v207_v17  ;;  %v285_v16 = vld [vmem:[%s10452_s0 + $0x878] sm:$0xff] }
  0xdb   :  { %1701 = vmatmul.mubr.f32.gmra.mrb[76].mxu1 %v204_v36  ;;  %v287_v36 = vld [vmem:[%s10452_s0 + $0x888] sm:$0xff] }
  0xdc   :  { %2611 = vmatmul.mubr.f32.gmra.mrb[76].mxu0 %v206_v19  ;;  %1705 = vmatprep.mubr.f32.mxu1 %v210_v21  ;;  %v284_v21 = vld [vmem:[%s10452_s0 + $0x870] sm:$0xff] }
  0xdd   :  { %2615 = vmatprep.mubr.f32.mxu0 %v212_v22  ;;  %v286_v22 = vld [vmem:[%s10452_s0 + $0x880] sm:$0xff] }
  0xdf   :  { %1706 = vmatmul.mubr.f32.gmra.mrb[78].mxu1 %v209_v44  ;;  %v290_v44 = vld [vmem:[%s10452_s0 + $0x8a0] sm:$0xff] }
  0xe0   :  { %2616 = vmatmul.mubr.f32.gmra.mrb[78].mxu0 %v211_v23  ;;  %1710 = vmatprep.mubr.f32.mxu1 %v215_v25  ;;  %v292_v25 = vld [vmem:[%s10452_s0 + $0x8b0] sm:$0xff] }
  0xe1   :  { %2620 = vmatprep.mubr.f32.mxu0 %v217_v26 }
  0xe3   :  { %1711 = vmatmul.mubr.f32.gmra.mrb[80].mxu1 %v214_v50  ;;  %v289_v50 = vld [vmem:[%s10452_s0 + $0x898] sm:$0xff] }
  0xe4   :  { %2621 = vmatmul.mubr.f32.gmra.mrb[80].mxu0 %v216_v28  ;;  %1715 = vmatprep.mubr.f32.mxu1 %v220_v29  ;;  %v291_v28 = vld [vmem:[%s10452_s0 + $0x8a8] sm:$0xff] }
  0xe5   :  { %2625 = vmatprep.mubr.f32.mxu0 %v222_v31  ;;  %v295_v29 = vld [vmem:[%s10452_s0 + $0x8c8] sm:$0xff] }
  0xe7   :  { %1716 = vmatmul.mubr.f32.gmra.mrb[82].mxu1 %v219_v56  ;;  %v297_v56 = vld [vmem:[%s10452_s0 + $0x8d8] sm:$0xff] }
  0xe8   :  { %2626 = vmatmul.mubr.f32.gmra.mrb[82].mxu0 %v221_v32  ;;  %1720 = vmatprep.mubr.f32.mxu1 %v225_v33  ;;  %v294_v33 = vld [vmem:[%s10452_s0 + $0x8c0] sm:$0xff] }
  0xe9   :  { %2630 = vmatprep.mubr.f32.mxu0 %v227_v35  ;;  %v296_v35 = vld [vmem:[%s10452_s0 + $0x8d0] sm:$0xff] }
  0xeb   :  { %1721 = vmatmul.mubr.f32.gmra.mrb[84].mxu1 %v224_v62  ;;  %v300_v62 = vld [vmem:[%s10452_s0 + $0x8f0] sm:$0xff] }
  0xec   :  { %2631 = vmatmul.mubr.f32.gmra.mrb[84].mxu0 %v226_v37  ;;  %1725 = vmatprep.mubr.f32.mxu1 %v230_v38  ;;  %v302_v38 = vld [vmem:[%s10452_s0 + $0x900] sm:$0xff] }
  0xed   :  { %2635 = vmatprep.mubr.f32.mxu0 %v232_v39 }
  0xef   :  { %1726 = vmatmul.mubr.f32.gmra.mrb[86].mxu1 %v229_v40  ;;  %v299_v40 = vld [vmem:[%s10452_s0 + $0x8e8] sm:$0xff] }
  0xf0   :  { %2636 = vmatmul.mubr.f32.gmra.mrb[86].mxu0 %v231_v42  ;;  %1730 = vmatprep.mubr.f32.mxu1 %v235_v43  ;;  %v301_v42 = vld [vmem:[%s10452_s0 + $0x8f8] sm:$0xff] }
  0xf1   :  { %2640 = vmatprep.mubr.f32.mxu0 %v237_v5  ;;  %v305_v43 = vld [vmem:[%s10452_s0 + $0x918] sm:$0xff] }
  0xf3   :  { %1731 = vmatmul.mubr.f32.gmra.mrb[88].mxu1 %v234_v45  ;;  %v307_v45 = vld [vmem:[%s10452_s0 + $0x928] sm:$0xff] }
  0xf4   :  { %2641 = vmatmul.mubr.f32.gmra.mrb[88].mxu0 %v236_v46  ;;  %1735 = vmatprep.mubr.f32.mxu1 %v240_v47  ;;  %v304_v47 = vld [vmem:[%s10452_s0 + $0x910] sm:$0xff] }
  0xf5   :  { %2645 = vmatprep.mubr.f32.mxu0 %v242_v48  ;;  %v306_v48 = vld [vmem:[%s10452_s0 + $0x920] sm:$0xff] }
  0xf7   :  { %1736 = vmatmul.mubr.f32.gmra.mrb[90].mxu1 %v239_v13  ;;  %v310_v13 = vld [vmem:[%s10452_s0 + $0x940] sm:$0xff] }
  0xf8   :  { %2646 = vmatmul.mubr.f32.gmra.mrb[90].mxu0 %v241_v49  ;;  %1740 = vmatprep.mubr.f32.mxu1 %v245_v51  ;;  %v312_v51 = vld [vmem:[%s10452_s0 + $0x950] sm:$0xff] }
  0xf9   :  { %2650 = vmatprep.mubr.f32.mxu0 %v247_v52 }
  0xfb   :  { %1741 = vmatmul.mubr.f32.gmra.mrb[92].mxu1 %v244_v20  ;;  %v309_v20 = vld [vmem:[%s10452_s0 + $0x938] sm:$0xff] }
  0xfc   :  { %2651 = vmatmul.mubr.f32.gmra.mrb[92].mxu0 %v246_v53  ;;  %1745 = vmatprep.mubr.f32.mxu1 %v250_v54  ;;  %v311_v53 = vld [vmem:[%s10452_s0 + $0x948] sm:$0xff] }
  0xfd   :  { %2655 = vmatprep.mubr.f32.mxu0 %v252_v55  ;;  %v315_v54 = vld [vmem:[%s10452_s0 + $0x968] sm:$0xff] }
  0xff   :  { %1746 = vmatmul.mubr.f32.gmra.mrb[94].mxu1 %v249_v27  ;;  %v317_v27 = vld [vmem:[%s10452_s0 + $0x978] sm:$0xff] }
 0x100   :  { %2656 = vmatmul.mubr.f32.gmra.mrb[94].mxu0 %v251_v57  ;;  %1750 = vmatprep.mubr.f32.mxu1 %v255_v58  ;;  %v314_v58 = vld [vmem:[%s10452_s0 + $0x960] sm:$0xff] }
 0x101   :  { %2660 = vmatprep.mubr.f32.mxu0 %v257_v8  ;;  %v316_v8 = vld [vmem:[%s10452_s0 + $0x970] sm:$0xff] }
 0x103   :  { %1751 = vmatmul.mubr.f32.gmra.mrb[96].mxu1 %v254_v34  ;;  %v320_v34 = vld [vmem:[%s10452_s0 + $0x990] sm:$0xff] }
 0x104   :  { %2661 = vmatmul.mubr.f32.gmra.mrb[96].mxu0 %v256_v0  ;;  %1755 = vmatprep.mubr.f32.mxu1 %v260_v59  ;;  %v322_v59 = vld [vmem:[%s10452_s0 + $0x9a0] sm:$0xff] }
 0x105   :  { %2665 = vmatprep.mubr.f32.mxu0 %v262_v60 }
 0x107   :  { %1756 = vmatmul.mubr.f32.gmra.mrb[98].mxu1 %v259_v41  ;;  %v319_v41 = vld [vmem:[%s10452_s0 + $0x988] sm:$0xff] }
 0x108   :  { %2666 = vmatmul.mubr.f32.gmra.mrb[98].mxu0 %v261_v61  ;;  %1760 = vmatprep.mubr.f32.mxu1 %v265_v63  ;;  %v321_v61 = vld [vmem:[%s10452_s0 + $0x998] sm:$0xff] }
 0x109   :  { %2670 = vmatprep.mubr.f32.mxu0 %v267_v12  ;;  %v325_v63 = vld [vmem:[%s10452_s0 + $0x9b8] sm:$0xff] }
 0x10b   :  { %1761 = vmatmul.mubr.f32.gmra.mrb[100].mxu1 %v264_v1  ;;  %v327_v1 = vld [vmem:[%s10452_s0 + $0x9c8] sm:$0xff] }
 0x10c   :  { %2671 = vmatmul.mubr.f32.gmra.mrb[100].mxu0 %v266_v2  ;;  %1765 = vmatprep.mubr.f32.mxu1 %v270_v3  ;;  %v324_v3 = vld [vmem:[%s10452_s0 + $0x9b0] sm:$0xff] }
 0x10d   :  { %2675 = vmatprep.mubr.f32.mxu0 %v272_v4  ;;  %v326_v4 = vld [vmem:[%s10452_s0 + $0x9c0] sm:$0xff] }
 0x10f   :  { %1766 = vmatmul.mubr.f32.gmra.mrb[102].mxu1 %v269_v18  ;;  %v330_v18 = vld [vmem:[%s10452_s0 + $0x9e0] sm:$0xff] }
 0x110   :  { %2676 = vmatmul.mubr.f32.gmra.mrb[102].mxu0 %v271_v6  ;;  %1770 = vmatprep.mubr.f32.mxu1 %v275_v7  ;;  %v332_v7 = vld [vmem:[%s10452_s0 + $0x9f0] sm:$0xff] }
 0x111   :  { %2680 = vmatprep.mubr.f32.mxu0 %v277_v9 }
 0x113   :  { %1771 = vmatmul.mubr.f32.gmra.mrb[104].mxu1 %v274_v24  ;;  %v329_v24 = vld [vmem:[%s10452_s0 + $0x9d8] sm:$0xff] }
 0x114   :  { %2681 = vmatmul.mubr.f32.gmra.mrb[104].mxu0 %v276_v10  ;;  %1775 = vmatprep.mubr.f32.mxu1 %v280_v11  ;;  %v331_v10 = vld [vmem:[%s10452_s0 + $0x9e8] sm:$0xff] }
 0x115   :  { %2685 = vmatprep.mubr.f32.mxu0 %v282_v14  ;;  %v335_v11 = vld [vmem:[%s10452_s0 + $0xa08] sm:$0xff] }
 0x116   :  { %v7016_v17 = vpop.f32.mrb[0].mxu1 }
 0x117   :  { %1776 = vmatmul.mubr.f32.gmra.mrb[106].mxu1 %v279_v30  ;;  %v1514_v19 = vpop.f32.mrb[1].mxu1  ;;  %v337_v30 = vld [vmem:[%s10452_s0 + $0xa18] sm:$0xff] }
 0x118   :  { %2686 = vmatmul.mubr.f32.gmra.mrb[106].mxu0 %v281_v15  ;;  %1780 = vmatprep.mubr.f32.mxu1 %v285_v16  ;;  %v334_v16 = vld [vmem:[%s10452_s0 + $0xa00] sm:$0xff]  ;;  %v340_v19 = vld [vmem:[%s10452_s0 + $0xa30] sm:$0xff] }
 0x119   :  { %2690 = vmatprep.mubr.f32.mxu0 %v287_v36  ;;  %v336_v36 = vld [vmem:[%s10452_s0 + $0xa10] sm:$0xff] }
 0x11a   :  { %v7030_v23 = vpop.f32.mrb[2].mxu1 }
 0x11b   :  { %1781 = vmatmul.mubr.f32.gmra.mrb[108].mxu1 %v284_v21  ;;  %v1519_v26 = vpop.f32.mrb[3].mxu1 }
 0x11c   :  { %2691 = vmatmul.mubr.f32.gmra.mrb[108].mxu0 %v286_v22  ;;  %1785 = vmatprep.mubr.f32.mxu1 %v290_v44  ;;  %v342_v22 = vld [vmem:[%s10452_s0 + $0xa40] sm:$0xff]  ;;  %v341_v26 = vld [vmem:[%s10452_s0 + $0xa38] sm:$0xff] }
 0x11d   :  { %2695 = vmatprep.mubr.f32.mxu0 %v292_v25  ;;  %v339_v25 = vld [vmem:[%s10452_s0 + $0xa28] sm:$0xff] }
 0x11e   :  { %v7044_v31 = vpop.f32.mrb[4].mxu1 }
 0x11f   :  { %1786 = vmatmul.mubr.f32.gmra.mrb[110].mxu1 %v289_v50  ;;  %v1524_v32 = vpop.f32.mrb[5].mxu1  ;;  %v345_v50 = vld [vmem:[%s10452_s0 + $0xa58] sm:$0xff] }
 0x120   :  { %2696 = vmatmul.mubr.f32.gmra.mrb[110].mxu0 %v291_v28  ;;  %1790 = vmatprep.mubr.f32.mxu1 %v295_v29  ;;  %v347_v29 = vld [vmem:[%s10452_s0 + $0xa68] sm:$0xff]  ;;  %v344_v32 = vld [vmem:[%s10452_s0 + $0xa50] sm:$0xff] }
 0x121   :  { %2700 = vmatprep.mubr.f32.mxu0 %v297_v56 }
 0x122   :  { %v7058_v37 = vpop.f32.mrb[6].mxu1 }
 0x123   :  { %1791 = vmatmul.mubr.f32.gmra.mrb[112].mxu1 %v294_v33  ;;  %v1529_v39 = vpop.f32.mrb[7].mxu1  ;;  %v346_v33 = vld [vmem:[%s10452_s0 + $0xa60] sm:$0xff] }
 0x124   :  { %2701 = vmatmul.mubr.f32.gmra.mrb[112].mxu0 %v296_v35  ;;  %1795 = vmatprep.mubr.f32.mxu1 %v300_v62  ;;  %v350_v35 = vld [vmem:[%s10452_s0 + $0xa80] sm:$0xff] }
 0x125   :  { %2705 = vmatprep.mubr.f32.mxu0 %v302_v38  ;;  %v352_v38 = vld [vmem:[%s10452_s0 + $0xa90] sm:$0xff] }
 0x126   :  { %v7072_v5 = vpop.f32.mrb[8].mxu1 }
 0x127   :  { %1796 = vmatmul.mubr.f32.gmra.mrb[114].mxu1 %v299_v40  ;;  %v1534_v46 = vpop.f32.mrb[9].mxu1  ;;  %v349_v40 = vld [vmem:[%s10452_s0 + $0xa78] sm:$0xff] }
 0x128   :  { %2706 = vmatmul.mubr.f32.gmra.mrb[114].mxu0 %v301_v42  ;;  %1800 = vmatprep.mubr.f32.mxu1 %v305_v43  ;;  %v351_v42 = vld [vmem:[%s10452_s0 + $0xa88] sm:$0xff]  ;;  %v357_v46 = vld [vmem:[%s10452_s0 + $0xab8] sm:$0xff] }
 0x129   :  { %2710 = vmatprep.mubr.f32.mxu0 %v307_v45  ;;  %v355_v43 = vld [vmem:[%s10452_s0 + $0xaa8] sm:$0xff] }
 0x12a   :  { %v7086_v49 = vpop.f32.mrb[10].mxu1 }
 0x12b   :  { %1801 = vmatmul.mubr.f32.gmra.mrb[116].mxu1 %v304_v47  ;;  %v1539_v52 = vpop.f32.mrb[11].mxu1 }
 0x12c   :  { %2711 = vmatmul.mubr.f32.gmra.mrb[116].mxu0 %v306_v48  ;;  %1805 = vmatprep.mubr.f32.mxu1 %v310_v13  ;;  %v354_v48 = vld [vmem:[%s10452_s0 + $0xaa0] sm:$0xff]  ;;  %v356_v13 = vld [vmem:[%s10452_s0 + $0xab0] sm:$0xff] }
 0x12d   :  { %2715 = vmatprep.mubr.f32.mxu0 %v312_v51  ;;  %v360_v51 = vld [vmem:[%s10452_s0 + $0xad0] sm:$0xff] }
 0x12e   :  { %v7100_v55 = vpop.f32.mrb[12].mxu1 }
 0x12f   :  { %1806 = vmatmul.mubr.f32.gmra.mrb[118].mxu1 %v309_v20  ;;  %v1544_v57 = vpop.f32.mrb[13].mxu1  ;;  %v362_v20 = vld [vmem:[%s10452_s0 + $0xae0] sm:$0xff] }
 0x130   :  { %2716 = vmatmul.mubr.f32.gmra.mrb[118].mxu0 %v311_v53  ;;  %1810 = vmatprep.mubr.f32.mxu1 %v315_v54  ;;  %v359_v54 = vld [vmem:[%s10452_s0 + $0xac8] sm:$0xff]  ;;  %v365_v57 = vld [vmem:[%s10452_s0 + $0xaf8] sm:$0xff] }
 0x131   :  { %2720 = vmatprep.mubr.f32.mxu0 %v317_v27  ;;  %v361_v27 = vld [vmem:[%s10452_s0 + $0xad8] sm:$0xff] }
 0x132   :  { %v7114_v0 = vpop.f32.mrb[14].mxu1 }
 0x133   :  { %1811 = vmatmul.mubr.f32.gmra.mrb[120].mxu1 %v314_v58  ;;  %v1549_v60 = vpop.f32.mrb[15].mxu1 }
 0x134   :  { %2721 = vmatmul.mubr.f32.gmra.mrb[120].mxu0 %v316_v8  ;;  %1815 = vmatprep.mubr.f32.mxu1 %v320_v34  ;;  %v367_v8 = vld [vmem:[%s10452_s0 + $0xb08] sm:$0xff]  ;;  %v366_v60 = vld [vmem:[%s10452_s0 + $0xb00] sm:$0xff] }
 0x135   :  { %2725 = vmatprep.mubr.f32.mxu0 %v322_v59  ;;  %v364_v59 = vld [vmem:[%s10452_s0 + $0xaf0] sm:$0xff] }
 0x136   :  { %v7128_v12 = vpop.f32.mrb[16].mxu1 }
 0x137   :  { %1816 = vmatmul.mubr.f32.gmra.mrb[122].mxu1 %v319_v41  ;;  %v1554_v2 = vpop.f32.mrb[17].mxu1  ;;  %v370_v41 = vld [vmem:[%s10452_s0 + $0xb20] sm:$0xff] }
 0x138   :  { %2726 = vmatmul.mubr.f32.gmra.mrb[122].mxu0 %v321_v61  ;;  %1820 = vmatprep.mubr.f32.mxu1 %v325_v63  ;;  %v372_v63 = vld [vmem:[%s10452_s0 + $0xb30] sm:$0xff]  ;;  %v369_v2 = vld [vmem:[%s10452_s0 + $0xb18] sm:$0xff] }
 0x139   :  { %2730 = vmatprep.mubr.f32.mxu0 %v327_v1 }
 0x13a   :  { %v7142_v6 = vpop.f32.mrb[18].mxu1 }
 0x13b   :  { %1821 = vmatmul.mubr.f32.gmra.mrb[124].mxu1 %v324_v3  ;;  %v1559_v9 = vpop.f32.mrb[19].mxu1  ;;  %v371_v3 = vld [vmem:[%s10452_s0 + $0xb28] sm:$0xff] }
 0x13c   :  { %2731 = vmatmul.mubr.f32.gmra.mrb[124].mxu0 %v326_v4  ;;  %1825 = vmatprep.mubr.f32.mxu1 %v330_v18  ;;  %v375_v4 = vld [vmem:[%s10452_s0 + $0xb48] sm:$0xff] }
 0x13d   :  { %2735 = vmatprep.mubr.f32.mxu0 %v332_v7  ;;  %v377_v7 = vld [vmem:[%s10452_s0 + $0xb58] sm:$0xff] }
 0x13e   :  { %v7156_v14 = vpop.f32.mrb[20].mxu1 }
 0x13f   :  { %1826 = vmatmul.mubr.f32.gmra.mrb[126].mxu1 %v329_v24  ;;  %v1564_v15 = vpop.f32.mrb[21].mxu1  ;;  %v374_v24 = vld [vmem:[%s10452_s0 + $0xb40] sm:$0xff] }
 0x140   :  { %2736 = vmatmul.mubr.f32.gmra.mrb[126].mxu0 %v331_v10  ;;  %1830 = vmatprep.mubr.f32.mxu1 %v335_v11  ;;  %v376_v10 = vld [vmem:[%s10452_s0 + $0xb50] sm:$0xff]  ;;  %v382_v15 = vld [vmem:[%s10452_s0 + $0xb80] sm:$0xff] }
 0x141   :  { %2740 = vmatprep.mubr.f32.mxu0 %v337_v30  ;;  %v380_v11 = vld [vmem:[%s10452_s0 + $0xb70] sm:$0xff] }
 0x142   :  { %v7170_v21 = vpop.f32.mrb[22].mxu1 }
 0x143   :  { %1831 = vmatmul.mubr.f32.gmra.mrb[128].mxu1 %v334_v16  ;;  %v1569_v44 = vpop.f32.mrb[23].mxu1 }
 0x144   :  { %2741 = vmatmul.mubr.f32.gmra.mrb[128].mxu0 %v336_v36  ;;  %1835 = vmatprep.mubr.f32.mxu1 %v340_v19  ;;  %v379_v36 = vld [vmem:[%s10452_s0 + $0xb68] sm:$0xff]  ;;  %v381_v19 = vld [vmem:[%s10452_s0 + $0xb78] sm:$0xff] }
 0x145   :  { %2745 = vmatprep.mubr.f32.mxu0 %v342_v22  ;;  %v385_v22 = vld [vmem:[%s10452_s0 + $0xb98] sm:$0xff] }
 0x146   :  { %v7184_v28 = vpop.f32.mrb[24].mxu1 }
 0x147   :  { %1836 = vmatmul.mubr.f32.gmra.mrb[130].mxu1 %v339_v25  ;;  %v1574_v56 = vpop.f32.mrb[25].mxu1  ;;  %v387_v25 = vld [vmem:[%s10452_s0 + $0xba8] sm:$0xff] }
 0x148   :  { %2746 = vmatmul.mubr.f32.gmra.mrb[130].mxu0 %v341_v26  ;;  %1840 = vmatprep.mubr.f32.mxu1 %v345_v50  ;;  %v384_v50 = vld [vmem:[%s10452_s0 + $0xb90] sm:$0xff]  ;;  %v390_v56 = vld [vmem:[%s10452_s0 + $0xbc0] sm:$0xff] }
 0x149   :  { %2750 = vmatprep.mubr.f32.mxu0 %v347_v29  ;;  %v386_v29 = vld [vmem:[%s10452_s0 + $0xba0] sm:$0xff] }
 0x14a   :  { %v7198_v62 = vpop.f32.mrb[26].mxu1 }
 0x14b   :  { %1841 = vmatmul.mubr.f32.gmra.mrb[132].mxu1 %v344_v32  ;;  %v1579_v39 = vpop.f32.mrb[27].mxu1 }
 0x14c   :  { %2751 = vmatmul.mubr.f32.gmra.mrb[132].mxu0 %v346_v33  ;;  %1845 = vmatprep.mubr.f32.mxu1 %v350_v35  ;;  %v392_v33 = vld [vmem:[%s10452_s0 + $0xbd0] sm:$0xff]  ;;  %v391_v39 = vld [vmem:[%s10452_s0 + $0xbc8] sm:$0xff] }
 0x14d   :  { %2755 = vmatprep.mubr.f32.mxu0 %v352_v38  ;;  %v389_v38 = vld [vmem:[%s10452_s0 + $0xbb8] sm:$0xff] }
 0x14e   :  { %v7212_v45 = vpop.f32.mrb[28].mxu1 }
 0x14f   :  { %1846 = vmatmul.mubr.f32.gmra.mrb[134].mxu1 %v349_v40  ;;  %v1584_v47 = vpop.f32.mrb[29].mxu1  ;;  %v395_v40 = vld [vmem:[%s10452_s0 + $0xbe8] sm:$0xff] }
 0x150   :  { %2756 = vmatmul.mubr.f32.gmra.mrb[134].mxu0 %v351_v42  ;;  %1850 = vmatprep.mubr.f32.mxu1 %v355_v43  ;;  %v397_v43 = vld [vmem:[%s10452_s0 + $0xbf8] sm:$0xff]  ;;  %v394_v47 = vld [vmem:[%s10452_s0 + $0xbe0] sm:$0xff] }
 0x151   :  { %2760 = vmatprep.mubr.f32.mxu0 %v357_v46 }
 0x152   :  { %v7226_v52 = vpop.f32.mrb[30].mxu1 }
 0x153   :  { %1851 = vmatmul.mubr.f32.gmra.mrb[136].mxu1 %v354_v48  ;;  %v1589_v53 = vpop.f32.mrb[31].mxu1  ;;  %v396_v48 = vld [vmem:[%s10452_s0 + $0xbf0] sm:$0xff] }
 0x154   :  { %2761 = vmatmul.mubr.f32.gmra.mrb[136].mxu0 %v356_v13  ;;  %1855 = vmatprep.mubr.f32.mxu1 %v360_v51  ;;  %v400_v13 = vld [vmem:[%s10452_s0 + $0xc10] sm:$0xff] }
 0x155   :  { %2765 = vmatprep.mubr.f32.mxu0 %v362_v20  ;;  %v402_v20 = vld [vmem:[%s10452_s0 + $0xc20] sm:$0xff] }
 0x156   :  { %v7240_v58 = vpop.f32.mrb[32].mxu1 }
 0x157   :  { %1856 = vmatmul.mubr.f32.gmra.mrb[138].mxu1 %v359_v54  ;;  %v1594_v34 = vpop.f32.mrb[33].mxu1  ;;  %v399_v54 = vld [vmem:[%s10452_s0 + $0xc08] sm:$0xff] }
 0x158   :  { %2766 = vmatmul.mubr.f32.gmra.mrb[138].mxu0 %v361_v27  ;;  %1860 = vmatprep.mubr.f32.mxu1 %v365_v57  ;;  %v401_v27 = vld [vmem:[%s10452_s0 + $0xc18] sm:$0xff]  ;;  %v407_v34 = vld [vmem:[%s10452_s0 + $0xc48] sm:$0xff] }
 0x159   :  { %2770 = vmatprep.mubr.f32.mxu0 %v367_v8  ;;  %v405_v57 = vld [vmem:[%s10452_s0 + $0xc38] sm:$0xff] }
 0x15a   :  { %v7254_v61 = vpop.f32.mrb[34].mxu1 }
 0x15b   :  { %1861 = vmatmul.mubr.f32.gmra.mrb[140].mxu1 %v364_v59  ;;  %v1599_v1 = vpop.f32.mrb[35].mxu1 }
 0x15c   :  { %2771 = vmatmul.mubr.f32.gmra.mrb[140].mxu0 %v366_v60  ;;  %1865 = vmatprep.mubr.f32.mxu1 %v370_v41  ;;  %v404_v60 = vld [vmem:[%s10452_s0 + $0xc30] sm:$0xff]  ;;  %v406_v41 = vld [vmem:[%s10452_s0 + $0xc40] sm:$0xff] }
 0x15d   :  { %2775 = vmatprep.mubr.f32.mxu0 %v372_v63  ;;  %v410_v63 = vld [vmem:[%s10452_s0 + $0xc60] sm:$0xff] }
 0x15e   :  { %v7268_v18 = vpop.f32.mrb[36].mxu1 }
 0x15f   :  { %1866 = vmatmul.mubr.f32.gmra.mrb[142].mxu1 %v369_v2  ;;  %v1604_v9 = vpop.f32.mrb[37].mxu1  ;;  %v412_v2 = vld [vmem:[%s10452_s0 + $0xc70] sm:$0xff] }
 0x160   :  { %2776 = vmatmul.mubr.f32.gmra.mrb[142].mxu0 %v371_v3  ;;  %1870 = vmatprep.mubr.f32.mxu1 %v375_v4  ;;  %v409_v4 = vld [vmem:[%s10452_s0 + $0xc58] sm:$0xff]  ;;  %v415_v9 = vld [vmem:[%s10452_s0 + $0xc88] sm:$0xff] }
 0x161   :  { %2780 = vmatprep.mubr.f32.mxu0 %v377_v7  ;;  %v411_v7 = vld [vmem:[%s10452_s0 + $0xc68] sm:$0xff] }
 0x162   :  { %v7282_v30 = vpop.f32.mrb[38].mxu1 }
 0x163   :  { %1871 = vmatmul.mubr.f32.gmra.mrb[144].mxu1 %v374_v24  ;;  %v1609_v16 = vpop.f32.mrb[39].mxu1 }
 0x164   :  { %2781 = vmatmul.mubr.f32.gmra.mrb[144].mxu0 %v376_v10  ;;  %1875 = vmatprep.mubr.f32.mxu1 %v380_v11  ;;  %v417_v10 = vld [vmem:[%s10452_s0 + $0xc98] sm:$0xff]  ;;  %v416_v16 = vld [vmem:[%s10452_s0 + $0xc90] sm:$0xff] }
 0x165   :  { %2785 = vmatprep.mubr.f32.mxu0 %v382_v15  ;;  %v414_v15 = vld [vmem:[%s10452_s0 + $0xc80] sm:$0xff] }
 0x166   :  { %v7296_v44 = vpop.f32.mrb[40].mxu1 }
 0x167   :  { %1876 = vmatmul.mubr.f32.gmra.mrb[146].mxu1 %v379_v36  ;;  %v1614_v26 = vpop.f32.mrb[41].mxu1  ;;  %v420_v36 = vld [vmem:[%s10452_s0 + $0xcb0] sm:$0xff] }
 0x168   :  { %2786 = vmatmul.mubr.f32.gmra.mrb[146].mxu0 %v381_v19  ;;  %1880 = vmatprep.mubr.f32.mxu1 %v385_v22  ;;  %v422_v22 = vld [vmem:[%s10452_s0 + $0xcc0] sm:$0xff]  ;;  %v419_v26 = vld [vmem:[%s10452_s0 + $0xca8] sm:$0xff] }
 0x169   :  { %2790 = vmatprep.mubr.f32.mxu0 %v387_v25 }
 0x16a   :  { %v7310_v32 = vpop.f32.mrb[42].mxu1 }
 0x16b   :  { %1881 = vmatmul.mubr.f32.gmra.mrb[148].mxu1 %v384_v50  ;;  %v1619_v35 = vpop.f32.mrb[43].mxu1  ;;  %v421_v50 = vld [vmem:[%s10452_s0 + $0xcb8] sm:$0xff] }
 0x16c   :  { %2791 = vmatmul.mubr.f32.gmra.mrb[148].mxu0 %v386_v29  ;;  %1885 = vmatprep.mubr.f32.mxu1 %v390_v56  ;;  %v425_v29 = vld [vmem:[%s10452_s0 + $0xcd8] sm:$0xff] }
 0x16d   :  { %2795 = vmatprep.mubr.f32.mxu0 %v392_v33  ;;  %v427_v33 = vld [vmem:[%s10452_s0 + $0xce8] sm:$0xff] }
 0x16e   :  { %v7324_v42 = vpop.f32.mrb[44].mxu1 }
 0x16f   :  { %1886 = vmatmul.mubr.f32.gmra.mrb[150].mxu1 %v389_v38  ;;  %v1624_v46 = vpop.f32.mrb[45].mxu1  ;;  %v424_v38 = vld [vmem:[%s10452_s0 + $0xcd0] sm:$0xff] }
 0x170   :  { %2796 = vmatmul.mubr.f32.gmra.mrb[150].mxu0 %v391_v39  ;;  %1890 = vmatprep.mubr.f32.mxu1 %v395_v40  ;;  %v426_v39 = vld [vmem:[%s10452_s0 + $0xce0] sm:$0xff]  ;;  %v432_v46 = vld [vmem:[%s10452_s0 + $0xd10] sm:$0xff] }
 0x171   :  { %2800 = vmatprep.mubr.f32.mxu0 %v397_v43  ;;  %v430_v40 = vld [vmem:[%s10452_s0 + $0xd00] sm:$0xff] }
 0x172   :  { %v7338_v51 = vpop.f32.mrb[46].mxu1 }
 0x173   :  { %1891 = vmatmul.mubr.f32.gmra.mrb[152].mxu1 %v394_v47  ;;  %v1629_v53 = vpop.f32.mrb[47].mxu1 }
 0x174   :  { %2801 = vmatmul.mubr.f32.gmra.mrb[152].mxu0 %v396_v48  ;;  %1895 = vmatprep.mubr.f32.mxu1 %v400_v13  ;;  %v429_v48 = vld [vmem:[%s10452_s0 + $0xcf8] sm:$0xff]  ;;  %v431_v13 = vld [vmem:[%s10452_s0 + $0xd08] sm:$0xff] }
 0x175   :  { %2805 = vmatprep.mubr.f32.mxu0 %v402_v20  ;;  %v435_v20 = vld [vmem:[%s10452_s0 + $0xd28] sm:$0xff] }
 0x176   :  { %v7352_v8 = vpop.f32.mrb[48].mxu1 }
 0x177   :  { %1896 = vmatmul.mubr.f32.gmra.mrb[154].mxu1 %v399_v54  ;;  %v1634_v59 = vpop.f32.mrb[49].mxu1  ;;  %v437_v54 = vld [vmem:[%s10452_s0 + $0xd38] sm:$0xff] }
 0x178   :  { %2806 = vmatmul.mubr.f32.gmra.mrb[154].mxu0 %v401_v27  ;;  %1900 = vmatprep.mubr.f32.mxu1 %v405_v57  ;;  %v434_v57 = vld [vmem:[%s10452_s0 + $0xd20] sm:$0xff]  ;;  %v440_v59 = vld [vmem:[%s10452_s0 + $0xd50] sm:$0xff] }
 0x179   :  { %2810 = vmatprep.mubr.f32.mxu0 %v407_v34  ;;  %v436_v34 = vld [vmem:[%s10452_s0 + $0xd30] sm:$0xff] }
 0x17a   :  { %v7366_v1 = vpop.f32.mrb[50].mxu1 }
 0x17b   :  { %1901 = vmatmul.mubr.f32.gmra.mrb[156].mxu1 %v404_v60  ;;  %v1639_v3 = vpop.f32.mrb[51].mxu1 }
 0x17c   :  { %2811 = vmatmul.mubr.f32.gmra.mrb[156].mxu0 %v406_v41  ;;  %1905 = vmatprep.mubr.f32.mxu1 %v410_v63  ;;  %v439_v63 = vld [vmem:[%s10452_s0 + $0xd48] sm:$0xff]  ;;  %v18_v3 = vld [vmem:[%s10452_s0 + $0x20] sm:$0xff] }
 0x17d   :  { %2815 = vmatprep.mubr.f32.mxu0 %v412_v2  ;;  %v10455_v2 = vmov 0.0  }
 0x17e   :  { %v7380_v24 = vpop.f32.mrb[52].mxu1 }
 0x17f   :  { %1906 = vmatmul.mubr.f32.gmra.mrb[158].mxu1 %v409_v4  ;;  %v1644_v11 = vpop.f32.mrb[53].mxu1  ;;  %v445_v4 = vld [vmem:[%s10452_s0 + $0xd78] sm:$0xff] }
 0x180   :  { %2816 = vmatmul.mubr.f32.gmra.mrb[158].mxu0 %v411_v7  ;;  %1910 = vmatprep.mubr.f32.mxu1 %v415_v9  ;;  %v23_v11 = vld [vmem:[%s10452_s0 + $0x48] sm:$0xff] }
 0x181   :  { %2820 = vmatprep.mubr.f32.mxu0 %v417_v10  ;;  %v444_v10 = vld [vmem:[%s10452_s0 + $0xd70] sm:$0xff] }
 0x182   :  { %v7394_v19 = vpop.f32.mrb[54].mxu1 }
 0x183   :  { %1911 = vmatmul.mubr.f32.gmra.mrb[160].mxu1 %v414_v15  ;;  %v1649_v25 = vpop.f32.mrb[55].mxu1  ;;  %v450_v15 = vld [vmem:[%s10452_s0 + $0xda0] sm:$0xff] }
 0x184   :  { %2821 = vmatmul.mubr.f32.gmra.mrb[160].mxu0 %v416_v16  ;;  %1915 = vmatprep.mubr.f32.mxu1 %v420_v36  ;;  %v28_v25 = vld [vmem:[%s10452_s0 + $0x70] sm:$0xff] }
 0x185   :  { %2825 = vmatprep.mubr.f32.mxu0 %v422_v22  ;;  %v449_v22 = vld [vmem:[%s10452_s0 + $0xd98] sm:$0xff] }
 0x186   :  { %v7408_v56 = vpop.f32.mrb[56].mxu1 }
 0x187   :  { %1916 = vmatmul.mubr.f32.gmra.mrb[162].mxu1 %v419_v26  ;;  %v1654_v35 = vpop.f32.mrb[57].mxu1  ;;  %v455_v26 = vld [vmem:[%s10452_s0 + $0xdc8] sm:$0xff] }
 0x188   :  { %2826 = vmatmul.mubr.f32.gmra.mrb[162].mxu0 %v421_v50  ;;  %1920 = vmatprep.mubr.f32.mxu1 %v425_v29  ;;  %v33_v35 = vld [vmem:[%s10452_s0 + $0x98] sm:$0xff] }
 0x189   :  { %2830 = vmatprep.mubr.f32.mxu0 %v427_v33  ;;  %v454_v33 = vld [vmem:[%s10452_s0 + $0xdc0] sm:$0xff] }
 0x18a   :  { %v7422_v43 = vpop.f32.mrb[58].mxu1 }
 0x18b   :  { %1921 = vmatmul.mubr.f32.gmra.mrb[164].mxu1 %v424_v38  ;;  %v1659_v47 = vpop.f32.mrb[59].mxu1  ;;  %v460_v38 = vld [vmem:[%s10452_s0 + $0xdf0] sm:$0xff] }
 0x18c   :  { %2831 = vmatmul.mubr.f32.gmra.mrb[164].mxu0 %v426_v39  ;;  %1925 = vmatprep.mubr.f32.mxu1 %v430_v40  ;;  %v38_v47 = vld [vmem:[%s10452_s0 + $0xc0] sm:$0xff] }
 0x18d   :  { %2835 = vmatprep.mubr.f32.mxu0 %v432_v46  ;;  %v459_v46 = vld [vmem:[%s10452_s0 + $0xde8] sm:$0xff] }
 0x18e   :  { %v7436_v53 = vpop.f32.mrb[60].mxu1 }
 0x18f   :  { %1926 = vmatmul.mubr.f32.gmra.mrb[166].mxu1 %v429_v48  ;;  %v1664_v27 = vpop.f32.mrb[61].mxu1  ;;  %v465_v48 = vld [vmem:[%s10452_s0 + $0xe18] sm:$0xff] }
 0x190   :  { %2836 = vmatmul.mubr.f32.gmra.mrb[166].mxu0 %v431_v13  ;;  %1930 = vmatprep.mubr.f32.mxu1 %v435_v20  ;;  %v43_v27 = vld [vmem:[%s10452_s0 + $0xe8] sm:$0xff] }
 0x191   :  { %2840 = vmatprep.mubr.f32.mxu0 %v437_v54  ;;  %v464_v54 = vld [vmem:[%s10452_s0 + $0xe10] sm:$0xff] }
 0x192   :  { %v7450_v60 = vpop.f32.mrb[62].mxu1 }
 0x193   :  { %1931 = vmatmul.mubr.f32.gmra.mrb[168].mxu1 %v434_v57  ;;  %v1669_v41 = vpop.f32.mrb[63].mxu1  ;;  %v470_v57 = vld [vmem:[%s10452_s0 + $0xe40] sm:$0xff] }
 0x194   :  { %2841 = vmatmul.mubr.f32.gmra.mrb[168].mxu0 %v436_v34  ;;  %1935 = vmatprep.mubr.f32.mxu1 %v440_v59  ;;  %v469_v41 = vld [vmem:[%s10452_s0 + $0xe38] sm:$0xff] }
 0x195   :  { %4712 = vmatprep.mubr.msk.f32.mxu0 %vm6011_vm0, %v10455_v2 }
 0x196   :  { %v7463_v7 = vpop.f32.mrb[64].mxu1 }
 0x197   :  { %1936 = vmatmul.mubr.f32.gmra.mrb[170].mxu1 %v439_v63  ;;  %v1674_v9 = vpop.f32.mrb[65].mxu1  ;;  %v48_v63 = vld [vmem:[%s10452_s0 + $0x110] sm:$0xff] }
 0x198   :  { %4713 = vmatmul.mubr.msk.f32.vlgmr.msra.gmra.mrb[0].mxu0 %vm938_vm1, %v18_v3  ;;  %1940 = vmatprep.mubr.f32.mxu1 %v445_v4  ;;  %v475_v3 = vld [vmem:[%s10452_s0 + $0xe68] sm:$0xff] }
 0x199   :  { %4715 = vmatprep.mubr.msk.f32.mxu0 %vm6011_vm0, %v10455_v2 }
 0x19a   :  { %v7477_v16 = vpop.f32.mrb[66].mxu1 }
 0x19b   :  { %1941 = vmatmul.mubr.f32.gmra.mrb[172].mxu1 %v444_v10  ;;  %v1679_v36 = vpop.f32.mrb[67].mxu1  ;;  %v474_v10 = vld [vmem:[%s10452_s0 + $0xe60] sm:$0xff] }
 0x19c   :  { %4716 = vmatmul.mubr.msk.f32.gmra.mrb[2].mxu0 %vm938_vm1, %v23_v11  ;;  %1945 = vmatprep.mubr.f32.mxu1 %v450_v15  ;;  %v53_v11 = vld [vmem:[%s10452_s0 + $0x138] sm:$0xff]  ;;  %v480_v15 = vld [vmem:[%s10452_s0 + $0xe90] sm:$0xff] }
 0x19d   :  { %4718 = vmatprep.mubr.msk.f32.mxu0 %vm6011_vm0, %v10455_v2 }
 0x19e   :  { %v7491_v50 = vpop.f32.mrb[68].mxu1 }
 0x19f   :  { %1946 = vmatmul.mubr.f32.gmra.mrb[174].mxu1 %v449_v22  ;;  %v1684_v29 = vpop.f32.mrb[69].mxu1 }
 0x1a0   :  { %4719 = vmatmul.mubr.msk.f32.gmra.mrb[4].mxu0 %vm938_vm1, %v28_v25  ;;  %1950 = vmatprep.mubr.f32.mxu1 %v455_v26  ;;  %v479_v25 = vld [vmem:[%s10452_s0 + $0xe88] sm:$0xff]  ;;  %v58_v26 = vld [vmem:[%s10452_s0 + $0x160] sm:$0xff]  ;;  %v485_v29 = vld [vmem:[%s10452_s0 + $0xeb8] sm:$0xff] }
 0x1a1   :  { %4721 = vmatprep.mubr.msk.f32.mxu0 %vm6011_vm0, %v10455_v2 }
 0x1a2   :  { %v7505_v39 = vpop.f32.mrb[70].mxu1 }
 0x1a3   :  { %1951 = vmatmul.mubr.f32.gmra.mrb[176].mxu1 %v454_v33  ;;  %v1689_v40 = vpop.f32.mrb[71].mxu1 }
 0x1a4   :  { %4722 = vmatmul.mubr.msk.f32.gmra.mrb[6].mxu0 %vm938_vm1, %v33_v35  ;;  %1955 = vmatprep.mubr.f32.mxu1 %v460_v38  ;;  %v484_v38 = vld [vmem:[%s10452_s0 + $0xeb0] sm:$0xff]  ;;  %v63_v40 = vld [vmem:[%s10452_s0 + $0x188] sm:$0xff] }
 0x1a5   :  { %4724 = vmatprep.mubr.msk.f32.mxu0 %vm6011_vm0, %v10455_v2 }
 0x1a6   :  { %v7519_v13 = vpop.f32.mrb[72].mxu1 }
 0x1a7   :  { %1956 = vmatmul.mubr.f32.gmra.mrb[178].mxu1 %v459_v46  ;;  %v1694_v20 = vpop.f32.mrb[73].mxu1  ;;  %v490_v46 = vld [vmem:[%s10452_s0 + $0xee0] sm:$0xff] }
 0x1a8   :  { %4725 = vmatmul.mubr.msk.f32.gmra.mrb[8].mxu0 %vm938_vm1, %v38_v47  ;;  %1960 = vmatprep.mubr.f32.mxu1 %v465_v48  ;;  %v489_v20 = vld [vmem:[%s10452_s0 + $0xed8] sm:$0xff] }
 0x1a9   :  { %4727 = vmatprep.mubr.msk.f32.mxu0 %vm6011_vm0, %v10455_v2 }
 0x1aa   :  { %v7533_v34 = vpop.f32.mrb[74].mxu1 }
 0x1ab   :  { %1961 = vmatmul.mubr.f32.gmra.mrb[180].mxu1 %v464_v54  ;;  %v1699_v59 = vpop.f32.mrb[75].mxu1  ;;  %v68_v54 = vld [vmem:[%s10452_s0 + $0x1b0] sm:$0xff] }
 0x1ac   :  { %4728 = vmatmul.mubr.msk.f32.gmra.mrb[10].mxu0 %vm938_vm1, %v43_v27  ;;  %1965 = vmatprep.mubr.f32.mxu1 %v470_v57  ;;  %v495_v27 = vld [vmem:[%s10452_s0 + $0xf08] sm:$0xff] }
 0x1ad   :  { %4730 = vmatprep.mubr.msk.f32.mxu0 %vm6011_vm0, %v10455_v2 }
 0x1ae   :  { %v7547_v4 = vpop.f32.mrb[76].mxu1 }
 0x1af   :  { %1966 = vmatmul.mubr.f32.gmra.mrb[182].mxu1 %v469_v41  ;;  %v1704_v9 = vpop.f32.mrb[77].mxu1  ;;  %v494_v41 = vld [vmem:[%s10452_s0 + $0xf00] sm:$0xff] }
 0x1b0   :  { %4731 = vmatmul.mubr.msk.f32.gmra.mrb[12].mxu0 %vm938_vm1, %v48_v63  ;;  %1970 = vmatprep.mubr.f32.mxu1 %v475_v3  ;;  %v73_v63 = vld [vmem:[%s10452_s0 + $0x1d8] sm:$0xff]  ;;  %v500_v3 = vld [vmem:[%s10452_s0 + $0xf30] sm:$0xff] }
 0x1b1   :  { %4733 = vmatprep.mubr.msk.f32.mxu0 %vm6011_vm0, %v10455_v2 }
 0x1b2   :  { %v7561_v36 = vpop.f32.mrb[78].mxu1 }
 0x1b3   :  { %1971 = vmatmul.mubr.f32.gmra.mrb[184].mxu1 %v474_v10  ;;  %v1709_v22 = vpop.f32.mrb[79].mxu1 }
 0x1b4   :  { %4734 = vmatmul.mubr.msk.f32.gmra.mrb[14].mxu0 %vm938_vm1, %v53_v11  ;;  %1975 = vmatprep.mubr.f32.mxu1 %v480_v15  ;;  %v499_v11 = vld [vmem:[%s10452_s0 + $0xf28] sm:$0xff]  ;;  %v78_v15 = vld [vmem:[%s10452_s0 + $0x200] sm:$0xff]  ;;  %v505_v22 = vld [vmem:[%s10452_s0 + $0xf58] sm:$0xff] }
 0x1b5   :  { %4736 = vmatprep.mubr.msk.f32.mxu0 %vm6011_vm0, %v10455_v2 }
 0x1b6   :  { %v7575_v33 = vpop.f32.mrb[80].mxu1 }
 0x1b7   :  { %1976 = vmatmul.mubr.f32.gmra.mrb[186].mxu1 %v479_v25  ;;  %v1714_v35 = vpop.f32.mrb[81].mxu1 }
 0x1b8   :  { %4737 = vmatmul.mubr.msk.f32.gmra.mrb[16].mxu0 %vm938_vm1, %v58_v26  ;;  %1980 = vmatprep.mubr.f32.mxu1 %v485_v29  ;;  %v504_v29 = vld [vmem:[%s10452_s0 + $0xf50] sm:$0xff]  ;;  %v83_v35 = vld [vmem:[%s10452_s0 + $0x228] sm:$0xff] }
 0x1b9   :  { %4739 = vmatprep.mubr.msk.f32.mxu0 %vm6011_vm0, %v10455_v2 }
 0x1ba   :  { %v7589_v47 = vpop.f32.mrb[82].mxu1 }
 0x1bb   :  { %1981 = vmatmul.mubr.f32.gmra.mrb[188].mxu1 %v484_v38  ;;  %v1719_v48 = vpop.f32.mrb[83].mxu1  ;;  %v510_v38 = vld [vmem:[%s10452_s0 + $0xf80] sm:$0xff] }
 0x1bc   :  { %4740 = vmatmul.mubr.msk.f32.gmra.mrb[18].mxu0 %vm938_vm1, %v63_v40  ;;  %1985 = vmatprep.mubr.f32.mxu1 %v490_v46  ;;  %v509_v48 = vld [vmem:[%s10452_s0 + $0xf78] sm:$0xff] }
 0x1bd   :  { %4742 = vmatprep.mubr.msk.f32.mxu0 %vm6011_vm0, %v10455_v2 }
 0x1be   :  { %v7603_v57 = vpop.f32.mrb[84].mxu1 }
 0x1bf   :  { %1986 = vmatmul.mubr.f32.gmra.mrb[190].mxu1 %v489_v20  ;;  %v1724_v59 = vpop.f32.mrb[85].mxu1  ;;  %v88_v20 = vld [vmem:[%s10452_s0 + $0x250] sm:$0xff] }
 0x1c0   :  { %4743 = vmatmul.mubr.msk.f32.gmra.mrb[20].mxu0 %vm938_vm1, %v68_v54  ;;  %1990 = vmatprep.mubr.f32.mxu1 %v495_v27  ;;  %v515_v54 = vld [vmem:[%s10452_s0 + $0xfa8] sm:$0xff] }
 0x1c1   :  { %4745 = vmatprep.mubr.msk.f32.mxu0 %vm6011_vm0, %v10455_v2 }
 0x1c2   :  { %v7617_v9 = vpop.f32.mrb[86].mxu1 }
 0x1c3   :  { %1991 = vmatmul.mubr.f32.gmra.mrb[192].mxu1 %v494_v41  ;;  %v1729_v10 = vpop.f32.mrb[87].mxu1  ;;  %v514_v41 = vld [vmem:[%s10452_s0 + $0xfa0] sm:$0xff] }
 0x1c4   :  { %4746 = vmatmul.mubr.msk.f32.gmra.mrb[22].mxu0 %vm938_vm1, %v73_v63  ;;  %1995 = vmatprep.mubr.f32.mxu1 %v500_v3  ;;  %v93_v63 = vld [vmem:[%s10452_s0 + $0x278] sm:$0xff]  ;;  %v520_v3 = vld [vmem:[%s10452_s0 + $0xfd0] sm:$0xff] }
 0x1c5   :  { %4748 = vmatprep.mubr.msk.f32.mxu0 %vm6011_vm0, %v10455_v2 }
 0x1c6   :  { %v7631_v25 = vpop.f32.mrb[88].mxu1 }
 0x1c7   :  { %1996 = vmatmul.mubr.f32.gmra.mrb[194].mxu1 %v499_v11  ;;  %v1734_v26 = vpop.f32.mrb[89].mxu1 }
 0x1c8   :  { %4749 = vmatmul.mubr.msk.f32.gmra.mrb[24].mxu0 %vm938_vm1, %v78_v15  ;;  %2000 = vmatprep.mubr.f32.mxu1 %v505_v22  ;;  %v519_v15 = vld [vmem:[%s10452_s0 + $0xfc8] sm:$0xff]  ;;  %v98_v22 = vld [vmem:[%s10452_s0 + $0x2a0] sm:$0xff]  ;;  %v525_v26 = vld [vmem:[%s10452_s0 + $0xff8] sm:$0xff] }
 0x1c9   :  { %4751 = vmatprep.mubr.msk.f32.mxu0 %vm6011_vm0, %v10455_v2 }
 0x1ca   :  { %v7645_v40 = vpop.f32.mrb[90].mxu1 }
 0x1cb   :  { %2001 = vmatmul.mubr.f32.gmra.mrb[196].mxu1 %v504_v29  ;;  %v1739_v46 = vpop.f32.mrb[91].mxu1 }
 0x1cc   :  { %4752 = vmatmul.mubr.msk.f32.gmra.mrb[26].mxu0 %vm938_vm1, %v83_v35  ;;  %2005 = vmatprep.mubr.f32.mxu1 %v510_v38  ;;  %v524_v38 = vld [vmem:[%s10452_s0 + $0xff0] sm:$0xff]  ;;  %v103_v46 = vld [vmem:[%s10452_s0 + $0x2c8] sm:$0xff] }
 0x1cd   :  { %4754 = vmatprep.mubr.msk.f32.mxu0 %vm6011_vm0, %v10455_v2 }
 0x1ce   :  { %v7659_v27 = vpop.f32.mrb[92].mxu1 }
 0x1cf   :  { %2006 = vmatmul.mubr.f32.gmra.mrb[198].mxu1 %v509_v48  ;;  %v1744_v59 = vpop.f32.mrb[93].mxu1  ;;  %v530_v48 = vld [vmem:[%s10452_s0 + $0x1020] sm:$0xff] }
 0x1d0   :  { %4755 = vmatmul.mubr.msk.f32.gmra.mrb[28].mxu0 %vm938_vm1, %v88_v20  ;;  %2010 = vmatprep.mubr.f32.mxu1 %v515_v54  ;;  %v529_v59 = vld [vmem:[%s10452_s0 + $0x1018] sm:$0xff] }
 0x1d1   :  { %4757 = vmatprep.mubr.msk.f32.mxu0 %vm6011_vm0, %v10455_v2 }
 0x1d2   :  { %v7673_v10 = vpop.f32.mrb[94].mxu1 }
 0x1d3   :  { %2011 = vmatmul.mubr.f32.gmra.mrb[200].mxu1 %v514_v41  ;;  %v1749_v11 = vpop.f32.mrb[95].mxu1  ;;  %v108_v41 = vld [vmem:[%s10452_s0 + $0x2f0] sm:$0xff] }
 0x1d4   :  { %4758 = vmatmul.mubr.msk.f32.gmra.mrb[30].mxu0 %vm938_vm1, %v93_v63  ;;  %2015 = vmatprep.mubr.f32.mxu1 %v520_v3  ;;  %v535_v63 = vld [vmem:[%s10452_s0 + $0x1048] sm:$0xff] }
 0x1d5   :  { %4760 = vmatprep.mubr.msk.f32.mxu0 %vm6011_vm0, %v10455_v2 }
 0x1d6   :  { %v7687_v29 = vpop.f32.mrb[96].mxu1 }
 0x1d7   :  { %2016 = vmatmul.mubr.f32.gmra.mrb[202].mxu1 %v519_v15  ;;  %v1754_v35 = vpop.f32.mrb[97].mxu1  ;;  %v534_v15 = vld [vmem:[%s10452_s0 + $0x1040] sm:$0xff] }
 0x1d8   :  { %4761 = vmatmul.mubr.msk.f32.gmra.mrb[32].mxu0 %vm938_vm1, %v98_v22  ;;  %2020 = vmatprep.mubr.f32.mxu1 %v525_v26  ;;  %v113_v22 = vld [vmem:[%s10452_s0 + $0x318] sm:$0xff]  ;;  %v540_v26 = vld [vmem:[%s10452_s0 + $0x1070] sm:$0xff] }
 0x1d9   :  { %4763 = vmatprep.mubr.msk.f32.mxu0 %vm6011_vm0, %v10455_v2 }
 0x1da   :  { %v7701_v20 = vpop.f32.mrb[98].mxu1 }
 0x1db   :  { %2021 = vmatmul.mubr.f32.gmra.mrb[204].mxu1 %v524_v38  ;;  %v1759_v54 = vpop.f32.mrb[99].mxu1 }
 0x1dc   :  { %4764 = vmatmul.mubr.msk.f32.gmra.mrb[34].mxu0 %vm938_vm1, %v103_v46  ;;  %2025 = vmatprep.mubr.f32.mxu1 %v530_v48  ;;  %v539_v46 = vld [vmem:[%s10452_s0 + $0x1068] sm:$0xff]  ;;  %v118_v48 = vld [vmem:[%s10452_s0 + $0x340] sm:$0xff]  ;;  %v545_v54 = vld [vmem:[%s10452_s0 + $0x1098] sm:$0xff] }
 0x1dd   :  { %4766 = vmatprep.mubr.msk.f32.mxu0 %vm6011_vm0, %v10455_v2 }
 0x1de   :  { %v7715_v3 = vpop.f32.mrb[100].mxu1 }
 0x1df   :  { %2026 = vmatmul.mubr.f32.gmra.mrb[206].mxu1 %v529_v59  ;;  %v1764_v11 = vpop.f32.mrb[101].mxu1 }
 0x1e0   :  { %4767 = vmatmul.mubr.msk.f32.gmra.mrb[36].mxu0 %vm938_vm1, %v108_v41  ;;  %2030 = vmatprep.mubr.f32.mxu1 %v535_v63  ;;  %v544_v63 = vld [vmem:[%s10452_s0 + $0x1090] sm:$0xff]  ;;  %v123_v11 = vld [vmem:[%s10452_s0 + $0x368] sm:$0xff] }
 0x1e1   :  { %4769 = vmatprep.mubr.msk.f32.mxu0 %vm6011_vm0, %v10455_v2 }
 0x1e2   :  { %v7729_v35 = vpop.f32.mrb[102].mxu1 }
 0x1e3   :  { %2031 = vmatmul.mubr.f32.gmra.mrb[208].mxu1 %v534_v15  ;;  %v1769_v38 = vpop.f32.mrb[103].mxu1  ;;  %v550_v15 = vld [vmem:[%s10452_s0 + $0x10c0] sm:$0xff] }
 0x1e4   :  { %4770 = vmatmul.mubr.msk.f32.gmra.mrb[38].mxu0 %vm938_vm1, %v113_v22  ;;  %2035 = vmatprep.mubr.f32.mxu1 %v540_v26  ;;  %v549_v38 = vld [vmem:[%s10452_s0 + $0x10b8] sm:$0xff] }
 0x1e5   :  { %4772 = vmatprep.mubr.msk.f32.mxu0 %vm6011_vm0, %v10455_v2 }
 0x1e6   :  { %v7743_v59 = vpop.f32.mrb[104].mxu1 }
 0x1e7   :  { %10457 = vst [vmem:[#allocation2_spill] sm:$0xff] %v7743_v59  ;;  %2036 = vmatmul.mubr.f32.gmra.mrb[210].mxu1 %v539_v46  ;;  %v1774_v41 = vpop.f32.mrb[105].mxu1  ;;  %v128_v46 = vld [vmem:[%s10452_s0 + $0x390] sm:$0xff]  ;;  %v10491_v59 = vmov 0.0  }
 0x1e8   :  { %4773 = vmatmul.mubr.msk.f32.gmra.mrb[40].mxu0 %vm938_vm1, %v118_v48  ;;  %2040 = vmatprep.mubr.f32.mxu1 %v545_v54  ;;  %v555_v48 = vld [vmem:[%s10452_s0 + $0x10e8] sm:$0xff] }
 0x1e9   :  { %4775 = vmatprep.mubr.msk.f32.mxu0 %vm6011_vm0, %v10455_v2 }
 0x1ea   :  { %v7757_v22 = vpop.f32.mrb[106].mxu1 }
 0x1eb   :  { %10458 = vst [vmem:[#allocation3_spill] sm:$0xff] %v7757_v22  ;;  %2041 = vmatmul.mubr.f32.gmra.mrb[212].mxu1 %v544_v63  ;;  %v1779_v26 = vpop.f32.mrb[107].mxu1  ;;  %v554_v63 = vld [vmem:[%s10452_s0 + $0x10e0] sm:$0xff] }
 0x1ec   :  { %4776 = vmatmul.mubr.msk.f32.gmra.mrb[42].mxu0 %vm938_vm1, %v123_v11  ;;  %2045 = vmatprep.mubr.f32.mxu1 %v550_v15  ;;  %v133_v11 = vld [vmem:[%s10452_s0 + $0x3b8] sm:$0xff]  ;;  %v560_v15 = vld [vmem:[%s10452_s0 + $0x1110] sm:$0xff] }
 0x1ed   :  { %4778 = vmatprep.mubr.msk.f32.mxu0 %vm6011_vm0, %v10455_v2 }
 0x1ee   :  { %v7771_v54 = vpop.f32.mrb[108].mxu1 }
 0x1ef   :  { %10459 = vst [vmem:[#allocation4_spill] sm:$0xff] %v7771_v54  ;;  %2046 = vmatmul.mubr.f32.gmra.mrb[214].mxu1 %v549_v38  ;;  %v1784_v41 = vpop.f32.mrb[109].mxu1 }
 0x1f0   :  { %4779 = vmatmul.mubr.msk.f32.gmra.mrb[44].mxu0 %vm938_vm1, %v128_v46  ;;  %2050 = vmatprep.mubr.f32.mxu1 %v555_v48  ;;  %v559_v46 = vld [vmem:[%s10452_s0 + $0x1108] sm:$0xff]  ;;  %v138_v48 = vld [vmem:[%s10452_s0 + $0x3e0] sm:$0xff]  ;;  %v565_v41 = vld [vmem:[%s10452_s0 + $0x1138] sm:$0xff] }
 0x1f1   :  { %4781 = vmatprep.mubr.msk.f32.mxu0 %vm6011_vm0, %v10455_v2 }
 0x1f2   :  { %v7785_v26 = vpop.f32.mrb[110].mxu1 }
 0x1f3   :  { %10460 = vst [vmem:[#allocation5_spill] sm:$0xff] %v7785_v26  ;;  %2051 = vmatmul.mubr.f32.gmra.mrb[216].mxu1 %v554_v63  ;;  %v1789_v38 = vpop.f32.mrb[111].mxu1  ;;  %v710_v26 = vld [vmem:[%s10452_s0 + $0x15c0] sm:$0xff] }
 0x1f4   :  { %4782 = vmatmul.mubr.msk.f32.gmra.mrb[46].mxu0 %vm938_vm1, %v133_v11  ;;  %2055 = vmatprep.mubr.f32.mxu1 %v560_v15  ;;  %v564_v15 = vld [vmem:[%s10452_s0 + $0x1130] sm:$0xff]  ;;  %v143_v38 = vld [vmem:[%s10452_s0 + $0x408] sm:$0xff] }
 0x1f5   :  { %4784 = vmatprep.mubr.msk.f32.mxu0 %vm6011_vm0, %v10455_v2 }
 0x1f6   :  { %v7799_v63 = vpop.f32.mrb[112].mxu1 }
 0x1f7   :  { %10461 = vst [vmem:[#allocation6_spill] sm:$0xff] %v7799_v63  ;;  %2056 = vmatmul.mubr.f32.gmra.mrb[218].mxu1 %v559_v46  ;;  %v1794_v11 = vpop.f32.mrb[113].mxu1  ;;  %v570_v63 = vld [vmem:[%s10452_s0 + $0x1160] sm:$0xff] }
 0x1f8   :  { %4785 = vmatmul.mubr.msk.f32.gmra.mrb[48].mxu0 %vm938_vm1, %v138_v48  ;;  %2060 = vmatprep.mubr.f32.mxu1 %v565_v41  ;;  %v569_v41 = vld [vmem:[%s10452_s0 + $0x1158] sm:$0xff]  ;;  %v148_v11 = vld [vmem:[%s10452_s0 + $0x430] sm:$0xff] }
 0x1f9   :  { %4787 = vmatprep.mubr.msk.f32.mxu0 %vm6011_vm0, %v10455_v2 }
 0x1fa   :  { %v7813_v46 = vpop.f32.mrb[114].mxu1 }
 0x1fb   :  { %10462 = vst [vmem:[#allocation7_spill] sm:$0xff] %v7813_v46  ;;  %2061 = vmatmul.mubr.f32.gmra.mrb[220].mxu1 %v564_v15  ;;  %v1799_v48 = vpop.f32.mrb[115].mxu1  ;;  %v575_v46 = vld [vmem:[%s10452_s0 + $0x1188] sm:$0xff] }
 0x1fc   :  { %4788 = vmatmul.mubr.msk.f32.gmra.mrb[50].mxu0 %vm938_vm1, %v143_v38  ;;  %2065 = vmatprep.mubr.f32.mxu1 %v570_v63  ;;  %v574_v63 = vld [vmem:[%s10452_s0 + $0x1180] sm:$0xff]  ;;  %v153_v48 = vld [vmem:[%s10452_s0 + $0x458] sm:$0xff] }
 0x1fd   :  { %4790 = vmatprep.mubr.msk.f32.mxu0 %vm6011_vm0, %v10455_v2 }
 0x1fe   :  { %v7827_v15 = vpop.f32.mrb[116].mxu1 }
 0x1ff   :  { %10463 = vst [vmem:[#allocation8_spill] sm:$0xff] %v7827_v15  ;;  %2066 = vmatmul.mubr.f32.gmra.mrb[222].mxu1 %v569_v41  ;;  %v1804_v38 = vpop.f32.mrb[117].mxu1  ;;  %v580_v15 = vld [vmem:[%s10452_s0 + $0x11b0] sm:$0xff] }
 0x200   :  { %4791 = vmatmul.mubr.msk.f32.gmra.mrb[52].mxu0 %vm938_vm1, %v148_v11  ;;  %2070 = vmatprep.mubr.f32.mxu1 %v575_v46  ;;  %v579_v46 = vld [vmem:[%s10452_s0 + $0x11a8] sm:$0xff]  ;;  %v158_v38 = vld [vmem:[%s10452_s0 + $0x480] sm:$0xff] }
 0x201   :  { %4793 = vmatprep.mubr.msk.f32.mxu0 %vm6011_vm0, %v10455_v2 }
 0x202   :  { %v7841_v41 = vpop.f32.mrb[118].mxu1 }
 0x203   :  { %10464 = vst [vmem:[#allocation9_spill] sm:$0xff] %v7841_v41  ;;  %2071 = vmatmul.mubr.f32.gmra.mrb[224].mxu1 %v574_v63  ;;  %v1809_v11 = vpop.f32.mrb[119].mxu1  ;;  %v585_v41 = vld [vmem:[%s10452_s0 + $0x11d8] sm:$0xff] }
 0x204   :  { %4794 = vmatmul.mubr.msk.f32.gmra.mrb[54].mxu0 %vm938_vm1, %v153_v48  ;;  %2075 = vmatprep.mubr.f32.mxu1 %v580_v15  ;;  %v584_v15 = vld [vmem:[%s10452_s0 + $0x11d0] sm:$0xff]  ;;  %v163_v11 = vld [vmem:[%s10452_s0 + $0x4a8] sm:$0xff] }
 0x205   :  { %4796 = vmatprep.mubr.msk.f32.mxu0 %vm6011_vm0, %v10455_v2 }
 0x206   :  { %v7855_v63 = vpop.f32.mrb[120].mxu1 }
 0x207   :  { %10465 = vst [vmem:[#allocation10_spill] sm:$0xff] %v7855_v63  ;;  %2076 = vmatmul.mubr.f32.gmra.mrb[226].mxu1 %v579_v46  ;;  %v1814_v48 = vpop.f32.mrb[121].mxu1  ;;  %v590_v63 = vld [vmem:[%s10452_s0 + $0x1200] sm:$0xff] }
 0x208   :  { %4797 = vmatmul.mubr.msk.f32.gmra.mrb[56].mxu0 %vm938_vm1, %v158_v38  ;;  %2080 = vmatprep.mubr.f32.mxu1 %v585_v41  ;;  %v589_v41 = vld [vmem:[%s10452_s0 + $0x11f8] sm:$0xff]  ;;  %v168_v48 = vld [vmem:[%s10452_s0 + $0x4d0] sm:$0xff] }
 0x209   :  { %4799 = vmatprep.mubr.msk.f32.mxu0 %vm6011_vm0, %v10455_v2 }
 0x20a   :  { %v7869_v46 = vpop.f32.mrb[122].mxu1 }
 0x20b   :  { %10466 = vst [vmem:[#allocation11_spill] sm:$0xff] %v7869_v46  ;;  %2081 = vmatmul.mubr.f32.gmra.mrb[228].mxu1 %v584_v15  ;;  %v1819_v38 = vpop.f32.mrb[123].mxu1  ;;  %v595_v46 = vld [vmem:[%s10452_s0 + $0x1228] sm:$0xff] }
 0x20c   :  { %4800 = vmatmul.mubr.msk.f32.gmra.mrb[58].mxu0 %vm938_vm1, %v163_v11  ;;  %2085 = vmatprep.mubr.f32.mxu1 %v590_v63  ;;  %v594_v63 = vld [vmem:[%s10452_s0 + $0x1220] sm:$0xff]  ;;  %v173_v38 = vld [vmem:[%s10452_s0 + $0x4f8] sm:$0xff] }
 0x20d   :  { %4802 = vmatprep.mubr.msk.f32.mxu0 %vm6011_vm0, %v10455_v2 }
 0x20e   :  { %v7883_v15 = vpop.f32.mrb[124].mxu1 }
 0x20f   :  { %10467 = vst [vmem:[#allocation12_spill] sm:$0xff] %v7883_v15  ;;  %2086 = vmatmul.mubr.f32.gmra.mrb[230].mxu1 %v589_v41  ;;  %v1824_v11 = vpop.f32.mrb[125].mxu1  ;;  %v600_v15 = vld [vmem:[%s10452_s0 + $0x1250] sm:$0xff] }
 0x210   :  { %4803 = vmatmul.mubr.msk.f32.gmra.mrb[60].mxu0 %vm938_vm1, %v168_v48  ;;  %2090 = vmatprep.mubr.f32.mxu1 %v595_v46  ;;  %v599_v46 = vld [vmem:[%s10452_s0 + $0x1248] sm:$0xff]  ;;  %v178_v11 = vld [vmem:[%s10452_s0 + $0x520] sm:$0xff] }
 0x211   :  { %4805 = vmatprep.mubr.msk.f32.mxu0 %vm6011_vm0, %v10455_v2 }
 0x212   :  { %v7897_v41 = vpop.f32.mrb[126].mxu1 }
 0x213   :  { %10468 = vst [vmem:[#allocation13_spill] sm:$0xff] %v7897_v41  ;;  %2091 = vmatmul.mubr.f32.gmra.mrb[232].mxu1 %v594_v63  ;;  %v1829_v48 = vpop.f32.mrb[127].mxu1  ;;  %v605_v41 = vld [vmem:[%s10452_s0 + $0x1278] sm:$0xff] }
 0x214   :  { %4806 = vmatmul.mubr.msk.f32.gmra.mrb[62].mxu0 %vm938_vm1, %v173_v38  ;;  %2095 = vmatprep.mubr.f32.mxu1 %v600_v15  ;;  %v604_v15 = vld [vmem:[%s10452_s0 + $0x1270] sm:$0xff]  ;;  %v183_v48 = vld [vmem:[%s10452_s0 + $0x548] sm:$0xff] }
 0x215   :  { %4808 = vmatprep.mubr.msk.f32.mxu0 %vm6011_vm0, %v10455_v2 }
 0x216   :  { %v7911_v63 = vpop.f32.mrb[128].mxu1 }
 0x217   :  { %10469 = vst [vmem:[#allocation14_spill] sm:$0xff] %v7911_v63  ;;  %2096 = vmatmul.mubr.f32.gmra.mrb[234].mxu1 %v599_v46  ;;  %v1834_v38 = vpop.f32.mrb[129].mxu1  ;;  %v610_v63 = vld [vmem:[%s10452_s0 + $0x12a0] sm:$0xff] }
 0x218   :  { %4809 = vmatmul.mubr.msk.f32.gmra.mrb[64].mxu0 %vm938_vm1, %v178_v11  ;;  %2100 = vmatprep.mubr.f32.mxu1 %v605_v41  ;;  %v609_v41 = vld [vmem:[%s10452_s0 + $0x1298] sm:$0xff]  ;;  %v188_v38 = vld [vmem:[%s10452_s0 + $0x570] sm:$0xff] }
 0x219   :  { %4811 = vmatprep.mubr.msk.f32.mxu0 %vm6011_vm0, %v10455_v2 }
 0x21a   :  { %v7925_v46 = vpop.f32.mrb[130].mxu1 }
 0x21b   :  { %10470 = vst [vmem:[#allocation15_spill] sm:$0xff] %v7925_v46  ;;  %2101 = vmatmul.mubr.f32.gmra.mrb[236].mxu1 %v604_v15  ;;  %v1839_v11 = vpop.f32.mrb[131].mxu1  ;;  %v615_v46 = vld [vmem:[%s10452_s0 + $0x12c8] sm:$0xff] }
 0x21c   :  { %4812 = vmatmul.mubr.msk.f32.gmra.mrb[66].mxu0 %vm938_vm1, %v183_v48  ;;  %2105 = vmatprep.mubr.f32.mxu1 %v610_v63  ;;  %v614_v63 = vld [vmem:[%s10452_s0 + $0x12c0] sm:$0xff]  ;;  %v193_v11 = vld [vmem:[%s10452_s0 + $0x598] sm:$0xff] }
 0x21d   :  { %4814 = vmatprep.mubr.msk.f32.mxu0 %vm6011_vm0, %v10455_v2 }
 0x21e   :  { %v7939_v15 = vpop.f32.mrb[132].mxu1 }
 0x21f   :  { %10471 = vst [vmem:[#allocation16_spill] sm:$0xff] %v7939_v15  ;;  %2106 = vmatmul.mubr.f32.gmra.mrb[238].mxu1 %v609_v41  ;;  %v1844_v48 = vpop.f32.mrb[133].mxu1  ;;  %v620_v15 = vld [vmem:[%s10452_s0 + $0x12f0] sm:$0xff] }
 0x220   :  { %4815 = vmatmul.mubr.msk.f32.gmra.mrb[68].mxu0 %vm938_vm1, %v188_v38  ;;  %2110 = vmatprep.mubr.f32.mxu1 %v615_v46  ;;  %v619_v46 = vld [vmem:[%s10452_s0 + $0x12e8] sm:$0xff]  ;;  %v198_v48 = vld [vmem:[%s10452_s0 + $0x5c0] sm:$0xff] }
 0x221   :  { %4817 = vmatprep.mubr.msk.f32.mxu0 %vm6011_vm0, %v10455_v2 }
 0x222   :  { %v7953_v41 = vpop.f32.mrb[134].mxu1 }
 0x223   :  { %10472 = vst [vmem:[#allocation17_spill] sm:$0xff] %v7953_v41  ;;  %2111 = vmatmul.mubr.f32.gmra.mrb[240].mxu1 %v614_v63  ;;  %v1849_v38 = vpop.f32.mrb[135].mxu1  ;;  %v625_v41 = vld [vmem:[%s10452_s0 + $0x1318] sm:$0xff] }
 0x224   :  { %4818 = vmatmul.mubr.msk.f32.gmra.mrb[70].mxu0 %vm938_vm1, %v193_v11  ;;  %2115 = vmatprep.mubr.f32.mxu1 %v620_v15  ;;  %v624_v15 = vld [vmem:[%s10452_s0 + $0x1310] sm:$0xff]  ;;  %v203_v38 = vld [vmem:[%s10452_s0 + $0x5e8] sm:$0xff] }
 0x225   :  { %4820 = vmatprep.mubr.msk.f32.mxu0 %vm6011_vm0, %v10455_v2 }
 0x226   :  { %v7967_v63 = vpop.f32.mrb[136].mxu1 }
 0x227   :  { %10473 = vst [vmem:[#allocation18_spill] sm:$0xff] %v7967_v63  ;;  %2116 = vmatmul.mubr.f32.gmra.mrb[242].mxu1 %v619_v46  ;;  %v1854_v11 = vpop.f32.mrb[137].mxu1  ;;  %v630_v63 = vld [vmem:[%s10452_s0 + $0x1340] sm:$0xff] }
 0x228   :  { %4821 = vmatmul.mubr.msk.f32.gmra.mrb[72].mxu0 %vm938_vm1, %v198_v48  ;;  %2120 = vmatprep.mubr.f32.mxu1 %v625_v41  ;;  %v629_v41 = vld [vmem:[%s10452_s0 + $0x1338] sm:$0xff]  ;;  %v208_v11 = vld [vmem:[%s10452_s0 + $0x610] sm:$0xff] }
 0x229   :  { %4823 = vmatprep.mubr.msk.f32.mxu0 %vm6011_vm0, %v10455_v2 }
 0x22a   :  { %v7981_v46 = vpop.f32.mrb[138].mxu1 }
 0x22b   :  { %10474 = vst [vmem:[#allocation19_spill] sm:$0xff] %v7981_v46  ;;  %2121 = vmatmul.mubr.f32.gmra.mrb[244].mxu1 %v624_v15  ;;  %v1859_v48 = vpop.f32.mrb[139].mxu1  ;;  %v635_v46 = vld [vmem:[%s10452_s0 + $0x1368] sm:$0xff] }
 0x22c   :  { %4824 = vmatmul.mubr.msk.f32.gmra.mrb[74].mxu0 %vm938_vm1, %v203_v38  ;;  %2125 = vmatprep.mubr.f32.mxu1 %v630_v63  ;;  %v634_v63 = vld [vmem:[%s10452_s0 + $0x1360] sm:$0xff]  ;;  %v213_v48 = vld [vmem:[%s10452_s0 + $0x638] sm:$0xff] }
 0x22d   :  { %4826 = vmatprep.mubr.msk.f32.mxu0 %vm6011_vm0, %v10455_v2 }
 0x22e   :  { %v7995_v15 = vpop.f32.mrb[140].mxu1 }
 0x22f   :  { %10475 = vst [vmem:[#allocation20_spill] sm:$0xff] %v7995_v15  ;;  %2126 = vmatmul.mubr.f32.gmra.mrb[246].mxu1 %v629_v41  ;;  %v1864_v38 = vpop.f32.mrb[141].mxu1  ;;  %v640_v15 = vld [vmem:[%s10452_s0 + $0x1390] sm:$0xff] }
 0x230   :  { %4827 = vmatmul.mubr.msk.f32.gmra.mrb[76].mxu0 %vm938_vm1, %v208_v11  ;;  %2130 = vmatprep.mubr.f32.mxu1 %v635_v46  ;;  %v639_v46 = vld [vmem:[%s10452_s0 + $0x1388] sm:$0xff]  ;;  %v218_v38 = vld [vmem:[%s10452_s0 + $0x660] sm:$0xff] }
 0x231   :  { %4829 = vmatprep.mubr.msk.f32.mxu0 %vm6011_vm0, %v10455_v2 }
 0x232   :  { %v8009_v41 = vpop.f32.mrb[142].mxu1 }
 0x233   :  { %10476 = vst [vmem:[#allocation21_spill] sm:$0xff] %v8009_v41  ;;  %2131 = vmatmul.mubr.f32.gmra.mrb[248].mxu1 %v634_v63  ;;  %v1869_v11 = vpop.f32.mrb[143].mxu1  ;;  %v645_v41 = vld [vmem:[%s10452_s0 + $0x13b8] sm:$0xff] }
 0x234   :  { %4830 = vmatmul.mubr.msk.f32.gmra.mrb[78].mxu0 %vm938_vm1, %v213_v48  ;;  %2135 = vmatprep.mubr.f32.mxu1 %v640_v15  ;;  %v644_v15 = vld [vmem:[%s10452_s0 + $0x13b0] sm:$0xff]  ;;  %v223_v11 = vld [vmem:[%s10452_s0 + $0x688] sm:$0xff] }
 0x235   :  { %4832 = vmatprep.mubr.msk.f32.mxu0 %vm6011_vm0, %v10455_v2 }
 0x236   :  { %v8023_v63 = vpop.f32.mrb[144].mxu1 }
 0x237   :  { %10477 = vst [vmem:[#allocation22_spill] sm:$0xff] %v8023_v63  ;;  %2136 = vmatmul.mubr.f32.gmra.mrb[250].mxu1 %v639_v46  ;;  %v1874_v48 = vpop.f32.mrb[145].mxu1  ;;  %v650_v63 = vld [vmem:[%s10452_s0 + $0x13e0] sm:$0xff] }
 0x238   :  { %4833 = vmatmul.mubr.msk.f32.gmra.mrb[80].mxu0 %vm938_vm1, %v218_v38  ;;  %2140 = vmatprep.mubr.f32.mxu1 %v645_v41  ;;  %v649_v41 = vld [vmem:[%s10452_s0 + $0x13d8] sm:$0xff]  ;;  %v228_v48 = vld [vmem:[%s10452_s0 + $0x6b0] sm:$0xff] }
 0x239   :  { %4835 = vmatprep.mubr.msk.f32.mxu0 %vm6011_vm0, %v10455_v2 }
 0x23a   :  { %v8037_v46 = vpop.f32.mrb[146].mxu1 }
 0x23b   :  { %10478 = vst [vmem:[#allocation23_spill] sm:$0xff] %v8037_v46  ;;  %2141 = vmatmul.mubr.f32.gmra.mrb[252].mxu1 %v644_v15  ;;  %v1879_v38 = vpop.f32.mrb[147].mxu1  ;;  %v655_v46 = vld [vmem:[%s10452_s0 + $0x1408] sm:$0xff] }
 0x23c   :  { %4836 = vmatmul.mubr.msk.f32.gmra.mrb[82].mxu0 %vm938_vm1, %v223_v11  ;;  %2145 = vmatprep.mubr.f32.mxu1 %v650_v63  ;;  %v654_v63 = vld [vmem:[%s10452_s0 + $0x1400] sm:$0xff]  ;;  %v233_v38 = vld [vmem:[%s10452_s0 + $0x6d8] sm:$0xff] }
 0x23d   :  { %4838 = vmatprep.mubr.msk.f32.mxu0 %vm6011_vm0, %v10455_v2 }
 0x23e   :  { %v8051_v15 = vpop.f32.mrb[148].mxu1 }
 0x23f   :  { %10479 = vst [vmem:[#allocation24_spill] sm:$0xff] %v8051_v15  ;;  %2146 = vmatmul.mubr.f32.gmra.mrb[254].mxu1 %v649_v41  ;;  %v1884_v11 = vpop.f32.mrb[149].mxu1  ;;  %v660_v15 = vld [vmem:[%s10452_s0 + $0x1430] sm:$0xff] }
 0x240   :  { %4839 = vmatmul.mubr.msk.f32.gmra.mrb[84].mxu0 %vm938_vm1, %v228_v48  ;;  %2150 = vmatprep.mubr.f32.mxu1 %v655_v46  ;;  %v659_v46 = vld [vmem:[%s10452_s0 + $0x1428] sm:$0xff]  ;;  %v238_v48 = vld [vmem:[%s10452_s0 + $0x700] sm:$0xff] }
 0x241   :  { %4841 = vmatprep.mubr.msk.f32.mxu0 %vm6011_vm0, %v10455_v2 }
 0x242   :  { %v8065_v41 = vpop.f32.mrb[150].mxu1 }
 0x243   :  { %10480 = vst [vmem:[#allocation25_spill] sm:$0xff] %v8065_v41  ;;  %v1889_v11 = vpop.f32.mrb[151].mxu1  ;;  %2151 = vmatmul.mubr.f32.gmra.mrb[150].mxu1 %v654_v63  ;;  %v665_v41 = vld [vmem:[%s10452_s0 + $0x1458] sm:$0xff] }
 0x244   :  { %4842 = vmatmul.mubr.msk.f32.gmra.mrb[86].mxu0 %vm938_vm1, %v233_v38  ;;  %2155 = vmatprep.mubr.f32.mxu1 %v660_v15  ;;  %v664_v15 = vld [vmem:[%s10452_s0 + $0x1450] sm:$0xff]  ;;  %v243_v38 = vld [vmem:[%s10452_s0 + $0x728] sm:$0xff] }
 0x245   :  { %4844 = vmatprep.mubr.msk.f32.mxu0 %vm6011_vm0, %v10455_v2 }
 0x246   :  { %v8079_v11 = vpop.f32.mrb[152].mxu1 }
 0x247   :  { %10481 = vst [vmem:[#allocation26_spill] sm:$0xff] %v8079_v11  ;;  %v1894_v63 = vpop.f32.mrb[153].mxu1  ;;  %2156 = vmatmul.mubr.f32.gmra.mrb[152].mxu1 %v659_v46  ;;  %v670_v11 = vld [vmem:[%s10452_s0 + $0x1480] sm:$0xff] }
 0x248   :  { %4845 = vmatmul.mubr.msk.f32.gmra.mrb[88].mxu0 %vm938_vm1, %v238_v48  ;;  %2160 = vmatprep.mubr.f32.mxu1 %v665_v41  ;;  %v669_v41 = vld [vmem:[%s10452_s0 + $0x1478] sm:$0xff]  ;;  %v248_v48 = vld [vmem:[%s10452_s0 + $0x750] sm:$0xff] }
 0x249   :  { %4847 = vmatprep.mubr.msk.f32.mxu0 %vm6011_vm0, %v10455_v2 }
 0x24a   :  { %v8093_v63 = vpop.f32.mrb[154].mxu1 }
 0x24b   :  { %10482 = vst [vmem:[#allocation27_spill] sm:$0xff] %v8093_v63  ;;  %v1899_v46 = vpop.f32.mrb[155].mxu1  ;;  %2161 = vmatmul.mubr.f32.gmra.mrb[154].mxu1 %v664_v15  ;;  %v675_v63 = vld [vmem:[%s10452_s0 + $0x14a8] sm:$0xff] }
 0x24c   :  { %4848 = vmatmul.mubr.msk.f32.gmra.mrb[90].mxu0 %vm938_vm1, %v243_v38  ;;  %2165 = vmatprep.mubr.f32.mxu1 %v670_v11  ;;  %v674_v11 = vld [vmem:[%s10452_s0 + $0x14a0] sm:$0xff]  ;;  %v253_v38 = vld [vmem:[%s10452_s0 + $0x778] sm:$0xff] }
 0x24d   :  { %4850 = vmatprep.mubr.msk.f32.mxu0 %vm6011_vm0, %v10455_v2 }
 0x24e   :  { %v8107_v46 = vpop.f32.mrb[156].mxu1 }
 0x24f   :  { %10483 = vst [vmem:[#allocation28_spill] sm:$0xff] %v8107_v46  ;;  %v1904_v15 = vpop.f32.mrb[157].mxu1  ;;  %2166 = vmatmul.mubr.f32.gmra.mrb[156].mxu1 %v669_v41  ;;  %v680_v46 = vld [vmem:[%s10452_s0 + $0x14d0] sm:$0xff] }
 0x250   :  { %4851 = vmatmul.mubr.msk.f32.gmra.mrb[92].mxu0 %vm938_vm1, %v248_v48  ;;  %2170 = vmatprep.mubr.f32.mxu1 %v675_v63  ;;  %v679_v63 = vld [vmem:[%s10452_s0 + $0x14c8] sm:$0xff]  ;;  %v258_v48 = vld [vmem:[%s10452_s0 + $0x7a0] sm:$0xff] }
 0x251   :  { %4853 = vmatprep.mubr.msk.f32.mxu0 %vm6011_vm0, %v10455_v2 }
 0x252   :  { %v8121_v15 = vpop.f32.mrb[158].mxu1 }
 0x253   :  { %10484 = vst [vmem:[#allocation29_spill] sm:$0xff] %v8121_v15  ;;  %v1909_v41 = vpop.f32.mrb[159].mxu1  ;;  %2171 = vmatmul.mubr.f32.gmra.mrb[158].mxu1 %v674_v11  ;;  %v685_v15 = vld [vmem:[%s10452_s0 + $0x14f8] sm:$0xff] }
 0x254   :  { %4854 = vmatmul.mubr.msk.f32.gmra.mrb[94].mxu0 %vm938_vm1, %v253_v38  ;;  %2175 = vmatprep.mubr.f32.mxu1 %v680_v46  ;;  %v684_v46 = vld [vmem:[%s10452_s0 + $0x14f0] sm:$0xff]  ;;  %v263_v38 = vld [vmem:[%s10452_s0 + $0x7c8] sm:$0xff] }
 0x255   :  { %4856 = vmatprep.mubr.msk.f32.mxu0 %vm6011_vm0, %v10455_v2 }
 0x256   :  { %v8135_v41 = vpop.f32.mrb[160].mxu1 }
 0x257   :  { %10485 = vst [vmem:[#allocation30_spill] sm:$0xff] %v8135_v41  ;;  %v1914_v11 = vpop.f32.mrb[161].mxu1  ;;  %2176 = vmatmul.mubr.f32.gmra.mrb[160].mxu1 %v679_v63  ;;  %v690_v41 = vld [vmem:[%s10452_s0 + $0x1520] sm:$0xff] }
 0x258   :  { %4857 = vmatmul.mubr.msk.f32.gmra.mrb[96].mxu0 %vm938_vm1, %v258_v48  ;;  %2180 = vmatprep.mubr.f32.mxu1 %v685_v15  ;;  %v689_v15 = vld [vmem:[%s10452_s0 + $0x1518] sm:$0xff]  ;;  %v268_v48 = vld [vmem:[%s10452_s0 + $0x7f0] sm:$0xff] }
 0x259   :  { %4859 = vmatprep.mubr.msk.f32.mxu0 %vm6011_vm0, %v10455_v2 }
 0x25a   :  { %v8149_v11 = vpop.f32.mrb[162].mxu1 }
 0x25b   :  { %10486 = vst [vmem:[#allocation31_spill] sm:$0xff] %v8149_v11  ;;  %v1919_v63 = vpop.f32.mrb[163].mxu1  ;;  %2181 = vmatmul.mubr.f32.gmra.mrb[162].mxu1 %v684_v46  ;;  %v695_v11 = vld [vmem:[%s10452_s0 + $0x1548] sm:$0xff] }
 0x25c   :  { %4860 = vmatmul.mubr.msk.f32.gmra.mrb[98].mxu0 %vm938_vm1, %v263_v38  ;;  %2185 = vmatprep.mubr.f32.mxu1 %v690_v41  ;;  %v694_v41 = vld [vmem:[%s10452_s0 + $0x1540] sm:$0xff]  ;;  %v273_v38 = vld [vmem:[%s10452_s0 + $0x818] sm:$0xff] }
 0x25d   :  { %4862 = vmatprep.mubr.msk.f32.mxu0 %vm6011_vm0, %v10455_v2 }
 0x25e   :  { %v8163_v63 = vpop.f32.mrb[164].mxu1 }
 0x25f   :  { %10487 = vst [vmem:[#allocation32_spill] sm:$0xff] %v8163_v63  ;;  %v1924_v46 = vpop.f32.mrb[165].mxu1  ;;  %2186 = vmatmul.mubr.f32.gmra.mrb[164].mxu1 %v689_v15  ;;  %v700_v63 = vld [vmem:[%s10452_s0 + $0x1570] sm:$0xff] }
 0x260   :  { %4863 = vmatmul.mubr.msk.f32.gmra.mrb[100].mxu0 %vm938_vm1, %v268_v48  ;;  %2190 = vmatprep.mubr.f32.mxu1 %v695_v11  ;;  %v699_v11 = vld [vmem:[%s10452_s0 + $0x1568] sm:$0xff]  ;;  %v278_v48 = vld [vmem:[%s10452_s0 + $0x840] sm:$0xff] }
 0x261   :  { %4865 = vmatprep.mubr.msk.f32.mxu0 %vm6011_vm0, %v10455_v2 }
 0x262   :  { %v8177_v46 = vpop.f32.mrb[166].mxu1 }
 0x263   :  { %10488 = vst [vmem:[#allocation33_spill] sm:$0xff] %v8177_v46  ;;  %v1929_v15 = vpop.f32.mrb[167].mxu1  ;;  %2191 = vmatmul.mubr.f32.gmra.mrb[166].mxu1 %v694_v41  ;;  %v705_v46 = vld [vmem:[%s10452_s0 + $0x1598] sm:$0xff] }
 0x264   :  { %4866 = vmatmul.mubr.msk.f32.gmra.mrb[102].mxu0 %vm938_vm1, %v273_v38  ;;  %2195 = vmatprep.mubr.f32.mxu1 %v700_v63  ;;  %v8196_v63 = vld [vmem:[%s10453_s2] ss:$0 sm:$0xff]  ;;  %v704_v38 = vld [vmem:[%s10452_s0 + $0x1590] sm:$0xff] }
 0x265   :  { %4868 = vmatprep.mubr.msk.f32.mxu0 %vm6011_vm0, %v10455_v2 }
 0x266   :  { %v8191_v15 = vpop.f32.mrb[168].mxu1 }
 0x267   :  { %10489 = vst [vmem:[#allocation34_spill] sm:$0xff] %v8191_v15  ;;  %v1934_v41 = vpop.f32.mrb[169].mxu1  ;;  %2196 = vmatmul.mubr.f32.gmra.mrb[168].mxu1 %v699_v11  ;;  %v283_v15 = vld [vmem:[%s10452_s0 + $0x868] sm:$0xff]  ;;  %v1513_v11 = vadd.f32 %v8196_v63, %v7016_v17  ;;  %v288_v17 = vld [vmem:[%s10452_s0 + $0x890] sm:$0xff] }
 0x268   :  { %4869 = vmatmul.mubr.msk.f32.gmra.mrb[104].mxu0 %vm938_vm1, %v278_v48  ;;  %2200 = vmatprep.mubr.f32.mxu1 %v705_v46 }
 0x269   :  { %4871 = vmatprep.mubr.msk.f32.mxu0 %vm6011_vm0, %v10455_v2  ;;  %v709_v2 = vld [vmem:[%s10452_s0 + $0x15b8] sm:$0xff] }
 0x26a   :  { %v8212_v48 = vpop.f32.mrb[170].mxu1 }
 0x26b   :  { %10490 = vst [vmem:[#allocation35_spill] sm:$0xff] %v8212_v48  ;;  %v3332_v46 = vpop.f32.mrb[0].mxu0  ;;  %v1939_v41 = vpop.f32.mrb[171].mxu1  ;;  %2201 = vmatmul.mubr.f32.gmra.mrb[170].mxu1 %v704_v38  ;;  %v715_v38 = vld [vmem:[%s10452_s0 + $0x15e8] sm:$0xff]  ;;  %v714_v48 = vld [vmem:[%s10452_s0 + $0x15e0] sm:$0xff] }
 0x26c   :  { %v5360_v54 = vadd.f32 %v3332_v46, %v1513_v11  ;;  %v4714_v22 = vpop.f32.mrb[1].mxu0  ;;  %4872 = vmatmul.mubr.msk.f32.gmra.mrb[106].mxu0 %vm938_vm1, %v283_v15  ;;  %2205 = vmatprep.mubr.f32.mxu1 %v710_v26 }
 0x26d   :  { %4874 = vmatprep.mubr.msk.f32.mxu0 %vm6011_vm0, %v10491_v59  ;;  %v1518_v22 = vadd.f32 %v8196_v63, %v7030_v23  ;;  %v293_v23 = vld [vmem:[%s10452_s0 + $0x8b8] sm:$0xff] }
 0x26e   :  { %4176 = vst [vmem:[%s10454_s3] sm:$0xff] %v5360_v54  ;;  %v8231_v26 = vpop.f32.mrb[172].mxu1  ;;  %v1523_v54 = vadd.f32 %v8196_v63, %v7044_v31  ;;  %v298_v31 = vld [vmem:[%s10452_s0 + $0x8e0] sm:$0xff] }
 0x26f   :  { %v3337_v15 = vpop.f32.mrb[2].mxu0  ;;  %v1944_v11 = vpop.f32.mrb[173].mxu1  ;;  %2206 = vmatmul.mubr.f32.gmra.mrb[172].mxu1 %v709_v2  ;;  %v720_v2 = vld [vmem:[%s10452_s0 + $0x1610] sm:$0xff] }
 0x270   :  { %v5362_v46 = vadd.f32 %v3337_v15, %v1518_v22  ;;  %v4717_v41 = vpop.f32.mrb[3].mxu0  ;;  %4875 = vmatmul.mubr.msk.f32.gmra.mrb[108].mxu0 %vm938_vm1, %v288_v17  ;;  %2210 = vmatprep.mubr.f32.mxu1 %v715_v38 }
 0x271   :  { %4877 = vmatprep.mubr.msk.f32.mxu0 %vm6011_vm0, %v10491_v59  ;;  %v719_v41 = vld [vmem:[%s10452_s0 + $0x1608] sm:$0xff] }
 0x272   :  { %4177 = vst [vmem:[%s10454_s3 + $0x8] sm:$0xff] %v5362_v46  ;;  %v8250_v17 = vpop.f32.mrb[174].mxu1  ;;  %v1528_v46 = vadd.f32 %v8196_v63, %v7058_v37  ;;  %v303_v37 = vld [vmem:[%s10452_s0 + $0x908] sm:$0xff] }
 0x273   :  { %v3342_v38 = vpop.f32.mrb[4].mxu0  ;;  %v1949_v22 = vpop.f32.mrb[175].mxu1  ;;  %2211 = vmatmul.mubr.f32.gmra.mrb[174].mxu1 %v714_v48  ;;  %v725_v48 = vld [vmem:[%s10452_s0 + $0x1638] sm:$0xff] }
 0x274   :  { %v5364_v15 = vadd.f32 %v3342_v38, %v1523_v54  ;;  %v4720_v11 = vpop.f32.mrb[5].mxu0  ;;  %4878 = vmatmul.mubr.msk.f32.gmra.mrb[110].mxu0 %vm938_vm1, %v293_v23  ;;  %2215 = vmatprep.mubr.f32.mxu1 %v720_v2 }
 0x275   :  { %4880 = vmatprep.mubr.msk.f32.mxu0 %vm6011_vm0, %v10491_v59  ;;  %v724_v11 = vld [vmem:[%s10452_s0 + $0x1630] sm:$0xff] }
 0x276   :  { %4178 = vst [vmem:[%s10454_s3 + $0x10] sm:$0xff] %v5364_v15  ;;  %v8269_v23 = vpop.f32.mrb[176].mxu1  ;;  %v730_v15 = vld [vmem:[%s10452_s0 + $0x1660] sm:$0xff] }
 0x277   :  { %v3347_v2 = vpop.f32.mrb[6].mxu0  ;;  %v1954_v54 = vpop.f32.mrb[177].mxu1  ;;  %2216 = vmatmul.mubr.f32.gmra.mrb[176].mxu1 %v719_v41  ;;  %v1533_v41 = vadd.f32 %v8196_v63, %v7072_v5  ;;  %v308_v5 = vld [vmem:[%s10452_s0 + $0x930] sm:$0xff] }
 0x278   :  { %v5366_v38 = vadd.f32 %v3347_v2, %v1528_v46  ;;  %v4723_v22 = vpop.f32.mrb[7].mxu0  ;;  %4881 = vmatmul.mubr.msk.f32.gmra.mrb[112].mxu0 %vm938_vm1, %v298_v31  ;;  %2220 = vmatprep.mubr.f32.mxu1 %v725_v48 }
 0x279   :  { %4883 = vmatprep.mubr.msk.f32.mxu0 %vm6011_vm0, %v10491_v59  ;;  %v729_v22 = vld [vmem:[%s10452_s0 + $0x1658] sm:$0xff] }
 0x27a   :  { %4179 = vst [vmem:[%s10454_s3 + $0x18] sm:$0xff] %v5366_v38  ;;  %v8288_v31 = vpop.f32.mrb[178].mxu1  ;;  %v735_v38 = vld [vmem:[%s10452_s0 + $0x1688] sm:$0xff] }
 0x27b   :  { %v3352_v48 = vpop.f32.mrb[8].mxu0  ;;  %v1959_v46 = vpop.f32.mrb[179].mxu1  ;;  %2221 = vmatmul.mubr.f32.gmra.mrb[178].mxu1 %v724_v11  ;;  %v1538_v11 = vadd.f32 %v8196_v63, %v7086_v49  ;;  %v313_v49 = vld [vmem:[%s10452_s0 + $0x958] sm:$0xff] }
 0x27c   :  { %v5368_v2 = vadd.f32 %v3352_v48, %v1533_v41  ;;  %v4726_v54 = vpop.f32.mrb[9].mxu0  ;;  %4884 = vmatmul.mubr.msk.f32.gmra.mrb[114].mxu0 %vm938_vm1, %v303_v37  ;;  %2225 = vmatprep.mubr.f32.mxu1 %v730_v15 }
 0x27d   :  { %4886 = vmatprep.mubr.msk.f32.mxu0 %vm6011_vm0, %v10491_v59  ;;  %v734_v54 = vld [vmem:[%s10452_s0 + $0x1680] sm:$0xff] }
 0x27e   :  { %4180 = vst [vmem:[%s10454_s3 + $0x20] sm:$0xff] %v5368_v2  ;;  %v8307_v37 = vpop.f32.mrb[180].mxu1  ;;  %v740_v2 = vld [vmem:[%s10452_s0 + $0x16b0] sm:$0xff] }
 0x27f   :  { %v3357_v15 = vpop.f32.mrb[10].mxu0  ;;  %v1964_v41 = vpop.f32.mrb[181].mxu1  ;;  %2226 = vmatmul.mubr.f32.gmra.mrb[180].mxu1 %v729_v22  ;;  %v1543_v22 = vadd.f32 %v8196_v63, %v7100_v55  ;;  %v318_v55 = vld [vmem:[%s10452_s0 + $0x980] sm:$0xff] }
 0x280   :  { %v5370_v48 = vadd.f32 %v3357_v15, %v1538_v11  ;;  %v4729_v46 = vpop.f32.mrb[11].mxu0  ;;  %4887 = vmatmul.mubr.msk.f32.gmra.mrb[116].mxu0 %vm938_vm1, %v308_v5  ;;  %2230 = vmatprep.mubr.f32.mxu1 %v735_v38 }
 0x281   :  { %4889 = vmatprep.mubr.msk.f32.mxu0 %vm6011_vm0, %v10491_v59  ;;  %v739_v46 = vld [vmem:[%s10452_s0 + $0x16a8] sm:$0xff] }
 0x282   :  { %4181 = vst [vmem:[%s10454_s3 + $0x28] sm:$0xff] %v5370_v48  ;;  %v8326_v5 = vpop.f32.mrb[182].mxu1  ;;  %v745_v48 = vld [vmem:[%s10452_s0 + $0x16d8] sm:$0xff] }
 0x283   :  { %v3362_v38 = vpop.f32.mrb[12].mxu0  ;;  %v1969_v11 = vpop.f32.mrb[183].mxu1  ;;  %2231 = vmatmul.mubr.f32.gmra.mrb[182].mxu1 %v734_v54  ;;  %v1548_v54 = vadd.f32 %v8196_v63, %v7114_v0  ;;  %v323_v0 = vld [vmem:[%s10452_s0 + $0x9a8] sm:$0xff] }
 0x284   :  { %v5372_v15 = vadd.f32 %v3362_v38, %v1543_v22  ;;  %v4732_v41 = vpop.f32.mrb[13].mxu0  ;;  %4890 = vmatmul.mubr.msk.f32.gmra.mrb[118].mxu0 %vm938_vm1, %v313_v49  ;;  %2235 = vmatprep.mubr.f32.mxu1 %v740_v2 }
 0x285   :  { %4892 = vmatprep.mubr.msk.f32.mxu0 %vm6011_vm0, %v10491_v59  ;;  %v744_v41 = vld [vmem:[%s10452_s0 + $0x16d0] sm:$0xff] }
 0x286   :  { %4182 = vst [vmem:[%s10454_s3 + $0x30] sm:$0xff] %v5372_v15  ;;  %v8345_v49 = vpop.f32.mrb[184].mxu1  ;;  %v750_v15 = vld [vmem:[%s10452_s0 + $0x1700] sm:$0xff] }
 0x287   :  { %v3367_v2 = vpop.f32.mrb[14].mxu0  ;;  %v1974_v22 = vpop.f32.mrb[185].mxu1  ;;  %2236 = vmatmul.mubr.f32.gmra.mrb[184].mxu1 %v739_v46  ;;  %v1553_v46 = vadd.f32 %v8196_v63, %v7128_v12  ;;  %v328_v12 = vld [vmem:[%s10452_s0 + $0x9d0] sm:$0xff] }
 0x288   :  { %v5374_v38 = vadd.f32 %v3367_v2, %v1548_v54  ;;  %v4735_v11 = vpop.f32.mrb[15].mxu0  ;;  %4893 = vmatmul.mubr.msk.f32.gmra.mrb[120].mxu0 %vm938_vm1, %v318_v55  ;;  %2240 = vmatprep.mubr.f32.mxu1 %v745_v48 }
 0x289   :  { %4895 = vmatprep.mubr.msk.f32.mxu0 %vm6011_vm0, %v10491_v59  ;;  %v749_v11 = vld [vmem:[%s10452_s0 + $0x16f8] sm:$0xff] }
 0x28a   :  { %4183 = vst [vmem:[%s10454_s3 + $0x38] sm:$0xff] %v5374_v38  ;;  %v8364_v55 = vpop.f32.mrb[186].mxu1  ;;  %v755_v38 = vld [vmem:[%s10452_s0 + $0x1728] sm:$0xff] }
 0x28b   :  { %v3372_v48 = vpop.f32.mrb[16].mxu0  ;;  %v1979_v54 = vpop.f32.mrb[187].mxu1  ;;  %2241 = vmatmul.mubr.f32.gmra.mrb[186].mxu1 %v744_v41  ;;  %v1558_v41 = vadd.f32 %v8196_v63, %v7142_v6  ;;  %v333_v6 = vld [vmem:[%s10452_s0 + $0x9f8] sm:$0xff] }
 0x28c   :  { %v5376_v2 = vadd.f32 %v3372_v48, %v1553_v46  ;;  %v4738_v22 = vpop.f32.mrb[17].mxu0  ;;  %4896 = vmatmul.mubr.msk.f32.gmra.mrb[122].mxu0 %vm938_vm1, %v323_v0  ;;  %2245 = vmatprep.mubr.f32.mxu1 %v750_v15 }
 0x28d   :  { %4898 = vmatprep.mubr.msk.f32.mxu0 %vm6011_vm0, %v10491_v59  ;;  %v754_v22 = vld [vmem:[%s10452_s0 + $0x1720] sm:$0xff] }
 0x28e   :  { %4184 = vst [vmem:[%s10454_s3 + $0x40] sm:$0xff] %v5376_v2  ;;  %v8383_v0 = vpop.f32.mrb[188].mxu1  ;;  %v760_v2 = vld [vmem:[%s10452_s0 + $0x1750] sm:$0xff] }
 0x28f   :  { %v3377_v15 = vpop.f32.mrb[18].mxu0  ;;  %v1984_v46 = vpop.f32.mrb[189].mxu1  ;;  %2246 = vmatmul.mubr.f32.gmra.mrb[188].mxu1 %v749_v11  ;;  %v1563_v11 = vadd.f32 %v8196_v63, %v7156_v14  ;;  %v338_v14 = vld [vmem:[%s10452_s0 + $0xa20] sm:$0xff] }
 0x290   :  { %v5378_v48 = vadd.f32 %v3377_v15, %v1558_v41  ;;  %v4741_v54 = vpop.f32.mrb[19].mxu0  ;;  %4899 = vmatmul.mubr.msk.f32.gmra.mrb[124].mxu0 %vm938_vm1, %v328_v12  ;;  %2250 = vmatprep.mubr.f32.mxu1 %v755_v38 }
 0x291   :  { %4901 = vmatprep.mubr.msk.f32.mxu0 %vm6011_vm0, %v10491_v59  ;;  %v759_v54 = vld [vmem:[%s10452_s0 + $0x1748] sm:$0xff] }
 0x292   :  { %4185 = vst [vmem:[%s10454_s3 + $0x48] sm:$0xff] %v5378_v48  ;;  %v8402_v12 = vpop.f32.mrb[190].mxu1  ;;  %v765_v48 = vld [vmem:[%s10452_s0 + $0x1778] sm:$0xff] }
 0x293   :  { %v3382_v38 = vpop.f32.mrb[20].mxu0  ;;  %v1989_v41 = vpop.f32.mrb[191].mxu1  ;;  %2251 = vmatmul.mubr.f32.gmra.mrb[190].mxu1 %v754_v22  ;;  %v1568_v22 = vadd.f32 %v8196_v63, %v7170_v21  ;;  %v343_v21 = vld [vmem:[%s10452_s0 + $0xa48] sm:$0xff] }
 0x294   :  { %v5380_v15 = vadd.f32 %v3382_v38, %v1563_v11  ;;  %v4744_v46 = vpop.f32.mrb[21].mxu0  ;;  %4902 = vmatmul.mubr.msk.f32.gmra.mrb[126].mxu0 %vm938_vm1, %v333_v6  ;;  %2255 = vmatprep.mubr.f32.mxu1 %v760_v2 }
 0x295   :  { %4904 = vmatprep.mubr.msk.f32.mxu0 %vm6011_vm0, %v10491_v59  ;;  %v764_v46 = vld [vmem:[%s10452_s0 + $0x1770] sm:$0xff] }
 0x296   :  { %4186 = vst [vmem:[%s10454_s3 + $0x50] sm:$0xff] %v5380_v15  ;;  %v8421_v6 = vpop.f32.mrb[192].mxu1  ;;  %v770_v15 = vld [vmem:[%s10452_s0 + $0x17a0] sm:$0xff] }
 0x297   :  { %v3387_v2 = vpop.f32.mrb[22].mxu0  ;;  %v1994_v11 = vpop.f32.mrb[193].mxu1  ;;  %2256 = vmatmul.mubr.f32.gmra.mrb[192].mxu1 %v759_v54  ;;  %v1573_v54 = vadd.f32 %v8196_v63, %v7184_v28  ;;  %v348_v28 = vld [vmem:[%s10452_s0 + $0xa70] sm:$0xff] }
 0x298   :  { %v5382_v38 = vadd.f32 %v3387_v2, %v1568_v22  ;;  %v4747_v41 = vpop.f32.mrb[23].mxu0  ;;  %4905 = vmatmul.mubr.msk.f32.gmra.mrb[128].mxu0 %vm938_vm1, %v338_v14  ;;  %2260 = vmatprep.mubr.f32.mxu1 %v765_v48 }
 0x299   :  { %4907 = vmatprep.mubr.msk.f32.mxu0 %vm6011_vm0, %v10491_v59  ;;  %v769_v41 = vld [vmem:[%s10452_s0 + $0x1798] sm:$0xff] }
 0x29a   :  { %4187 = vst [vmem:[%s10454_s3 + $0x58] sm:$0xff] %v5382_v38  ;;  %v8440_v14 = vpop.f32.mrb[194].mxu1  ;;  %v775_v38 = vld [vmem:[%s10452_s0 + $0x17c8] sm:$0xff] }
 0x29b   :  { %v3392_v48 = vpop.f32.mrb[24].mxu0  ;;  %v1999_v22 = vpop.f32.mrb[195].mxu1  ;;  %2261 = vmatmul.mubr.f32.gmra.mrb[194].mxu1 %v764_v46  ;;  %v1578_v46 = vadd.f32 %v8196_v63, %v7198_v62  ;;  %v353_v62 = vld [vmem:[%s10452_s0 + $0xa98] sm:$0xff] }
 0x29c   :  { %v5384_v2 = vadd.f32 %v3392_v48, %v1573_v54  ;;  %v4750_v11 = vpop.f32.mrb[25].mxu0  ;;  %4908 = vmatmul.mubr.msk.f32.gmra.mrb[130].mxu0 %vm938_vm1, %v343_v21  ;;  %2265 = vmatprep.mubr.f32.mxu1 %v770_v15 }
 0x29d   :  { %4910 = vmatprep.mubr.msk.f32.mxu0 %vm6011_vm0, %v10491_v59  ;;  %v774_v11 = vld [vmem:[%s10452_s0 + $0x17c0] sm:$0xff] }
 0x29e   :  { %4188 = vst [vmem:[%s10454_s3 + $0x60] sm:$0xff] %v5384_v2  ;;  %v8459_v21 = vpop.f32.mrb[196].mxu1  ;;  %v780_v2 = vld [vmem:[%s10452_s0 + $0x17f0] sm:$0xff] }
 0x29f   :  { %v3397_v15 = vpop.f32.mrb[26].mxu0  ;;  %v2004_v54 = vpop.f32.mrb[197].mxu1  ;;  %2266 = vmatmul.mubr.f32.gmra.mrb[196].mxu1 %v769_v41  ;;  %v1583_v41 = vadd.f32 %v8196_v63, %v7212_v45  ;;  %v358_v45 = vld [vmem:[%s10452_s0 + $0xac0] sm:$0xff] }
 0x2a0   :  { %v5386_v48 = vadd.f32 %v3397_v15, %v1578_v46  ;;  %v4753_v22 = vpop.f32.mrb[27].mxu0  ;;  %4911 = vmatmul.mubr.msk.f32.gmra.mrb[132].mxu0 %vm938_vm1, %v348_v28  ;;  %2270 = vmatprep.mubr.f32.mxu1 %v775_v38 }
 0x2a1   :  { %4913 = vmatprep.mubr.msk.f32.mxu0 %vm6011_vm0, %v10491_v59  ;;  %v779_v22 = vld [vmem:[%s10452_s0 + $0x17e8] sm:$0xff] }
 0x2a2   :  { %4189 = vst [vmem:[%s10454_s3 + $0x68] sm:$0xff] %v5386_v48  ;;  %v8478_v28 = vpop.f32.mrb[198].mxu1  ;;  %v785_v48 = vld [vmem:[%s10452_s0 + $0x1818] sm:$0xff] }
 0x2a3   :  { %v3402_v38 = vpop.f32.mrb[28].mxu0  ;;  %v2009_v46 = vpop.f32.mrb[199].mxu1  ;;  %2271 = vmatmul.mubr.f32.gmra.mrb[198].mxu1 %v774_v11  ;;  %v1588_v11 = vadd.f32 %v8196_v63, %v7226_v52  ;;  %v363_v52 = vld [vmem:[%s10452_s0 + $0xae8] sm:$0xff] }
 0x2a4   :  { %v5388_v15 = vadd.f32 %v3402_v38, %v1583_v41  ;;  %v4756_v54 = vpop.f32.mrb[29].mxu0  ;;  %4914 = vmatmul.mubr.msk.f32.gmra.mrb[134].mxu0 %vm938_vm1, %v353_v62  ;;  %2275 = vmatprep.mubr.f32.mxu1 %v780_v2 }
 0x2a5   :  { %4916 = vmatprep.mubr.msk.f32.mxu0 %vm6011_vm0, %v10491_v59  ;;  %v784_v54 = vld [vmem:[%s10452_s0 + $0x1810] sm:$0xff] }
 0x2a6   :  { %4190 = vst [vmem:[%s10454_s3 + $0x70] sm:$0xff] %v5388_v15  ;;  %v8497_v62 = vpop.f32.mrb[200].mxu1  ;;  %v790_v15 = vld [vmem:[%s10452_s0 + $0x1840] sm:$0xff] }
 0x2a7   :  { %v3407_v2 = vpop.f32.mrb[30].mxu0  ;;  %v2014_v41 = vpop.f32.mrb[201].mxu1  ;;  %2276 = vmatmul.mubr.f32.gmra.mrb[200].mxu1 %v779_v22  ;;  %v1593_v22 = vadd.f32 %v8196_v63, %v7240_v58  ;;  %v368_v58 = vld [vmem:[%s10452_s0 + $0xb10] sm:$0xff] }
 0x2a8   :  { %v5390_v38 = vadd.f32 %v3407_v2, %v1588_v11  ;;  %v4759_v46 = vpop.f32.mrb[31].mxu0  ;;  %4917 = vmatmul.mubr.msk.f32.gmra.mrb[136].mxu0 %vm938_vm1, %v358_v45  ;;  %2280 = vmatprep.mubr.f32.mxu1 %v785_v48 }
 0x2a9   :  { %4919 = vmatprep.mubr.msk.f32.mxu0 %vm6011_vm0, %v10491_v59  ;;  %v789_v46 = vld [vmem:[%s10452_s0 + $0x1838] sm:$0xff] }
 0x2aa   :  { %4191 = vst [vmem:[%s10454_s3 + $0x78] sm:$0xff] %v5390_v38  ;;  %v8516_v45 = vpop.f32.mrb[202].mxu1  ;;  %v795_v38 = vld [vmem:[%s10452_s0 + $0x1868] sm:$0xff] }
 0x2ab   :  { %v3412_v48 = vpop.f32.mrb[32].mxu0  ;;  %v2019_v11 = vpop.f32.mrb[203].mxu1  ;;  %2281 = vmatmul.mubr.f32.gmra.mrb[202].mxu1 %v784_v54  ;;  %v1598_v54 = vadd.f32 %v8196_v63, %v7254_v61  ;;  %v373_v61 = vld [vmem:[%s10452_s0 + $0xb38] sm:$0xff] }
 0x2ac   :  { %v5392_v2 = vadd.f32 %v3412_v48, %v1593_v22  ;;  %v4762_v41 = vpop.f32.mrb[33].mxu0  ;;  %4920 = vmatmul.mubr.msk.f32.gmra.mrb[138].mxu0 %vm938_vm1, %v363_v52  ;;  %2285 = vmatprep.mubr.f32.mxu1 %v790_v15 }
 0x2ad   :  { %4922 = vmatprep.mubr.msk.f32.mxu0 %vm6011_vm0, %v10491_v59  ;;  %v794_v41 = vld [vmem:[%s10452_s0 + $0x1860] sm:$0xff] }
 0x2ae   :  { %4192 = vst [vmem:[%s10454_s3 + $0x80] sm:$0xff] %v5392_v2  ;;  %v8535_v52 = vpop.f32.mrb[204].mxu1  ;;  %v800_v2 = vld [vmem:[%s10452_s0 + $0x1890] sm:$0xff] }
 0x2af   :  { %v3417_v15 = vpop.f32.mrb[34].mxu0  ;;  %v2024_v22 = vpop.f32.mrb[205].mxu1  ;;  %2286 = vmatmul.mubr.f32.gmra.mrb[204].mxu1 %v789_v46  ;;  %v1603_v46 = vadd.f32 %v8196_v63, %v7268_v18  ;;  %v378_v18 = vld [vmem:[%s10452_s0 + $0xb60] sm:$0xff] }
 0x2b0   :  { %v5394_v48 = vadd.f32 %v3417_v15, %v1598_v54  ;;  %v4765_v11 = vpop.f32.mrb[35].mxu0  ;;  %4923 = vmatmul.mubr.msk.f32.gmra.mrb[140].mxu0 %vm938_vm1, %v368_v58  ;;  %2290 = vmatprep.mubr.f32.mxu1 %v795_v38 }
 0x2b1   :  { %4925 = vmatprep.mubr.msk.f32.mxu0 %vm6011_vm0, %v10491_v59  ;;  %v799_v11 = vld [vmem:[%s10452_s0 + $0x1888] sm:$0xff] }
 0x2b2   :  { %4193 = vst [vmem:[%s10454_s3 + $0x88] sm:$0xff] %v5394_v48  ;;  %v8554_v58 = vpop.f32.mrb[206].mxu1  ;;  %v805_v48 = vld [vmem:[%s10452_s0 + $0x18b8] sm:$0xff] }
 0x2b3   :  { %v3422_v38 = vpop.f32.mrb[36].mxu0  ;;  %v2029_v54 = vpop.f32.mrb[207].mxu1  ;;  %2291 = vmatmul.mubr.f32.gmra.mrb[206].mxu1 %v794_v41  ;;  %v1608_v41 = vadd.f32 %v8196_v63, %v7282_v30  ;;  %v383_v30 = vld [vmem:[%s10452_s0 + $0xb88] sm:$0xff] }
 0x2b4   :  { %v5396_v15 = vadd.f32 %v3422_v38, %v1603_v46  ;;  %v4768_v22 = vpop.f32.mrb[37].mxu0  ;;  %4926 = vmatmul.mubr.msk.f32.gmra.mrb[142].mxu0 %vm938_vm1, %v373_v61  ;;  %2295 = vmatprep.mubr.f32.mxu1 %v800_v2 }
 0x2b5   :  { %4928 = vmatprep.mubr.msk.f32.mxu0 %vm6011_vm0, %v10491_v59  ;;  %v804_v22 = vld [vmem:[%s10452_s0 + $0x18b0] sm:$0xff] }
 0x2b6   :  { %4194 = vst [vmem:[%s10454_s3 + $0x90] sm:$0xff] %v5396_v15  ;;  %v8573_v61 = vpop.f32.mrb[208].mxu1  ;;  %v810_v15 = vld [vmem:[%s10452_s0 + $0x18e0] sm:$0xff] }
 0x2b7   :  { %v3427_v2 = vpop.f32.mrb[38].mxu0  ;;  %v2034_v46 = vpop.f32.mrb[209].mxu1  ;;  %2296 = vmatmul.mubr.f32.gmra.mrb[208].mxu1 %v799_v11  ;;  %v1613_v11 = vadd.f32 %v8196_v63, %v7296_v44  ;;  %v388_v44 = vld [vmem:[%s10452_s0 + $0xbb0] sm:$0xff] }
 0x2b8   :  { %v5398_v38 = vadd.f32 %v3427_v2, %v1608_v41  ;;  %v4771_v54 = vpop.f32.mrb[39].mxu0  ;;  %4929 = vmatmul.mubr.msk.f32.gmra.mrb[144].mxu0 %vm938_vm1, %v378_v18  ;;  %2300 = vmatprep.mubr.f32.mxu1 %v805_v48 }
 0x2b9   :  { %4931 = vmatprep.mubr.msk.f32.mxu0 %vm6011_vm0, %v10491_v59  ;;  %v809_v54 = vld [vmem:[%s10452_s0 + $0x18d8] sm:$0xff] }
 0x2ba   :  { %4195 = vst [vmem:[%s10454_s3 + $0x98] sm:$0xff] %v5398_v38  ;;  %v8592_v18 = vpop.f32.mrb[210].mxu1  ;;  %v815_v38 = vld [vmem:[%s10452_s0 + $0x1908] sm:$0xff] }
 0x2bb   :  { %v3432_v48 = vpop.f32.mrb[40].mxu0  ;;  %v2039_v41 = vpop.f32.mrb[211].mxu1  ;;  %2301 = vmatmul.mubr.f32.gmra.mrb[210].mxu1 %v804_v22  ;;  %v1618_v22 = vadd.f32 %v8196_v63, %v7310_v32  ;;  %v393_v32 = vld [vmem:[%s10452_s0 + $0xbd8] sm:$0xff] }
 0x2bc   :  { %v5400_v2 = vadd.f32 %v3432_v48, %v1613_v11  ;;  %v4774_v46 = vpop.f32.mrb[41].mxu0  ;;  %4932 = vmatmul.mubr.msk.f32.gmra.mrb[146].mxu0 %vm938_vm1, %v383_v30  ;;  %2305 = vmatprep.mubr.f32.mxu1 %v810_v15 }
 0x2bd   :  { %4934 = vmatprep.mubr.msk.f32.mxu0 %vm6011_vm0, %v10491_v59  ;;  %v814_v46 = vld [vmem:[%s10452_s0 + $0x1900] sm:$0xff] }
 0x2be   :  { %4196 = vst [vmem:[%s10454_s3 + $0xa0] sm:$0xff] %v5400_v2  ;;  %v8611_v30 = vpop.f32.mrb[212].mxu1  ;;  %v820_v2 = vld [vmem:[%s10452_s0 + $0x1930] sm:$0xff] }
 0x2bf   :  { %v3437_v15 = vpop.f32.mrb[42].mxu0  ;;  %v2044_v11 = vpop.f32.mrb[213].mxu1  ;;  %2306 = vmatmul.mubr.f32.gmra.mrb[212].mxu1 %v809_v54  ;;  %v1623_v54 = vadd.f32 %v8196_v63, %v7324_v42  ;;  %v398_v42 = vld [vmem:[%s10452_s0 + $0xc00] sm:$0xff] }
 0x2c0   :  { %v5402_v48 = vadd.f32 %v3437_v15, %v1618_v22  ;;  %v4777_v41 = vpop.f32.mrb[43].mxu0  ;;  %4935 = vmatmul.mubr.msk.f32.gmra.mrb[148].mxu0 %vm938_vm1, %v388_v44  ;;  %2310 = vmatprep.mubr.f32.mxu1 %v815_v38 }
 0x2c1   :  { %4937 = vmatprep.mubr.msk.f32.mxu0 %vm6011_vm0, %v10491_v59  ;;  %v819_v41 = vld [vmem:[%s10452_s0 + $0x1928] sm:$0xff] }
 0x2c2   :  { %4197 = vst [vmem:[%s10454_s3 + $0xa8] sm:$0xff] %v5402_v48  ;;  %v8630_v44 = vpop.f32.mrb[214].mxu1  ;;  %v825_v48 = vld [vmem:[%s10452_s0 + $0x1958] sm:$0xff] }
 0x2c3   :  { %v3442_v38 = vpop.f32.mrb[44].mxu0  ;;  %v2049_v22 = vpop.f32.mrb[215].mxu1  ;;  %2311 = vmatmul.mubr.f32.gmra.mrb[214].mxu1 %v814_v46  ;;  %v1628_v46 = vadd.f32 %v8196_v63, %v7338_v51  ;;  %v403_v51 = vld [vmem:[%s10452_s0 + $0xc28] sm:$0xff] }
 0x2c4   :  { %v5404_v15 = vadd.f32 %v3442_v38, %v1623_v54  ;;  %v4780_v11 = vpop.f32.mrb[45].mxu0  ;;  %4938 = vmatmul.mubr.msk.f32.gmra.mrb[150].mxu0 %vm938_vm1, %v393_v32  ;;  %2315 = vmatprep.mubr.f32.mxu1 %v820_v2 }
 0x2c5   :  { %4940 = vmatprep.mubr.msk.f32.mxu0 %vm6011_vm0, %v10491_v59  ;;  %v824_v11 = vld [vmem:[%s10452_s0 + $0x1950] sm:$0xff] }
 0x2c6   :  { %4198 = vst [vmem:[%s10454_s3 + $0xb0] sm:$0xff] %v5404_v15  ;;  %v8649_v32 = vpop.f32.mrb[216].mxu1  ;;  %v830_v15 = vld [vmem:[%s10452_s0 + $0x1980] sm:$0xff] }
 0x2c7   :  { %v3447_v2 = vpop.f32.mrb[46].mxu0  ;;  %v2054_v54 = vpop.f32.mrb[217].mxu1  ;;  %2316 = vmatmul.mubr.f32.gmra.mrb[216].mxu1 %v819_v41  ;;  %v1633_v41 = vadd.f32 %v8196_v63, %v7352_v8  ;;  %v408_v8 = vld [vmem:[%s10452_s0 + $0xc50] sm:$0xff] }
 0x2c8   :  { %v5406_v38 = vadd.f32 %v3447_v2, %v1628_v46  ;;  %v4783_v22 = vpop.f32.mrb[47].mxu0  ;;  %4941 = vmatmul.mubr.msk.f32.gmra.mrb[152].mxu0 %vm938_vm1, %v398_v42  ;;  %2320 = vmatprep.mubr.f32.mxu1 %v825_v48 }
 0x2c9   :  { %4943 = vmatprep.mubr.msk.f32.mxu0 %vm6011_vm0, %v10491_v59  ;;  %v829_v22 = vld [vmem:[%s10452_s0 + $0x1978] sm:$0xff] }
 0x2ca   :  { %4199 = vst [vmem:[%s10454_s3 + $0xb8] sm:$0xff] %v5406_v38  ;;  %v8668_v42 = vpop.f32.mrb[218].mxu1  ;;  %v835_v38 = vld [vmem:[%s10452_s0 + $0x19a8] sm:$0xff] }
 0x2cb   :  { %v3452_v48 = vpop.f32.mrb[48].mxu0  ;;  %v2059_v46 = vpop.f32.mrb[219].mxu1  ;;  %2321 = vmatmul.mubr.f32.gmra.mrb[218].mxu1 %v824_v11  ;;  %v1638_v11 = vadd.f32 %v8196_v63, %v7366_v1  ;;  %v413_v1 = vld [vmem:[%s10452_s0 + $0xc78] sm:$0xff] }
 0x2cc   :  { %v5408_v2 = vadd.f32 %v3452_v48, %v1633_v41  ;;  %v4786_v54 = vpop.f32.mrb[49].mxu0  ;;  %4944 = vmatmul.mubr.msk.f32.gmra.mrb[154].mxu0 %vm938_vm1, %v403_v51  ;;  %2325 = vmatprep.mubr.f32.mxu1 %v830_v15 }
 0x2cd   :  { %4946 = vmatprep.mubr.msk.f32.mxu0 %vm6011_vm0, %v10491_v59  ;;  %v834_v54 = vld [vmem:[%s10452_s0 + $0x19a0] sm:$0xff] }
 0x2ce   :  { %4200 = vst [vmem:[%s10454_s3 + $0xc0] sm:$0xff] %v5408_v2  ;;  %v8687_v51 = vpop.f32.mrb[220].mxu1  ;;  %v840_v2 = vld [vmem:[%s10452_s0 + $0x19d0] sm:$0xff] }
 0x2cf   :  { %v3457_v15 = vpop.f32.mrb[50].mxu0  ;;  %v2064_v41 = vpop.f32.mrb[221].mxu1  ;;  %2326 = vmatmul.mubr.f32.gmra.mrb[220].mxu1 %v829_v22  ;;  %v1643_v22 = vadd.f32 %v8196_v63, %v7380_v24  ;;  %v418_v24 = vld [vmem:[%s10452_s0 + $0xca0] sm:$0xff] }
 0x2d0   :  { %v5410_v48 = vadd.f32 %v3457_v15, %v1638_v11  ;;  %v4789_v46 = vpop.f32.mrb[51].mxu0  ;;  %4947 = vmatmul.mubr.msk.f32.gmra.mrb[156].mxu0 %vm938_vm1, %v408_v8  ;;  %2330 = vmatprep.mubr.f32.mxu1 %v835_v38 }
 0x2d1   :  { %4949 = vmatprep.mubr.msk.f32.mxu0 %vm6011_vm0, %v10491_v59  ;;  %v839_v46 = vld [vmem:[%s10452_s0 + $0x19c8] sm:$0xff] }
 0x2d2   :  { %4201 = vst [vmem:[%s10454_s3 + $0xc8] sm:$0xff] %v5410_v48  ;;  %v8706_v8 = vpop.f32.mrb[222].mxu1  ;;  %v845_v48 = vld [vmem:[%s10452_s0 + $0x19f8] sm:$0xff] }
 0x2d3   :  { %v3462_v38 = vpop.f32.mrb[52].mxu0  ;;  %v2069_v11 = vpop.f32.mrb[223].mxu1  ;;  %2331 = vmatmul.mubr.f32.gmra.mrb[222].mxu1 %v834_v54  ;;  %v1648_v54 = vadd.f32 %v8196_v63, %v7394_v19  ;;  %v423_v19 = vld [vmem:[%s10452_s0 + $0xcc8] sm:$0xff] }
 0x2d4   :  { %v5412_v15 = vadd.f32 %v3462_v38, %v1643_v22  ;;  %v4792_v41 = vpop.f32.mrb[53].mxu0  ;;  %4950 = vmatmul.mubr.msk.f32.gmra.mrb[158].mxu0 %vm938_vm1, %v413_v1  ;;  %2335 = vmatprep.mubr.f32.mxu1 %v840_v2 }
 0x2d5   :  { %4952 = vmatprep.mubr.msk.f32.mxu0 %vm6011_vm0, %v10491_v59  ;;  %v844_v41 = vld [vmem:[%s10452_s0 + $0x19f0] sm:$0xff] }
 0x2d6   :  { %4202 = vst [vmem:[%s10454_s3 + $0xd0] sm:$0xff] %v5412_v15  ;;  %v8725_v1 = vpop.f32.mrb[224].mxu1  ;;  %v850_v15 = vld [vmem:[%s10452_s0 + $0x1a20] sm:$0xff] }
 0x2d7   :  { %v3467_v2 = vpop.f32.mrb[54].mxu0  ;;  %v2074_v22 = vpop.f32.mrb[225].mxu1  ;;  %2336 = vmatmul.mubr.f32.gmra.mrb[224].mxu1 %v839_v46  ;;  %v1653_v46 = vadd.f32 %v8196_v63, %v7408_v56  ;;  %v428_v56 = vld [vmem:[%s10452_s0 + $0xcf0] sm:$0xff] }
 0x2d8   :  { %v5414_v38 = vadd.f32 %v3467_v2, %v1648_v54  ;;  %v4795_v11 = vpop.f32.mrb[55].mxu0  ;;  %4953 = vmatmul.mubr.msk.f32.gmra.mrb[160].mxu0 %vm938_vm1, %v418_v24  ;;  %2340 = vmatprep.mubr.f32.mxu1 %v845_v48 }
 0x2d9   :  { %4955 = vmatprep.mubr.msk.f32.mxu0 %vm6011_vm0, %v10491_v59  ;;  %v849_v11 = vld [vmem:[%s10452_s0 + $0x1a18] sm:$0xff] }
 0x2da   :  { %4203 = vst [vmem:[%s10454_s3 + $0xd8] sm:$0xff] %v5414_v38  ;;  %v8744_v24 = vpop.f32.mrb[226].mxu1  ;;  %v855_v38 = vld [vmem:[%s10452_s0 + $0x1a48] sm:$0xff] }
 0x2db   :  { %v3472_v48 = vpop.f32.mrb[56].mxu0  ;;  %v2079_v54 = vpop.f32.mrb[227].mxu1  ;;  %2341 = vmatmul.mubr.f32.gmra.mrb[226].mxu1 %v844_v41  ;;  %v1658_v41 = vadd.f32 %v8196_v63, %v7422_v43  ;;  %v433_v43 = vld [vmem:[%s10452_s0 + $0xd18] sm:$0xff] }
 0x2dc   :  { %v5416_v2 = vadd.f32 %v3472_v48, %v1653_v46  ;;  %v4798_v22 = vpop.f32.mrb[57].mxu0  ;;  %4956 = vmatmul.mubr.msk.f32.gmra.mrb[162].mxu0 %vm938_vm1, %v423_v19  ;;  %2345 = vmatprep.mubr.f32.mxu1 %v850_v15 }
 0x2dd   :  { %4958 = vmatprep.mubr.msk.f32.mxu0 %vm6011_vm0, %v10491_v59  ;;  %v854_v22 = vld [vmem:[%s10452_s0 + $0x1a40] sm:$0xff] }
 0x2de   :  { %4204 = vst [vmem:[%s10454_s3 + $0xe0] sm:$0xff] %v5416_v2  ;;  %v8763_v19 = vpop.f32.mrb[228].mxu1  ;;  %v442_v2 = vld [vmem:[%s10452_s0 + $0xd60] sm:$0xff] }
 0x2df   :  { %v3477_v15 = vpop.f32.mrb[58].mxu0  ;;  %v2084_v46 = vpop.f32.mrb[229].mxu1  ;;  %2346 = vmatmul.mubr.f32.gmra.mrb[228].mxu1 %v849_v11  ;;  %v1663_v11 = vadd.f32 %v8196_v63, %v7436_v53  ;;  %v438_v53 = vld [vmem:[%s10452_s0 + $0xd40] sm:$0xff] }
 0x2e0   :  { %v5418_v48 = vadd.f32 %v3477_v15, %v1658_v41  ;;  %v4801_v54 = vpop.f32.mrb[59].mxu0  ;;  %4959 = vmatmul.mubr.msk.f32.gmra.mrb[164].mxu0 %vm938_vm1, %v428_v56  ;;  %2350 = vmatprep.mubr.f32.mxu1 %v855_v38 }
 0x2e1   :  { %4961 = vmatprep.mubr.msk.f32.mxu0 %vm6011_vm0, %v10491_v59  ;;  %v441_v54 = vld [vmem:[%s10452_s0 + $0xd58] sm:$0xff] }
 0x2e2   :  { %4205 = vst [vmem:[%s10454_s3 + $0xe8] sm:$0xff] %v5418_v48  ;;  %v8782_v56 = vpop.f32.mrb[230].mxu1  ;;  %v447_v48 = vld [vmem:[%s10452_s0 + $0xd88] sm:$0xff] }
 0x2e3   :  { %v3482_v38 = vpop.f32.mrb[60].mxu0  ;;  %v2089_v41 = vpop.f32.mrb[231].mxu1  ;;  %2351 = vmatmul.mubr.f32.gmra.mrb[230].mxu1 %v854_v22  ;;  %v1668_v22 = vadd.f32 %v8196_v63, %v7450_v60  ;;  %v443_v60 = vld [vmem:[%s10452_s0 + $0xd68] sm:$0xff] }
 0x2e4   :  { %v5420_v15 = vadd.f32 %v3482_v38, %v1663_v11  ;;  %v4804_v46 = vpop.f32.mrb[61].mxu0  ;;  %4962 = vmatmul.mubr.msk.f32.gmra.mrb[166].mxu0 %vm938_vm1, %v433_v43  ;;  %2845 = vmatprep.mubr.f32.mxu1 %v442_v2  ;;  %v446_v38 = vld [vmem:[%s10452_s0 + $0xd80] sm:$0xff]  ;;  %v452_v41 = vld [vmem:[%s10452_s0 + $0xdb0] sm:$0xff] }
 0x2e5   :  { %4964 = vmatprep.mubr.msk.f32.mxu0 %vm6011_vm0, %v10491_v59 }
 0x2e6   :  { %4206 = vst [vmem:[%s10454_s3 + $0xf0] sm:$0xff] %v5420_v15  ;;  %v1673_v15 = vadd.f32 %v8196_v63, %v7463_v7  ;;  %v448_v7 = vld [vmem:[%s10452_s0 + $0xd90] sm:$0xff] }
 0x2e7   :  { %v3487_v43 = vpop.f32.mrb[62].mxu0  ;;  %2846 = vmatmul.mubr.f32.vlgmr.msra.gmra.mrb[0].mxu1 %v441_v54 }
 0x2e8   :  { %v5422_v2 = vadd.f32 %v3487_v43, %v1668_v22  ;;  %v4807_v11 = vpop.f32.mrb[63].mxu0  ;;  %4965 = vmatmul.mubr.msk.f32.gmra.mrb[168].mxu0 %vm938_vm1, %v438_v53  ;;  %2850 = vmatprep.mubr.f32.mxu1 %v447_v48  ;;  %v451_v48 = vld [vmem:[%s10452_s0 + $0xda8] sm:$0xff]  ;;  %v457_v22 = vld [vmem:[%s10452_s0 + $0xdd8] sm:$0xff]  ;;  %v1678_v43 = vadd.f32 %v8196_v63, %v7477_v16 }
 0x2e9   :  { %4967 = vmatprep.mubr.msk.f32.mxu0 %vm6011_vm0, %v10491_v59  ;;  %v453_v16 = vld [vmem:[%s10452_s0 + $0xdb8] sm:$0xff] }
 0x2ea   :  { %4207 = vst [vmem:[%s10454_s3 + $0xf8] sm:$0xff] %v5422_v2 }
 0x2eb   :  { %v3492_v46 = vpop.f32.mrb[64].mxu0  ;;  %2851 = vmatmul.mubr.f32.gmra.mrb[2].mxu1 %v446_v38 }
 0x2ec   :  { %v5424_v54 = vadd.f32 %v3492_v46, %v1673_v15  ;;  %v4810_v53 = vpop.f32.mrb[65].mxu0  ;;  %4968 = vmatmul.mubr.msk.f32.gmra.mrb[170].mxu0 %vm938_vm1, %v443_v60  ;;  %2855 = vmatprep.mubr.f32.mxu1 %v452_v41  ;;  %v456_v60 = vld [vmem:[%s10452_s0 + $0xdd0] sm:$0xff]  ;;  %v462_v41 = vld [vmem:[%s10452_s0 + $0xe00] sm:$0xff]  ;;  %v1683_v15 = vadd.f32 %v8196_v63, %v7491_v50 }
 0x2ed   :  { %4970 = vmatprep.mubr.msk.f32.mxu0 %vm6011_vm0, %v10491_v59  ;;  %v458_v50 = vld [vmem:[%s10452_s0 + $0xde0] sm:$0xff] }
 0x2ee   :  { %4208 = vst [vmem:[%s10454_s3 + $0x100] sm:$0xff] %v5424_v54 }
 0x2ef   :  { %v3497_v2 = vpop.f32.mrb[66].mxu0  ;;  %2856 = vmatmul.mubr.f32.gmra.mrb[4].mxu1 %v451_v48  ;;  %v461_v48 = vld [vmem:[%s10452_s0 + $0xdf8] sm:$0xff] }
 0x2f0   :  { %v5426_v11 = vadd.f32 %v3497_v2, %v1678_v43  ;;  %v4813_v38 = vpop.f32.mrb[67].mxu0  ;;  %4971 = vmatmul.mubr.msk.f32.gmra.mrb[172].mxu0 %vm938_vm1, %v448_v7  ;;  %2860 = vmatprep.mubr.f32.mxu1 %v457_v22  ;;  %v467_v7 = vld [vmem:[%s10452_s0 + $0xe28] sm:$0xff]  ;;  %v1688_v22 = vadd.f32 %v8196_v63, %v7505_v39 }
 0x2f1   :  { %4973 = vmatprep.mubr.msk.f32.mxu0 %vm6011_vm0, %v10491_v59  ;;  %v466_v38 = vld [vmem:[%s10452_s0 + $0xe20] sm:$0xff]  ;;  %v463_v39 = vld [vmem:[%s10452_s0 + $0xe08] sm:$0xff] }
 0x2f2   :  { %4209 = vst [vmem:[%s10454_s3 + $0x108] sm:$0xff] %v5426_v11 }
 0x2f3   :  { %v3502_v46 = vpop.f32.mrb[68].mxu0  ;;  %2861 = vmatmul.mubr.f32.gmra.mrb[6].mxu1 %v456_v60  ;;  %v472_v60 = vld [vmem:[%s10452_s0 + $0xe50] sm:$0xff] }
 0x2f4   :  { %v5428_v54 = vadd.f32 %v3502_v46, %v1683_v15  ;;  %v4816_v53 = vpop.f32.mrb[69].mxu0  ;;  %4974 = vmatmul.mubr.msk.f32.gmra.mrb[174].mxu0 %vm938_vm1, %v453_v16  ;;  %2865 = vmatprep.mubr.f32.mxu1 %v462_v41  ;;  %v1693_v16 = vadd.f32 %v8196_v63, %v7519_v13  ;;  %v468_v13 = vld [vmem:[%s10452_s0 + $0xe30] sm:$0xff]  ;;  %v477_v63 = vld [vmem:[%s10452_s0 + $0xe78] sm:$0xff] }
 0x2f5   :  { %4976 = vmatprep.mubr.msk.f32.mxu0 %vm6011_vm0, %v10491_v59  ;;  %v8901_v53 = vld [vmem:[%s10453_s2] ss:$0 sm:$0xff] }
 0x2f6   :  { %4210 = vst [vmem:[%s10454_s3 + $0x110] sm:$0xff] %v5428_v54  ;;  %v471_v54 = vld [vmem:[%s10452_s0 + $0xe48] sm:$0xff] }
 0x2f7   :  { %v3507_v43 = vpop.f32.mrb[70].mxu0  ;;  %2866 = vmatmul.mubr.f32.gmra.mrb[8].mxu1 %v461_v48  ;;  %v1698_v48 = vadd.f32 %v8901_v53, %v7533_v34  ;;  %v473_v34 = vld [vmem:[%s10452_s0 + $0xe58] sm:$0xff] }
 0x2f8   :  { %v5430_v2 = vadd.f32 %v3507_v43, %v1688_v22  ;;  %v4819_v11 = vpop.f32.mrb[71].mxu0  ;;  %4977 = vmatmul.mubr.msk.f32.gmra.mrb[176].mxu0 %vm938_vm1, %v458_v50  ;;  %2870 = vmatprep.mubr.f32.mxu1 %v467_v7  ;;  %v476_v43 = vld [vmem:[%s10452_s0 + $0xe70] sm:$0xff] }
 0x2f9   :  { %4979 = vmatprep.mubr.msk.f32.mxu0 %vm6011_vm0, %v10491_v59  ;;  %v1703_v11 = vadd.f32 %v8901_v53, %v7547_v4  ;;  %v478_v4 = vld [vmem:[%s10452_s0 + $0xe80] sm:$0xff] }
 0x2fa   :  { %4211 = vst [vmem:[%s10454_s3 + $0x118] sm:$0xff] %v5430_v2  ;;  %v482_v2 = vld [vmem:[%s10452_s0 + $0xea0] sm:$0xff] }
 0x2fb   :  { %v3512_v41 = vpop.f32.mrb[72].mxu0  ;;  %2871 = vmatmul.mubr.f32.gmra.mrb[10].mxu1 %v466_v38 }
 0x2fc   :  { %v5432_v15 = vadd.f32 %v3512_v41, %v1693_v16  ;;  %v4822_v46 = vpop.f32.mrb[73].mxu0  ;;  %4980 = vmatmul.mubr.msk.f32.gmra.mrb[178].mxu0 %vm938_vm1, %v463_v39  ;;  %2875 = vmatprep.mubr.f32.mxu1 %v472_v60  ;;  %v481_v16 = vld [vmem:[%s10452_s0 + $0xe98] sm:$0xff]  ;;  %v487_v41 = vld [vmem:[%s10452_s0 + $0xec8] sm:$0xff] }
 0x2fd   :  { %4982 = vmatprep.mubr.msk.f32.mxu0 %vm6011_vm0, %v10491_v59 }
 0x2fe   :  { %4212 = vst [vmem:[%s10454_s3 + $0x120] sm:$0xff] %v5432_v15  ;;  %v1708_v15 = vadd.f32 %v8901_v53, %v7561_v36  ;;  %v483_v36 = vld [vmem:[%s10452_s0 + $0xea8] sm:$0xff] }
 0x2ff   :  { %v3517_v50 = vpop.f32.mrb[74].mxu0  ;;  %2876 = vmatmul.mubr.f32.gmra.mrb[12].mxu1 %v471_v54 }
 0x300   :  { %v5434_v7 = vadd.f32 %v3517_v50, %v1698_v48  ;;  %v4825_v22 = vpop.f32.mrb[75].mxu0  ;;  %4983 = vmatmul.mubr.msk.f32.gmra.mrb[180].mxu0 %vm938_vm1, %v468_v13  ;;  %2880 = vmatprep.mubr.f32.mxu1 %v477_v63  ;;  %v486_v63 = vld [vmem:[%s10452_s0 + $0xec0] sm:$0xff]  ;;  %v492_v48 = vld [vmem:[%s10452_s0 + $0xef0] sm:$0xff]  ;;  %v1713_v50 = vadd.f32 %v8901_v53, %v7575_v33 }
 0x301   :  { %4985 = vmatprep.mubr.msk.f32.mxu0 %vm6011_vm0, %v10491_v59  ;;  %v488_v33 = vld [vmem:[%s10452_s0 + $0xed0] sm:$0xff] }
 0x302   :  { %4213 = vst [vmem:[%s10454_s3 + $0x128] sm:$0xff] %v5434_v7 }
 0x303   :  { %v3522_v38 = vpop.f32.mrb[76].mxu0  ;;  %2881 = vmatmul.mubr.f32.gmra.mrb[14].mxu1 %v476_v43 }
 0x304   :  { %v5436_v39 = vadd.f32 %v3522_v38, %v1703_v11  ;;  %v4828_v60 = vpop.f32.mrb[77].mxu0  ;;  %4986 = vmatmul.mubr.msk.f32.gmra.mrb[182].mxu0 %vm938_vm1, %v473_v34  ;;  %2885 = vmatprep.mubr.f32.mxu1 %v482_v2  ;;  %v491_v34 = vld [vmem:[%s10452_s0 + $0xee8] sm:$0xff]  ;;  %v497_v2 = vld [vmem:[%s10452_s0 + $0xf18] sm:$0xff]  ;;  %v1718_v11 = vadd.f32 %v8901_v53, %v7589_v47 }
 0x305   :  { %4988 = vmatprep.mubr.msk.f32.mxu0 %vm6011_vm0, %v10491_v59  ;;  %v493_v47 = vld [vmem:[%s10452_s0 + $0xef8] sm:$0xff] }
 0x306   :  { %4214 = vst [vmem:[%s10454_s3 + $0x130] sm:$0xff] %v5436_v39 }
 0x307   :  { %v3527_v46 = vpop.f32.mrb[78].mxu0  ;;  %2886 = vmatmul.mubr.f32.gmra.mrb[16].mxu1 %v481_v16  ;;  %v496_v16 = vld [vmem:[%s10452_s0 + $0xf10] sm:$0xff] }
 0x308   :  { %v5438_v54 = vadd.f32 %v3527_v46, %v1708_v15  ;;  %v4831_v13 = vpop.f32.mrb[79].mxu0  ;;  %4989 = vmatmul.mubr.msk.f32.gmra.mrb[184].mxu0 %vm938_vm1, %v478_v4  ;;  %2890 = vmatprep.mubr.f32.mxu1 %v487_v41  ;;  %v502_v4 = vld [vmem:[%s10452_s0 + $0xf40] sm:$0xff]  ;;  %v1723_v41 = vadd.f32 %v8901_v53, %v7603_v57 }
 0x309   :  { %4991 = vmatprep.mubr.msk.f32.mxu0 %vm6011_vm0, %v10491_v59  ;;  %v501_v13 = vld [vmem:[%s10452_s0 + $0xf38] sm:$0xff]  ;;  %v498_v57 = vld [vmem:[%s10452_s0 + $0xf20] sm:$0xff] }
 0x30a   :  { %4215 = vst [vmem:[%s10454_s3 + $0x138] sm:$0xff] %v5438_v54 }
 0x30b   :  { %v3532_v7 = vpop.f32.mrb[80].mxu0  ;;  %2891 = vmatmul.mubr.f32.gmra.mrb[18].mxu1 %v486_v63  ;;  %v507_v63 = vld [vmem:[%s10452_s0 + $0xf68] sm:$0xff] }
 0x30c   :  { %v5440_v22 = vadd.f32 %v3532_v7, %v1713_v50  ;;  %v4834_v43 = vpop.f32.mrb[81].mxu0  ;;  %4992 = vmatmul.mubr.msk.f32.gmra.mrb[186].mxu0 %vm938_vm1, %v483_v36  ;;  %2895 = vmatprep.mubr.f32.mxu1 %v492_v48  ;;  %v1728_v36 = vadd.f32 %v8901_v53, %v7617_v9  ;;  %v503_v9 = vld [vmem:[%s10452_s0 + $0xf48] sm:$0xff] }
 0x30d   :  { %4994 = vmatprep.mubr.msk.f32.mxu0 %vm6011_vm0, %v10491_v59  ;;  %v512_v43 = vld [vmem:[%s10452_s0 + $0xf90] sm:$0xff] }
 0x30e   :  { %4216 = vst [vmem:[%s10454_s3 + $0x140] sm:$0xff] %v5440_v22  ;;  %v506_v22 = vld [vmem:[%s10452_s0 + $0xf60] sm:$0xff] }
 0x30f   :  { %v3537_v38 = vpop.f32.mrb[82].mxu0  ;;  %2896 = vmatmul.mubr.f32.gmra.mrb[20].mxu1 %v491_v34  ;;  %v1733_v34 = vadd.f32 %v8901_v53, %v7631_v25  ;;  %v508_v25 = vld [vmem:[%s10452_s0 + $0xf70] sm:$0xff] }
 0x310   :  { %v5442_v39 = vadd.f32 %v3537_v38, %v1718_v11  ;;  %v4837_v60 = vpop.f32.mrb[83].mxu0  ;;  %4995 = vmatmul.mubr.msk.f32.gmra.mrb[188].mxu0 %vm938_vm1, %v488_v33  ;;  %2900 = vmatprep.mubr.f32.mxu1 %v497_v2  ;;  %v511_v38 = vld [vmem:[%s10452_s0 + $0xf88] sm:$0xff] }
 0x311   :  { %4997 = vmatprep.mubr.msk.f32.mxu0 %vm6011_vm0, %v10491_v59  ;;  %v1738_v60 = vadd.f32 %v8901_v53, %v7645_v40  ;;  %v513_v40 = vld [vmem:[%s10452_s0 + $0xf98] sm:$0xff] }
 0x312   :  { %4217 = vst [vmem:[%s10454_s3 + $0x148] sm:$0xff] %v5442_v39  ;;  %v517_v39 = vld [vmem:[%s10452_s0 + $0xfb8] sm:$0xff] }
 0x313   :  { %v3542_v15 = vpop.f32.mrb[84].mxu0  ;;  %2901 = vmatmul.mubr.f32.gmra.mrb[22].mxu1 %v496_v16 }
 0x314   :  { %v5444_v46 = vadd.f32 %v3542_v15, %v1723_v41  ;;  %v4840_v54 = vpop.f32.mrb[85].mxu0  ;;  %4998 = vmatmul.mubr.msk.f32.gmra.mrb[190].mxu0 %vm938_vm1, %v493_v47  ;;  %2905 = vmatprep.mubr.f32.mxu1 %v502_v4  ;;  %v516_v41 = vld [vmem:[%s10452_s0 + $0xfb0] sm:$0xff]  ;;  %v522_v15 = vld [vmem:[%s10452_s0 + $0xfe0] sm:$0xff] }
 0x315   :  { %5000 = vmatprep.mubr.msk.f32.mxu0 %vm6011_vm0, %v10491_v59 }
 0x316   :  { %4218 = vst [vmem:[%s10454_s3 + $0x150] sm:$0xff] %v5444_v46  ;;  %v1743_v46 = vadd.f32 %v8901_v53, %v7659_v27  ;;  %v518_v27 = vld [vmem:[%s10452_s0 + $0xfc0] sm:$0xff] }
 0x317   :  { %v3547_v48 = vpop.f32.mrb[86].mxu0  ;;  %2906 = vmatmul.mubr.f32.gmra.mrb[24].mxu1 %v501_v13 }
 0x318   :  { %v5446_v50 = vadd.f32 %v3547_v48, %v1728_v36  ;;  %v4843_v7 = vpop.f32.mrb[87].mxu0  ;;  %5001 = vmatmul.mubr.msk.f32.gmra.mrb[192].mxu0 %vm938_vm1, %v498_v57  ;;  %2910 = vmatprep.mubr.f32.mxu1 %v507_v63  ;;  %v521_v63 = vld [vmem:[%s10452_s0 + $0xfd8] sm:$0xff]  ;;  %v527_v36 = vld [vmem:[%s10452_s0 + $0x1008] sm:$0xff]  ;;  %v1748_v48 = vadd.f32 %v8901_v53, %v7673_v10 }
 0x319   :  { %5003 = vmatprep.mubr.msk.f32.mxu0 %vm6011_vm0, %v10491_v59  ;;  %v523_v10 = vld [vmem:[%s10452_s0 + $0xfe8] sm:$0xff] }
 0x31a   :  { %4219 = vst [vmem:[%s10454_s3 + $0x158] sm:$0xff] %v5446_v50 }
 0x31b   :  { %v3552_v33 = vpop.f32.mrb[88].mxu0  ;;  %2911 = vmatmul.mubr.f32.gmra.mrb[26].mxu1 %v506_v22 }
 0x31c   :  { %v5448_v2 = vadd.f32 %v3552_v33, %v1733_v34  ;;  %v4846_v11 = vpop.f32.mrb[89].mxu0  ;;  %5004 = vmatmul.mubr.msk.f32.gmra.mrb[194].mxu0 %vm938_vm1, %v503_v9  ;;  %2915 = vmatprep.mubr.f32.mxu1 %v512_v43  ;;  %v526_v9 = vld [vmem:[%s10452_s0 + $0x1000] sm:$0xff]  ;;  %v532_v43 = vld [vmem:[%s10452_s0 + $0x1030] sm:$0xff]  ;;  %v1753_v34 = vadd.f32 %v8901_v53, %v7687_v29 }
 0x31d   :  { %5006 = vmatprep.mubr.msk.f32.mxu0 %vm6011_vm0, %v10491_v59  ;;  %v528_v29 = vld [vmem:[%s10452_s0 + $0x1010] sm:$0xff] }
 0x31e   :  { %4220 = vst [vmem:[%s10454_s3 + $0x160] sm:$0xff] %v5448_v2 }
 0x31f   :  { %v3557_v16 = vpop.f32.mrb[90].mxu0  ;;  %2916 = vmatmul.mubr.f32.gmra.mrb[28].mxu1 %v511_v38  ;;  %v531_v38 = vld [vmem:[%s10452_s0 + $0x1028] sm:$0xff] }
 0x320   :  { %v5450_v47 = vadd.f32 %v3557_v16, %v1738_v60  ;;  %v4849_v4 = vpop.f32.mrb[91].mxu0  ;;  %5007 = vmatmul.mubr.msk.f32.gmra.mrb[196].mxu0 %vm938_vm1, %v508_v25  ;;  %2920 = vmatprep.mubr.f32.mxu1 %v517_v39  ;;  %v537_v25 = vld [vmem:[%s10452_s0 + $0x1058] sm:$0xff]  ;;  %v1758_v39 = vadd.f32 %v8901_v53, %v7701_v20 }
 0x321   :  { %5009 = vmatprep.mubr.msk.f32.mxu0 %vm6011_vm0, %v10491_v59  ;;  %v536_v4 = vld [vmem:[%s10452_s0 + $0x1050] sm:$0xff]  ;;  %v533_v20 = vld [vmem:[%s10452_s0 + $0x1038] sm:$0xff] }
 0x322   :  { %4221 = vst [vmem:[%s10454_s3 + $0x168] sm:$0xff] %v5450_v47 }
 0x323   :  { %v3562_v54 = vpop.f32.mrb[92].mxu0  ;;  %2921 = vmatmul.mubr.f32.gmra.mrb[30].mxu1 %v516_v41  ;;  %v542_v41 = vld [vmem:[%s10452_s0 + $0x1080] sm:$0xff] }
 0x324   :  { %v5452_v13 = vadd.f32 %v3562_v54, %v1743_v46  ;;  %v4852_v57 = vpop.f32.mrb[93].mxu0  ;;  %5010 = vmatmul.mubr.msk.f32.gmra.mrb[198].mxu0 %vm938_vm1, %v513_v40  ;;  %2925 = vmatprep.mubr.f32.mxu1 %v522_v15  ;;  %v1763_v40 = vadd.f32 %v8901_v53, %v7715_v3  ;;  %v538_v3 = vld [vmem:[%s10452_s0 + $0x1060] sm:$0xff] }
 0x325   :  { %5012 = vmatprep.mubr.msk.f32.mxu0 %vm6011_vm0, %v10491_v59  ;;  %v547_v57 = vld [vmem:[%s10452_s0 + $0x10a8] sm:$0xff] }
 0x326   :  { %4222 = vst [vmem:[%s10454_s3 + $0x170] sm:$0xff] %v5452_v13  ;;  %v541_v13 = vld [vmem:[%s10452_s0 + $0x1078] sm:$0xff] }
 0x327   :  { %v3567_v50 = vpop.f32.mrb[94].mxu0  ;;  %2926 = vmatmul.mubr.f32.gmra.mrb[32].mxu1 %v521_v63  ;;  %v1768_v63 = vadd.f32 %v8901_v53, %v7729_v35  ;;  %v543_v35 = vld [vmem:[%s10452_s0 + $0x1088] sm:$0xff] }
 0x328   :  { %v5454_v7 = vadd.f32 %v3567_v50, %v1748_v48  ;;  %v4855_v22 = vpop.f32.mrb[95].mxu0  ;;  %5013 = vmatmul.mubr.msk.f32.gmra.mrb[200].mxu0 %vm938_vm1, %v518_v27  ;;  %2930 = vmatprep.mubr.f32.mxu1 %v527_v36  ;;  %v546_v50 = vld [vmem:[%s10452_s0 + $0x10a0] sm:$0xff] }
 0x329   :  { %5015 = vmatprep.mubr.msk.f32.mxu0 %vm6011_vm0, %v10491_v59  ;;  %v10492_v22 = vld [vmem:[#allocation2_spill] sm:$0xff] }
 0x32a   :  { %4223 = vst [vmem:[%s10454_s3 + $0x178] sm:$0xff] %v5454_v7  ;;  %v552_v7 = vld [vmem:[%s10452_s0 + $0x10d0] sm:$0xff] }
 0x32b   :  { %v3572_v33 = vpop.f32.mrb[96].mxu0  ;;  %2931 = vmatmul.mubr.f32.gmra.mrb[34].mxu1 %v526_v9  ;;  %v1773_v9 = vadd.f32 %v8901_v53, %v10492_v22  ;;  %v10496_v22 = vld [vmem:[#allocation6_spill] sm:$0xff] }
 0x32c   :  { %v5456_v2 = vadd.f32 %v3572_v33, %v1753_v34  ;;  %v4858_v11 = vpop.f32.mrb[97].mxu0  ;;  %5016 = vmatmul.mubr.msk.f32.gmra.mrb[202].mxu0 %vm938_vm1, %v523_v10  ;;  %2935 = vmatprep.mubr.f32.mxu1 %v532_v43  ;;  %v551_v33 = vld [vmem:[%s10452_s0 + $0x10c8] sm:$0xff] }
 0x32d   :  { %5018 = vmatprep.mubr.msk.f32.mxu0 %vm6011_vm0, %v10491_v59  ;;  %v557_v11 = vld [vmem:[%s10452_s0 + $0x10f8] sm:$0xff] }
 0x32e   :  { %4224 = vst [vmem:[%s10454_s3 + $0x180] sm:$0xff] %v5456_v2  ;;  %v548_v2 = vld [vmem:[%s10452_s0 + $0x10b0] sm:$0xff] }
 0x32f   :  { %v3577_v60 = vpop.f32.mrb[98].mxu0  ;;  %2936 = vmatmul.mubr.f32.gmra.mrb[36].mxu1 %v531_v38  ;;  %v10493_v38 = vld [vmem:[#allocation3_spill] sm:$0xff] }
 0x330   :  { %v5458_v16 = vadd.f32 %v3577_v60, %v1758_v39  ;;  %v4861_v47 = vpop.f32.mrb[99].mxu0  ;;  %5019 = vmatmul.mubr.msk.f32.gmra.mrb[204].mxu0 %vm938_vm1, %v528_v29  ;;  %2940 = vmatprep.mubr.f32.mxu1 %v537_v25  ;;  %v1778_v29 = vadd.f32 %v8901_v53, %v10493_v38  ;;  %v10497_v38 = vld [vmem:[#allocation7_spill] sm:$0xff] }
 0x331   :  { %5021 = vmatprep.mubr.msk.f32.mxu0 %vm6011_vm0, %v10491_v59  ;;  %v553_v47 = vld [vmem:[%s10452_s0 + $0x10d8] sm:$0xff] }
 0x332   :  { %4225 = vst [vmem:[%s10454_s3 + $0x188] sm:$0xff] %v5458_v16  ;;  %v556_v16 = vld [vmem:[%s10452_s0 + $0x10f0] sm:$0xff] }
 0x333   :  { %v3582_v15 = vpop.f32.mrb[100].mxu0  ;;  %2941 = vmatmul.mubr.f32.gmra.mrb[38].mxu1 %v536_v4  ;;  %v562_v4 = vld [vmem:[%s10452_s0 + $0x1120] sm:$0xff] }
 0x334   :  { %v5460_v46 = vadd.f32 %v3582_v15, %v1763_v40  ;;  %v4864_v54 = vpop.f32.mrb[101].mxu0  ;;  %5022 = vmatmul.mubr.msk.f32.gmra.mrb[206].mxu0 %vm938_vm1, %v533_v20  ;;  %2945 = vmatprep.mubr.f32.mxu1 %v542_v41  ;;  %v10494_v20 = vld [vmem:[#allocation4_spill] sm:$0xff] }
 0x335   :  { %5024 = vmatprep.mubr.msk.f32.mxu0 %vm6011_vm0, %v10491_v59  ;;  %v1783_v41 = vadd.f32 %v8901_v53, %v10494_v20  ;;  %v561_v54 = vld [vmem:[%s10452_s0 + $0x1118] sm:$0xff]  ;;  %v10498_v20 = vld [vmem:[#allocation8_spill] sm:$0xff] }
 0x336   :  { %4226 = vst [vmem:[%s10454_s3 + $0x190] sm:$0xff] %v5460_v46 }
 0x337   :  { %v3587_v27 = vpop.f32.mrb[102].mxu0  ;;  %2946 = vmatmul.mubr.f32.gmra.mrb[40].mxu1 %v541_v13  ;;  %v558_v13 = vld [vmem:[%s10452_s0 + $0x1100] sm:$0xff] }
 0x338   :  { %v5462_v36 = vadd.f32 %v3587_v27, %v1768_v63  ;;  %v4867_v48 = vpop.f32.mrb[103].mxu0  ;;  %5025 = vmatmul.mubr.msk.f32.gmra.mrb[208].mxu0 %vm938_vm1, %v538_v3  ;;  %2950 = vmatprep.mubr.f32.mxu1 %v547_v57  ;;  %v567_v3 = vld [vmem:[%s10452_s0 + $0x1148] sm:$0xff]  ;;  %v10495_v57 = vld [vmem:[#allocation5_spill] sm:$0xff] }
 0x339   :  { %5027 = vmatprep.mubr.msk.f32.mxu0 %vm6011_vm0, %v10491_v59  ;;  %v1788_v63 = vadd.f32 %v8901_v53, %v10495_v57  ;;  %v10499_v57 = vld [vmem:[#allocation9_spill] sm:$0xff] }
 0x33a   :  { %4227 = vst [vmem:[%s10454_s3 + $0x198] sm:$0xff] %v5462_v36 }
 0x33b   :  { %v3592_v10 = vpop.f32.mrb[104].mxu0  ;;  %2951 = vmatmul.mubr.f32.gmra.mrb[42].mxu1 %v546_v50  ;;  %v566_v50 = vld [vmem:[%s10452_s0 + $0x1140] sm:$0xff] }
 0x33c   :  { %v5464_v43 = vadd.f32 %v3592_v10, %v1773_v9  ;;  %v4870_v34 = vpop.f32.mrb[105].mxu0  ;;  %5028 = vmatmul.mubr.msk.f32.gmra.mrb[210].mxu0 %vm938_vm1, %v543_v35  ;;  %2955 = vmatprep.mubr.f32.mxu1 %v552_v7  ;;  %v563_v35 = vld [vmem:[%s10452_s0 + $0x1128] sm:$0xff]  ;;  %v572_v7 = vld [vmem:[%s10452_s0 + $0x1170] sm:$0xff]  ;;  %v1793_v9 = vadd.f32 %v8901_v53, %v10496_v22  ;;  %v10500_v22 = vld [vmem:[#allocation10_spill] sm:$0xff] }
 0x33d   :  { %5030 = vmatprep.mubr.msk.f32.mxu0 %vm6011_vm0, %v10491_v59 }
 0x33e   :  { %4228 = vst [vmem:[%s10454_s3 + $0x1a0] sm:$0xff] %v5464_v43 }
 0x33f   :  { %v3597_v25 = vpop.f32.mrb[106].mxu0  ;;  %2956 = vmatmul.mubr.f32.gmra.mrb[44].mxu1 %v551_v33  ;;  %v571_v33 = vld [vmem:[%s10452_s0 + $0x1168] sm:$0xff] }
 0x340   :  { %v5466_v39 = vadd.f32 %v3597_v25, %v1778_v29  ;;  %v4873_v60 = vpop.f32.mrb[107].mxu0  ;;  %5031 = vmatmul.mubr.msk.f32.gmra.mrb[212].mxu0 %vm938_vm1, %v548_v2  ;;  %2960 = vmatprep.mubr.f32.mxu1 %v557_v11  ;;  %v568_v2 = vld [vmem:[%s10452_s0 + $0x1150] sm:$0xff]  ;;  %v577_v11 = vld [vmem:[%s10452_s0 + $0x1198] sm:$0xff]  ;;  %v1798_v29 = vadd.f32 %v8901_v53, %v10497_v38  ;;  %v10501_v38 = vld [vmem:[#allocation11_spill] sm:$0xff] }
 0x341   :  { %5033 = vmatprep.mubr.msk.f32.mxu0 %vm6011_vm0, %v10491_v59 }
 0x342   :  { %4229 = vst [vmem:[%s10454_s3 + $0x1a8] sm:$0xff] %v5466_v39 }
 0x343   :  { %v3602_v40 = vpop.f32.mrb[108].mxu0  ;;  %2961 = vmatmul.mubr.f32.gmra.mrb[46].mxu1 %v556_v16  ;;  %v576_v16 = vld [vmem:[%s10452_s0 + $0x1190] sm:$0xff] }
 0x344   :  { %v5468_v15 = vadd.f32 %v3602_v40, %v1783_v41  ;;  %v4876_v46 = vpop.f32.mrb[109].mxu0  ;;  %5034 = vmatmul.mubr.msk.f32.gmra.mrb[214].mxu0 %vm938_vm1, %v553_v47  ;;  %2965 = vmatprep.mubr.f32.mxu1 %v562_v4  ;;  %v573_v47 = vld [vmem:[%s10452_s0 + $0x1178] sm:$0xff]  ;;  %v582_v4 = vld [vmem:[%s10452_s0 + $0x11c0] sm:$0xff]  ;;  %v1803_v41 = vadd.f32 %v8901_v53, %v10498_v20  ;;  %v10502_v20 = vld [vmem:[#allocation12_spill] sm:$0xff] }
 0x345   :  { %5036 = vmatprep.mubr.msk.f32.mxu0 %vm6011_vm0, %v10491_v59 }
 0x346   :  { %4230 = vst [vmem:[%s10454_s3 + $0x1b0] sm:$0xff] %v5468_v15 }
 0x347   :  { %v3607_v27 = vpop.f32.mrb[110].mxu0  ;;  %2966 = vmatmul.mubr.f32.gmra.mrb[48].mxu1 %v561_v54  ;;  %v581_v54 = vld [vmem:[%s10452_s0 + $0x11b8] sm:$0xff] }
 0x348   :  { %v5470_v36 = vadd.f32 %v3607_v27, %v1788_v63  ;;  %v4879_v48 = vpop.f32.mrb[111].mxu0  ;;  %5037 = vmatmul.mubr.msk.f32.gmra.mrb[216].mxu0 %vm938_vm1, %v558_v13  ;;  %2970 = vmatprep.mubr.f32.mxu1 %v567_v3  ;;  %v578_v13 = vld [vmem:[%s10452_s0 + $0x11a0] sm:$0xff]  ;;  %v587_v3 = vld [vmem:[%s10452_s0 + $0x11e8] sm:$0xff]  ;;  %v1808_v63 = vadd.f32 %v8901_v53, %v10499_v57  ;;  %v10503_v57 = vld [vmem:[#allocation13_spill] sm:$0xff] }
 0x349   :  { %5039 = vmatprep.mubr.msk.f32.mxu0 %vm6011_vm0, %v10491_v59 }
 0x34a   :  { %4231 = vst [vmem:[%s10454_s3 + $0x1b8] sm:$0xff] %v5470_v36 }
 0x34b   :  { %v3612_v10 = vpop.f32.mrb[112].mxu0  ;;  %2971 = vmatmul.mubr.f32.gmra.mrb[50].mxu1 %v566_v50  ;;  %v586_v50 = vld [vmem:[%s10452_s0 + $0x11e0] sm:$0xff] }
 0x34c   :  { %v5472_v43 = vadd.f32 %v3612_v10, %v1793_v9  ;;  %v4882_v34 = vpop.f32.mrb[113].mxu0  ;;  %5040 = vmatmul.mubr.msk.f32.gmra.mrb[218].mxu0 %vm938_vm1, %v563_v35  ;;  %2975 = vmatprep.mubr.f32.mxu1 %v572_v7  ;;  %v583_v35 = vld [vmem:[%s10452_s0 + $0x11c8] sm:$0xff]  ;;  %v592_v7 = vld [vmem:[%s10452_s0 + $0x1210] sm:$0xff]  ;;  %v1813_v9 = vadd.f32 %v8901_v53, %v10500_v22  ;;  %v10504_v22 = vld [vmem:[#allocation14_spill] sm:$0xff] }
 0x34d   :  { %5042 = vmatprep.mubr.msk.f32.mxu0 %vm6011_vm0, %v10491_v59 }
 0x34e   :  { %4232 = vst [vmem:[%s10454_s3 + $0x1c0] sm:$0xff] %v5472_v43 }
 0x34f   :  { %v3617_v25 = vpop.f32.mrb[114].mxu0  ;;  %2976 = vmatmul.mubr.f32.gmra.mrb[52].mxu1 %v571_v33  ;;  %v591_v33 = vld [vmem:[%s10452_s0 + $0x1208] sm:$0xff] }
 0x350   :  { %v5474_v39 = vadd.f32 %v3617_v25, %v1798_v29  ;;  %v4885_v60 = vpop.f32.mrb[115].mxu0  ;;  %5043 = vmatmul.mubr.msk.f32.gmra.mrb[220].mxu0 %vm938_vm1, %v568_v2  ;;  %2980 = vmatprep.mubr.f32.mxu1 %v577_v11  ;;  %v588_v2 = vld [vmem:[%s10452_s0 + $0x11f0] sm:$0xff]  ;;  %v597_v11 = vld [vmem:[%s10452_s0 + $0x1238] sm:$0xff]  ;;  %v1818_v29 = vadd.f32 %v8901_v53, %v10501_v38  ;;  %v10505_v38 = vld [vmem:[#allocation15_spill] sm:$0xff] }
 0x351   :  { %5045 = vmatprep.mubr.msk.f32.mxu0 %vm6011_vm0, %v10491_v59 }
 0x352   :  { %4233 = vst [vmem:[%s10454_s3 + $0x1c8] sm:$0xff] %v5474_v39 }
 0x353   :  { %v3622_v40 = vpop.f32.mrb[116].mxu0  ;;  %2981 = vmatmul.mubr.f32.gmra.mrb[54].mxu1 %v576_v16  ;;  %v596_v16 = vld [vmem:[%s10452_s0 + $0x1230] sm:$0xff] }
 0x354   :  { %v5476_v15 = vadd.f32 %v3622_v40, %v1803_v41  ;;  %v4888_v46 = vpop.f32.mrb[117].mxu0  ;;  %5046 = vmatmul.mubr.msk.f32.gmra.mrb[222].mxu0 %vm938_vm1, %v573_v47  ;;  %2985 = vmatprep.mubr.f32.mxu1 %v582_v4  ;;  %v593_v47 = vld [vmem:[%s10452_s0 + $0x1218] sm:$0xff]  ;;  %v602_v4 = vld [vmem:[%s10452_s0 + $0x1260] sm:$0xff]  ;;  %v1823_v41 = vadd.f32 %v8901_v53, %v10502_v20  ;;  %v10506_v20 = vld [vmem:[#allocation16_spill] sm:$0xff] }
 0x355   :  { %5048 = vmatprep.mubr.msk.f32.mxu0 %vm6011_vm0, %v10491_v59 }
 0x356   :  { %4234 = vst [vmem:[%s10454_s3 + $0x1d0] sm:$0xff] %v5476_v15 }
 0x357   :  { %v3627_v27 = vpop.f32.mrb[118].mxu0  ;;  %2986 = vmatmul.mubr.f32.gmra.mrb[56].mxu1 %v581_v54  ;;  %v601_v54 = vld [vmem:[%s10452_s0 + $0x1258] sm:$0xff] }
 0x358   :  { %v5478_v36 = vadd.f32 %v3627_v27, %v1808_v63  ;;  %v4891_v48 = vpop.f32.mrb[119].mxu0  ;;  %5049 = vmatmul.mubr.msk.f32.gmra.mrb[224].mxu0 %vm938_vm1, %v578_v13  ;;  %2990 = vmatprep.mubr.f32.mxu1 %v587_v3  ;;  %v598_v13 = vld [vmem:[%s10452_s0 + $0x1240] sm:$0xff]  ;;  %v607_v3 = vld [vmem:[%s10452_s0 + $0x1288] sm:$0xff]  ;;  %v1828_v63 = vadd.f32 %v8901_v53, %v10503_v57  ;;  %v10507_v57 = vld [vmem:[#allocation17_spill] sm:$0xff] }
 0x359   :  { %5051 = vmatprep.mubr.msk.f32.mxu0 %vm6011_vm0, %v10491_v59 }
 0x35a   :  { %4235 = vst [vmem:[%s10454_s3 + $0x1d8] sm:$0xff] %v5478_v36 }
 0x35b   :  { %v3632_v10 = vpop.f32.mrb[120].mxu0  ;;  %2991 = vmatmul.mubr.f32.gmra.mrb[58].mxu1 %v586_v50  ;;  %v606_v50 = vld [vmem:[%s10452_s0 + $0x1280] sm:$0xff] }
 0x35c   :  { %v5480_v43 = vadd.f32 %v3632_v10, %v1813_v9  ;;  %v4894_v34 = vpop.f32.mrb[121].mxu0  ;;  %5052 = vmatmul.mubr.msk.f32.gmra.mrb[226].mxu0 %vm938_vm1, %v583_v35  ;;  %2995 = vmatprep.mubr.f32.mxu1 %v592_v7  ;;  %v603_v35 = vld [vmem:[%s10452_s0 + $0x1268] sm:$0xff]  ;;  %v612_v7 = vld [vmem:[%s10452_s0 + $0x12b0] sm:$0xff]  ;;  %v1833_v9 = vadd.f32 %v8901_v53, %v10504_v22  ;;  %v10508_v22 = vld [vmem:[#allocation18_spill] sm:$0xff] }
 0x35d   :  { %5054 = vmatprep.mubr.msk.f32.mxu0 %vm6011_vm0, %v10491_v59 }
 0x35e   :  { %4236 = vst [vmem:[%s10454_s3 + $0x1e0] sm:$0xff] %v5480_v43 }
 0x35f   :  { %v3637_v25 = vpop.f32.mrb[122].mxu0  ;;  %2996 = vmatmul.mubr.f32.gmra.mrb[60].mxu1 %v591_v33  ;;  %v611_v33 = vld [vmem:[%s10452_s0 + $0x12a8] sm:$0xff] }
 0x360   :  { %v5482_v39 = vadd.f32 %v3637_v25, %v1818_v29  ;;  %v4897_v60 = vpop.f32.mrb[123].mxu0  ;;  %5055 = vmatmul.mubr.msk.f32.gmra.mrb[228].mxu0 %vm938_vm1, %v588_v2  ;;  %3000 = vmatprep.mubr.f32.mxu1 %v597_v11  ;;  %v608_v2 = vld [vmem:[%s10452_s0 + $0x1290] sm:$0xff]  ;;  %v617_v11 = vld [vmem:[%s10452_s0 + $0x12d8] sm:$0xff]  ;;  %v1838_v29 = vadd.f32 %v8901_v53, %v10505_v38  ;;  %v10509_v38 = vld [vmem:[#allocation19_spill] sm:$0xff] }
 0x361   :  { %5057 = vmatprep.mubr.msk.f32.mxu0 %vm6011_vm0, %v10491_v59 }
 0x362   :  { %4237 = vst [vmem:[%s10454_s3 + $0x1e8] sm:$0xff] %v5482_v39 }
 0x363   :  { %v3642_v40 = vpop.f32.mrb[124].mxu0  ;;  %3001 = vmatmul.mubr.f32.gmra.mrb[232].mxu1 %v596_v16  ;;  %v616_v16 = vld [vmem:[%s10452_s0 + $0x12d0] sm:$0xff] }
 0x364   :  { %v5484_v15 = vadd.f32 %v3642_v40, %v1823_v41  ;;  %v4900_v46 = vpop.f32.mrb[125].mxu0  ;;  %5058 = vmatmul.mubr.msk.f32.gmra.mrb[230].mxu0 %vm938_vm1, %v593_v47  ;;  %3005 = vmatprep.mubr.f32.mxu1 %v602_v4  ;;  %v613_v47 = vld [vmem:[%s10452_s0 + $0x12b8] sm:$0xff]  ;;  %v622_v4 = vld [vmem:[%s10452_s0 + $0x1300] sm:$0xff]  ;;  %v1843_v41 = vadd.f32 %v8901_v53, %v10506_v20  ;;  %v10510_v20 = vld [vmem:[#allocation20_spill] sm:$0xff] }
 0x365   :  { %5060 = vmatprep.mubr.msk.f32.mxu0 %vm6011_vm0, %v10491_v59 }
 0x366   :  { %4238 = vst [vmem:[%s10454_s3 + $0x1f0] sm:$0xff] %v5484_v15 }
 0x367   :  { %v3647_v27 = vpop.f32.mrb[126].mxu0  ;;  %3006 = vmatmul.mubr.f32.gmra.mrb[234].mxu1 %v601_v54  ;;  %v621_v54 = vld [vmem:[%s10452_s0 + $0x12f8] sm:$0xff] }
 0x368   :  { %v5486_v36 = vadd.f32 %v3647_v27, %v1828_v63  ;;  %v4903_v48 = vpop.f32.mrb[127].mxu0  ;;  %5061 = vmatmul.mubr.msk.f32.gmra.mrb[232].mxu0 %vm938_vm1, %v598_v13  ;;  %3010 = vmatprep.mubr.f32.mxu1 %v607_v3  ;;  %v618_v13 = vld [vmem:[%s10452_s0 + $0x12e0] sm:$0xff]  ;;  %v627_v3 = vld [vmem:[%s10452_s0 + $0x1328] sm:$0xff]  ;;  %v1848_v63 = vadd.f32 %v8901_v53, %v10507_v57  ;;  %v10511_v57 = vld [vmem:[#allocation21_spill] sm:$0xff] }
 0x369   :  { %5063 = vmatprep.mubr.msk.f32.mxu0 %vm6011_vm0, %v10491_v59 }
 0x36a   :  { %4239 = vst [vmem:[%s10454_s3 + $0x1f8] sm:$0xff] %v5486_v36 }
 0x36b   :  { %v3652_v10 = vpop.f32.mrb[128].mxu0  ;;  %3011 = vmatmul.mubr.f32.gmra.mrb[236].mxu1 %v606_v50  ;;  %v626_v50 = vld [vmem:[%s10452_s0 + $0x1320] sm:$0xff] }
 0x36c   :  { %v5488_v43 = vadd.f32 %v3652_v10, %v1833_v9  ;;  %v4906_v34 = vpop.f32.mrb[129].mxu0  ;;  %5064 = vmatmul.mubr.msk.f32.gmra.mrb[234].mxu0 %vm938_vm1, %v603_v35  ;;  %3015 = vmatprep.mubr.f32.mxu1 %v612_v7  ;;  %v623_v35 = vld [vmem:[%s10452_s0 + $0x1308] sm:$0xff]  ;;  %v632_v7 = vld [vmem:[%s10452_s0 + $0x1350] sm:$0xff]  ;;  %v1853_v9 = vadd.f32 %v8901_v53, %v10508_v22  ;;  %v10512_v22 = vld [vmem:[#allocation22_spill] sm:$0xff] }
 0x36d   :  { %5066 = vmatprep.mubr.msk.f32.mxu0 %vm6011_vm0, %v10491_v59 }
 0x36e   :  { %4240 = vst [vmem:[%s10454_s3 + $0x200] sm:$0xff] %v5488_v43 }
 0x36f   :  { %v3657_v25 = vpop.f32.mrb[130].mxu0  ;;  %3016 = vmatmul.mubr.f32.gmra.mrb[238].mxu1 %v611_v33  ;;  %v631_v33 = vld [vmem:[%s10452_s0 + $0x1348] sm:$0xff] }
 0x370   :  { %v5490_v39 = vadd.f32 %v3657_v25, %v1838_v29  ;;  %v4909_v60 = vpop.f32.mrb[131].mxu0  ;;  %5067 = vmatmul.mubr.msk.f32.gmra.mrb[236].mxu0 %vm938_vm1, %v608_v2  ;;  %3020 = vmatprep.mubr.f32.mxu1 %v617_v11  ;;  %v628_v2 = vld [vmem:[%s10452_s0 + $0x1330] sm:$0xff]  ;;  %v637_v11 = vld [vmem:[%s10452_s0 + $0x1378] sm:$0xff]  ;;  %v1858_v29 = vadd.f32 %v8901_v53, %v10509_v38  ;;  %v10513_v38 = vld [vmem:[#allocation23_spill] sm:$0xff] }
 0x371   :  { %5069 = vmatprep.mubr.msk.f32.mxu0 %vm6011_vm0, %v10491_v59 }
 0x372   :  { %4241 = vst [vmem:[%s10454_s3 + $0x208] sm:$0xff] %v5490_v39 }
 0x373   :  { %v3662_v40 = vpop.f32.mrb[132].mxu0  ;;  %3021 = vmatmul.mubr.f32.gmra.mrb[240].mxu1 %v616_v16  ;;  %v636_v16 = vld [vmem:[%s10452_s0 + $0x1370] sm:$0xff] }
 0x374   :  { %v5492_v15 = vadd.f32 %v3662_v40, %v1843_v41  ;;  %v4912_v46 = vpop.f32.mrb[133].mxu0  ;;  %5070 = vmatmul.mubr.msk.f32.gmra.mrb[238].mxu0 %vm938_vm1, %v613_v47  ;;  %3025 = vmatprep.mubr.f32.mxu1 %v622_v4  ;;  %v633_v47 = vld [vmem:[%s10452_s0 + $0x1358] sm:$0xff]  ;;  %v642_v4 = vld [vmem:[%s10452_s0 + $0x13a0] sm:$0xff]  ;;  %v1863_v41 = vadd.f32 %v8901_v53, %v10510_v20  ;;  %v10514_v20 = vld [vmem:[#allocation24_spill] sm:$0xff] }
 0x375   :  { %5072 = vmatprep.mubr.msk.f32.mxu0 %vm6011_vm0, %v10491_v59 }
 0x376   :  { %4242 = vst [vmem:[%s10454_s3 + $0x210] sm:$0xff] %v5492_v15 }
 0x377   :  { %v3667_v27 = vpop.f32.mrb[134].mxu0  ;;  %3026 = vmatmul.mubr.f32.gmra.mrb[242].mxu1 %v621_v54  ;;  %v641_v54 = vld [vmem:[%s10452_s0 + $0x1398] sm:$0xff] }
 0x378   :  { %v5494_v36 = vadd.f32 %v3667_v27, %v1848_v63  ;;  %v4915_v48 = vpop.f32.mrb[135].mxu0  ;;  %5073 = vmatmul.mubr.msk.f32.gmra.mrb[240].mxu0 %vm938_vm1, %v618_v13  ;;  %3030 = vmatprep.mubr.f32.mxu1 %v627_v3  ;;  %v638_v13 = vld [vmem:[%s10452_s0 + $0x1380] sm:$0xff]  ;;  %v647_v3 = vld [vmem:[%s10452_s0 + $0x13c8] sm:$0xff]  ;;  %v1868_v63 = vadd.f32 %v8901_v53, %v10511_v57  ;;  %v10515_v57 = vld [vmem:[#allocation25_spill] sm:$0xff] }
 0x379   :  { %5075 = vmatprep.mubr.msk.f32.mxu0 %vm6011_vm0, %v10491_v59 }
 0x37a   :  { %4243 = vst [vmem:[%s10454_s3 + $0x218] sm:$0xff] %v5494_v36 }
 0x37b   :  { %v3672_v10 = vpop.f32.mrb[136].mxu0  ;;  %3031 = vmatmul.mubr.f32.gmra.mrb[244].mxu1 %v626_v50  ;;  %v646_v50 = vld [vmem:[%s10452_s0 + $0x13c0] sm:$0xff] }
 0x37c   :  { %v5496_v43 = vadd.f32 %v3672_v10, %v1853_v9  ;;  %v4918_v34 = vpop.f32.mrb[137].mxu0  ;;  %5076 = vmatmul.mubr.msk.f32.gmra.mrb[242].mxu0 %vm938_vm1, %v623_v35  ;;  %3035 = vmatprep.mubr.f32.mxu1 %v632_v7  ;;  %v643_v35 = vld [vmem:[%s10452_s0 + $0x13a8] sm:$0xff]  ;;  %v652_v7 = vld [vmem:[%s10452_s0 + $0x13f0] sm:$0xff]  ;;  %v1873_v9 = vadd.f32 %v8901_v53, %v10512_v22  ;;  %v10516_v22 = vld [vmem:[#allocation26_spill] sm:$0xff] }
 0x37d   :  { %5078 = vmatprep.mubr.msk.f32.mxu0 %vm6011_vm0, %v10491_v59 }
 0x37e   :  { %4244 = vst [vmem:[%s10454_s3 + $0x220] sm:$0xff] %v5496_v43 }
 0x37f   :  { %v3677_v25 = vpop.f32.mrb[138].mxu0  ;;  %3036 = vmatmul.mubr.f32.gmra.mrb[246].mxu1 %v631_v33  ;;  %v651_v33 = vld [vmem:[%s10452_s0 + $0x13e8] sm:$0xff] }
 0x380   :  { %v5498_v39 = vadd.f32 %v3677_v25, %v1858_v29  ;;  %v4921_v60 = vpop.f32.mrb[139].mxu0  ;;  %5079 = vmatmul.mubr.msk.f32.gmra.mrb[244].mxu0 %vm938_vm1, %v628_v2  ;;  %3040 = vmatprep.mubr.f32.mxu1 %v637_v11  ;;  %v648_v2 = vld [vmem:[%s10452_s0 + $0x13d0] sm:$0xff]  ;;  %v657_v11 = vld [vmem:[%s10452_s0 + $0x1418] sm:$0xff]  ;;  %v1878_v29 = vadd.f32 %v8901_v53, %v10513_v38  ;;  %v10517_v38 = vld [vmem:[#allocation27_spill] sm:$0xff] }
 0x381   :  { %5081 = vmatprep.mubr.msk.f32.mxu0 %vm6011_vm0, %v10491_v59 }
 0x382   :  { %4245 = vst [vmem:[%s10454_s3 + $0x228] sm:$0xff] %v5498_v39 }
 0x383   :  { %v3682_v40 = vpop.f32.mrb[140].mxu0  ;;  %3041 = vmatmul.mubr.f32.gmra.mrb[248].mxu1 %v636_v16  ;;  %v656_v16 = vld [vmem:[%s10452_s0 + $0x1410] sm:$0xff] }
 0x384   :  { %v5500_v15 = vadd.f32 %v3682_v40, %v1863_v41  ;;  %v4924_v46 = vpop.f32.mrb[141].mxu0  ;;  %5082 = vmatmul.mubr.msk.f32.gmra.mrb[246].mxu0 %vm938_vm1, %v633_v47  ;;  %3045 = vmatprep.mubr.f32.mxu1 %v642_v4  ;;  %v653_v47 = vld [vmem:[%s10452_s0 + $0x13f8] sm:$0xff]  ;;  %v662_v4 = vld [vmem:[%s10452_s0 + $0x1440] sm:$0xff]  ;;  %v1883_v41 = vadd.f32 %v8901_v53, %v10514_v20  ;;  %v10518_v20 = vld [vmem:[#allocation28_spill] sm:$0xff] }
 0x385   :  { %5084 = vmatprep.mubr.msk.f32.mxu0 %vm6011_vm0, %v10491_v59 }
 0x386   :  { %4246 = vst [vmem:[%s10454_s3 + $0x230] sm:$0xff] %v5500_v15 }
 0x387   :  { %v3687_v27 = vpop.f32.mrb[142].mxu0  ;;  %3046 = vmatmul.mubr.f32.gmra.mrb[250].mxu1 %v641_v54  ;;  %v661_v54 = vld [vmem:[%s10452_s0 + $0x1438] sm:$0xff] }
 0x388   :  { %v5502_v36 = vadd.f32 %v3687_v27, %v1868_v63  ;;  %v4927_v48 = vpop.f32.mrb[143].mxu0  ;;  %5085 = vmatmul.mubr.msk.f32.gmra.mrb[248].mxu0 %vm938_vm1, %v638_v13  ;;  %3050 = vmatprep.mubr.f32.mxu1 %v647_v3  ;;  %v658_v13 = vld [vmem:[%s10452_s0 + $0x1420] sm:$0xff]  ;;  %v667_v3 = vld [vmem:[%s10452_s0 + $0x1468] sm:$0xff]  ;;  %v1888_v63 = vadd.f32 %v8901_v53, %v10515_v57  ;;  %v10519_v57 = vld [vmem:[#allocation29_spill] sm:$0xff] }
 0x389   :  { %5087 = vmatprep.mubr.msk.f32.mxu0 %vm6011_vm0, %v10491_v59 }
 0x38a   :  { %4247 = vst [vmem:[%s10454_s3 + $0x238] sm:$0xff] %v5502_v36 }
 0x38b   :  { %v3692_v10 = vpop.f32.mrb[144].mxu0  ;;  %3051 = vmatmul.mubr.f32.gmra.mrb[252].mxu1 %v646_v50  ;;  %v666_v50 = vld [vmem:[%s10452_s0 + $0x1460] sm:$0xff] }
 0x38c   :  { %v5504_v43 = vadd.f32 %v3692_v10, %v1873_v9  ;;  %v4930_v34 = vpop.f32.mrb[145].mxu0  ;;  %5088 = vmatmul.mubr.msk.f32.gmra.mrb[250].mxu0 %vm938_vm1, %v643_v35  ;;  %3055 = vmatprep.mubr.f32.mxu1 %v652_v7  ;;  %v663_v35 = vld [vmem:[%s10452_s0 + $0x1448] sm:$0xff]  ;;  %v672_v7 = vld [vmem:[%s10452_s0 + $0x1490] sm:$0xff]  ;;  %v1893_v9 = vadd.f32 %v8901_v53, %v10516_v22  ;;  %v10520_v22 = vld [vmem:[#allocation30_spill] sm:$0xff] }
 0x38d   :  { %5090 = vmatprep.mubr.msk.f32.mxu0 %vm6011_vm0, %v10491_v59 }
 0x38e   :  { %4248 = vst [vmem:[%s10454_s3 + $0x240] sm:$0xff] %v5504_v43 }
 0x38f   :  { %v3697_v25 = vpop.f32.mrb[146].mxu0  ;;  %3056 = vmatmul.mubr.f32.gmra.mrb[254].mxu1 %v651_v33  ;;  %v671_v33 = vld [vmem:[%s10452_s0 + $0x1488] sm:$0xff] }
 0x390   :  { %v5506_v39 = vadd.f32 %v3697_v25, %v1878_v29  ;;  %v4933_v60 = vpop.f32.mrb[147].mxu0  ;;  %5091 = vmatmul.mubr.msk.f32.gmra.mrb[252].mxu0 %vm938_vm1, %v648_v2  ;;  %3060 = vmatprep.mubr.f32.mxu1 %v657_v11  ;;  %v668_v2 = vld [vmem:[%s10452_s0 + $0x1470] sm:$0xff]  ;;  %v677_v11 = vld [vmem:[%s10452_s0 + $0x14b8] sm:$0xff]  ;;  %v1898_v29 = vadd.f32 %v8901_v53, %v10517_v38  ;;  %v10521_v38 = vld [vmem:[#allocation31_spill] sm:$0xff] }
 0x391   :  { %5093 = vmatprep.mubr.msk.f32.mxu0 %vm6011_vm0, %v10491_v59 }
 0x392   :  { %4249 = vst [vmem:[%s10454_s3 + $0x248] sm:$0xff] %v5506_v39 }
 0x393   :  { %v3702_v40 = vpop.f32.mrb[148].mxu0  ;;  %3061 = vmatmul.mubr.f32.gmra.mrb[150].mxu1 %v656_v16  ;;  %v676_v16 = vld [vmem:[%s10452_s0 + $0x14b0] sm:$0xff] }
 0x394   :  { %v5508_v15 = vadd.f32 %v3702_v40, %v1883_v41  ;;  %v4936_v46 = vpop.f32.mrb[149].mxu0  ;;  %5094 = vmatmul.mubr.msk.f32.gmra.mrb[254].mxu0 %vm938_vm1, %v653_v47  ;;  %3065 = vmatprep.mubr.f32.mxu1 %v662_v4  ;;  %v673_v47 = vld [vmem:[%s10452_s0 + $0x1498] sm:$0xff]  ;;  %v682_v4 = vld [vmem:[%s10452_s0 + $0x14e0] sm:$0xff]  ;;  %v1903_v41 = vadd.f32 %v8901_v53, %v10518_v20  ;;  %v10522_v20 = vld [vmem:[#allocation32_spill] sm:$0xff] }
 0x395   :  { %5096 = vmatprep.mubr.msk.f32.mxu0 %vm6011_vm0, %v10491_v59 }
 0x396   :  { %4250 = vst [vmem:[%s10454_s3 + $0x250] sm:$0xff] %v5508_v15 }
 0x397   :  { %v3707_v27 = vpop.f32.mrb[150].mxu0  ;;  %3066 = vmatmul.mubr.f32.gmra.mrb[152].mxu1 %v661_v54  ;;  %v681_v54 = vld [vmem:[%s10452_s0 + $0x14d8] sm:$0xff] }
 0x398   :  { %v5510_v36 = vadd.f32 %v3707_v27, %v1888_v63  ;;  %v4939_v48 = vpop.f32.mrb[151].mxu0  ;;  %5097 = vmatmul.mubr.msk.f32.gmra.mrb[0].mxu0 %vm938_vm1, %v658_v13  ;;  %3070 = vmatprep.mubr.f32.mxu1 %v667_v3  ;;  %v678_v13 = vld [vmem:[%s10452_s0 + $0x14c0] sm:$0xff]  ;;  %v687_v3 = vld [vmem:[%s10452_s0 + $0x1508] sm:$0xff]  ;;  %v1908_v63 = vadd.f32 %v8901_v53, %v10519_v57  ;;  %v692_v53 = vld [vmem:[%s10452_s0 + $0x1530] sm:$0xff] }
 0x399   :  { %5099 = vmatprep.mubr.msk.f32.mxu0 %vm6011_vm0, %v10491_v59  ;;  %v10523_v57 = vld [vmem:[#allocation33_spill] sm:$0xff] }
 0x39a   :  { %4251 = vst [vmem:[%s10454_s3 + $0x258] sm:$0xff] %v5510_v36 }
 0x39b   :  { %v3712_v10 = vpop.f32.mrb[152].mxu0  ;;  %3071 = vmatmul.mubr.f32.gmra.mrb[154].mxu1 %v666_v50  ;;  %v686_v50 = vld [vmem:[%s10452_s0 + $0x1500] sm:$0xff] }
 0x39c   :  { %v5512_v43 = vadd.f32 %v3712_v10, %v1893_v9  ;;  %v4942_v34 = vpop.f32.mrb[153].mxu0  ;;  %5100 = vmatmul.mubr.msk.f32.gmra.mrb[2].mxu0 %vm938_vm1, %v663_v35  ;;  %3075 = vmatprep.mubr.f32.mxu1 %v672_v7  ;;  %v683_v35 = vld [vmem:[%s10452_s0 + $0x14e8] sm:$0xff]  ;;  %v9640_v7 = vld [vmem:[%s10453_s2] ss:$0 sm:$0xff] }
 0x39d   :  { %5102 = vmatprep.mubr.msk.f32.mxu0 %vm6011_vm0, %v10491_v59  ;;  %v1913_v9 = vadd.f32 %v9640_v7, %v10520_v22  ;;  %v703_v22 = vld [vmem:[%s10452_s0 + $0x1588] sm:$0xff] }
 0x39e   :  { %4252 = vst [vmem:[%s10454_s3 + $0x260] sm:$0xff] %v5512_v43 }
 0x39f   :  { %v3717_v25 = vpop.f32.mrb[154].mxu0  ;;  %3076 = vmatmul.mubr.f32.gmra.mrb[156].mxu1 %v671_v33  ;;  %v691_v33 = vld [vmem:[%s10452_s0 + $0x1528] sm:$0xff] }
 0x3a0   :  { %v5514_v39 = vadd.f32 %v3717_v25, %v1898_v29  ;;  %v4945_v60 = vpop.f32.mrb[155].mxu0  ;;  %5103 = vmatmul.mubr.msk.f32.gmra.mrb[4].mxu0 %vm938_vm1, %v668_v2  ;;  %3080 = vmatprep.mubr.f32.mxu1 %v677_v11  ;;  %v688_v2 = vld [vmem:[%s10452_s0 + $0x1510] sm:$0xff]  ;;  %v697_v11 = vld [vmem:[%s10452_s0 + $0x1558] sm:$0xff]  ;;  %v1918_v29 = vadd.f32 %v9640_v7, %v10521_v38 }
 0x3a1   :  { %5105 = vmatprep.mubr.msk.f32.mxu0 %vm6011_vm0, %v10491_v59 }
 0x3a2   :  { %4253 = vst [vmem:[%s10454_s3 + $0x268] sm:$0xff] %v5514_v39 }
 0x3a3   :  { %v3722_v40 = vpop.f32.mrb[156].mxu0  ;;  %3081 = vmatmul.mubr.f32.gmra.mrb[158].mxu1 %v676_v16  ;;  %v696_v16 = vld [vmem:[%s10452_s0 + $0x1550] sm:$0xff] }
 0x3a4   :  { %v5516_v15 = vadd.f32 %v3722_v40, %v1903_v41  ;;  %v4948_v46 = vpop.f32.mrb[157].mxu0  ;;  %5106 = vmatmul.mubr.msk.f32.gmra.mrb[6].mxu0 %vm938_vm1, %v673_v47  ;;  %3085 = vmatprep.mubr.f32.mxu1 %v682_v4  ;;  %v693_v47 = vld [vmem:[%s10452_s0 + $0x1538] sm:$0xff]  ;;  %v702_v4 = vld [vmem:[%s10452_s0 + $0x1580] sm:$0xff]  ;;  %v1923_v41 = vadd.f32 %v9640_v7, %v10522_v20 }
 0x3a5   :  { %5108 = vmatprep.mubr.msk.f32.mxu0 %vm6011_vm0, %v10491_v59 }
 0x3a6   :  { %4254 = vst [vmem:[%s10454_s3 + $0x270] sm:$0xff] %v5516_v15 }
 0x3a7   :  { %v3727_v27 = vpop.f32.mrb[158].mxu0  ;;  %3086 = vmatmul.mubr.f32.gmra.mrb[160].mxu1 %v681_v54  ;;  %v701_v54 = vld [vmem:[%s10452_s0 + $0x1578] sm:$0xff] }
 0x3a8   :  { %v5518_v36 = vadd.f32 %v3727_v27, %v1908_v63  ;;  %v4951_v48 = vpop.f32.mrb[159].mxu0  ;;  %5109 = vmatmul.mubr.msk.f32.gmra.mrb[8].mxu0 %vm938_vm1, %v678_v13  ;;  %3090 = vmatprep.mubr.f32.mxu1 %v687_v3  ;;  %v698_v13 = vld [vmem:[%s10452_s0 + $0x1560] sm:$0xff]  ;;  %v707_v3 = vld [vmem:[%s10452_s0 + $0x15a8] sm:$0xff]  ;;  %v1928_v63 = vadd.f32 %v9640_v7, %v10523_v57 }
 0x3a9   :  { %5111 = vmatprep.mubr.msk.f32.mxu0 %vm6011_vm0, %v10491_v59 }
 0x3aa   :  { %4255 = vst [vmem:[%s10454_s3 + $0x278] sm:$0xff] %v5518_v36 }
 0x3ab   :  { %v3732_v10 = vpop.f32.mrb[160].mxu0  ;;  %3091 = vmatmul.mubr.f32.gmra.mrb[162].mxu1 %v686_v50  ;;  %v706_v50 = vld [vmem:[%s10452_s0 + $0x15a0] sm:$0xff] }
 0x3ac   :  { %v5520_v43 = vadd.f32 %v3732_v10, %v1913_v9  ;;  %v4954_v34 = vpop.f32.mrb[161].mxu0  ;;  %5112 = vmatmul.mubr.msk.f32.gmra.mrb[10].mxu0 %vm938_vm1, %v683_v35  ;;  %3095 = vmatprep.mubr.f32.mxu1 %v692_v53  ;;  %v10524_v35 = vld [vmem:[#allocation35_spill] sm:$0xff]  ;;  %v712_v9 = vld [vmem:[%s10452_s0 + $0x15d0] sm:$0xff] }
 0x3ad   :  { %5114 = vmatprep.mubr.msk.f32.mxu0 %vm6011_vm0, %v10491_v59  ;;  %v1938_v53 = vadd.f32 %v9640_v7, %v10524_v35  ;;  %v718_v35 = vld [vmem:[%s10452_s0 + $0x1600] sm:$0xff] }
 0x3ae   :  { %4256 = vst [vmem:[%s10454_s3 + $0x280] sm:$0xff] %v5520_v43  ;;  %v10525_v43 = vld [vmem:[#allocation34_spill] sm:$0xff] }
 0x3af   :  { %v3737_v25 = vpop.f32.mrb[162].mxu0  ;;  %3096 = vmatmul.mubr.f32.gmra.mrb[164].mxu1 %v691_v33  ;;  %v1933_v34 = vadd.f32 %v9640_v7, %v10525_v43 }
 0x3b0   :  { %v5522_v39 = vadd.f32 %v3737_v25, %v1918_v29  ;;  %v4957_v60 = vpop.f32.mrb[163].mxu0  ;;  %5115 = vmatmul.mubr.msk.f32.gmra.mrb[12].mxu0 %vm938_vm1, %v688_v2  ;;  %3100 = vmatprep.mubr.f32.mxu1 %v697_v11  ;;  %v711_v25 = vld [vmem:[%s10452_s0 + $0x15c8] sm:$0xff] }
 0x3b1   :  { %5117 = vmatprep.mubr.msk.f32.mxu0 %vm6011_vm0, %v10491_v59  ;;  %v708_v60 = vld [vmem:[%s10452_s0 + $0x15b0] sm:$0xff] }
 0x3b2   :  { %4257 = vst [vmem:[%s10454_s3 + $0x288] sm:$0xff] %v5522_v39  ;;  %v1943_v39 = vadd.f32 %v9640_v7, %v8231_v26 }
 0x3b3   :  { %v3742_v40 = vpop.f32.mrb[164].mxu0  ;;  %3101 = vmatmul.mubr.f32.gmra.mrb[166].mxu1 %v696_v16  ;;  %v717_v16 = vld [vmem:[%s10452_s0 + $0x15f8] sm:$0xff] }
 0x3b4   :  { %v5524_v15 = vadd.f32 %v3742_v40, %v1923_v41  ;;  %v4960_v46 = vpop.f32.mrb[165].mxu0  ;;  %5118 = vmatmul.mubr.msk.f32.gmra.mrb[14].mxu0 %vm938_vm1, %v693_v47  ;;  %3105 = vmatprep.mubr.f32.mxu1 %v702_v4 }
 0x3b5   :  { %5120 = vmatprep.mubr.msk.f32.mxu0 %vm6011_vm0, %v10491_v59  ;;  %v1948_v46 = vadd.f32 %v9640_v7, %v8250_v17 }
 0x3b6   :  { %4258 = vst [vmem:[%s10454_s3 + $0x290] sm:$0xff] %v5524_v15  ;;  %v716_v15 = vld [vmem:[%s10452_s0 + $0x15f0] sm:$0xff] }
 0x3b7   :  { %v3747_v27 = vpop.f32.mrb[166].mxu0  ;;  %3106 = vmatmul.mubr.f32.gmra.mrb[168].mxu1 %v701_v54  ;;  %v713_v54 = vld [vmem:[%s10452_s0 + $0x15d8] sm:$0xff] }
 0x3b8   :  { %v5526_v36 = vadd.f32 %v3747_v27, %v1928_v63  ;;  %v4963_v48 = vpop.f32.mrb[167].mxu0  ;;  %5121 = vmatmul.mubr.msk.f32.gmra.mrb[16].mxu0 %vm938_vm1, %v698_v13  ;;  %3110 = vmatprep.mubr.f32.mxu1 %v707_v3  ;;  %v722_v13 = vld [vmem:[%s10452_s0 + $0x1620] sm:$0xff] }
 0x3b9   :  { %5123 = vmatprep.mubr.msk.f32.mxu0 %vm6011_vm0, %v10491_v59  ;;  %v721_v48 = vld [vmem:[%s10452_s0 + $0x1618] sm:$0xff] }
 0x3ba   :  { %4259 = vst [vmem:[%s10454_s3 + $0x298] sm:$0xff] %v5526_v36  ;;  %v2847_v10 = vpop.f32.mrb[0].mxu1 }
 0x3bb   :  { %v2848_v33 = vadd.f32 %v2847_v10, %v1938_v53  ;;  %v3752_v2 = vpop.f32.mrb[168].mxu0  ;;  %3111 = vmatmul.mubr.f32.gmra.mrb[170].mxu1 %v706_v50  ;;  %v2849_v11 = vpop.f32.mrb[1].mxu1  ;;  %v1953_v50 = vadd.f32 %v9640_v7, %v8269_v23  ;;  %v727_v53 = vld [vmem:[%s10452_s0 + $0x1648] sm:$0xff] }
 0x3bc   :  { %v5528_v38 = vadd.f32 %v3752_v2, %v1933_v34  ;;  %v4966_v29 = vpop.f32.mrb[169].mxu0  ;;  %5124 = vmatmul.mubr.msk.f32.gmra.mrb[18].mxu0 %vm938_vm1, %v703_v22  ;;  %3115 = vmatprep.mubr.f32.mxu1 %v712_v9  ;;  %v1958_v2 = vadd.f32 %v9640_v7, %v8288_v31  ;;  %v723_v11 = vld [vmem:[%s10452_s0 + $0x1628] sm:$0xff] }
 0x3bd   :  { %5126 = vmatprep.mubr.msk.f32.mxu0 %vm6011_vm0, %v10491_v59 }
 0x3be   :  { %4260 = vst [vmem:[%s10454_s3 + $0x2a0] sm:$0xff] %v5528_v38  ;;  %v2852_v47 = vpop.f32.mrb[2].mxu1  ;;  %v732_v38 = vld [vmem:[%s10452_s0 + $0x1670] sm:$0xff] }
 0x3bf   :  { %v2853_v4 = vadd.f32 %v2852_v47, %v1943_v39  ;;  %v3757_v20 = vpop.f32.mrb[170].mxu0  ;;  %3116 = vmatmul.mubr.f32.gmra.mrb[172].mxu1 %v711_v25  ;;  %v2854_v26 = vpop.f32.mrb[3].mxu1  ;;  %v731_v47 = vld [vmem:[%s10452_s0 + $0x1668] sm:$0xff] }
 0x3c0   :  { %v3758_v41 = vadd.f32 %v3757_v20, %v2848_v33  ;;  %v4969_v40 = vpop.f32.mrb[171].mxu0  ;;  %5127 = vmatmul.mubr.msk.f32.gmra.mrb[20].mxu0 %vm938_vm1, %v708_v60  ;;  %3120 = vmatprep.mubr.f32.mxu1 %v717_v16  ;;  %v726_v33 = vld [vmem:[%s10452_s0 + $0x1640] sm:$0xff]  ;;  %v728_v20 = vld [vmem:[%s10452_s0 + $0x1650] sm:$0xff]  ;;  %v737_v26 = vld [vmem:[%s10452_s0 + $0x1698] sm:$0xff] }
 0x3c1   :  { %5129 = vmatprep.mubr.msk.f32.mxu0 %vm6011_vm0, %v10491_v59 }
 0x3c2   :  { %4261 = vst [vmem:[%s10454_s3 + $0x2a8] sm:$0xff] %v3758_v41  ;;  %v2857_v3 = vpop.f32.mrb[4].mxu1 }
 0x3c3   :  { %v2858_v57 = vadd.f32 %v2857_v3, %v1948_v46  ;;  %v3762_v63 = vpop.f32.mrb[172].mxu0  ;;  %3121 = vmatmul.mubr.f32.gmra.mrb[174].mxu1 %v716_v15  ;;  %v2859_v17 = vpop.f32.mrb[5].mxu1  ;;  %v1968_v3 = vadd.f32 %v9640_v7, %v8326_v5 }
 0x3c4   :  { %v3763_v27 = vadd.f32 %v3762_v63, %v2853_v4  ;;  %v4972_v36 = vpop.f32.mrb[173].mxu0  ;;  %5130 = vmatmul.mubr.msk.f32.gmra.mrb[22].mxu0 %vm938_vm1, %v713_v54  ;;  %3125 = vmatprep.mubr.f32.mxu1 %v722_v13  ;;  %v1963_v4 = vadd.f32 %v9640_v7, %v8307_v37  ;;  %v736_v13 = vld [vmem:[%s10452_s0 + $0x1690] sm:$0xff]  ;;  %v742_v63 = vld [vmem:[%s10452_s0 + $0x16c0] sm:$0xff] }
 0x3c5   :  { %5132 = vmatprep.mubr.msk.f32.mxu0 %vm6011_vm0, %v10491_v59 }
 0x3c6   :  { %4262 = vst [vmem:[%s10454_s3 + $0x2b0] sm:$0xff] %v3763_v27  ;;  %v2862_v22 = vpop.f32.mrb[6].mxu1 }
 0x3c7   :  { %v2863_v9 = vadd.f32 %v2862_v22, %v1953_v50  ;;  %v3767_v10 = vpop.f32.mrb[174].mxu0  ;;  %3126 = vmatmul.mubr.f32.gmra.mrb[176].mxu1 %v721_v48  ;;  %v2864_v23 = vpop.f32.mrb[7].mxu1  ;;  %v738_v22 = vld [vmem:[%s10452_s0 + $0x16a0] sm:$0xff] }
 0x3c8   :  { %v3768_v43 = vadd.f32 %v3767_v10, %v2858_v57  ;;  %v4975_v34 = vpop.f32.mrb[175].mxu0  ;;  %5133 = vmatmul.mubr.msk.f32.gmra.mrb[24].mxu0 %vm938_vm1, %v718_v35  ;;  %3130 = vmatprep.mubr.f32.mxu1 %v727_v53  ;;  %v733_v57 = vld [vmem:[%s10452_s0 + $0x1678] sm:$0xff]  ;;  %v1973_v53 = vadd.f32 %v9640_v7, %v8345_v49 }
 0x3c9   :  { %5135 = vmatprep.mubr.msk.f32.mxu0 %vm6011_vm0, %v10491_v59  ;;  %v741_v35 = vld [vmem:[%s10452_s0 + $0x16b8] sm:$0xff] }
 0x3ca   :  { %4263 = vst [vmem:[%s10454_s3 + $0x2b8] sm:$0xff] %v3768_v43  ;;  %v2867_v29 = vpop.f32.mrb[8].mxu1 }
 0x3cb   :  { %v2868_v25 = vadd.f32 %v2867_v29, %v1958_v2  ;;  %v3772_v39 = vpop.f32.mrb[176].mxu0  ;;  %3131 = vmatmul.mubr.f32.gmra.mrb[178].mxu1 %v726_v33  ;;  %v2869_v31 = vpop.f32.mrb[9].mxu1  ;;  %v746_v2 = vld [vmem:[%s10452_s0 + $0x16e0] sm:$0xff]  ;;  %v752_v29 = vld [vmem:[%s10452_s0 + $0x1710] sm:$0xff] }
 0x3cc   :  { %v3773_v60 = vadd.f32 %v3772_v39, %v2863_v9  ;;  %v4978_v16 = vpop.f32.mrb[177].mxu0  ;;  %5136 = vmatmul.mubr.msk.f32.gmra.mrb[26].mxu0 %vm938_vm1, %v723_v11  ;;  %3135 = vmatprep.mubr.f32.mxu1 %v732_v38  ;;  %v747_v9 = vld [vmem:[%s10452_s0 + $0x16e8] sm:$0xff]  ;;  %v1978_v11 = vadd.f32 %v9640_v7, %v8364_v55 }
 0x3cd   :  { %5138 = vmatprep.mubr.msk.f32.mxu0 %vm6011_vm0, %v10491_v59  ;;  %v743_v38 = vld [vmem:[%s10452_s0 + $0x16c8] sm:$0xff] }
 0x3ce   :  { %4264 = vst [vmem:[%s10454_s3 + $0x2c0] sm:$0xff] %v3773_v60  ;;  %v2872_v41 = vpop.f32.mrb[10].mxu1 }
 0x3cf   :  { %v2873_v40 = vadd.f32 %v2872_v41, %v1963_v4  ;;  %v3777_v15 = vpop.f32.mrb[178].mxu0  ;;  %3136 = vmatmul.mubr.f32.gmra.mrb[180].mxu1 %v731_v47  ;;  %v2874_v37 = vpop.f32.mrb[11].mxu1  ;;  %v751_v47 = vld [vmem:[%s10452_s0 + $0x1708] sm:$0xff]  ;;  %v1983_v4 = vadd.f32 %v9640_v7, %v8383_v0 }
 0x3d0   :  { %v3778_v46 = vadd.f32 %v3777_v15, %v2868_v25  ;;  %v4981_v54 = vpop.f32.mrb[179].mxu0  ;;  %5139 = vmatmul.mubr.msk.f32.gmra.mrb[28].mxu0 %vm938_vm1, %v728_v20  ;;  %3140 = vmatprep.mubr.f32.mxu1 %v737_v26  ;;  %v748_v20 = vld [vmem:[%s10452_s0 + $0x16f0] sm:$0xff]  ;;  %v757_v26 = vld [vmem:[%s10452_s0 + $0x1738] sm:$0xff] }
 0x3d1   :  { %5141 = vmatprep.mubr.msk.f32.mxu0 %vm6011_vm0, %v10491_v59  ;;  %v756_v54 = vld [vmem:[%s10452_s0 + $0x1730] sm:$0xff] }
 0x3d2   :  { %4265 = vst [vmem:[%s10454_s3 + $0x2c8] sm:$0xff] %v3778_v46  ;;  %v2877_v17 = vpop.f32.mrb[12].mxu1 }
 0x3d3   :  { %v2878_v27 = vadd.f32 %v2877_v17, %v1968_v3  ;;  %v3782_v36 = vpop.f32.mrb[180].mxu0  ;;  %3141 = vmatmul.mubr.f32.gmra.mrb[182].mxu1 %v736_v13  ;;  %v2879_v5 = vpop.f32.mrb[13].mxu1  ;;  %v1988_v13 = vadd.f32 %v9640_v7, %v8402_v12  ;;  %v753_v3 = vld [vmem:[%s10452_s0 + $0x1718] sm:$0xff] }
 0x3d4   :  { %v3783_v48 = vadd.f32 %v3782_v36, %v2873_v40  ;;  %v4984_v50 = vpop.f32.mrb[181].mxu0  ;;  %5142 = vmatmul.mubr.msk.f32.gmra.mrb[30].mxu0 %vm938_vm1, %v733_v57  ;;  %3145 = vmatprep.mubr.f32.mxu1 %v742_v63  ;;  %v762_v57 = vld [vmem:[%s10452_s0 + $0x1760] sm:$0xff] }
 0x3d5   :  { %5144 = vmatprep.mubr.msk.f32.mxu0 %vm6011_vm0, %v10491_v59  ;;  %v1993_v50 = vadd.f32 %v9640_v7, %v8421_v6 }
 0x3d6   :  { %4266 = vst [vmem:[%s10454_s3 + $0x2d0] sm:$0xff] %v3783_v48  ;;  %v2882_v10 = vpop.f32.mrb[14].mxu1  ;;  %v761_v48 = vld [vmem:[%s10452_s0 + $0x1758] sm:$0xff] }
 0x3d7   :  { %v2883_v23 = vadd.f32 %v2882_v10, %v1973_v53  ;;  %v3787_v43 = vpop.f32.mrb[182].mxu0  ;;  %3146 = vmatmul.mubr.f32.gmra.mrb[184].mxu1 %v741_v35  ;;  %v2884_v49 = vpop.f32.mrb[15].mxu1  ;;  %v758_v35 = vld [vmem:[%s10452_s0 + $0x1740] sm:$0xff]  ;;  %v767_v53 = vld [vmem:[%s10452_s0 + $0x1788] sm:$0xff] }
 0x3d8   :  { %v3788_v34 = vadd.f32 %v3787_v43, %v2878_v27  ;;  %v4987_v33 = vpop.f32.mrb[183].mxu0  ;;  %5145 = vmatmul.mubr.msk.f32.gmra.mrb[32].mxu0 %vm938_vm1, %v738_v22  ;;  %3150 = vmatprep.mubr.f32.mxu1 %v747_v9  ;;  %v766_v49 = vld [vmem:[%s10452_s0 + $0x1780] sm:$0xff] }
 0x3d9   :  { %5147 = vmatprep.mubr.msk.f32.mxu0 %vm6011_vm0, %v10491_v59  ;;  %v763_v33 = vld [vmem:[%s10452_s0 + $0x1768] sm:$0xff] }
 0x3da   :  { %4267 = vst [vmem:[%s10454_s3 + $0x2d8] sm:$0xff] %v3788_v34  ;;  %v2887_v25 = vpop.f32.mrb[16].mxu1  ;;  %v1998_v34 = vadd.f32 %v9640_v7, %v8440_v14 }
 0x3db   :  { %v2888_v39 = vadd.f32 %v2887_v25, %v1978_v11  ;;  %v3792_v31 = vpop.f32.mrb[184].mxu0  ;;  %3151 = vmatmul.mubr.f32.gmra.mrb[186].mxu1 %v746_v2  ;;  %v2889_v55 = vpop.f32.mrb[17].mxu1  ;;  %v772_v2 = vld [vmem:[%s10452_s0 + $0x17b0] sm:$0xff] }
 0x3dc   :  { %v3793_v60 = vadd.f32 %v3792_v31, %v2883_v23  ;;  %v4990_v16 = vpop.f32.mrb[185].mxu0  ;;  %5148 = vmatmul.mubr.msk.f32.gmra.mrb[34].mxu0 %vm938_vm1, %v743_v38  ;;  %3155 = vmatprep.mubr.f32.mxu1 %v752_v29  ;;  %v771_v31 = vld [vmem:[%s10452_s0 + $0x17a8] sm:$0xff]  ;;  %v2003_v55 = vadd.f32 %v9640_v7, %v8459_v21 }
 0x3dd   :  { %5150 = vmatprep.mubr.msk.f32.mxu0 %vm6011_vm0, %v10491_v59  ;;  %v777_v16 = vld [vmem:[%s10452_s0 + $0x17d8] sm:$0xff] }
 0x3de   :  { %4268 = vst [vmem:[%s10454_s3 + $0x2e0] sm:$0xff] %v3793_v60  ;;  %v2892_v41 = vpop.f32.mrb[18].mxu1  ;;  %v768_v60 = vld [vmem:[%s10452_s0 + $0x1790] sm:$0xff] }
 0x3df   :  { %v2893_v40 = vadd.f32 %v2892_v41, %v1983_v4  ;;  %v3797_v15 = vpop.f32.mrb[186].mxu0  ;;  %3156 = vmatmul.mubr.f32.gmra.mrb[188].mxu1 %v751_v47  ;;  %v2894_v0 = vpop.f32.mrb[19].mxu1 }
 0x3e0   :  { %v3798_v37 = vadd.f32 %v3797_v15, %v2888_v39  ;;  %v4993_v46 = vpop.f32.mrb[187].mxu0  ;;  %5151 = vmatmul.mubr.msk.f32.gmra.mrb[36].mxu0 %vm938_vm1, %v748_v20  ;;  %3160 = vmatprep.mubr.f32.mxu1 %v757_v26  ;;  %v2008_v15 = vadd.f32 %v9640_v7, %v8478_v28  ;;  %v773_v0 = vld [vmem:[%s10452_s0 + $0x17b8] sm:$0xff] }
 0x3e1   :  { %5153 = vmatprep.mubr.msk.f32.mxu0 %vm6011_vm0, %v10491_v59 }
 0x3e2   :  { %4269 = vst [vmem:[%s10454_s3 + $0x2e8] sm:$0xff] %v3798_v37  ;;  %v2897_v63 = vpop.f32.mrb[20].mxu1  ;;  %v782_v37 = vld [vmem:[%s10452_s0 + $0x1800] sm:$0xff] }
 0x3e3   :  { %v2898_v17 = vadd.f32 %v2897_v63, %v1988_v13  ;;  %v3802_v27 = vpop.f32.mrb[188].mxu0  ;;  %3161 = vmatmul.mubr.f32.gmra.mrb[190].mxu1 %v756_v54  ;;  %v2899_v12 = vpop.f32.mrb[21].mxu1  ;;  %v781_v63 = vld [vmem:[%s10452_s0 + $0x17f8] sm:$0xff] }
 0x3e4   :  { %v3803_v36 = vadd.f32 %v3802_v27, %v2893_v40  ;;  %v4996_v5 = vpop.f32.mrb[189].mxu0  ;;  %5154 = vmatmul.mubr.msk.f32.gmra.mrb[38].mxu0 %vm938_vm1, %v753_v3  ;;  %3165 = vmatprep.mubr.f32.mxu1 %v762_v57  ;;  %v776_v40 = vld [vmem:[%s10452_s0 + $0x17d0] sm:$0xff]  ;;  %v778_v27 = vld [vmem:[%s10452_s0 + $0x17e0] sm:$0xff]  ;;  %v787_v12 = vld [vmem:[%s10452_s0 + $0x1828] sm:$0xff] }
 0x3e5   :  { %5156 = vmatprep.mubr.msk.f32.mxu0 %vm6011_vm0, %v10491_v59 }
 0x3e6   :  { %4270 = vst [vmem:[%s10454_s3 + $0x2f0] sm:$0xff] %v3803_v36  ;;  %v2902_v22 = vpop.f32.mrb[22].mxu1 }
 0x3e7   :  { %v2903_v9 = vadd.f32 %v2902_v22, %v1993_v50  ;;  %v3807_v10 = vpop.f32.mrb[190].mxu0  ;;  %3166 = vmatmul.mubr.f32.gmra.mrb[192].mxu1 %v761_v48  ;;  %v2904_v6 = vpop.f32.mrb[23].mxu1  ;;  %v2018_v22 = vadd.f32 %v9640_v7, %v8516_v45 }
 0x3e8   :  { %v3808_v23 = vadd.f32 %v3807_v10, %v2898_v17  ;;  %v4999_v43 = vpop.f32.mrb[191].mxu0  ;;  %5157 = vmatmul.mubr.msk.f32.gmra.mrb[40].mxu0 %vm938_vm1, %v758_v35  ;;  %3170 = vmatprep.mubr.f32.mxu1 %v767_v53  ;;  %v2013_v17 = vadd.f32 %v9640_v7, %v8497_v62  ;;  %v786_v53 = vld [vmem:[%s10452_s0 + $0x1820] sm:$0xff]  ;;  %v792_v10 = vld [vmem:[%s10452_s0 + $0x1850] sm:$0xff] }
 0x3e9   :  { %5159 = vmatprep.mubr.msk.f32.mxu0 %vm6011_vm0, %v10491_v59 }
 0x3ea   :  { %4271 = vst [vmem:[%s10454_s3 + $0x2f8] sm:$0xff] %v3808_v23  ;;  %v2907_v11 = vpop.f32.mrb[24].mxu1 }
 0x3eb   :  { %v2908_v38 = vadd.f32 %v2907_v11, %v1998_v34  ;;  %v3812_v29 = vpop.f32.mrb[192].mxu0  ;;  %3171 = vmatmul.mubr.f32.gmra.mrb[194].mxu1 %v766_v49  ;;  %v2909_v14 = vpop.f32.mrb[25].mxu1  ;;  %v788_v11 = vld [vmem:[%s10452_s0 + $0x1830] sm:$0xff] }
 0x3ec   :  { %v3813_v25 = vadd.f32 %v3812_v29, %v2903_v9  ;;  %v5002_v39 = vpop.f32.mrb[193].mxu0  ;;  %5160 = vmatmul.mubr.msk.f32.gmra.mrb[42].mxu0 %vm938_vm1, %v763_v33  ;;  %3175 = vmatprep.mubr.f32.mxu1 %v772_v2  ;;  %v783_v9 = vld [vmem:[%s10452_s0 + $0x1808] sm:$0xff]  ;;  %v2023_v2 = vadd.f32 %v9640_v7, %v8535_v52 }
 0x3ed   :  { %5162 = vmatprep.mubr.msk.f32.mxu0 %vm6011_vm0, %v10491_v59  ;;  %v791_v33 = vld [vmem:[%s10452_s0 + $0x1848] sm:$0xff] }
 0x3ee   :  { %4272 = vst [vmem:[%s10454_s3 + $0x300] sm:$0xff] %v3813_v25  ;;  %v2912_v47 = vpop.f32.mrb[26].mxu1 }
 0x3ef   :  { %v2913_v4 = vadd.f32 %v2912_v47, %v2003_v55  ;;  %v3817_v20 = vpop.f32.mrb[194].mxu0  ;;  %3176 = vmatmul.mubr.f32.gmra.mrb[196].mxu1 %v771_v31  ;;  %v2914_v21 = vpop.f32.mrb[27].mxu1  ;;  %v796_v55 = vld [vmem:[%s10452_s0 + $0x1870] sm:$0xff]  ;;  %v802_v47 = vld [vmem:[%s10452_s0 + $0x18a0] sm:$0xff] }
 0x3f0   :  { %v3818_v26 = vadd.f32 %v3817_v20, %v2908_v38  ;;  %v5005_v41 = vpop.f32.mrb[195].mxu0  ;;  %5163 = vmatmul.mubr.msk.f32.gmra.mrb[44].mxu0 %vm938_vm1, %v768_v60  ;;  %3180 = vmatprep.mubr.f32.mxu1 %v777_v16  ;;  %v797_v38 = vld [vmem:[%s10452_s0 + $0x1878] sm:$0xff]  ;;  %v2028_v60 = vadd.f32 %v9640_v7, %v8554_v58 }
 0x3f1   :  { %5165 = vmatprep.mubr.msk.f32.mxu0 %vm6011_vm0, %v10491_v59  ;;  %v793_v16 = vld [vmem:[%s10452_s0 + $0x1858] sm:$0xff] }
 0x3f2   :  { %4273 = vst [vmem:[%s10454_s3 + $0x308] sm:$0xff] %v3818_v26  ;;  %v2917_v46 = vpop.f32.mrb[28].mxu1 }
 0x3f3   :  { %v2918_v54 = vadd.f32 %v2917_v46, %v2008_v15  ;;  %v3822_v13 = vpop.f32.mrb[196].mxu0  ;;  %3181 = vmatmul.mubr.f32.gmra.mrb[198].mxu1 %v776_v40  ;;  %v2919_v28 = vpop.f32.mrb[29].mxu1  ;;  %v801_v40 = vld [vmem:[%s10452_s0 + $0x1898] sm:$0xff]  ;;  %v2033_v15 = vadd.f32 %v9640_v7, %v8573_v61 }
 0x3f4   :  { %v3823_v3 = vadd.f32 %v3822_v13, %v2913_v4  ;;  %v5008_v57 = vpop.f32.mrb[197].mxu0  ;;  %5166 = vmatmul.mubr.msk.f32.gmra.mrb[46].mxu0 %vm938_vm1, %v773_v0  ;;  %3185 = vmatprep.mubr.f32.mxu1 %v782_v37  ;;  %v798_v0 = vld [vmem:[%s10452_s0 + $0x1880] sm:$0xff]  ;;  %v807_v37 = vld [vmem:[%s10452_s0 + $0x18c8] sm:$0xff] }
 0x3f5   :  { %5168 = vmatprep.mubr.msk.f32.mxu0 %vm6011_vm0, %v10491_v59  ;;  %v806_v57 = vld [vmem:[%s10452_s0 + $0x18c0] sm:$0xff] }
 0x3f6   :  { %4274 = vst [vmem:[%s10454_s3 + $0x310] sm:$0xff] %v3823_v3  ;;  %v2922_v36 = vpop.f32.mrb[30].mxu1 }
 0x3f7   :  { %v2923_v5 = vadd.f32 %v2922_v36, %v2013_v17  ;;  %v3827_v48 = vpop.f32.mrb[198].mxu0  ;;  %3186 = vmatmul.mubr.f32.gmra.mrb[200].mxu1 %v781_v63  ;;  %v2924_v62 = vpop.f32.mrb[31].mxu1  ;;  %v2038_v63 = vadd.f32 %v9640_v7, %v8592_v18  ;;  %v803_v17 = vld [vmem:[%s10452_s0 + $0x18a8] sm:$0xff] }
 0x3f8   :  { %v3828_v50 = vadd.f32 %v3827_v48, %v2918_v54  ;;  %v5011_v35 = vpop.f32.mrb[199].mxu0  ;;  %5169 = vmatmul.mubr.msk.f32.gmra.mrb[48].mxu0 %vm938_vm1, %v778_v27  ;;  %3190 = vmatprep.mubr.f32.mxu1 %v787_v12  ;;  %v812_v27 = vld [vmem:[%s10452_s0 + $0x18f0] sm:$0xff] }
 0x3f9   :  { %5171 = vmatprep.mubr.msk.f32.mxu0 %vm6011_vm0, %v10491_v59  ;;  %v2043_v35 = vadd.f32 %v9640_v7, %v8611_v30 }
 0x3fa   :  { %4275 = vst [vmem:[%s10454_s3 + $0x318] sm:$0xff] %v3828_v50  ;;  %v2927_v6 = vpop.f32.mrb[32].mxu1  ;;  %v811_v50 = vld [vmem:[%s10452_s0 + $0x18e8] sm:$0xff] }
 0x3fb   :  { %v2928_v23 = vadd.f32 %v2927_v6, %v2018_v22  ;;  %v3832_v43 = vpop.f32.mrb[200].mxu0  ;;  %3191 = vmatmul.mubr.f32.gmra.mrb[202].mxu1 %v786_v53  ;;  %v2929_v45 = vpop.f32.mrb[33].mxu1  ;;  %v808_v53 = vld [vmem:[%s10452_s0 + $0x18d0] sm:$0xff]  ;;  %v817_v22 = vld [vmem:[%s10452_s0 + $0x1918] sm:$0xff] }
 0x3fc   :  { %v3833_v49 = vadd.f32 %v3832_v43, %v2923_v5  ;;  %v5014_v34 = vpop.f32.mrb[201].mxu0  ;;  %5172 = vmatmul.mubr.msk.f32.gmra.mrb[50].mxu0 %vm938_vm1, %v783_v9  ;;  %3195 = vmatprep.mubr.f32.mxu1 %v792_v10  ;;  %v816_v45 = vld [vmem:[%s10452_s0 + $0x1910] sm:$0xff] }
 0x3fd   :  { %5174 = vmatprep.mubr.msk.f32.mxu0 %vm6011_vm0, %v10491_v59  ;;  %v813_v34 = vld [vmem:[%s10452_s0 + $0x18f8] sm:$0xff] }
 0x3fe   :  { %4276 = vst [vmem:[%s10454_s3 + $0x320] sm:$0xff] %v3833_v49  ;;  %v2932_v29 = vpop.f32.mrb[34].mxu1  ;;  %v2048_v49 = vadd.f32 %v9640_v7, %v8630_v44 }
 0x3ff   :  { %v2933_v14 = vadd.f32 %v2932_v29, %v2023_v2  ;;  %v3837_v25 = vpop.f32.mrb[202].mxu0  ;;  %3196 = vmatmul.mubr.f32.gmra.mrb[204].mxu1 %v791_v33  ;;  %v2934_v52 = vpop.f32.mrb[35].mxu1  ;;  %v822_v33 = vld [vmem:[%s10452_s0 + $0x1940] sm:$0xff] }
 0x400   :  { %v3838_v39 = vadd.f32 %v3837_v25, %v2928_v23  ;;  %v5017_v31 = vpop.f32.mrb[203].mxu0  ;;  %5175 = vmatmul.mubr.msk.f32.gmra.mrb[52].mxu0 %vm938_vm1, %v788_v11  ;;  %3200 = vmatprep.mubr.f32.mxu1 %v797_v38  ;;  %v821_v25 = vld [vmem:[%s10452_s0 + $0x1938] sm:$0xff]  ;;  %v2053_v52 = vadd.f32 %v9640_v7, %v8649_v32 }
 0x401   :  { %5177 = vmatprep.mubr.msk.f32.mxu0 %vm6011_vm0, %v10491_v59  ;;  %v827_v31 = vld [vmem:[%s10452_s0 + $0x1968] sm:$0xff] }
 0x402   :  { %4277 = vst [vmem:[%s10454_s3 + $0x328] sm:$0xff] %v3838_v39  ;;  %v2937_v4 = vpop.f32.mrb[36].mxu1  ;;  %v818_v39 = vld [vmem:[%s10452_s0 + $0x1920] sm:$0xff] }
 0x403   :  { %v2938_v20 = vadd.f32 %v2937_v4, %v2028_v60  ;;  %v3842_v21 = vpop.f32.mrb[204].mxu0  ;;  %3201 = vmatmul.mubr.f32.gmra.mrb[206].mxu1 %v796_v55  ;;  %v2939_v58 = vpop.f32.mrb[37].mxu1 }
 0x404   :  { %v3843_v26 = vadd.f32 %v3842_v21, %v2933_v14  ;;  %v5020_v41 = vpop.f32.mrb[205].mxu0  ;;  %5178 = vmatmul.mubr.msk.f32.gmra.mrb[54].mxu0 %vm938_vm1, %v793_v16  ;;  %3205 = vmatprep.mubr.f32.mxu1 %v802_v47  ;;  %v2058_v21 = vadd.f32 %v9640_v7, %v8668_v42  ;;  %v823_v58 = vld [vmem:[%s10452_s0 + $0x1948] sm:$0xff] }
 0x405   :  { %5180 = vmatprep.mubr.msk.f32.mxu0 %vm6011_vm0, %v10491_v59 }
 0x406   :  { %4278 = vst [vmem:[%s10454_s3 + $0x330] sm:$0xff] %v3843_v26  ;;  %v2942_v46 = vpop.f32.mrb[38].mxu1  ;;  %v832_v26 = vld [vmem:[%s10452_s0 + $0x1990] sm:$0xff] }
 0x407   :  { %v2943_v54 = vadd.f32 %v2942_v46, %v2033_v15  ;;  %v3847_v13 = vpop.f32.mrb[206].mxu0  ;;  %3206 = vmatmul.mubr.f32.gmra.mrb[208].mxu1 %v801_v40  ;;  %v2944_v61 = vpop.f32.mrb[39].mxu1  ;;  %v831_v46 = vld [vmem:[%s10452_s0 + $0x1988] sm:$0xff] }
 0x408   :  { %v3848_v28 = vadd.f32 %v3847_v13, %v2938_v20  ;;  %v5023_v3 = vpop.f32.mrb[207].mxu0  ;;  %5181 = vmatmul.mubr.msk.f32.gmra.mrb[56].mxu0 %vm938_vm1, %v798_v0  ;;  %3210 = vmatprep.mubr.f32.mxu1 %v807_v37  ;;  %v826_v20 = vld [vmem:[%s10452_s0 + $0x1960] sm:$0xff]  ;;  %v828_v13 = vld [vmem:[%s10452_s0 + $0x1970] sm:$0xff]  ;;  %v837_v61 = vld [vmem:[%s10452_s0 + $0x19b8] sm:$0xff] }
 0x409   :  { %5183 = vmatprep.mubr.msk.f32.mxu0 %vm6011_vm0, %v10491_v59 }
 0x40a   :  { %4279 = vst [vmem:[%s10454_s3 + $0x338] sm:$0xff] %v3848_v28  ;;  %v2947_v12 = vpop.f32.mrb[40].mxu1 }
 0x40b   :  { %v2948_v36 = vadd.f32 %v2947_v12, %v2038_v63  ;;  %v3852_v5 = vpop.f32.mrb[208].mxu0  ;;  %3211 = vmatmul.mubr.f32.gmra.mrb[210].mxu1 %v806_v57  ;;  %v2949_v18 = vpop.f32.mrb[41].mxu1  ;;  %v2068_v12 = vadd.f32 %v9640_v7, %v8706_v8 }
 0x40c   :  { %v3853_v48 = vadd.f32 %v3852_v5, %v2943_v54  ;;  %v5026_v62 = vpop.f32.mrb[209].mxu0  ;;  %5184 = vmatmul.mubr.msk.f32.gmra.mrb[58].mxu0 %vm938_vm1, %v803_v17  ;;  %3215 = vmatprep.mubr.f32.mxu1 %v812_v27  ;;  %v2063_v54 = vadd.f32 %v9640_v7, %v8687_v51  ;;  %v836_v27 = vld [vmem:[%s10452_s0 + $0x19b0] sm:$0xff]  ;;  %v842_v5 = vld [vmem:[%s10452_s0 + $0x19e0] sm:$0xff] }
 0x40d   :  { %5186 = vmatprep.mubr.msk.f32.mxu0 %vm6011_vm0, %v10491_v59 }
 0x40e   :  { %4280 = vst [vmem:[%s10454_s3 + $0x340] sm:$0xff] %v3853_v48  ;;  %v2952_v9 = vpop.f32.mrb[42].mxu1 }
 0x40f   :  { %v2953_v10 = vadd.f32 %v2952_v9, %v2043_v35  ;;  %v3857_v6 = vpop.f32.mrb[210].mxu0  ;;  %3216 = vmatmul.mubr.f32.gmra.mrb[212].mxu1 %v811_v50  ;;  %v2954_v30 = vpop.f32.mrb[43].mxu1  ;;  %v838_v9 = vld [vmem:[%s10452_s0 + $0x19c0] sm:$0xff] }
 0x410   :  { %v3858_v23 = vadd.f32 %v3857_v6, %v2948_v36  ;;  %v5029_v43 = vpop.f32.mrb[211].mxu0  ;;  %5187 = vmatmul.mubr.msk.f32.gmra.mrb[60].mxu0 %vm938_vm1, %v808_v53  ;;  %3220 = vmatprep.mubr.f32.mxu1 %v817_v22  ;;  %v833_v36 = vld [vmem:[%s10452_s0 + $0x1998] sm:$0xff]  ;;  %v2073_v22 = vadd.f32 %v9640_v7, %v8725_v1 }
 0x411   :  { %5189 = vmatprep.mubr.msk.f32.mxu0 %vm6011_vm0, %v10491_v59  ;;  %v841_v53 = vld [vmem:[%s10452_s0 + $0x19d8] sm:$0xff] }
 0x412   :  { %4281 = vst [vmem:[%s10454_s3 + $0x348] sm:$0xff] %v3858_v23  ;;  %v2957_v2 = vpop.f32.mrb[44].mxu1 }
 0x413   :  { %v2958_v11 = vadd.f32 %v2957_v2, %v2048_v49  ;;  %v3862_v38 = vpop.f32.mrb[212].mxu0  ;;  %3221 = vmatmul.mubr.f32.gmra.mrb[214].mxu1 %v816_v45  ;;  %v2959_v44 = vpop.f32.mrb[45].mxu1  ;;  %v846_v49 = vld [vmem:[%s10452_s0 + $0x1a00] sm:$0xff]  ;;  %v852_v2 = vld [vmem:[%s10452_s0 + $0x1a30] sm:$0xff] }
 0x414   :  { %v3863_v29 = vadd.f32 %v3862_v38, %v2953_v10  ;;  %v5032_v14 = vpop.f32.mrb[213].mxu0  ;;  %5190 = vmatmul.mubr.msk.f32.gmra.mrb[62].mxu0 %vm938_vm1, %v813_v34  ;;  %3225 = vmatprep.mubr.f32.mxu1 %v822_v33  ;;  %v847_v10 = vld [vmem:[%s10452_s0 + $0x1a08] sm:$0xff]  ;;  %v2078_v34 = vadd.f32 %v9640_v7, %v8744_v24 }
 0x415   :  { %5192 = vmatprep.mubr.msk.f32.mxu0 %vm6011_vm0, %v10491_v59  ;;  %v843_v33 = vld [vmem:[%s10452_s0 + $0x19e8] sm:$0xff] }
 0x416   :  { %4282 = vst [vmem:[%s10454_s3 + $0x350] sm:$0xff] %v3863_v29  ;;  %v2962_v55 = vpop.f32.mrb[46].mxu1 }
 0x417   :  { %v2963_v60 = vadd.f32 %v2962_v55, %v2053_v52  ;;  %v3867_v16 = vpop.f32.mrb[214].mxu0  ;;  %3226 = vmatmul.mubr.f32.gmra.mrb[216].mxu1 %v821_v25  ;;  %v2964_v32 = vpop.f32.mrb[47].mxu1  ;;  %v851_v25 = vld [vmem:[%s10452_s0 + $0x1a28] sm:$0xff]  ;;  %v2083_v52 = vadd.f32 %v9640_v7, %v8763_v19 }
 0x418   :  { %v3868_v47 = vadd.f32 %v3867_v16, %v2958_v11  ;;  %v5035_v4 = vpop.f32.mrb[215].mxu0  ;;  %5193 = vmatmul.mubr.msk.f32.gmra.mrb[64].mxu0 %vm938_vm1, %v818_v39  ;;  %3230 = vmatprep.mubr.f32.mxu1 %v827_v31  ;;  %v848_v39 = vld [vmem:[%s10452_s0 + $0x1a10] sm:$0xff]  ;;  %v857_v31 = vld [vmem:[%s10452_s0 + $0x1a58] sm:$0xff] }
 0x419   :  { %5195 = vmatprep.mubr.msk.f32.mxu0 %vm6011_vm0, %v10491_v59  ;;  %v856_v4 = vld [vmem:[%s10452_s0 + $0x1a50] sm:$0xff] }
 0x41a   :  { %4283 = vst [vmem:[%s10454_s3 + $0x358] sm:$0xff] %v3868_v47  ;;  %v2967_v41 = vpop.f32.mrb[48].mxu1 }
 0x41b   :  { %v2968_v40 = vadd.f32 %v2967_v41, %v2058_v21  ;;  %v3872_v15 = vpop.f32.mrb[216].mxu0  ;;  %3231 = vmatmul.mubr.f32.gmra.mrb[218].mxu1 %v826_v20  ;;  %v2969_v42 = vpop.f32.mrb[49].mxu1  ;;  %v2088_v20 = vadd.f32 %v9640_v7, %v8782_v56  ;;  %v853_v21 = vld [vmem:[%s10452_s0 + $0x1a38] sm:$0xff]  ;;  %v858_v56 = vld [vmem:[%s10452_s0 + $0x1a60] sm:$0xff] }
 0x41c   :  { %v3873_v0 = vadd.f32 %v3872_v15, %v2963_v60  ;;  %v5038_v37 = vpop.f32.mrb[217].mxu0  ;;  %5196 = vmatmul.mubr.msk.f32.gmra.mrb[66].mxu0 %vm938_vm1, %v823_v58  ;;  %3235 = vmatprep.mubr.f32.mxu1 %v832_v26 }
 0x41d   :  { %5198 = vmatprep.mubr.msk.f32.mxu0 %vm6011_vm0, %v10491_v59 }
 0x41e   :  { %4284 = vst [vmem:[%s10454_s3 + $0x360] sm:$0xff] %v3873_v0  ;;  %v2972_v28 = vpop.f32.mrb[50].mxu1 }
 0x41f   :  { %v2973_v3 = vadd.f32 %v2972_v28, %v2063_v54  ;;  %v3877_v57 = vpop.f32.mrb[218].mxu0  ;;  %3236 = vmatmul.mubr.f32.gmra.mrb[220].mxu1 %v831_v46  ;;  %v2974_v51 = vpop.f32.mrb[51].mxu1 }
 0x420   :  { %v3878_v63 = vadd.f32 %v3877_v57, %v2968_v40  ;;  %v5041_v17 = vpop.f32.mrb[219].mxu0  ;;  %5199 = vmatmul.mubr.msk.f32.gmra.mrb[68].mxu0 %vm938_vm1, %v828_v13  ;;  %3240 = vmatprep.mubr.f32.mxu1 %v837_v61  ;;  %v10234_v13 = vld [vmem:[%s10453_s2] ss:$0 sm:$0xff] }
 0x421   :  { %5201 = vmatprep.mubr.msk.f32.mxu0 %vm6011_vm0, %v10491_v59 }
 0x422   :  { %4285 = vst [vmem:[%s10454_s3 + $0x368] sm:$0xff] %v3878_v63  ;;  %v2977_v18 = vpop.f32.mrb[52].mxu1 }
 0x423   :  { %v2978_v48 = vadd.f32 %v2977_v18, %v2068_v12  ;;  %v3882_v62 = vpop.f32.mrb[220].mxu0  ;;  %3241 = vmatmul.mubr.f32.gmra.mrb[222].mxu1 %v836_v27  ;;  %v2979_v8 = vpop.f32.mrb[53].mxu1 }
 0x424   :  { %v3883_v50 = vadd.f32 %v3882_v62, %v2973_v3  ;;  %v5044_v35 = vpop.f32.mrb[221].mxu0  ;;  %5202 = vmatmul.mubr.msk.f32.gmra.mrb[70].mxu0 %vm938_vm1, %v833_v36  ;;  %3245 = vmatprep.mubr.f32.mxu1 %v842_v5 }
 0x425   :  { %5204 = vmatprep.mubr.msk.f32.mxu0 %vm6011_vm0, %v10491_v59 }
 0x426   :  { %4286 = vst [vmem:[%s10454_s3 + $0x370] sm:$0xff] %v3883_v50  ;;  %v2982_v6 = vpop.f32.mrb[54].mxu1 }
 0x427   :  { %v2983_v30 = vadd.f32 %v2982_v6, %v2073_v22  ;;  %v3887_v23 = vpop.f32.mrb[222].mxu0  ;;  %3246 = vmatmul.mubr.f32.gmra.mrb[224].mxu1 %v841_v53  ;;  %v2984_v1 = vpop.f32.mrb[55].mxu1 }
 0x428   :  { %v3888_v43 = vadd.f32 %v3887_v23, %v2978_v48  ;;  %v5047_v45 = vpop.f32.mrb[223].mxu0  ;;  %5205 = vmatmul.mubr.msk.f32.gmra.mrb[72].mxu0 %vm938_vm1, %v838_v9  ;;  %3250 = vmatprep.mubr.f32.mxu1 %v847_v10 }
 0x429   :  { %5207 = vmatprep.mubr.msk.f32.mxu0 %vm6011_vm0, %v10491_v59 }
 0x42a   :  { %4287 = vst [vmem:[%s10454_s3 + $0x378] sm:$0xff] %v3888_v43  ;;  %v2987_v11 = vpop.f32.mrb[56].mxu1 }
 0x42b   :  { %v2988_v38 = vadd.f32 %v2987_v11, %v2078_v34  ;;  %v3892_v44 = vpop.f32.mrb[224].mxu0  ;;  %3251 = vmatmul.mubr.f32.gmra.mrb[226].mxu1 %v846_v49  ;;  %v2989_v24 = vpop.f32.mrb[57].mxu1 }
 0x42c   :  { %v3893_v29 = vadd.f32 %v3892_v44, %v2983_v30  ;;  %v5050_v14 = vpop.f32.mrb[225].mxu0  ;;  %5208 = vmatmul.mubr.msk.f32.gmra.mrb[74].mxu0 %vm938_vm1, %v843_v33  ;;  %3255 = vmatprep.mubr.f32.mxu1 %v852_v2 }
 0x42d   :  { %5210 = vmatprep.mubr.msk.f32.mxu0 %vm6011_vm0, %v10491_v59 }
 0x42e   :  { %4288 = vst [vmem:[%s10454_s3 + $0x380] sm:$0xff] %v3893_v29  ;;  %v2992_v55 = vpop.f32.mrb[58].mxu1 }
 0x42f   :  { %v2993_v60 = vadd.f32 %v2992_v55, %v2083_v52  ;;  %v3897_v16 = vpop.f32.mrb[226].mxu0  ;;  %3256 = vmatmul.mubr.f32.gmra.mrb[228].mxu1 %v851_v25  ;;  %v2994_v19 = vpop.f32.mrb[59].mxu1 }
 0x430   :  { %v3898_v32 = vadd.f32 %v3897_v16, %v2988_v38  ;;  %v5053_v47 = vpop.f32.mrb[227].mxu0  ;;  %5211 = vmatmul.mubr.msk.f32.gmra.mrb[76].mxu0 %vm938_vm1, %v848_v39  ;;  %3260 = vmatprep.mubr.f32.mxu1 %v857_v31 }
 0x431   :  { %5213 = vmatprep.mubr.msk.f32.mxu0 %vm6011_vm0, %v10491_v59 }
 0x432   :  { %4289 = vst [vmem:[%s10454_s3 + $0x388] sm:$0xff] %v3898_v32  ;;  %v2997_v58 = vpop.f32.mrb[60].mxu1 }
 0x433   :  { %v2998_v26 = vadd.f32 %v2997_v58, %v2088_v20  ;;  %v3902_v41 = vpop.f32.mrb[228].mxu0  ;;  %3261 = vmatmul.mubr.f32.gmra.mrb[230].mxu1 %v856_v4  ;;  %v2999_v40 = vpop.f32.mrb[61].mxu1 }
 0x434   :  { %v3903_v15 = vadd.f32 %v3902_v41, %v2993_v60  ;;  %v5056_v42 = vpop.f32.mrb[229].mxu0  ;;  %5214 = vmatmul.mubr.msk.f32.gmra.mrb[78].mxu0 %vm938_vm1, %v853_v21 }
 0x435   :  { %5216 = vmatprep.mubr.msk.f32.mxu0 %vm6011_vm0, %v10491_v59 }
 0x436   :  { %4290 = vst [vmem:[%s10454_s3 + $0x390] sm:$0xff] %v3903_v15  ;;  %v3002_v7 = vpop.f32.mrb[232].mxu1 }
 0x437   :  { %v3907_v0 = vpop.f32.mrb[230].mxu0  ;;  %v3004_v37 = vpop.f32.mrb[233].mxu1  ;;  %v5622_v59 = vadd.f32 %v10234_v13, %v3002_v7 }
 0x438   :  { %v3908_v46 = vadd.f32 %v3907_v0, %v2998_v26  ;;  %v5059_v54 = vpop.f32.mrb[231].mxu0  ;;  %5217 = vmatmul.mubr.msk.f32.gmra.mrb[80].mxu0 %vm938_vm1, %v858_v56 }
 0x43a   :  { %4291 = vst [vmem:[%s10454_s3 + $0x398] sm:$0xff] %v3908_v46  ;;  %v3007_v61 = vpop.f32.mrb[234].mxu1 }
 0x43b   :  { %v3912_v28 = vpop.f32.mrb[232].mxu0  ;;  %v3009_v3 = vpop.f32.mrb[235].mxu1  ;;  %v5624_v63 = vadd.f32 %v10234_v13, %v3007_v61 }
 0x43c   :  { %v5623_v57 = vadd.f32 %v5622_v59, %v3912_v28  ;;  %v5062_v51 = vpop.f32.mrb[233].mxu0 }
 0x43e   :  { %4292 = vst [vmem:[%s10454_s3 + $0x3a0] sm:$0xff] %v5623_v57  ;;  %v3012_v17 = vpop.f32.mrb[236].mxu1 }
 0x43f   :  { %v3917_v27 = vpop.f32.mrb[234].mxu0  ;;  %v3014_v12 = vpop.f32.mrb[237].mxu1  ;;  %v5626_v18 = vadd.f32 %v10234_v13, %v3012_v17 }
 0x440   :  { %v5625_v36 = vadd.f32 %v5624_v63, %v3917_v27  ;;  %v5065_v5 = vpop.f32.mrb[235].mxu0 }
 0x442   :  { %4293 = vst [vmem:[%s10454_s3 + $0x3a8] sm:$0xff] %v5625_v36  ;;  %v3017_v48 = vpop.f32.mrb[238].mxu1 }
 0x443   :  { %v3922_v62 = vpop.f32.mrb[236].mxu0  ;;  %v3019_v8 = vpop.f32.mrb[239].mxu1  ;;  %v5628_v53 = vadd.f32 %v10234_v13, %v3017_v48 }
 0x444   :  { %v5627_v50 = vadd.f32 %v5626_v18, %v3922_v62  ;;  %v5068_v35 = vpop.f32.mrb[237].mxu0 }
 0x446   :  { %4294 = vst [vmem:[%s10454_s3 + $0x3b0] sm:$0xff] %v5627_v50  ;;  %v3022_v22 = vpop.f32.mrb[240].mxu1 }
 0x447   :  { %v3927_v9 = vpop.f32.mrb[238].mxu0  ;;  %v3024_v10 = vpop.f32.mrb[241].mxu1  ;;  %v5630_v23 = vadd.f32 %v10234_v13, %v3022_v22 }
 0x448   :  { %v5629_v6 = vadd.f32 %v5628_v53, %v3927_v9  ;;  %v5071_v30 = vpop.f32.mrb[239].mxu0 }
 0x44a   :  { %4295 = vst [vmem:[%s10454_s3 + $0x3b8] sm:$0xff] %v5629_v6  ;;  %v3027_v1 = vpop.f32.mrb[242].mxu1 }
 0x44b   :  { %v3932_v43 = vpop.f32.mrb[240].mxu0  ;;  %v3029_v45 = vpop.f32.mrb[243].mxu1  ;;  %v5632_v33 = vadd.f32 %v10234_v13, %v3027_v1 }
 0x44c   :  { %v5631_v49 = vadd.f32 %v5630_v23, %v3932_v43  ;;  %v5074_v34 = vpop.f32.mrb[241].mxu0 }
 0x44e   :  { %4296 = vst [vmem:[%s10454_s3 + $0x3c0] sm:$0xff] %v5631_v49  ;;  %v3032_v2 = vpop.f32.mrb[244].mxu1 }
 0x44f   :  { %v3937_v11 = vpop.f32.mrb[242].mxu0  ;;  %v3034_v38 = vpop.f32.mrb[245].mxu1  ;;  %v5634_v29 = vadd.f32 %v10234_v13, %v3032_v2 }
 0x450   :  { %v5633_v44 = vadd.f32 %v5632_v33, %v3937_v11  ;;  %v5077_v24 = vpop.f32.mrb[243].mxu0 }
 0x452   :  { %4297 = vst [vmem:[%s10454_s3 + $0x3c8] sm:$0xff] %v5633_v44  ;;  %v3037_v14 = vpop.f32.mrb[246].mxu1 }
 0x453   :  { %v3942_v25 = vpop.f32.mrb[244].mxu0  ;;  %v3039_v52 = vpop.f32.mrb[247].mxu1  ;;  %v5636_v55 = vadd.f32 %v10234_v13, %v3037_v14 }
 0x454   :  { %v5635_v39 = vadd.f32 %v5634_v29, %v3942_v25  ;;  %v5080_v31 = vpop.f32.mrb[245].mxu0 }
 0x456   :  { %4298 = vst [vmem:[%s10454_s3 + $0x3d0] sm:$0xff] %v5635_v39  ;;  %v3042_v60 = vpop.f32.mrb[248].mxu1 }
 0x457   :  { %v3947_v16 = vpop.f32.mrb[246].mxu0  ;;  %v3044_v19 = vpop.f32.mrb[249].mxu1  ;;  %v5638_v4 = vadd.f32 %v10234_v13, %v3042_v60 }
 0x458   :  { %v5637_v32 = vadd.f32 %v5636_v55, %v3947_v16  ;;  %v5083_v47 = vpop.f32.mrb[247].mxu0 }
 0x45a   :  { %4299 = vst [vmem:[%s10454_s3 + $0x3d8] sm:$0xff] %v5637_v32  ;;  %v3047_v20 = vpop.f32.mrb[250].mxu1 }
 0x45b   :  { %v3952_v21 = vpop.f32.mrb[248].mxu0  ;;  %v3049_v58 = vpop.f32.mrb[251].mxu1  ;;  %v5640_v40 = vadd.f32 %v10234_v13, %v3047_v20 }
 0x45c   :  { %v5639_v26 = vadd.f32 %v5638_v4, %v3952_v21  ;;  %v5086_v41 = vpop.f32.mrb[249].mxu0 }
 0x45e   :  { %4300 = vst [vmem:[%s10454_s3 + $0x3e0] sm:$0xff] %v5639_v26  ;;  %v3052_v15 = vpop.f32.mrb[252].mxu1 }
 0x45f   :  { %v3957_v42 = vpop.f32.mrb[250].mxu0  ;;  %v3054_v56 = vpop.f32.mrb[253].mxu1  ;;  %v5642_v37 = vadd.f32 %v10234_v13, %v3052_v15 }
 0x460   :  { %v5641_v7 = vadd.f32 %v5640_v40, %v3957_v42  ;;  %v5089_v0 = vpop.f32.mrb[251].mxu0 }
 0x462   :  { %4301 = vst [vmem:[%s10454_s3 + $0x3e8] sm:$0xff] %v5641_v7  ;;  %v3057_v46 = vpop.f32.mrb[254].mxu1 }
 0x463   :  { %v3962_v54 = vpop.f32.mrb[252].mxu0  ;;  %v3059_v59 = vpop.f32.mrb[255].mxu1  ;;  %v5644_v3 = vadd.f32 %v10234_v13, %v3057_v46 }
 0x464   :  { %v5643_v61 = vadd.f32 %v5642_v37, %v3962_v54  ;;  %v5092_v28 = vpop.f32.mrb[253].mxu0 }
 0x466   :  { %4302 = vst [vmem:[%s10454_s3 + $0x3f0] sm:$0xff] %v5643_v61  ;;  %v3062_v57 = vpop.f32.mrb[150].mxu1 }
 0x467   :  { %v3967_v51 = vpop.f32.mrb[254].mxu0  ;;  %v3064_v63 = vpop.f32.mrb[151].mxu1  ;;  %v5646_v12 = vadd.f32 %v10234_v13, %v3062_v57 }
 0x468   :  { %v5645_v17 = vadd.f32 %v5644_v3, %v3967_v51  ;;  %v5095_v27 = vpop.f32.mrb[255].mxu0 }
 0x46a   :  { %4303 = vst [vmem:[%s10454_s3 + $0x3f8] sm:$0xff] %v5645_v17  ;;  %v3067_v36 = vpop.f32.mrb[152].mxu1 }
 0x46b   :  { %v3972_v5 = vpop.f32.mrb[0].mxu0  ;;  %v3069_v18 = vpop.f32.mrb[153].mxu1  ;;  %v5648_v8 = vadd.f32 %v10234_v13, %v3067_v36 }
 0x46c   :  { %v5647_v48 = vadd.f32 %v5646_v12, %v3972_v5  ;;  %v5098_v62 = vpop.f32.mrb[1].mxu0 }
 0x46e   :  { %4304 = vst [vmem:[%s10454_s3 + $0x400] sm:$0xff] %v5647_v48  ;;  %v3072_v50 = vpop.f32.mrb[154].mxu1 }
 0x46f   :  { %v3977_v35 = vpop.f32.mrb[2].mxu0  ;;  %v3074_v53 = vpop.f32.mrb[155].mxu1  ;;  %v5650_v10 = vadd.f32 %v10234_v13, %v3072_v50 }
 0x470   :  { %v5649_v22 = vadd.f32 %v5648_v8, %v3977_v35  ;;  %v5101_v9 = vpop.f32.mrb[3].mxu0 }
 0x472   :  { %4305 = vst [vmem:[%s10454_s3 + $0x408] sm:$0xff] %v5649_v22  ;;  %v3077_v6 = vpop.f32.mrb[156].mxu1 }
 0x473   :  { %v3982_v30 = vpop.f32.mrb[4].mxu0  ;;  %v3079_v23 = vpop.f32.mrb[157].mxu1  ;;  %v5652_v45 = vadd.f32 %v10234_v13, %v3077_v6 }
 0x474   :  { %v5651_v1 = vadd.f32 %v5650_v10, %v3982_v30  ;;  %v5104_v43 = vpop.f32.mrb[5].mxu0 }
 0x476   :  { %4306 = vst [vmem:[%s10454_s3 + $0x410] sm:$0xff] %v5651_v1  ;;  %v3082_v49 = vpop.f32.mrb[158].mxu1 }
 0x477   :  { %v3987_v34 = vpop.f32.mrb[6].mxu0  ;;  %v3084_v33 = vpop.f32.mrb[159].mxu1  ;;  %v5654_v38 = vadd.f32 %v10234_v13, %v3082_v49 }
 0x478   :  { %v5653_v2 = vadd.f32 %v5652_v45, %v3987_v34  ;;  %v5107_v11 = vpop.f32.mrb[7].mxu0 }
 0x47a   :  { %4307 = vst [vmem:[%s10454_s3 + $0x418] sm:$0xff] %v5653_v2  ;;  %v3087_v44 = vpop.f32.mrb[160].mxu1 }
 0x47b   :  { %v3992_v24 = vpop.f32.mrb[8].mxu0  ;;  %v3089_v29 = vpop.f32.mrb[161].mxu1  ;;  %v5656_v52 = vadd.f32 %v10234_v13, %v3087_v44 }
 0x47c   :  { %v5655_v14 = vadd.f32 %v5654_v38, %v3992_v24  ;;  %v5110_v25 = vpop.f32.mrb[9].mxu0 }
 0x47e   :  { %4308 = vst [vmem:[%s10454_s3 + $0x420] sm:$0xff] %v5655_v14  ;;  %v3092_v39 = vpop.f32.mrb[162].mxu1 }
 0x47f   :  { %v3997_v31 = vpop.f32.mrb[10].mxu0  ;;  %v3094_v55 = vpop.f32.mrb[163].mxu1  ;;  %v5658_v19 = vadd.f32 %v10234_v13, %v3092_v39 }
 0x480   :  { %v5657_v60 = vadd.f32 %v5656_v52, %v3997_v31  ;;  %v5113_v16 = vpop.f32.mrb[11].mxu0 }
 0x482   :  { %4309 = vst [vmem:[%s10454_s3 + $0x428] sm:$0xff] %v5657_v60  ;;  %v3097_v32 = vpop.f32.mrb[164].mxu1 }
 0x483   :  { %v4002_v47 = vpop.f32.mrb[12].mxu0  ;;  %v3099_v4 = vpop.f32.mrb[165].mxu1  ;;  %v5660_v58 = vadd.f32 %v10234_v13, %v3097_v32 }
 0x484   :  { %v5659_v20 = vadd.f32 %v5658_v19, %v4002_v47  ;;  %v5116_v21 = vpop.f32.mrb[13].mxu0 }
 0x486   :  { %4310 = vst [vmem:[%s10454_s3 + $0x430] sm:$0xff] %v5659_v20  ;;  %v3102_v26 = vpop.f32.mrb[166].mxu1 }
 0x487   :  { %v4007_v41 = vpop.f32.mrb[14].mxu0  ;;  %v3104_v40 = vpop.f32.mrb[167].mxu1  ;;  %v5662_v56 = vadd.f32 %v10234_v13, %v3102_v26 }
 0x488   :  { %v5661_v15 = vadd.f32 %v5660_v58, %v4007_v41  ;;  %v5119_v42 = vpop.f32.mrb[15].mxu0 }
 0x48a   :  { %4311 = vst [vmem:[%s10454_s3 + $0x438] sm:$0xff] %v5661_v15  ;;  %v3107_v7 = vpop.f32.mrb[168].mxu1 }
 0x48b   :  { %v4012_v0 = vpop.f32.mrb[16].mxu0  ;;  %v3109_v37 = vpop.f32.mrb[169].mxu1  ;;  %v5664_v59 = vadd.f32 %v10234_v13, %v3107_v7 }
 0x48c   :  { %v5663_v46 = vadd.f32 %v5662_v56, %v4012_v0  ;;  %v5122_v54 = vpop.f32.mrb[17].mxu0 }
 0x48e   :  { %4312 = vst [vmem:[%s10454_s3 + $0x440] sm:$0xff] %v5663_v46  ;;  %v3112_v61 = vpop.f32.mrb[170].mxu1 }
 0x48f   :  { %v4017_v28 = vpop.f32.mrb[18].mxu0  ;;  %v3114_v3 = vpop.f32.mrb[171].mxu1  ;;  %v5666_v63 = vadd.f32 %v10234_v13, %v3112_v61 }
 0x490   :  { %v5665_v57 = vadd.f32 %v5664_v59, %v4017_v28  ;;  %v5125_v51 = vpop.f32.mrb[19].mxu0 }
 0x492   :  { %4313 = vst [vmem:[%s10454_s3 + $0x448] sm:$0xff] %v5665_v57  ;;  %v3117_v17 = vpop.f32.mrb[172].mxu1 }
 0x493   :  { %v4022_v27 = vpop.f32.mrb[20].mxu0  ;;  %v3119_v12 = vpop.f32.mrb[173].mxu1  ;;  %v5668_v18 = vadd.f32 %v10234_v13, %v3117_v17 }
 0x494   :  { %v5667_v36 = vadd.f32 %v5666_v63, %v4022_v27  ;;  %v5128_v5 = vpop.f32.mrb[21].mxu0 }
 0x496   :  { %4314 = vst [vmem:[%s10454_s3 + $0x450] sm:$0xff] %v5667_v36  ;;  %v3122_v48 = vpop.f32.mrb[174].mxu1 }
 0x497   :  { %v4027_v62 = vpop.f32.mrb[22].mxu0  ;;  %v3124_v8 = vpop.f32.mrb[175].mxu1  ;;  %v5670_v53 = vadd.f32 %v10234_v13, %v3122_v48 }
 0x498   :  { %v5669_v50 = vadd.f32 %v5668_v18, %v4027_v62  ;;  %v5131_v35 = vpop.f32.mrb[23].mxu0 }
 0x49a   :  { %4315 = vst [vmem:[%s10454_s3 + $0x458] sm:$0xff] %v5669_v50  ;;  %v3127_v22 = vpop.f32.mrb[176].mxu1 }
 0x49b   :  { %v4032_v9 = vpop.f32.mrb[24].mxu0  ;;  %v3129_v10 = vpop.f32.mrb[177].mxu1  ;;  %v5672_v23 = vadd.f32 %v10234_v13, %v3127_v22 }
 0x49c   :  { %v5671_v6 = vadd.f32 %v5670_v53, %v4032_v9  ;;  %v5134_v30 = vpop.f32.mrb[25].mxu0 }
 0x49e   :  { %4316 = vst [vmem:[%s10454_s3 + $0x460] sm:$0xff] %v5671_v6  ;;  %v3132_v1 = vpop.f32.mrb[178].mxu1 }
 0x49f   :  { %v4037_v43 = vpop.f32.mrb[26].mxu0  ;;  %v3134_v45 = vpop.f32.mrb[179].mxu1  ;;  %v5674_v33 = vadd.f32 %v10234_v13, %v3132_v1 }
 0x4a0   :  { %v5673_v49 = vadd.f32 %v5672_v23, %v4037_v43  ;;  %v5137_v34 = vpop.f32.mrb[27].mxu0 }
 0x4a2   :  { %4317 = vst [vmem:[%s10454_s3 + $0x468] sm:$0xff] %v5673_v49  ;;  %v3137_v2 = vpop.f32.mrb[180].mxu1 }
 0x4a3   :  { %v4042_v11 = vpop.f32.mrb[28].mxu0  ;;  %v3139_v38 = vpop.f32.mrb[181].mxu1  ;;  %v5676_v29 = vadd.f32 %v10234_v13, %v3137_v2 }
 0x4a4   :  { %v5675_v44 = vadd.f32 %v5674_v33, %v4042_v11  ;;  %v5140_v24 = vpop.f32.mrb[29].mxu0 }
 0x4a6   :  { %4318 = vst [vmem:[%s10454_s3 + $0x470] sm:$0xff] %v5675_v44  ;;  %v3142_v14 = vpop.f32.mrb[182].mxu1 }
 0x4a7   :  { %v4047_v25 = vpop.f32.mrb[30].mxu0  ;;  %v3144_v52 = vpop.f32.mrb[183].mxu1  ;;  %v5678_v55 = vadd.f32 %v10234_v13, %v3142_v14 }
 0x4a8   :  { %v5677_v39 = vadd.f32 %v5676_v29, %v4047_v25  ;;  %v5143_v31 = vpop.f32.mrb[31].mxu0 }
 0x4aa   :  { %4319 = vst [vmem:[%s10454_s3 + $0x478] sm:$0xff] %v5677_v39  ;;  %v3147_v60 = vpop.f32.mrb[184].mxu1 }
 0x4ab   :  { %v4052_v16 = vpop.f32.mrb[32].mxu0  ;;  %v3149_v19 = vpop.f32.mrb[185].mxu1  ;;  %v5680_v4 = vadd.f32 %v10234_v13, %v3147_v60 }
 0x4ac   :  { %v5679_v32 = vadd.f32 %v5678_v55, %v4052_v16  ;;  %v5146_v47 = vpop.f32.mrb[33].mxu0 }
 0x4ae   :  { %4320 = vst [vmem:[%s10454_s3 + $0x480] sm:$0xff] %v5679_v32  ;;  %v3152_v20 = vpop.f32.mrb[186].mxu1 }
 0x4af   :  { %v4057_v21 = vpop.f32.mrb[34].mxu0  ;;  %v3154_v58 = vpop.f32.mrb[187].mxu1  ;;  %v5682_v40 = vadd.f32 %v10234_v13, %v3152_v20 }
 0x4b0   :  { %v5681_v26 = vadd.f32 %v5680_v4, %v4057_v21  ;;  %v5149_v41 = vpop.f32.mrb[35].mxu0 }
 0x4b2   :  { %4321 = vst [vmem:[%s10454_s3 + $0x488] sm:$0xff] %v5681_v26  ;;  %v3157_v15 = vpop.f32.mrb[188].mxu1 }
 0x4b3   :  { %v4062_v42 = vpop.f32.mrb[36].mxu0  ;;  %v3159_v56 = vpop.f32.mrb[189].mxu1  ;;  %v5684_v37 = vadd.f32 %v10234_v13, %v3157_v15 }
 0x4b4   :  { %v5683_v7 = vadd.f32 %v5682_v40, %v4062_v42  ;;  %v5152_v0 = vpop.f32.mrb[37].mxu0 }
 0x4b6   :  { %4322 = vst [vmem:[%s10454_s3 + $0x490] sm:$0xff] %v5683_v7  ;;  %v3162_v46 = vpop.f32.mrb[190].mxu1 }
 0x4b7   :  { %v4067_v54 = vpop.f32.mrb[38].mxu0  ;;  %v3164_v59 = vpop.f32.mrb[191].mxu1  ;;  %v5686_v3 = vadd.f32 %v10234_v13, %v3162_v46 }
 0x4b8   :  { %v5685_v61 = vadd.f32 %v5684_v37, %v4067_v54  ;;  %v5155_v28 = vpop.f32.mrb[39].mxu0 }
 0x4ba   :  { %4323 = vst [vmem:[%s10454_s3 + $0x498] sm:$0xff] %v5685_v61  ;;  %v3167_v57 = vpop.f32.mrb[192].mxu1 }
 0x4bb   :  { %v4072_v51 = vpop.f32.mrb[40].mxu0  ;;  %v3169_v63 = vpop.f32.mrb[193].mxu1  ;;  %v5688_v12 = vadd.f32 %v10234_v13, %v3167_v57 }
 0x4bc   :  { %v5687_v17 = vadd.f32 %v5686_v3, %v4072_v51  ;;  %v5158_v27 = vpop.f32.mrb[41].mxu0 }
 0x4be   :  { %4324 = vst [vmem:[%s10454_s3 + $0x4a0] sm:$0xff] %v5687_v17  ;;  %v3172_v36 = vpop.f32.mrb[194].mxu1 }
 0x4bf   :  { %v4077_v5 = vpop.f32.mrb[42].mxu0  ;;  %v3174_v18 = vpop.f32.mrb[195].mxu1  ;;  %v5690_v8 = vadd.f32 %v10234_v13, %v3172_v36 }
 0x4c0   :  { %v5689_v48 = vadd.f32 %v5688_v12, %v4077_v5  ;;  %v5161_v62 = vpop.f32.mrb[43].mxu0 }
 0x4c2   :  { %4325 = vst [vmem:[%s10454_s3 + $0x4a8] sm:$0xff] %v5689_v48  ;;  %v3177_v50 = vpop.f32.mrb[196].mxu1 }
 0x4c3   :  { %v4082_v35 = vpop.f32.mrb[44].mxu0  ;;  %v3179_v53 = vpop.f32.mrb[197].mxu1  ;;  %v5692_v10 = vadd.f32 %v10234_v13, %v3177_v50 }
 0x4c4   :  { %v5691_v22 = vadd.f32 %v5690_v8, %v4082_v35  ;;  %v5164_v9 = vpop.f32.mrb[45].mxu0 }
 0x4c6   :  { %4326 = vst [vmem:[%s10454_s3 + $0x4b0] sm:$0xff] %v5691_v22  ;;  %v3182_v6 = vpop.f32.mrb[198].mxu1 }
 0x4c7   :  { %v4087_v30 = vpop.f32.mrb[46].mxu0  ;;  %v3184_v23 = vpop.f32.mrb[199].mxu1  ;;  %v5694_v45 = vadd.f32 %v10234_v13, %v3182_v6 }
 0x4c8   :  { %v5693_v1 = vadd.f32 %v5692_v10, %v4087_v30  ;;  %v5167_v43 = vpop.f32.mrb[47].mxu0 }
 0x4ca   :  { %4327 = vst [vmem:[%s10454_s3 + $0x4b8] sm:$0xff] %v5693_v1  ;;  %v3187_v49 = vpop.f32.mrb[200].mxu1 }
 0x4cb   :  { %v4092_v34 = vpop.f32.mrb[48].mxu0  ;;  %v3189_v33 = vpop.f32.mrb[201].mxu1  ;;  %v5696_v38 = vadd.f32 %v10234_v13, %v3187_v49 }
 0x4cc   :  { %v5695_v2 = vadd.f32 %v5694_v45, %v4092_v34  ;;  %v5170_v11 = vpop.f32.mrb[49].mxu0 }
 0x4ce   :  { %4328 = vst [vmem:[%s10454_s3 + $0x4c0] sm:$0xff] %v5695_v2  ;;  %v3192_v44 = vpop.f32.mrb[202].mxu1 }
 0x4cf   :  { %v4097_v24 = vpop.f32.mrb[50].mxu0  ;;  %v3194_v29 = vpop.f32.mrb[203].mxu1  ;;  %v5698_v52 = vadd.f32 %v10234_v13, %v3192_v44 }
 0x4d0   :  { %v5697_v14 = vadd.f32 %v5696_v38, %v4097_v24  ;;  %v5173_v25 = vpop.f32.mrb[51].mxu0 }
 0x4d2   :  { %4329 = vst [vmem:[%s10454_s3 + $0x4c8] sm:$0xff] %v5697_v14  ;;  %v3197_v39 = vpop.f32.mrb[204].mxu1 }
 0x4d3   :  { %v4102_v31 = vpop.f32.mrb[52].mxu0  ;;  %v3199_v55 = vpop.f32.mrb[205].mxu1  ;;  %v5700_v19 = vadd.f32 %v10234_v13, %v3197_v39 }
 0x4d4   :  { %v5699_v60 = vadd.f32 %v5698_v52, %v4102_v31  ;;  %v5176_v16 = vpop.f32.mrb[53].mxu0 }
 0x4d6   :  { %4330 = vst [vmem:[%s10454_s3 + $0x4d0] sm:$0xff] %v5699_v60  ;;  %v3202_v32 = vpop.f32.mrb[206].mxu1 }
 0x4d7   :  { %v4107_v47 = vpop.f32.mrb[54].mxu0  ;;  %v3204_v4 = vpop.f32.mrb[207].mxu1  ;;  %v5702_v58 = vadd.f32 %v10234_v13, %v3202_v32 }
 0x4d8   :  { %v5701_v20 = vadd.f32 %v5700_v19, %v4107_v47  ;;  %v5179_v21 = vpop.f32.mrb[55].mxu0 }
 0x4da   :  { %4331 = vst [vmem:[%s10454_s3 + $0x4d8] sm:$0xff] %v5701_v20  ;;  %v3207_v26 = vpop.f32.mrb[208].mxu1 }
 0x4db   :  { %v4112_v41 = vpop.f32.mrb[56].mxu0  ;;  %v3209_v40 = vpop.f32.mrb[209].mxu1  ;;  %v5704_v56 = vadd.f32 %v10234_v13, %v3207_v26 }
 0x4dc   :  { %v5703_v15 = vadd.f32 %v5702_v58, %v4112_v41  ;;  %v5182_v42 = vpop.f32.mrb[57].mxu0 }
 0x4de   :  { %4332 = vst [vmem:[%s10454_s3 + $0x4e0] sm:$0xff] %v5703_v15  ;;  %v3212_v7 = vpop.f32.mrb[210].mxu1 }
 0x4df   :  { %v4117_v0 = vpop.f32.mrb[58].mxu0  ;;  %v3214_v37 = vpop.f32.mrb[211].mxu1  ;;  %v5706_v59 = vadd.f32 %v10234_v13, %v3212_v7 }
 0x4e0   :  { %v5705_v46 = vadd.f32 %v5704_v56, %v4117_v0  ;;  %v5185_v54 = vpop.f32.mrb[59].mxu0 }
 0x4e2   :  { %4333 = vst [vmem:[%s10454_s3 + $0x4e8] sm:$0xff] %v5705_v46  ;;  %v3217_v61 = vpop.f32.mrb[212].mxu1 }
 0x4e3   :  { %v4122_v28 = vpop.f32.mrb[60].mxu0  ;;  %v3219_v3 = vpop.f32.mrb[213].mxu1  ;;  %v5708_v63 = vadd.f32 %v10234_v13, %v3217_v61 }
 0x4e4   :  { %v5707_v57 = vadd.f32 %v5706_v59, %v4122_v28  ;;  %v5188_v51 = vpop.f32.mrb[61].mxu0 }
 0x4e6   :  { %4334 = vst [vmem:[%s10454_s3 + $0x4f0] sm:$0xff] %v5707_v57  ;;  %v3222_v17 = vpop.f32.mrb[214].mxu1 }
 0x4e7   :  { %v4127_v27 = vpop.f32.mrb[62].mxu0  ;;  %v3224_v12 = vpop.f32.mrb[215].mxu1  ;;  %v5710_v18 = vadd.f32 %v10234_v13, %v3222_v17 }
 0x4e8   :  { %v5709_v36 = vadd.f32 %v5708_v63, %v4127_v27  ;;  %v5191_v5 = vpop.f32.mrb[63].mxu0 }
 0x4ea   :  { %4335 = vst [vmem:[%s10454_s3 + $0x4f8] sm:$0xff] %v5709_v36  ;;  %v3227_v48 = vpop.f32.mrb[216].mxu1 }
 0x4eb   :  { %v4132_v62 = vpop.f32.mrb[64].mxu0  ;;  %v3229_v8 = vpop.f32.mrb[217].mxu1  ;;  %v5712_v53 = vadd.f32 %v10234_v13, %v3227_v48 }
 0x4ec   :  { %v5711_v50 = vadd.f32 %v5710_v18, %v4132_v62  ;;  %v5194_v35 = vpop.f32.mrb[65].mxu0 }
 0x4ee   :  { %4336 = vst [vmem:[%s10454_s3 + $0x500] sm:$0xff] %v5711_v50  ;;  %v3232_v22 = vpop.f32.mrb[218].mxu1 }
 0x4ef   :  { %v4137_v9 = vpop.f32.mrb[66].mxu0  ;;  %v3234_v10 = vpop.f32.mrb[219].mxu1  ;;  %v5714_v23 = vadd.f32 %v10234_v13, %v3232_v22 }
 0x4f0   :  { %v5713_v6 = vadd.f32 %v5712_v53, %v4137_v9  ;;  %v5197_v30 = vpop.f32.mrb[67].mxu0 }
 0x4f2   :  { %4337 = vst [vmem:[%s10454_s3 + $0x508] sm:$0xff] %v5713_v6  ;;  %v3237_v1 = vpop.f32.mrb[220].mxu1 }
 0x4f3   :  { %v4142_v43 = vpop.f32.mrb[68].mxu0  ;;  %v3239_v45 = vpop.f32.mrb[221].mxu1  ;;  %v5716_v33 = vadd.f32 %v10234_v13, %v3237_v1 }
 0x4f4   :  { %v5715_v49 = vadd.f32 %v5714_v23, %v4142_v43  ;;  %v5200_v34 = vpop.f32.mrb[69].mxu0 }
 0x4f6   :  { %4338 = vst [vmem:[%s10454_s3 + $0x510] sm:$0xff] %v5715_v49  ;;  %v3242_v2 = vpop.f32.mrb[222].mxu1 }
 0x4f7   :  { %v4147_v11 = vpop.f32.mrb[70].mxu0  ;;  %v3244_v38 = vpop.f32.mrb[223].mxu1  ;;  %v5718_v29 = vadd.f32 %v10234_v13, %v3242_v2 }
 0x4f8   :  { %v5717_v44 = vadd.f32 %v5716_v33, %v4147_v11  ;;  %v5203_v24 = vpop.f32.mrb[71].mxu0 }
 0x4fa   :  { %4339 = vst [vmem:[%s10454_s3 + $0x518] sm:$0xff] %v5717_v44  ;;  %v3247_v14 = vpop.f32.mrb[224].mxu1 }
 0x4fb   :  { %v4152_v25 = vpop.f32.mrb[72].mxu0  ;;  %v3249_v52 = vpop.f32.mrb[225].mxu1  ;;  %v5720_v55 = vadd.f32 %v10234_v13, %v3247_v14 }
 0x4fc   :  { %v5719_v39 = vadd.f32 %v5718_v29, %v4152_v25  ;;  %v5206_v31 = vpop.f32.mrb[73].mxu0 }
 0x4fe   :  { %4340 = vst [vmem:[%s10454_s3 + $0x520] sm:$0xff] %v5719_v39  ;;  %v3252_v60 = vpop.f32.mrb[226].mxu1 }
 0x4ff   :  { %v4157_v16 = vpop.f32.mrb[74].mxu0  ;;  %v3254_v19 = vpop.f32.mrb[227].mxu1  ;;  %v5722_v4 = vadd.f32 %v10234_v13, %v3252_v60 }
 0x500   :  { %v5721_v32 = vadd.f32 %v5720_v55, %v4157_v16  ;;  %v5209_v47 = vpop.f32.mrb[75].mxu0 }
 0x502   :  { %4341 = vst [vmem:[%s10454_s3 + $0x528] sm:$0xff] %v5721_v32  ;;  %v3257_v20 = vpop.f32.mrb[228].mxu1 }
 0x503   :  { %v4162_v21 = vpop.f32.mrb[76].mxu0  ;;  %v3259_v58 = vpop.f32.mrb[229].mxu1  ;;  %v5724_v40 = vadd.f32 %v10234_v13, %v3257_v20 }
 0x504   :  { %v5723_v26 = vadd.f32 %v5722_v4, %v4162_v21  ;;  %v5212_v41 = vpop.f32.mrb[77].mxu0 }
 0x506   :  { %4342 = vst [vmem:[%s10454_s3 + $0x530] sm:$0xff] %v5723_v26  ;;  %v3262_v15 = vpop.f32.mrb[230].mxu1 }
 0x507   :  { %v4167_v42 = vpop.f32.mrb[78].mxu0  ;;  %v3264_v56 = vpop.f32.mrb[231].mxu1  ;;  %v5726_v37 = vadd.f32 %v10234_v13, %v3262_v15 }
 0x508   :  { %v5725_v7 = vadd.f32 %v5724_v40, %v4167_v42  ;;  %v5215_v0 = vpop.f32.mrb[79].mxu0 }
 0x50a   :  { %4343 = vst [vmem:[%s10454_s3 + $0x538] sm:$0xff] %v5725_v7 }
 0x50b   :  { %v4172_v46 = vpop.f32.mrb[80].mxu0 }
 0x50c   :  { %v5727_v54 = vadd.f32 %v5726_v37, %v4172_v46  ;;  %v5218_v59 = vpop.f32.mrb[81].mxu0 }
 0x50e   :  { %4344 = vst [vmem:[%s10454_s3 + $0x540] sm:$0xff] %v5727_v54 }

// kernel: dummy_cnn_forward.5
= control target key start
LH: loop header
LB: loop body
LE: loop exit
PB: predicated region body
PF: predicated region fallthrough
CT: control target
= control target key end

     0   :  { %8 = vsyncpa [#allocation4], 0  ;;  %s6433_s0 = inlined_call_operand.vmem [shape: f32[2,86528], index: 0, kind: input, shape index: {}]   ;;  %s6434_s1 = inlined_call_operand.hbm [shape: f32[86528,10], index: 1, kind: input, shape index: {}]   ;;  %s6435_s2 = inlined_call_operand.vmem [shape: f32[1,10], index: 2, kind: input, shape index: {}]   ;;  %s6436_s3 = inlined_call_operand.hbm [shape: f32[2,10], index: 3, kind: output, shape index: {}]  }
   0x1   :  { %10 = vsyncpa [#allocation4 + $0x1], 0 }
   0x2   :  { %11 = vsyncpa [#allocation5], 0  ;;  %s5269_s12 = smov 0   ;;  %s5271_s13 = smov 0  }
   0x3   :  { %s5273_s14 = smov 0   ;;  %s5275_s15 = smov 0  }
   0x4   :  { %s5277_s16 = smov 0   ;;  %s5279_s17 = smov 0  }
   0x5 LB: > { %s3294_s18 = sadd.s32 4294967295, %s5241_s17   ;;  %s26_s19 = sadd.s32 1, %s5237_s16  ;;  %s5241_s17 = sphi %s5279_s17, %s17_s17   ;;  %s5237_s16 = sphi %s5277_s16, %s6444_s16   ;;  %s5233_s15 = sphi %s5275_s15, %s6443_s15   ;;  %s5229_s14 = sphi %s5273_s14, %s6442_s14   ;;  %s5225_s13 = sphi %s5271_s13, %s6441_s13   ;;  %s5221_s12 = sphi %s5269_s12, %s6440_s12  }
   0x6   : > { %p27_p0 = scmp.ge.s32.totalorder %s26_s19, 13  ;;  %s64_s20 = sadd.s32 1, %s5229_s14 }
   0x7   : > { %p71_p1 = scmp.ne.s32.totalorder %s5229_s14, %s5225_s13  ;;  %p72_p2 = scmp.eq.s32.totalorder %s5241_s17, 0 }
   0x8   : > { %s6446_s19 = smov (%p27_p0, %s26_s19), 0  ;;  %p77_p4 = scmp.ne.s32.totalorder %s5225_s13, %s5221_s12 }
   0x9   : > { %p73_p3 = por %p72_p2, %p71_p1  ;;  %s61_s21 = ssub.s32 %s5237_s16, %s6446_s19 }
   0xa   : > { %p78_p5 = scmp.eq.s32.totalorder %s3294_s18, 0  ;;  %p62_p6 = scmp.eq.s32.totalorder %s61_s21, 0 }
   0xb   : > { %p5062_p8 = scmp.lt.s32.totalorder %s5241_s17, 13  ;;  %s164_s24 = sand.u32 1, %s5229_s14  }
   0xc   : > { %p5310_p7 = por %p78_p5, %p77_p4  ;;  %s3307_s25 = smul.u32 106496, %s5237_s16 }
   0xd   : > { %s5316_s23 = scalar_select %p62_p6, %s5229_s14, %s64_s20  }
   0xe   : > { %s5050_s26 = smul.u32 6656, %s164_s24  ;;  %s5323_s29 = scalar_lea.hbm %s6434_s1, %s3307_s25 }
   0xf   : > { %p5325_p9 = pnand %p5062_p8, %p73_p3  ;;  %s5331_s6 = scalar_lea.sflag [#allocation4], %s164_s24 }
  0x10   : > { %s168_s4 = scalar_lea.vmem [#allocation3], %s5050_s26  ;;  %s5131_s7 = scalar_lea.hbm %s5323_s29, 106496 }
  0x11   : > { %s175_s5 = sshll.u32 %s168_s4, 4  ;;  %p5132_p10 = scmp.ne.s32.totalorder %s5323_s29, %s5131_s7  ;;  %s5329_s5 = int_to_ptr.vmem [resolvable:$true] %s175_s5 }
  0x12   : > { %p5133_p11 = pneg %p5325_p9  ;;  %s5136_s10 = scalar_lea.hbm %s6434_s1, 1384448 }
  0x13   : > { %p5137_p0 = scmp.lt.u32.totalorder %s5323_s29, %s6434_s1  ;;  %p5138_p1 = scmp.lt.u32.totalorder %s5136_s10, %s5131_s7 }
  0x14   : > { %p5134_p12 = pnand %p5133_p11, %p5132_p10  ;;  %p5140_p3 = scmp.lt.u32.totalorder %s5131_s7, %s5323_s29 }
  0x15   : > { %p5139_p2 = por %p5138_p1, %p5137_p0 }
  0x16   : > { %p5135_p13 = pneg %p5134_p12 }
  0x17   : > { %p5141_p4 = por %p5140_p3, %p5139_p2 }
  0x19   : > { %p5142_p5 = pnand %p5141_p4, %p5135_p13 }
  0x1b   : > { %5145 = shalt.err (!%p5142_p5)
}
  0x1c   : > { %s5146_s20 = scalar_lea.vmem %s5329_s5, 106496  ;;  %s5243_s21 = smov [#allocation3]  }
  0x1d   : > { %p5147_p6 = scmp.ne.s32.totalorder %s5329_s5, %s5146_s20  ;;  %s5151_s24 = sshll.u32 %s5243_s21, 4  ;;  %s5152_s24 = int_to_ptr.vmem [resolvable:$false] %s5151_s24 }
  0x1e   : > { %s5153_s25 = scalar_lea.vmem %s5152_s24, 212992  ;;  %p5154_p12 = scmp.lt.s32.totalorder %s5329_s5, %s5152_s24 }
  0x1f   : > { %p5149_p8 = pnand %p5147_p6, %p5133_p11  ;;  %p5155_p0 = scmp.lt.s32.totalorder %s5153_s25, %s5146_s20 }
  0x21   : > { %p5150_p10 = pneg %p5149_p8  ;;  %p5156_p1 = por %p5155_p0, %p5154_p12 }
  0x23   : > { %p5157_p2 = pnand %p5156_p1, %p5150_p10 }
  0x25   : > { %5160 = shalt.err (!%p5157_p2)
}
  0x26   : > { %s5244_s26 = smov 128   ;;  %s5245_s27 = smov 8  }
  0x27   : > { %5061 = dma.hbm_to_vmem [thread:$0]  (!%p5325_p9), %s5323_s29, 106496, %s5329_s5, %s5331_s6, %s5244_s26, %s5244_s26, %s5245_s27  }
  0x28   : > { %p3298_p11 = scmp.ge.s32.totalorder %s5241_s17, 1  ;;  %p183_p13 = scmp.lt.s32.totalorder %s5241_s17, 14 }
  0x2a   : > { %p184_p3 = pnand %p3298_p11, %p183_p13 }
  0x2b   : > { %s189_s28 = sand.u32 (!%p184_p3), 1, %s5225_s13  }
  0x2c   : > { %187 = sbr.rel (%p184_p3) target bundleno = 738 (0x2e2), region = 32  ;;  %s190_s7 = scalar_lea.sflag (!%p184_p3), [#allocation4], %s189_s28 }
  0x2d   : > { %s5051_s4 = smul.u32 (!%p184_p3), 6656, %s189_s28 }
  0x2f   : > { %s5362_s8 = scalar_lea.vmem (!%p184_p3), [#allocation3], %s5051_s4 }
  0x33   : > { %5212 = dma.done.wait (%p5310_p7), %s190_s7, 106496  }
  0x34   : > { %5214 = vsyncadd (%p5310_p7), %s190_s7, 4294860800  ;;  %s220_s9 = smul.u32 52, %s5233_s15  ;;  %p3300_p9 = scmp.ne.s32.totalorder %s5233_s15, 0 }
  0x35   : > { %vm235_vm0 = vcmask (!%p3300_p9), 74752   ;;  %v5246_v0 = vmov (!%p3300_p9), 0.0  }
  0x36   : > { %p223_p4 = scmp.lt.s32.totalorder %s220_s9, 675  ;;  %234 = sbr.rel (%p3300_p9) target bundleno = 61 (0x3d), region = 40  ;;  %236 = vst.msk [vmem:[#allocation2] sm:$0x3] (!%p3300_p9), %vm235_vm0, %v5246_v0 }
  0x38   : > { %s6448_s9 = smov (!%p223_p4, %s220_s9), 675 }
  0x39   : > { %s3299_s29 = sshll.u32 %s6448_s9, 1 }
  0x3a   : > { %s5372_s6 = scalar_lea.vmem %s6433_s0, %s3299_s29 }
  0x3d PF: > { %v267_v1 = vld [vmem:[%s5362_s8 + $0x80] sm:$0xff]  ;;  %v268_v2 = vld [vmem:[%s5362_s8 + $0x88] sm:$0xff]  ;;  %v269_v12 = vld [vmem:[%s5362_s8 + $0x90] sm:$0xff]  ;;  %v5247_v48 = vmov 1983009808   ;;  %v1100_v50 = vlaneseq  ;;  %vm3190_vm1 = vcmask 74752  }
  0x3e   : > { %v299_v3 = vld [vmem:[%s5362_s8 + $0x180] sm:$0xff]  ;;  %v4218_v4 = vpack.c.bf16 %v268_v2, %v267_v1  ;;  %v300_v5 = vld [vmem:[%s5362_s8 + $0x188] sm:$0xff]  ;;  %v270_v14 = vld [vmem:[%s5362_s8 + $0x98] sm:$0xff]  ;;  %v1098_v49 = vunpack.c.l.s4 %v5247_v48  ;;  %p3301_p7 = scmp.ne.s32.totalorder %s5233_s15, 12 }
  0x3f   : > { %v251_v6 = vld [vmem:[%s5362_s8] sm:$0xff]  ;;  %v252_v7 = vld [vmem:[%s5362_s8 + $0x8] sm:$0xff]  ;;  %v4250_v8 = vpack.c.bf16 %v300_v5, %v299_v3  ;;  %v301_v15 = vld [vmem:[%s5362_s8 + $0x190] sm:$0xff]  ;;  %v4222_v17 = vpack.c.bf16 %v270_v14, %v269_v12  ;;  %v1101_v1 = vshrl.u32 %v1100_v50, 7 }
  0x40   : > { %v4220_v9 = vpack.c.bf16 %v252_v7, %v251_v6  ;;  %v283_v10 = vld [vmem:[%s5362_s8 + $0x100] sm:$0xff]  ;;  %v284_v11 = vld [vmem:[%s5362_s8 + $0x108] sm:$0xff]  ;;  %4219 = vmatprep.subr.bf16.mxu0 %v4218_v4  ;;  %v302_v16 = vld [vmem:[%s5362_s8 + $0x198] sm:$0xff]  ;;  %v1099_v0 = vunpack.c.0.s8 %v1098_v49 }
  0x41   : > { %v4252_v13 = vpack.c.bf16 %v284_v11, %v283_v10  ;;  %4251 = vmatprep.subr.bf16.mxu1 %v4250_v8  ;;  %v4254_v18 = vpack.c.bf16 %v302_v16, %v301_v15  ;;  %v253_v19 = vld [vmem:[%s5362_s8 + $0x10] sm:$0xff]  ;;  %v254_v20 = vld [vmem:[%s5362_s8 + $0x18] sm:$0xff]  ;;  %v271_v24 = vld [vmem:[%s5362_s8 + $0xa0] sm:$0xff] }
  0x42   : > { %4221 = vmatpush3.bf16.msra.mxu0 %v4220_v9  ;;  %v285_v21 = vld [vmem:[%s5362_s8 + $0x110] sm:$0xff]  ;;  %v4224_v22 = vpack.c.bf16 %v254_v20, %v253_v19  ;;  %v286_v23 = vld [vmem:[%s5362_s8 + $0x118] sm:$0xff]  ;;  %v272_v25 = vld [vmem:[%s5362_s8 + $0xa8] sm:$0xff]  ;;  %v5425_v14 = vsub.s32 %v1099_v0, %v1101_v1 }
  0x43   : > { %4253 = vmatpush3.bf16.msra.mxu1 %v4252_v13  ;;  %4223 = vmatprep.subr.bf16.mxu0 %v4222_v17  ;;  %v4256_v26 = vpack.c.bf16 %v286_v23, %v285_v21  ;;  %v4226_v27 = vpack.c.bf16 %v272_v25, %v271_v24  ;;  %v303_v28 = vld [vmem:[%s5362_s8 + $0x1a0] sm:$0xff]  ;;  %v304_v29 = vld [vmem:[%s5362_s8 + $0x1a8] sm:$0xff]  ;;  %v273_v36 = vld [vmem:[%s5362_s8 + $0xb0] sm:$0xff] }
  0x44   : > { %4255 = vmatprep.subr.bf16.mxu1 %v4254_v18  ;;  %v255_v30 = vld [vmem:[%s5362_s8 + $0x20] sm:$0xff]  ;;  %v4258_v31 = vpack.c.bf16 %v304_v29, %v303_v28  ;;  %v256_v32 = vld [vmem:[%s5362_s8 + $0x28] sm:$0xff]  ;;  %v274_v37 = vld [vmem:[%s5362_s8 + $0xb8] sm:$0xff] }
  0x45   : > { %v287_v33 = vld [vmem:[%s5362_s8 + $0x120] sm:$0xff]  ;;  %v288_v34 = vld [vmem:[%s5362_s8 + $0x128] sm:$0xff]  ;;  %v4228_v35 = vpack.c.bf16 %v256_v32, %v255_v30  ;;  %v305_v38 = vld [vmem:[%s5362_s8 + $0x1b0] sm:$0xff]  ;;  %v4230_v40 = vpack.c.bf16 %v274_v37, %v273_v36 }
  0x46   : > { %4225 = vmatpush3.bf16.msra.mxu0 %v4224_v22  ;;  %v4260_v39 = vpack.c.bf16 %v288_v34, %v287_v33  ;;  %v306_v41 = vld [vmem:[%s5362_s8 + $0x1b8] sm:$0xff]  ;;  %v257_v42 = vld [vmem:[%s5362_s8 + $0x30] sm:$0xff]  ;;  %v275_v47 = vld [vmem:[%s5362_s8 + $0xc0] sm:$0xff] }
  0x47   : > { %4257 = vmatpush3.bf16.msra.mxu1 %v4256_v26  ;;  %4227 = vmatprep.subr.bf16.mxu0 %v4226_v27  ;;  %v258_v43 = vld [vmem:[%s5362_s8 + $0x38] sm:$0xff]  ;;  %v4262_v44 = vpack.c.bf16 %v306_v41, %v305_v38  ;;  %v289_v45 = vld [vmem:[%s5362_s8 + $0x130] sm:$0xff]  ;;  %v276_v51 = vld [vmem:[%s5362_s8 + $0xc8] sm:$0xff] }
  0x48   : > { %4259 = vmatprep.subr.bf16.mxu1 %v4258_v31  ;;  %v290_v46 = vld [vmem:[%s5362_s8 + $0x138] sm:$0xff]  ;;  %v307_v52 = vld [vmem:[%s5362_s8 + $0x1c0] sm:$0xff]  ;;  %v308_v53 = vld [vmem:[%s5362_s8 + $0x1c8] sm:$0xff]  ;;  %v4232_v54 = vpack.c.bf16 %v258_v43, %v257_v42  ;;  %v4234_v56 = vpack.c.bf16 %v276_v51, %v275_v47 }
  0x49   : > { %v4264_v55 = vpack.c.bf16 %v290_v46, %v289_v45  ;;  %v259_v57 = vld [vmem:[%s5362_s8 + $0x40] sm:$0xff]  ;;  %v260_v58 = vld [vmem:[%s5362_s8 + $0x48] sm:$0xff]  ;;  %v4266_v60 = vpack.c.bf16 %v308_v53, %v307_v52  ;;  %v277_v62 = vld [vmem:[%s5362_s8 + $0xd0] sm:$0xff] }
  0x4a   : > { %4229 = vmatpush3.bf16.msra.mxu0 %v4228_v35  ;;  %v291_v59 = vld [vmem:[%s5362_s8 + $0x140] sm:$0xff]  ;;  %v292_v61 = vld [vmem:[%s5362_s8 + $0x148] sm:$0xff]  ;;  %v278_v63 = vld [vmem:[%s5362_s8 + $0xd8] sm:$0xff]  ;;  %v4236_v4 = vpack.c.bf16 %v260_v58, %v259_v57 }
  0x4b   : > { %4261 = vmatpush3.bf16.msra.mxu1 %v4260_v39  ;;  %4231 = vmatprep.subr.bf16.mxu0 %v4230_v40  ;;  %v309_v2 = vld [vmem:[%s5362_s8 + $0x1d0] sm:$0xff]  ;;  %v310_v3 = vld [vmem:[%s5362_s8 + $0x1d8] sm:$0xff]  ;;  %v4268_v5 = vpack.c.bf16 %v292_v61, %v291_v59  ;;  %v4238_v6 = vpack.c.bf16 %v278_v63, %v277_v62  ;;  %v279_v12 = vld [vmem:[%s5362_s8 + $0xe0] sm:$0xff] }
  0x4c   : > { %4263 = vmatprep.subr.bf16.mxu1 %v4262_v44  ;;  %v261_v7 = vld [vmem:[%s5362_s8 + $0x50] sm:$0xff]  ;;  %v262_v8 = vld [vmem:[%s5362_s8 + $0x58] sm:$0xff]  ;;  %v4270_v10 = vpack.c.bf16 %v310_v3, %v309_v2  ;;  %v280_v13 = vld [vmem:[%s5362_s8 + $0xe8] sm:$0xff] }
  0x4d   : > { %v293_v9 = vld [vmem:[%s5362_s8 + $0x150] sm:$0xff]  ;;  %v294_v11 = vld [vmem:[%s5362_s8 + $0x158] sm:$0xff]  ;;  %v311_v15 = vld [vmem:[%s5362_s8 + $0x1e0] sm:$0xff]  ;;  %v4240_v17 = vpack.c.bf16 %v262_v8, %v261_v7  ;;  %v4242_v20 = vpack.c.bf16 %v280_v13, %v279_v12 }
  0x4e   : > { %4233 = vmatpush3.bf16.msra.mxu0 %v4232_v54  ;;  %v312_v16 = vld [vmem:[%s5362_s8 + $0x1e8] sm:$0xff]  ;;  %v263_v18 = vld [vmem:[%s5362_s8 + $0x60] sm:$0xff]  ;;  %v4272_v19 = vpack.c.bf16 %v294_v11, %v293_v9  ;;  %v281_v26 = vld [vmem:[%s5362_s8 + $0xf0] sm:$0xff] }
  0x4f   : > { %4265 = vmatpush3.bf16.msra.mxu1 %v4264_v55  ;;  %4235 = vmatprep.subr.bf16.mxu0 %v4234_v56  ;;  %v264_v21 = vld [vmem:[%s5362_s8 + $0x68] sm:$0xff]  ;;  %v295_v22 = vld [vmem:[%s5362_s8 + $0x160] sm:$0xff]  ;;  %v4274_v24 = vpack.c.bf16 %v312_v16, %v311_v15  ;;  %v282_v27 = vld [vmem:[%s5362_s8 + $0xf8] sm:$0xff] }
  0x50   : > { %4267 = vmatprep.subr.bf16.mxu1 %v4266_v60  ;;  %v238_v23 = vld [vmem:[%s5372_s6] sm:$0xff]  ;;  %v296_v25 = vld [vmem:[%s5362_s8 + $0x168] sm:$0xff]  ;;  %v313_v30 = vld [vmem:[%s5362_s8 + $0x1f0] sm:$0xff]  ;;  %v4244_v32 = vpack.c.bf16 %v264_v21, %v263_v18  ;;  %v4246_v36 = vpack.c.bf16 %v282_v27, %v281_v26 }
  0x51   : > { %v1103_v28 = vrot.slane %v238_v23, %v5425_v14  ;;  %v1096_v29 = vcombine.high %v238_v23, %v238_v23  ;;  %v314_v31 = vld [vmem:[%s5362_s8 + $0x1f8] sm:$0xff]  ;;  %v4276_v35 = vpack.c.bf16 %v296_v25, %v295_v22  ;;  %v265_v37 = vld [vmem:[%s5362_s8 + $0x70] sm:$0xff]  ;;  %v331_v43 = vld [vmem:[%s5362_s8 + $0x280] sm:$0xff] }
  0x52   : > { %4237 = vmatpush3.bf16.msra.mxu0 %v4236_v4  ;;  %v266_v38 = vld [vmem:[%s5362_s8 + $0x78] sm:$0xff]  ;;  %v297_v39 = vld [vmem:[%s5362_s8 + $0x170] sm:$0xff]  ;;  %v4278_v40 = vpack.c.bf16 %v314_v31, %v313_v30  ;;  %v332_v44 = vld [vmem:[%s5362_s8 + $0x288] sm:$0xff] }
  0x53   : > { %4269 = vmatpush3.bf16.msra.mxu1 %v4268_v5  ;;  %4239 = vmatprep.subr.bf16.mxu0 %v4238_v6  ;;  %v1111_v33 = vcombine.high %v1103_v28, %v1103_v28  ;;  %v1110_v34 = vrot.slane %v1096_v29, %v5425_v14  ;;  %v298_v41 = vld [vmem:[%s5362_s8 + $0x178] sm:$0xff]  ;;  %v363_v45 = vld [vmem:[%s5362_s8 + $0x380] sm:$0xff]  ;;  %v364_v46 = vld [vmem:[%s5362_s8 + $0x388] sm:$0xff]  ;;  %v4248_v47 = vpack.c.bf16 %v266_v38, %v265_v37 }
  0x54   : > { %4271 = vmatprep.subr.bf16.mxu1 %v4270_v10  ;;  %v4280_v48 = vpack.c.bf16 %v298_v41, %v297_v39  ;;  %v4282_v49 = vpack.c.bf16 %v332_v44, %v331_v43  ;;  %v315_v50 = vld [vmem:[%s5362_s8 + $0x200] sm:$0xff]  ;;  %v316_v51 = vld [vmem:[%s5362_s8 + $0x208] sm:$0xff]  ;;  %v4314_v53 = vpack.c.bf16 %v364_v46, %v363_v45  ;;  %v333_v55 = vld [vmem:[%s5362_s8 + $0x290] sm:$0xff] }
  0x55   : > { %1433 = vmatprep.mubr.f32.mxu0 %v1111_v33  ;;  %v1112_v42 = vcombine.high %v1110_v34, %v1110_v34  ;;  %v347_v52 = vld [vmem:[%s5362_s8 + $0x300] sm:$0xff]  ;;  %v348_v54 = vld [vmem:[%s5362_s8 + $0x308] sm:$0xff]  ;;  %v334_v56 = vld [vmem:[%s5362_s8 + $0x298] sm:$0xff]  ;;  %v4284_v59 = vpack.c.bf16 %v316_v51, %v315_v50 }
  0x56   : > { %4241 = vmatpush3.bf16.msra.mxu0 %v4240_v17  ;;  %v365_v57 = vld [vmem:[%s5362_s8 + $0x390] sm:$0xff]  ;;  %v366_v58 = vld [vmem:[%s5362_s8 + $0x398] sm:$0xff]  ;;  %v4316_v60 = vpack.c.bf16 %v348_v54, %v347_v52  ;;  %v4286_v61 = vpack.c.bf16 %v334_v56, %v333_v55  ;;  %v335_v3 = vld [vmem:[%s5362_s8 + $0x2a0] sm:$0xff] }
  0x57   : > { %4273 = vmatpush3.bf16.msra.mxu1 %v4272_v19  ;;  %4243 = vmatprep.subr.bf16.mxu0 %v4242_v20  ;;  %v317_v62 = vld [vmem:[%s5362_s8 + $0x210] sm:$0xff]  ;;  %v318_v63 = vld [vmem:[%s5362_s8 + $0x218] sm:$0xff]  ;;  %v4318_v1 = vpack.c.bf16 %v366_v58, %v365_v57  ;;  %v336_v4 = vld [vmem:[%s5362_s8 + $0x2a8] sm:$0xff] }
  0x58   : > { %4275 = vmatprep.subr.bf16.mxu1 %v4274_v24  ;;  %1503 = vmatprep.mubr.f32.mxu1 %v1112_v42  ;;  %v349_v0 = vld [vmem:[%s5362_s8 + $0x310] sm:$0xff]  ;;  %v350_v2 = vld [vmem:[%s5362_s8 + $0x318] sm:$0xff]  ;;  %v367_v5 = vld [vmem:[%s5362_s8 + $0x3a0] sm:$0xff]  ;;  %v4288_v7 = vpack.c.bf16 %v318_v63, %v317_v62  ;;  %v4290_v9 = vpack.c.bf16 %v336_v4, %v335_v3 }
  0x59   : > { %v368_v6 = vld [vmem:[%s5362_s8 + $0x3a8] sm:$0xff]  ;;  %v4320_v8 = vpack.c.bf16 %v350_v2, %v349_v0  ;;  %v319_v10 = vld [vmem:[%s5362_s8 + $0x220] sm:$0xff]  ;;  %v337_v16 = vld [vmem:[%s5362_s8 + $0x2b0] sm:$0xff] }
  0x5a   : > { %4245 = vmatpush3.bf16.msra.mxu0 %v4244_v32  ;;  %v320_v11 = vld [vmem:[%s5362_s8 + $0x228] sm:$0xff]  ;;  %v351_v12 = vld [vmem:[%s5362_s8 + $0x320] sm:$0xff]  ;;  %v4322_v13 = vpack.c.bf16 %v368_v6, %v367_v5  ;;  %v338_v17 = vld [vmem:[%s5362_s8 + $0x2b8] sm:$0xff] }
  0x5b   : > { %4277 = vmatpush3.bf16.msra.mxu1 %v4276_v35  ;;  %4247 = vmatprep.subr.bf16.mxu0 %v4246_v36  ;;  %v352_v15 = vld [vmem:[%s5362_s8 + $0x328] sm:$0xff]  ;;  %v369_v18 = vld [vmem:[%s5362_s8 + $0x3b0] sm:$0xff]  ;;  %v370_v19 = vld [vmem:[%s5362_s8 + $0x3b8] sm:$0xff]  ;;  %v4292_v20 = vpack.c.bf16 %v320_v11, %v319_v10  ;;  %v4294_v22 = vpack.c.bf16 %v338_v17, %v337_v16 }
  0x5c   : > { %4279 = vmatprep.subr.bf16.mxu1 %v4278_v40  ;;  %v4324_v21 = vpack.c.bf16 %v352_v15, %v351_v12  ;;  %v321_v23 = vld [vmem:[%s5362_s8 + $0x230] sm:$0xff]  ;;  %v322_v24 = vld [vmem:[%s5362_s8 + $0x238] sm:$0xff]  ;;  %v4326_v26 = vpack.c.bf16 %v370_v19, %v369_v18  ;;  %v340_v29 = vld [vmem:[%s5362_s8 + $0x2c8] sm:$0xff] }
  0x5d   : > { %v353_v25 = vld [vmem:[%s5362_s8 + $0x330] sm:$0xff]  ;;  %v354_v27 = vld [vmem:[%s5362_s8 + $0x338] sm:$0xff]  ;;  %v371_v30 = vld [vmem:[%s5362_s8 + $0x3c0] sm:$0xff]  ;;  %v4296_v33 = vpack.c.bf16 %v322_v24, %v321_v23 }
  0x5e   : > { %4249 = vmatpush3.bf16.msra.mxu0 %v4248_v47  ;;  %v372_v31 = vld [vmem:[%s5362_s8 + $0x3c8] sm:$0xff]  ;;  %v4328_v36 = vpack.c.bf16 %v354_v27, %v353_v25  ;;  %v323_v38 = vld [vmem:[%s5362_s8 + $0x240] sm:$0xff]  ;;  %v341_v43 = vld [vmem:[%s5362_s8 + $0x2d0] sm:$0xff] }
  0x5f   : > { %4281 = vmatpush3.bf16.msra.mxu1 %v4280_v48  ;;  %4283 = vmatprep.subr.bf16.mxu0 %v4282_v49  ;;  %v239_v32 = vld [vmem:[%s5372_s6 + $0x8] sm:$0xff]  ;;  %v4330_v41 = vpack.c.bf16 %v372_v31, %v371_v30  ;;  %v342_v44 = vld [vmem:[%s5362_s8 + $0x2d8] sm:$0xff]  ;;  %v373_v47 = vld [vmem:[%s5362_s8 + $0x3d0] sm:$0xff] }
  0x60   : > { %4315 = vmatprep.subr.bf16.mxu1 %v4314_v53  ;;  %v1113_v35 = vcombine.high %v239_v32, %v239_v32  ;;  %v324_v39 = vld [vmem:[%s5362_s8 + $0x248] sm:$0xff]  ;;  %v355_v40 = vld [vmem:[%s5362_s8 + $0x340] sm:$0xff]  ;;  %v374_v48 = vld [vmem:[%s5362_s8 + $0x3d8] sm:$0xff]  ;;  %v4302_v52 = vpack.c.bf16 %v342_v44, %v341_v43 }
  0x61   : > { %1434 = vmatmul.mubr.f32.vlgmr.msra.gmra.mrb[0].mxu0 %v1103_v28  ;;  %v339_v28 = vld [vmem:[%s5362_s8 + $0x2c0] sm:$0xff]  ;;  %v356_v42 = vld [vmem:[%s5362_s8 + $0x348] sm:$0xff]  ;;  %v4300_v49 = vpack.c.bf16 %v324_v39, %v323_v38  ;;  %v325_v53 = vld [vmem:[%s5362_s8 + $0x250] sm:$0xff]  ;;  %v4334_v56 = vpack.c.bf16 %v374_v48, %v373_v47 }
  0x62   : > { %1504 = vmatmul.mubr.f32.vlgmr.msra.gmra.mrb[0].mxu1 %v1110_v34  ;;  %4285 = vmatpush3.bf16.msra.mxu0 %v4284_v59  ;;  %v5482_v34 = vrot.slane %v239_v32, %v5425_v14  ;;  %v4298_v37 = vpack.c.bf16 %v340_v29, %v339_v28  ;;  %v5493_v46 = vrot.slane %v1113_v35, %v5425_v14  ;;  %v326_v54 = vld [vmem:[%s5362_s8 + $0x258] sm:$0xff]  ;;  %v357_v55 = vld [vmem:[%s5362_s8 + $0x350] sm:$0xff]  ;;  %v343_v58 = vld [vmem:[%s5362_s8 + $0x2e0] sm:$0xff] }
  0x63   : > { %4317 = vmatpush3.bf16.msra.mxu1 %v4316_v60  ;;  %4287 = vmatprep.subr.bf16.mxu0 %v4286_v61  ;;  %v4332_v51 = vpack.c.bf16 %v356_v42, %v355_v40  ;;  %v358_v57 = vld [vmem:[%s5362_s8 + $0x358] sm:$0xff]  ;;  %v344_v59 = vld [vmem:[%s5362_s8 + $0x2e8] sm:$0xff]  ;;  %v375_v60 = vld [vmem:[%s5362_s8 + $0x3e0] sm:$0xff]  ;;  %v4304_v62 = vpack.c.bf16 %v326_v54, %v325_v53 }
  0x64   : > { %4319 = vmatprep.subr.bf16.mxu1 %v4318_v1  ;;  %v1128_v45 = vcombine.high %v5482_v34, %v5482_v34  ;;  %v1129_v50 = vcombine.high %v5493_v46, %v5493_v46  ;;  %v376_v61 = vld [vmem:[%s5362_s8 + $0x3e8] sm:$0xff]  ;;  %v4336_v63 = vpack.c.bf16 %v358_v57, %v357_v55  ;;  %v4306_v0 = vpack.c.bf16 %v344_v59, %v343_v58  ;;  %v327_v1 = vld [vmem:[%s5362_s8 + $0x260] sm:$0xff]  ;;  %v345_v6 = vld [vmem:[%s5362_s8 + $0x2f0] sm:$0xff] }
  0x65   : > { %v328_v2 = vld [vmem:[%s5362_s8 + $0x268] sm:$0xff]  ;;  %v359_v3 = vld [vmem:[%s5362_s8 + $0x360] sm:$0xff]  ;;  %v4338_v4 = vpack.c.bf16 %v376_v61, %v375_v60  ;;  %v330_v15 = vld [vmem:[%s5362_s8 + $0x278] sm:$0xff] }
  0x66   : > { %4289 = vmatpush3.bf16.msra.mxu0 %v4288_v7  ;;  %1573 = vmatprep.mubr.f32.mxu0 %v1128_v45  ;;  %v360_v5 = vld [vmem:[%s5362_s8 + $0x368] sm:$0xff]  ;;  %v346_v7 = vld [vmem:[%s5362_s8 + $0x2f8] sm:$0xff]  ;;  %v4308_v10 = vpack.c.bf16 %v328_v2, %v327_v1  ;;  %v361_v16 = vld [vmem:[%s5362_s8 + $0x370] sm:$0xff] }
  0x67   : > { %4321 = vmatpush3.bf16.msra.mxu1 %v4320_v8  ;;  %4291 = vmatprep.subr.bf16.mxu0 %v4290_v9  ;;  %v377_v8 = vld [vmem:[%s5362_s8 + $0x3f0] sm:$0xff]  ;;  %v378_v9 = vld [vmem:[%s5362_s8 + $0x3f8] sm:$0xff]  ;;  %v4340_v11 = vpack.c.bf16 %v360_v5, %v359_v3  ;;  %v4310_v12 = vpack.c.bf16 %v346_v7, %v345_v6  ;;  %v395_v19 = vld [vmem:[%s5362_s8 + $0x480] sm:$0xff] }
  0x68   : > { %4323 = vmatprep.subr.bf16.mxu1 %v4322_v13  ;;  %1643 = vmatprep.mubr.f32.mxu1 %v1129_v50  ;;  %v329_v13 = vld [vmem:[%s5362_s8 + $0x270] sm:$0xff]  ;;  %v4342_v17 = vpack.c.bf16 %v378_v9, %v377_v8  ;;  %v362_v18 = vld [vmem:[%s5362_s8 + $0x378] sm:$0xff]  ;;  %v379_v24 = vld [vmem:[%s5362_s8 + $0x400] sm:$0xff] }
  0x69   : > { %v4312_v23 = vpack.c.bf16 %v330_v15, %v329_v13  ;;  %v4344_v25 = vpack.c.bf16 %v362_v18, %v361_v16  ;;  %v380_v27 = vld [vmem:[%s5362_s8 + $0x408] sm:$0xff]  ;;  %v411_v28 = vld [vmem:[%s5362_s8 + $0x500] sm:$0xff]  ;;  %v397_v31 = vld [vmem:[%s5362_s8 + $0x490] sm:$0xff] }
  0x6a   : > { %4293 = vmatpush3.bf16.msra.mxu0 %v4292_v20  ;;  %v396_v20 = vld [vmem:[%s5362_s8 + $0x488] sm:$0xff]  ;;  %v398_v32 = vld [vmem:[%s5362_s8 + $0x498] sm:$0xff]  ;;  %v381_v40 = vld [vmem:[%s5362_s8 + $0x410] sm:$0xff] }
  0x6b   : > { %4325 = vmatpush3.bf16.msra.mxu1 %v4324_v21  ;;  %4295 = vmatprep.subr.bf16.mxu0 %v4294_v22  ;;  %v427_v21 = vld [vmem:[%s5362_s8 + $0x580] sm:$0xff]  ;;  %v428_v22 = vld [vmem:[%s5362_s8 + $0x588] sm:$0xff]  ;;  %v430_v35 = vld [vmem:[%s5362_s8 + $0x598] sm:$0xff]  ;;  %v4350_v39 = vpack.c.bf16 %v398_v32, %v397_v31 }
  0x6c   : > { %4327 = vmatprep.subr.bf16.mxu1 %v4326_v26  ;;  %v4346_v26 = vpack.c.bf16 %v396_v20, %v395_v19  ;;  %v412_v29 = vld [vmem:[%s5362_s8 + $0x508] sm:$0xff]  ;;  %v4378_v30 = vpack.c.bf16 %v428_v22, %v427_v21  ;;  %v413_v42 = vld [vmem:[%s5362_s8 + $0x510] sm:$0xff]  ;;  %v414_v47 = vld [vmem:[%s5362_s8 + $0x518] sm:$0xff] }
  0x6d   : > { %v240_v38 = vld [vmem:[%s5372_s6 + $0x10] sm:$0xff]  ;;  %v399_v48 = vld [vmem:[%s5362_s8 + $0x4a0] sm:$0xff]  ;;  %v386_v5 = vld [vmem:[%s5362_s8 + $0x438] sm:$0xff] }
  0x6e   : > { %4297 = vmatpush3.bf16.msra.mxu0 %v4296_v33  ;;  %v429_v33 = vld [vmem:[%s5362_s8 + $0x590] sm:$0xff]  ;;  %v5536_v43 = vrot.slane %v240_v38, %v5425_v14  ;;  %v1130_v44 = vcombine.high %v240_v38, %v240_v38  ;;  %v431_v50 = vld [vmem:[%s5362_s8 + $0x5a0] sm:$0xff]  ;;  %v384_v57 = vld [vmem:[%s5362_s8 + $0x428] sm:$0xff] }
  0x6f   : > { %4329 = vmatpush3.bf16.msra.mxu1 %v4328_v36  ;;  %4299 = vmatprep.subr.bf16.mxu0 %v4298_v37  ;;  %v4348_v36 = vpack.c.bf16 %v380_v27, %v379_v24  ;;  %v4380_v37 = vpack.c.bf16 %v412_v29, %v411_v28  ;;  %v4382_v45 = vpack.c.bf16 %v430_v35, %v429_v33  ;;  %v415_v58 = vld [vmem:[%s5362_s8 + $0x520] sm:$0xff]  ;;  %v416_v61 = vld [vmem:[%s5362_s8 + $0x528] sm:$0xff]  ;;  %v417_v6 = vld [vmem:[%s5362_s8 + $0x530] sm:$0xff] }
  0x70   : > { %4331 = vmatprep.subr.bf16.mxu1 %v4330_v41  ;;  %v382_v41 = vld [vmem:[%s5362_s8 + $0x418] sm:$0xff]  ;;  %v5547_v53 = vrot.slane %v1130_v44, %v5425_v14  ;;  %v4388_v2 = vpack.c.bf16 %v416_v61, %v415_v58  ;;  %v403_v9 = vld [vmem:[%s5362_s8 + $0x4c0] sm:$0xff]  ;;  %v388_v18 = vld [vmem:[%s5362_s8 + $0x448] sm:$0xff] }
  0x71   : > { %v4352_v54 = vpack.c.bf16 %v382_v41, %v381_v40  ;;  %v418_v8 = vld [vmem:[%s5362_s8 + $0x538] sm:$0xff]  ;;  %v419_v19 = vld [vmem:[%s5362_s8 + $0x540] sm:$0xff]  ;;  %v420_v21 = vld [vmem:[%s5362_s8 + $0x548] sm:$0xff] }
  0x72   : > { %4301 = vmatpush3.bf16.msra.mxu0 %v4300_v49  ;;  %v400_v49 = vld [vmem:[%s5362_s8 + $0x4a8] sm:$0xff]  ;;  %v1146_v59 = vcombine.high %v5547_v53, %v5547_v53  ;;  %v4392_v15 = vpack.c.bf16 %v418_v8, %v417_v6  ;;  %v405_v22 = vld [vmem:[%s5362_s8 + $0x4d0] sm:$0xff]  ;;  %v4396_v27 = vpack.c.bf16 %v420_v21, %v419_v19  ;;  %v422_v33 = vld [vmem:[%s5362_s8 + $0x558] sm:$0xff] }
  0x73   : > { %4333 = vmatpush3.bf16.msra.mxu1 %v4332_v51  ;;  %4303 = vmatprep.subr.bf16.mxu0 %v4302_v52  ;;  %v432_v51 = vld [vmem:[%s5362_s8 + $0x5a8] sm:$0xff]  ;;  %v1145_v52 = vcombine.high %v5536_v43, %v5536_v43  ;;  %v4354_v55 = vpack.c.bf16 %v400_v49, %v399_v48  ;;  %v437_v24 = vld [vmem:[%s5362_s8 + $0x5d0] sm:$0xff]  ;;  %v407_v35 = vld [vmem:[%s5362_s8 + $0x4e0] sm:$0xff] }
  0x74   : > { %4335 = vmatprep.subr.bf16.mxu1 %v4334_v56  ;;  %v383_v56 = vld [vmem:[%s5362_s8 + $0x420] sm:$0xff]  ;;  %v4386_v60 = vpack.c.bf16 %v432_v51, %v431_v50  ;;  %v389_v29 = vld [vmem:[%s5362_s8 + $0x450] sm:$0xff]  ;;  %v440_v38 = vld [vmem:[%s5362_s8 + $0x5e8] sm:$0xff] }
  0x75   : > { %v4356_v1 = vpack.c.bf16 %v384_v57, %v383_v56  ;;  %v421_v31 = vld [vmem:[%s5362_s8 + $0x550] sm:$0xff]  ;;  %v392_v44 = vld [vmem:[%s5362_s8 + $0x468] sm:$0xff]  ;;  %v410_v50 = vld [vmem:[%s5362_s8 + $0x4f8] sm:$0xff] }
  0x76   : > { %4305 = vmatpush3.bf16.msra.mxu0 %v4304_v62  ;;  %v402_v62 = vld [vmem:[%s5362_s8 + $0x4b8] sm:$0xff]  ;;  %v4400_v40 = vpack.c.bf16 %v422_v33, %v421_v31  ;;  %v424_v48 = vld [vmem:[%s5362_s8 + $0x568] sm:$0xff]  ;;  %v409_v49 = vld [vmem:[%s5362_s8 + $0x4f0] sm:$0xff] }
  0x77   : > { %4337 = vmatpush3.bf16.msra.mxu1 %v4336_v63  ;;  %4307 = vmatprep.subr.bf16.mxu0 %v4306_v0  ;;  %v433_v63 = vld [vmem:[%s5362_s8 + $0x5b0] sm:$0xff]  ;;  %v434_v0 = vld [vmem:[%s5362_s8 + $0x5b8] sm:$0xff]  ;;  %v4374_v56 = vpack.c.bf16 %v410_v50, %v409_v49  ;;  %v444_v6 = vld [vmem:[%s5362_s8 + $0x608] sm:$0xff] }
  0x78   : > { %4339 = vmatprep.subr.bf16.mxu1 %v4338_v4  ;;  %v385_v4 = vld [vmem:[%s5362_s8 + $0x430] sm:$0xff]  ;;  %v4390_v7 = vpack.c.bf16 %v434_v0, %v433_v63  ;;  %v394_v58 = vld [vmem:[%s5362_s8 + $0x478] sm:$0xff]  ;;  %v491_v63 = vld [vmem:[%s5362_s8 + $0x780] sm:$0xff] }
  0x79   : > { %v4360_v13 = vpack.c.bf16 %v386_v5, %v385_v4  ;;  %v441_v51 = vld [vmem:[%s5362_s8 + $0x5f0] sm:$0xff]  ;;  %v426_v61 = vld [vmem:[%s5362_s8 + $0x578] sm:$0xff]  ;;  %v492_v0 = vld [vmem:[%s5362_s8 + $0x788] sm:$0xff] }
  0x7a   : > { %4309 = vmatpush3.bf16.msra.mxu0 %v4308_v10  ;;  %v404_v10 = vld [vmem:[%s5362_s8 + $0x4c8] sm:$0xff]  ;;  %v393_v57 = vld [vmem:[%s5362_s8 + $0x470] sm:$0xff]  ;;  %v443_v5 = vld [vmem:[%s5362_s8 + $0x600] sm:$0xff]  ;;  %v4442_v8 = vpack.c.bf16 %v492_v0, %v491_v63 }
  0x7b   : > { %4341 = vmatpush3.bf16.msra.mxu1 %v4340_v11  ;;  %4311 = vmatprep.subr.bf16.mxu0 %v4310_v12  ;;  %v435_v11 = vld [vmem:[%s5362_s8 + $0x5c0] sm:$0xff]  ;;  %v436_v12 = vld [vmem:[%s5362_s8 + $0x5c8] sm:$0xff]  ;;  %v4362_v16 = vpack.c.bf16 %v404_v10, %v403_v9  ;;  %v461_v10 = vld [vmem:[%s5362_s8 + $0x690] sm:$0xff] }
  0x7c   : > { %4343 = vmatprep.subr.bf16.mxu1 %v4342_v17  ;;  %v387_v17 = vld [vmem:[%s5362_s8 + $0x440] sm:$0xff]  ;;  %v4394_v20 = vpack.c.bf16 %v436_v12, %v435_v11  ;;  %v476_v9 = vld [vmem:[%s5362_s8 + $0x708] sm:$0xff]  ;;  %v462_v11 = vld [vmem:[%s5362_s8 + $0x698] sm:$0xff] }
  0x7d   : > { %v4414_v19 = vpack.c.bf16 %v462_v11, %v461_v10  ;;  %v446_v21 = vld [vmem:[%s5362_s8 + $0x618] sm:$0xff]  ;;  %v481_v49 = vld [vmem:[%s5362_s8 + $0x730] sm:$0xff]  ;;  %v471_v11 = vld [vmem:[%s5362_s8 + $0x6e0] sm:$0xff] }
  0x7e   : > { %4313 = vmatpush3.bf16.msra.mxu0 %v4312_v23  ;;  %v406_v23 = vld [vmem:[%s5362_s8 + $0x4d8] sm:$0xff]  ;;  %v469_v63 = vld [vmem:[%s5362_s8 + $0x6d0] sm:$0xff] }
  0x7f   : > { %4345 = vmatpush3.bf16.msra.mxu1 %v4344_v25  ;;  %4347 = vmatprep.subr.bf16.mxu0 %v4346_v26  ;;  %v438_v25 = vld [vmem:[%s5362_s8 + $0x5d8] sm:$0xff]  ;;  %v4364_v26 = vpack.c.bf16 %v388_v18, %v387_v17  ;;  %v4366_v28 = vpack.c.bf16 %v406_v23, %v405_v22  ;;  %v4412_v17 = vpack.c.bf16 %v444_v6, %v443_v5  ;;  %v477_v22 = vld [vmem:[%s5362_s8 + $0x710] sm:$0xff] }
  0x80   : > { %4379 = vmatprep.subr.bf16.mxu1 %v4378_v30  ;;  %v390_v30 = vld [vmem:[%s5362_s8 + $0x458] sm:$0xff]  ;;  %v4398_v32 = vpack.c.bf16 %v438_v25, %v437_v24  ;;  %v463_v25 = vld [vmem:[%s5362_s8 + $0x6a0] sm:$0xff]  ;;  %v453_v6 = vld [vmem:[%s5362_s8 + $0x650] sm:$0xff] }
  0x81   : > { %1574 = vmatmul.mubr.f32.vlgmr.msra.gmra.mrb[2].mxu0 %v5482_v34  ;;  %v4384_v34 = vpack.c.bf16 %v414_v47, %v413_v42  ;;  %v391_v42 = vld [vmem:[%s5362_s8 + $0x460] sm:$0xff]  ;;  %v478_v24 = vld [vmem:[%s5362_s8 + $0x718] sm:$0xff] }
  0x82   : > { %4349 = vmatpush3.bf16.msra.mxu0 %v4348_v36  ;;  %1644 = vmatmul.mubr.f32.vlgmr.msra.gmra.mrb[2].mxu1 %v5493_v46  ;;  %v401_v46 = vld [vmem:[%s5362_s8 + $0x4b0] sm:$0xff]  ;;  %v408_v36 = vld [vmem:[%s5362_s8 + $0x4e8] sm:$0xff]  ;;  %v470_v0 = vld [vmem:[%s5362_s8 + $0x6d8] sm:$0xff] }
  0x83   : > { %4381 = vmatpush3.bf16.msra.mxu1 %v4380_v37  ;;  %4351 = vmatprep.subr.bf16.mxu0 %v4350_v39  ;;  %v4358_v3 = vpack.c.bf16 %v402_v62, %v401_v46  ;;  %v439_v37 = vld [vmem:[%s5362_s8 + $0x5e0] sm:$0xff]  ;;  %v4368_v39 = vpack.c.bf16 %v390_v30, %v389_v29  ;;  %v4370_v41 = vpack.c.bf16 %v408_v36, %v407_v35  ;;  %v460_v62 = vld [vmem:[%s5362_s8 + $0x688] sm:$0xff]  ;;  %v486_v10 = vld [vmem:[%s5362_s8 + $0x758] sm:$0xff] }
  0x84   : > { %4383 = vmatprep.subr.bf16.mxu1 %v4382_v45  ;;  %1713 = vmatprep.mubr.f32.mxu0 %v1145_v52  ;;  %v423_v45 = vld [vmem:[%s5362_s8 + $0x560] sm:$0xff]  ;;  %v4402_v47 = vpack.c.bf16 %v440_v38, %v439_v37  ;;  %v442_v52 = vld [vmem:[%s5362_s8 + $0x5f8] sm:$0xff]  ;;  %v496_v29 = vld [vmem:[%s5362_s8 + $0x7a8] sm:$0xff]  ;;  %v4430_v5 = vpack.c.bf16 %v470_v0, %v469_v63 }
  0x85   : > { %1783 = vmatprep.mubr.f32.mxu1 %v1146_v59  ;;  %v425_v59 = vld [vmem:[%s5362_s8 + $0x570] sm:$0xff]  ;;  %v459_v46 = vld [vmem:[%s5362_s8 + $0x680] sm:$0xff]  ;;  %v480_v38 = vld [vmem:[%s5362_s8 + $0x728] sm:$0xff] }
  0x86   : > { %4353 = vmatpush3.bf16.msra.mxu0 %v4352_v54  ;;  %v4372_v54 = vpack.c.bf16 %v392_v44, %v391_v42  ;;  %v4410_v4 = vpack.c.bf16 %v460_v62, %v459_v46  ;;  %v447_v35 = vld [vmem:[%s5362_s8 + $0x620] sm:$0xff]  ;;  %v484_v62 = vld [vmem:[%s5362_s8 + $0x748] sm:$0xff]  ;;  %v541_v63 = vld [vmem:[%s5362_s8 + $0x910] sm:$0xff] }
  0x87   : > { %4385 = vmatpush3.bf16.msra.mxu1 %v4384_v34  ;;  %4355 = vmatprep.subr.bf16.mxu0 %v4354_v55  ;;  %v241_v34 = vld [vmem:[%s5372_s6 + $0x18] sm:$0xff]  ;;  %v4404_v55 = vpack.c.bf16 %v424_v48, %v423_v45  ;;  %v479_v36 = vld [vmem:[%s5362_s8 + $0x720] sm:$0xff] }
  0x88   : > { %4387 = vmatprep.subr.bf16.mxu1 %v4386_v60  ;;  %v4406_v60 = vpack.c.bf16 %v442_v52, %v441_v51  ;;  %v5608_v12 = vrot.slane %v241_v34, %v5425_v14  ;;  %v4452_v44 = vpack.c.bf16 %v480_v38, %v479_v36  ;;  %v450_v48 = vld [vmem:[%s5362_s8 + $0x638] sm:$0xff]  ;;  %v467_v52 = vld [vmem:[%s5362_s8 + $0x6c0] sm:$0xff]  ;;  %v489_v36 = vld [vmem:[%s5362_s8 + $0x770] sm:$0xff] }
  0x89   : > { %v482_v51 = vld [vmem:[%s5362_s8 + $0x738] sm:$0xff] }
  0x8a   : > { %4357 = vmatpush3.bf16.msra.mxu0 %v4356_v1  ;;  %v1147_v1 = vcombine.high %v241_v34, %v241_v34  ;;  %v499_v34 = vld [vmem:[%s5362_s8 + $0x7c0] sm:$0xff]  ;;  %v490_v38 = vld [vmem:[%s5362_s8 + $0x778] sm:$0xff] }
  0x8b   : > { %4389 = vmatpush3.bf16.msra.mxu1 %v4388_v2  ;;  %4359 = vmatprep.subr.bf16.mxu0 %v4358_v3  ;;  %v4376_v2 = vpack.c.bf16 %v394_v58, %v393_v57  ;;  %v4408_v3 = vpack.c.bf16 %v426_v61, %v425_v59  ;;  %v4456_v57 = vpack.c.bf16 %v482_v51, %v481_v49  ;;  %v451_v59 = vld [vmem:[%s5362_s8 + $0x640] sm:$0xff]  ;;  %v508_v49 = vld [vmem:[%s5362_s8 + $0x808] sm:$0xff] }
  0x8c   : > { %4391 = vmatprep.subr.bf16.mxu1 %v4390_v7  ;;  %v475_v7 = vld [vmem:[%s5362_s8 + $0x700] sm:$0xff] }
  0x8d   : > { %v4444_v18 = vpack.c.bf16 %v476_v9, %v475_v7  ;;  %v483_v61 = vld [vmem:[%s5362_s8 + $0x740] sm:$0xff]  ;;  %v454_v7 = vld [vmem:[%s5362_s8 + $0x658] sm:$0xff] }
  0x8e   : > { %4361 = vmatpush3.bf16.msra.mxu0 %v4360_v13  ;;  %v493_v13 = vld [vmem:[%s5362_s8 + $0x790] sm:$0xff] }
  0x8f   : > { %4393 = vmatpush3.bf16.msra.mxu1 %v4392_v15  ;;  %4363 = vmatprep.subr.bf16.mxu0 %v4362_v16  ;;  %v494_v15 = vld [vmem:[%s5362_s8 + $0x798] sm:$0xff]  ;;  %v5613_v16 = vrot.slane %v1147_v1, %v5425_v14  ;;  %v501_v1 = vld [vmem:[%s5362_s8 + $0x7d0] sm:$0xff] }
  0x90   : > { %4395 = vmatprep.subr.bf16.mxu1 %v4394_v20  ;;  %v445_v20 = vld [vmem:[%s5362_s8 + $0x610] sm:$0xff]  ;;  %v4446_v23 = vpack.c.bf16 %v494_v15, %v493_v13  ;;  %v472_v13 = vld [vmem:[%s5362_s8 + $0x6e8] sm:$0xff]  ;;  %v503_v15 = vld [vmem:[%s5362_s8 + $0x7e0] sm:$0xff] }
  0x91   : > { %v1163_v30 = vcombine.high %v5613_v16, %v5613_v16  ;;  %v4416_v31 = vpack.c.bf16 %v446_v21, %v445_v20  ;;  %v4434_v20 = vpack.c.bf16 %v472_v13, %v471_v11  ;;  %v455_v21 = vld [vmem:[%s5362_s8 + $0x660] sm:$0xff] }
  0x92   : > { %4365 = vmatpush3.bf16.msra.mxu0 %v4364_v26  ;;  %v464_v26 = vld [vmem:[%s5362_s8 + $0x6a8] sm:$0xff]  ;;  %v511_v11 = vld [vmem:[%s5362_s8 + $0x820] sm:$0xff] }
  0x93   : > { %4397 = vmatpush3.bf16.msra.mxu1 %v4396_v27  ;;  %4367 = vmatprep.subr.bf16.mxu0 %v4366_v28  ;;  %v1162_v27 = vcombine.high %v5608_v12, %v5608_v12  ;;  %v495_v28 = vld [vmem:[%s5362_s8 + $0x7a0] sm:$0xff]  ;;  %v4418_v33 = vpack.c.bf16 %v464_v26, %v463_v25  ;;  %v488_v25 = vld [vmem:[%s5362_s8 + $0x768] sm:$0xff]  ;;  %v473_v26 = vld [vmem:[%s5362_s8 + $0x6f0] sm:$0xff] }
  0x94   : > { %4399 = vmatprep.subr.bf16.mxu1 %v4398_v32  ;;  %v4448_v32 = vpack.c.bf16 %v478_v24, %v477_v22  ;;  %v4450_v37 = vpack.c.bf16 %v496_v29, %v495_v28  ;;  %v456_v22 = vld [vmem:[%s5362_s8 + $0x668] sm:$0xff]  ;;  %v505_v28 = vld [vmem:[%s5362_s8 + $0x7f0] sm:$0xff]  ;;  %v506_v29 = vld [vmem:[%s5362_s8 + $0x7f8] sm:$0xff] }
  0x95   : > { %v543_v13 = vld [vmem:[%s5362_s8 + $0x920] sm:$0xff] }
  0x96   : > { %4369 = vmatpush3.bf16.msra.mxu0 %v4368_v39  ;;  %v465_v39 = vld [vmem:[%s5362_s8 + $0x6b0] sm:$0xff] }
  0x97   : > { %4401 = vmatpush3.bf16.msra.mxu1 %v4400_v40  ;;  %4371 = vmatprep.subr.bf16.mxu0 %v4370_v41  ;;  %v466_v40 = vld [vmem:[%s5362_s8 + $0x6b8] sm:$0xff] }
  0x98   : > { %4403 = vmatprep.subr.bf16.mxu1 %v4402_v47  ;;  %v498_v41 = vld [vmem:[%s5362_s8 + $0x7b8] sm:$0xff]  ;;  %v4422_v45 = vpack.c.bf16 %v466_v40, %v465_v39  ;;  %v449_v47 = vld [vmem:[%s5362_s8 + $0x630] sm:$0xff]  ;;  %v523_v39 = vld [vmem:[%s5362_s8 + $0x880] sm:$0xff] }
  0x99   : > { %v524_v40 = vld [vmem:[%s5362_s8 + $0x888] sm:$0xff] }
  0x9a   : > { %4373 = vmatpush3.bf16.msra.mxu0 %v4372_v54  ;;  %v468_v54 = vld [vmem:[%s5362_s8 + $0x6c8] sm:$0xff] }
  0x9b   : > { %4405 = vmatpush3.bf16.msra.mxu1 %v4404_v55  ;;  %4375 = vmatprep.subr.bf16.mxu0 %v4374_v56  ;;  %v500_v55 = vld [vmem:[%s5362_s8 + $0x7c8] sm:$0xff]  ;;  %v4424_v56 = vpack.c.bf16 %v450_v48, %v449_v47  ;;  %v4426_v58 = vpack.c.bf16 %v468_v54, %v467_v52  ;;  %v4474_v47 = vpack.c.bf16 %v524_v40, %v523_v39  ;;  %v507_v48 = vld [vmem:[%s5362_s8 + $0x800] sm:$0xff]  ;;  %v525_v54 = vld [vmem:[%s5362_s8 + $0x890] sm:$0xff] }
  0x9c   : > { %4407 = vmatprep.subr.bf16.mxu1 %v4406_v60  ;;  %v452_v60 = vld [vmem:[%s5362_s8 + $0x648] sm:$0xff]  ;;  %v4458_v46 = vpack.c.bf16 %v500_v55, %v499_v34  ;;  %v526_v34 = vld [vmem:[%s5362_s8 + $0x898] sm:$0xff] }
  0x9d   : > { %v540_v52 = vld [vmem:[%s5362_s8 + $0x908] sm:$0xff] }
  0x9e   : > { %4377 = vmatpush3.bf16.msra.mxu0 %v4376_v2  ;;  %v502_v2 = vld [vmem:[%s5362_s8 + $0x7d8] sm:$0xff]  ;;  %v548_v40 = vld [vmem:[%s5362_s8 + $0x948] sm:$0xff] }
  0x9f   : > { %4409 = vmatpush3.bf16.msra.mxu1 %v4408_v3  ;;  %4411 = vmatprep.subr.bf16.mxu0 %v4410_v4  ;;  %v4428_v3 = vpack.c.bf16 %v452_v60, %v451_v59  ;;  %v4460_v4 = vpack.c.bf16 %v484_v62, %v483_v61  ;;  %v4462_v9 = vpack.c.bf16 %v502_v2, %v501_v1  ;;  %v510_v62 = vld [vmem:[%s5362_s8 + $0x818] sm:$0xff]  ;;  %v527_v2 = vld [vmem:[%s5362_s8 + $0x8a0] sm:$0xff] }
  0xa0   : > { %4443 = vmatprep.subr.bf16.mxu1 %v4442_v8  ;;  %v485_v8 = vld [vmem:[%s5362_s8 + $0x750] sm:$0xff]  ;;  %v4476_v59 = vpack.c.bf16 %v508_v49, %v507_v48  ;;  %v4478_v61 = vpack.c.bf16 %v526_v34, %v525_v54  ;;  %v542_v1 = vld [vmem:[%s5362_s8 + $0x918] sm:$0xff]  ;;  %v535_v34 = vld [vmem:[%s5362_s8 + $0x8e0] sm:$0xff] }
  0xa1   : > { %1714 = vmatmul.mubr.f32.vlgmr.msra.gmra.mrb[4].mxu0 %v5536_v43  ;;  %v448_v43 = vld [vmem:[%s5362_s8 + $0x628] sm:$0xff]  ;;  %v517_v49 = vld [vmem:[%s5362_s8 + $0x850] sm:$0xff]  ;;  %v550_v54 = vld [vmem:[%s5362_s8 + $0x958] sm:$0xff] }
  0xa2   : > { %4413 = vmatpush3.bf16.msra.mxu0 %v4412_v17  ;;  %1784 = vmatmul.mubr.f32.vlgmr.msra.gmra.mrb[4].mxu1 %v5547_v53  ;;  %v497_v53 = vld [vmem:[%s5362_s8 + $0x7b0] sm:$0xff]  ;;  %v4420_v42 = vpack.c.bf16 %v448_v43, %v447_v35  ;;  %v504_v17 = vld [vmem:[%s5362_s8 + $0x7e8] sm:$0xff]  ;;  %v458_v43 = vld [vmem:[%s5362_s8 + $0x678] sm:$0xff] }
  0xa3   : > { %4445 = vmatpush3.bf16.msra.mxu1 %v4444_v18  ;;  %4415 = vmatprep.subr.bf16.mxu0 %v4414_v19  ;;  %v4454_v50 = vpack.c.bf16 %v498_v41, %v497_v53  ;;  %v4432_v18 = vpack.c.bf16 %v454_v7, %v453_v6  ;;  %v4464_v19 = vpack.c.bf16 %v486_v10, %v485_v8  ;;  %v457_v35 = vld [vmem:[%s5362_s8 + $0x670] sm:$0xff]  ;;  %v555_v53 = vld [vmem:[%s5362_s8 + $0x980] sm:$0xff]  ;;  %v556_v41 = vld [vmem:[%s5362_s8 + $0x988] sm:$0xff] }
  0xa4   : > { %4447 = vmatprep.subr.bf16.mxu1 %v4446_v23  ;;  %1853 = vmatprep.mubr.f32.mxu0 %v1162_v27  ;;  %v487_v23 = vld [vmem:[%s5362_s8 + $0x760] sm:$0xff]  ;;  %v4466_v24 = vpack.c.bf16 %v504_v17, %v503_v15  ;;  %v474_v27 = vld [vmem:[%s5362_s8 + $0x6f8] sm:$0xff]  ;;  %v4506_v51 = vpack.c.bf16 %v556_v41, %v555_v53  ;;  %v560_v6 = vld [vmem:[%s5362_s8 + $0x9a8] sm:$0xff] }
  0xa5   : > { %1923 = vmatprep.mubr.f32.mxu1 %v1163_v30  ;;  %v4436_v30 = vpack.c.bf16 %v456_v22, %v455_v21  ;;  %v544_v17 = vld [vmem:[%s5362_s8 + $0x928] sm:$0xff]  ;;  %v533_v53 = vld [vmem:[%s5362_s8 + $0x8d0] sm:$0xff]  ;;  %v534_v41 = vld [vmem:[%s5362_s8 + $0x8d8] sm:$0xff] }
  0xa6   : > { %4417 = vmatpush3.bf16.msra.mxu0 %v4416_v31  ;;  %v242_v31 = vld [vmem:[%s5372_s6 + $0x20] sm:$0xff]  ;;  %v4516_v22 = vpack.c.bf16 %v544_v17, %v543_v13  ;;  %v4494_v48 = vpack.c.bf16 %v534_v41, %v533_v53  ;;  %v553_v13 = vld [vmem:[%s5362_s8 + $0x970] sm:$0xff] }
  0xa7   : > { %4449 = vmatpush3.bf16.msra.mxu1 %v4448_v32  ;;  %4419 = vmatprep.subr.bf16.mxu0 %v4418_v33  ;;  %v4468_v32 = vpack.c.bf16 %v488_v25, %v487_v23  ;;  %v4438_v33 = vpack.c.bf16 %v474_v27, %v473_v26  ;;  %v5685_v55 = vrot.slane %v242_v31, %v5425_v14  ;;  %v514_v25 = vld [vmem:[%s5362_s8 + $0x838] sm:$0xff]  ;;  %v545_v26 = vld [vmem:[%s5362_s8 + $0x930] sm:$0xff] }
  0xa8   : > { %4451 = vmatprep.subr.bf16.mxu1 %v4450_v37  ;;  %v4470_v37 = vpack.c.bf16 %v506_v29, %v505_v28  ;;  %v546_v28 = vld [vmem:[%s5362_s8 + $0x938] sm:$0xff]  ;;  %v531_v29 = vld [vmem:[%s5362_s8 + $0x8c0] sm:$0xff]  ;;  %v605_v53 = vld [vmem:[%s5362_s8 + $0xb10] sm:$0xff] }
  0xa9   : > { %v554_v17 = vld [vmem:[%s5362_s8 + $0x978] sm:$0xff] }
  0xaa   : > { %4421 = vmatpush3.bf16.msra.mxu0 %v4420_v42  ;;  %v1164_v42 = vcombine.high %v242_v31, %v242_v31  ;;  %v563_v31 = vld [vmem:[%s5362_s8 + $0x9c0] sm:$0xff] }
  0xab   : > { %4453 = vmatpush3.bf16.msra.mxu1 %v4452_v44  ;;  %4423 = vmatprep.subr.bf16.mxu0 %v4422_v45  ;;  %v4440_v44 = vpack.c.bf16 %v458_v43, %v457_v35  ;;  %v4472_v45 = vpack.c.bf16 %v490_v38, %v489_v36  ;;  %v4520_v35 = vpack.c.bf16 %v546_v28, %v545_v26  ;;  %v515_v36 = vld [vmem:[%s5362_s8 + $0x840] sm:$0xff]  ;;  %v572_v26 = vld [vmem:[%s5362_s8 + $0xa08] sm:$0xff] }
  0xac   : > { %4455 = vmatprep.subr.bf16.mxu1 %v4454_v50  ;;  %v539_v50 = vld [vmem:[%s5362_s8 + $0x900] sm:$0xff] }
  0xad   : > { %v4508_v60 = vpack.c.bf16 %v540_v52, %v539_v50  ;;  %v547_v38 = vld [vmem:[%s5362_s8 + $0x940] sm:$0xff]  ;;  %v518_v50 = vld [vmem:[%s5362_s8 + $0x858] sm:$0xff] }
  0xae   : > { %4425 = vmatpush3.bf16.msra.mxu0 %v4424_v56  ;;  %v557_v56 = vld [vmem:[%s5362_s8 + $0x990] sm:$0xff] }
  0xaf   : > { %4457 = vmatpush3.bf16.msra.mxu1 %v4456_v57  ;;  %4427 = vmatprep.subr.bf16.mxu0 %v4426_v58  ;;  %v558_v57 = vld [vmem:[%s5362_s8 + $0x998] sm:$0xff]  ;;  %v5690_v58 = vrot.slane %v1164_v42, %v5425_v14  ;;  %v565_v42 = vld [vmem:[%s5362_s8 + $0x9d0] sm:$0xff] }
  0xb0   : > { %4459 = vmatprep.subr.bf16.mxu1 %v4458_v46  ;;  %v509_v46 = vld [vmem:[%s5362_s8 + $0x810] sm:$0xff]  ;;  %v4510_v0 = vpack.c.bf16 %v558_v57, %v557_v56  ;;  %v536_v56 = vld [vmem:[%s5362_s8 + $0x8e8] sm:$0xff]  ;;  %v567_v57 = vld [vmem:[%s5362_s8 + $0x9e0] sm:$0xff] }
  0xb1   : > { %v1180_v7 = vcombine.high %v5690_v58, %v5690_v58  ;;  %v4480_v8 = vpack.c.bf16 %v510_v62, %v509_v46  ;;  %v4498_v46 = vpack.c.bf16 %v536_v56, %v535_v34  ;;  %v519_v62 = vld [vmem:[%s5362_s8 + $0x860] sm:$0xff] }
  0xb2   : > { %4429 = vmatpush3.bf16.msra.mxu0 %v4428_v3  ;;  %v528_v3 = vld [vmem:[%s5362_s8 + $0x8a8] sm:$0xff]  ;;  %v575_v34 = vld [vmem:[%s5362_s8 + $0xa20] sm:$0xff] }
  0xb3   : > { %4461 = vmatpush3.bf16.msra.mxu1 %v4460_v4  ;;  %4431 = vmatprep.subr.bf16.mxu0 %v4430_v5  ;;  %v1179_v4 = vcombine.high %v5685_v55, %v5685_v55  ;;  %v559_v5 = vld [vmem:[%s5362_s8 + $0x9a0] sm:$0xff]  ;;  %v4482_v10 = vpack.c.bf16 %v528_v3, %v527_v2  ;;  %v552_v2 = vld [vmem:[%s5362_s8 + $0x968] sm:$0xff]  ;;  %v537_v3 = vld [vmem:[%s5362_s8 + $0x8f0] sm:$0xff] }
  0xb4   : > { %4463 = vmatprep.subr.bf16.mxu1 %v4462_v9  ;;  %v4512_v9 = vpack.c.bf16 %v542_v1, %v541_v63  ;;  %v4514_v15 = vpack.c.bf16 %v560_v6, %v559_v5  ;;  %v520_v63 = vld [vmem:[%s5362_s8 + $0x868] sm:$0xff]  ;;  %v569_v5 = vld [vmem:[%s5362_s8 + $0x9f0] sm:$0xff]  ;;  %v570_v6 = vld [vmem:[%s5362_s8 + $0x9f8] sm:$0xff] }
  0xb5   : > { %v607_v56 = vld [vmem:[%s5362_s8 + $0xb20] sm:$0xff] }
  0xb6   : > { %4433 = vmatpush3.bf16.msra.mxu0 %v4432_v18  ;;  %v529_v18 = vld [vmem:[%s5362_s8 + $0x8b0] sm:$0xff] }
  0xb7   : > { %4465 = vmatpush3.bf16.msra.mxu1 %v4464_v19  ;;  %4435 = vmatprep.subr.bf16.mxu0 %v4434_v20  ;;  %v530_v19 = vld [vmem:[%s5362_s8 + $0x8b8] sm:$0xff] }
  0xb8   : > { %4467 = vmatprep.subr.bf16.mxu1 %v4466_v24  ;;  %v562_v20 = vld [vmem:[%s5362_s8 + $0x9b8] sm:$0xff]  ;;  %v4486_v23 = vpack.c.bf16 %v530_v19, %v529_v18  ;;  %v513_v24 = vld [vmem:[%s5362_s8 + $0x830] sm:$0xff]  ;;  %v587_v18 = vld [vmem:[%s5362_s8 + $0xa80] sm:$0xff] }
  0xb9   : > { %v588_v19 = vld [vmem:[%s5362_s8 + $0xa88] sm:$0xff] }
  0xba   : > { %4437 = vmatpush3.bf16.msra.mxu0 %v4436_v30  ;;  %v532_v30 = vld [vmem:[%s5362_s8 + $0x8c8] sm:$0xff] }
  0xbb   : > { %4469 = vmatpush3.bf16.msra.mxu1 %v4468_v32  ;;  %4439 = vmatprep.subr.bf16.mxu0 %v4438_v33  ;;  %v564_v32 = vld [vmem:[%s5362_s8 + $0x9c8] sm:$0xff]  ;;  %v4488_v33 = vpack.c.bf16 %v514_v25, %v513_v24  ;;  %v4490_v43 = vpack.c.bf16 %v532_v30, %v531_v29  ;;  %v4538_v24 = vpack.c.bf16 %v588_v19, %v587_v18  ;;  %v571_v25 = vld [vmem:[%s5362_s8 + $0xa00] sm:$0xff]  ;;  %v589_v30 = vld [vmem:[%s5362_s8 + $0xa90] sm:$0xff] }
  0xbc   : > { %4471 = vmatprep.subr.bf16.mxu1 %v4470_v37  ;;  %v516_v37 = vld [vmem:[%s5362_s8 + $0x848] sm:$0xff]  ;;  %v4522_v39 = vpack.c.bf16 %v564_v32, %v563_v31  ;;  %v590_v31 = vld [vmem:[%s5362_s8 + $0xa98] sm:$0xff] }
  0xbd   : > { %v604_v29 = vld [vmem:[%s5362_s8 + $0xb08] sm:$0xff] }
  0xbe   : > { %4441 = vmatpush3.bf16.msra.mxu0 %v4440_v44  ;;  %v566_v44 = vld [vmem:[%s5362_s8 + $0x9d8] sm:$0xff]  ;;  %v612_v19 = vld [vmem:[%s5362_s8 + $0xb48] sm:$0xff] }
  0xbf   : > { %4473 = vmatpush3.bf16.msra.mxu1 %v4472_v45  ;;  %4475 = vmatprep.subr.bf16.mxu0 %v4474_v47  ;;  %v4492_v45 = vpack.c.bf16 %v516_v37, %v515_v36  ;;  %v4524_v47 = vpack.c.bf16 %v548_v40, %v547_v38  ;;  %v4526_v52 = vpack.c.bf16 %v566_v44, %v565_v42  ;;  %v574_v40 = vld [vmem:[%s5362_s8 + $0xa18] sm:$0xff]  ;;  %v591_v44 = vld [vmem:[%s5362_s8 + $0xaa0] sm:$0xff] }
  0xc0   : > { %4507 = vmatprep.subr.bf16.mxu1 %v4506_v51  ;;  %v549_v51 = vld [vmem:[%s5362_s8 + $0x950] sm:$0xff]  ;;  %v4540_v36 = vpack.c.bf16 %v572_v26, %v571_v25  ;;  %v4542_v38 = vpack.c.bf16 %v590_v31, %v589_v30  ;;  %v606_v42 = vld [vmem:[%s5362_s8 + $0xb18] sm:$0xff]  ;;  %v599_v31 = vld [vmem:[%s5362_s8 + $0xae0] sm:$0xff] }
  0xc1   : > { %1854 = vmatmul.mubr.f32.vlgmr.msra.gmra.mrb[6].mxu0 %v5608_v12  ;;  %v512_v12 = vld [vmem:[%s5362_s8 + $0x828] sm:$0xff]  ;;  %v581_v26 = vld [vmem:[%s5362_s8 + $0xa50] sm:$0xff]  ;;  %v614_v30 = vld [vmem:[%s5362_s8 + $0xb58] sm:$0xff] }
  0xc2   : > { %4477 = vmatpush3.bf16.msra.mxu0 %v4476_v59  ;;  %1924 = vmatmul.mubr.f32.vlgmr.msra.gmra.mrb[6].mxu1 %v5613_v16  ;;  %v561_v16 = vld [vmem:[%s5362_s8 + $0x9b0] sm:$0xff]  ;;  %v4484_v21 = vpack.c.bf16 %v512_v12, %v511_v11  ;;  %v568_v59 = vld [vmem:[%s5362_s8 + $0x9e8] sm:$0xff]  ;;  %v522_v12 = vld [vmem:[%s5362_s8 + $0x878] sm:$0xff] }
  0xc3   : > { %4509 = vmatpush3.bf16.msra.mxu1 %v4508_v60  ;;  %4479 = vmatprep.subr.bf16.mxu0 %v4478_v61  ;;  %v4518_v27 = vpack.c.bf16 %v562_v20, %v561_v16  ;;  %v4496_v60 = vpack.c.bf16 %v518_v50, %v517_v49  ;;  %v4528_v61 = vpack.c.bf16 %v550_v54, %v549_v51  ;;  %v521_v11 = vld [vmem:[%s5362_s8 + $0x870] sm:$0xff]  ;;  %v619_v16 = vld [vmem:[%s5362_s8 + $0xb80] sm:$0xff]  ;;  %v620_v20 = vld [vmem:[%s5362_s8 + $0xb88] sm:$0xff] }
  0xc4   : > { %4511 = vmatprep.subr.bf16.mxu1 %v4510_v0  ;;  %1993 = vmatprep.mubr.f32.mxu0 %v1179_v4  ;;  %v551_v0 = vld [vmem:[%s5362_s8 + $0x960] sm:$0xff]  ;;  %v4530_v1 = vpack.c.bf16 %v568_v59, %v567_v57  ;;  %v538_v4 = vld [vmem:[%s5362_s8 + $0x8f8] sm:$0xff]  ;;  %v4570_v28 = vpack.c.bf16 %v620_v20, %v619_v16  ;;  %v624_v49 = vld [vmem:[%s5362_s8 + $0xba8] sm:$0xff] }
  0xc5   : > { %2063 = vmatprep.mubr.f32.mxu1 %v1180_v7  ;;  %v4500_v7 = vpack.c.bf16 %v520_v63, %v519_v62  ;;  %v608_v59 = vld [vmem:[%s5362_s8 + $0xb28] sm:$0xff]  ;;  %v597_v16 = vld [vmem:[%s5362_s8 + $0xad0] sm:$0xff]  ;;  %v598_v20 = vld [vmem:[%s5362_s8 + $0xad8] sm:$0xff] }
  0xc6   : > { %4481 = vmatpush3.bf16.msra.mxu0 %v4480_v8  ;;  %v243_v8 = vld [vmem:[%s5372_s6 + $0x28] sm:$0xff]  ;;  %v4580_v63 = vpack.c.bf16 %v608_v59, %v607_v56  ;;  %v4558_v25 = vpack.c.bf16 %v598_v20, %v597_v16  ;;  %v617_v56 = vld [vmem:[%s5362_s8 + $0xb70] sm:$0xff]  ;;  %v618_v59 = vld [vmem:[%s5362_s8 + $0xb78] sm:$0xff] }
  0xc7   : > { %4513 = vmatpush3.bf16.msra.mxu1 %v4512_v9  ;;  %4483 = vmatprep.subr.bf16.mxu0 %v4482_v10  ;;  %v4532_v9 = vpack.c.bf16 %v552_v2, %v551_v0  ;;  %v4502_v10 = vpack.c.bf16 %v538_v4, %v537_v3  ;;  %v5762_v32 = vrot.slane %v243_v8, %v5425_v14  ;;  %v578_v2 = vld [vmem:[%s5362_s8 + $0xa38] sm:$0xff]  ;;  %v609_v3 = vld [vmem:[%s5362_s8 + $0xb30] sm:$0xff] }
  0xc8   : > { %4515 = vmatprep.subr.bf16.mxu1 %v4514_v15  ;;  %v4534_v15 = vpack.c.bf16 %v570_v6, %v569_v5  ;;  %v610_v5 = vld [vmem:[%s5362_s8 + $0xb38] sm:$0xff]  ;;  %v595_v6 = vld [vmem:[%s5362_s8 + $0xac0] sm:$0xff]  ;;  %v669_v16 = vld [vmem:[%s5362_s8 + $0xd10] sm:$0xff] }
  0xca   : > { %4485 = vmatpush3.bf16.msra.mxu0 %v4484_v21  ;;  %v1181_v21 = vcombine.high %v243_v8, %v243_v8  ;;  %v627_v8 = vld [vmem:[%s5362_s8 + $0xbc0] sm:$0xff] }
  0xcb   : > { %4517 = vmatpush3.bf16.msra.mxu1 %v4516_v22  ;;  %4487 = vmatprep.subr.bf16.mxu0 %v4486_v23  ;;  %v4504_v22 = vpack.c.bf16 %v522_v12, %v521_v11  ;;  %v4536_v23 = vpack.c.bf16 %v554_v17, %v553_v13  ;;  %v4584_v11 = vpack.c.bf16 %v610_v5, %v609_v3  ;;  %v579_v13 = vld [vmem:[%s5362_s8 + $0xa40] sm:$0xff]  ;;  %v636_v3 = vld [vmem:[%s5362_s8 + $0xc08] sm:$0xff] }
  0xcc   : > { %4519 = vmatprep.subr.bf16.mxu1 %v4518_v27  ;;  %v603_v27 = vld [vmem:[%s5362_s8 + $0xb00] sm:$0xff] }
  0xcd   : > { %v4572_v37 = vpack.c.bf16 %v604_v29, %v603_v27  ;;  %v611_v17 = vld [vmem:[%s5362_s8 + $0xb40] sm:$0xff]  ;;  %v582_v27 = vld [vmem:[%s5362_s8 + $0xa58] sm:$0xff] }
  0xce   : > { %4489 = vmatpush3.bf16.msra.mxu0 %v4488_v33  ;;  %v621_v33 = vld [vmem:[%s5362_s8 + $0xb90] sm:$0xff] }
  0xcf   : > { %4521 = vmatpush3.bf16.msra.mxu1 %v4520_v35  ;;  %4491 = vmatprep.subr.bf16.mxu0 %v4490_v43  ;;  %v622_v35 = vld [vmem:[%s5362_s8 + $0xb98] sm:$0xff]  ;;  %v5767_v43 = vrot.slane %v1181_v21, %v5425_v14  ;;  %v629_v21 = vld [vmem:[%s5362_s8 + $0xbd0] sm:$0xff] }
  0xd0   : > { %4523 = vmatprep.subr.bf16.mxu1 %v4522_v39  ;;  %v573_v39 = vld [vmem:[%s5362_s8 + $0xa10] sm:$0xff]  ;;  %v4574_v41 = vpack.c.bf16 %v622_v35, %v621_v33  ;;  %v600_v33 = vld [vmem:[%s5362_s8 + $0xae8] sm:$0xff]  ;;  %v631_v35 = vld [vmem:[%s5362_s8 + $0xbe0] sm:$0xff] }
  0xd1   : > { %v1197_v50 = vcombine.high %v5767_v43, %v5767_v43  ;;  %v4544_v51 = vpack.c.bf16 %v574_v40, %v573_v39  ;;  %v4562_v39 = vpack.c.bf16 %v600_v33, %v599_v31  ;;  %v583_v40 = vld [vmem:[%s5362_s8 + $0xa60] sm:$0xff] }
  0xd2   : > { %4493 = vmatpush3.bf16.msra.mxu0 %v4492_v45  ;;  %v592_v45 = vld [vmem:[%s5362_s8 + $0xaa8] sm:$0xff]  ;;  %v639_v31 = vld [vmem:[%s5362_s8 + $0xc20] sm:$0xff] }
  0xd3   : > { %4525 = vmatpush3.bf16.msra.mxu1 %v4524_v47  ;;  %4495 = vmatprep.subr.bf16.mxu0 %v4494_v48  ;;  %v1196_v47 = vcombine.high %v5762_v32, %v5762_v32  ;;  %v623_v48 = vld [vmem:[%s5362_s8 + $0xba0] sm:$0xff]  ;;  %v4546_v54 = vpack.c.bf16 %v592_v45, %v591_v44  ;;  %v616_v44 = vld [vmem:[%s5362_s8 + $0xb68] sm:$0xff]  ;;  %v601_v45 = vld [vmem:[%s5362_s8 + $0xaf0] sm:$0xff] }
  0xd4   : > { %4527 = vmatprep.subr.bf16.mxu1 %v4526_v52  ;;  %v4576_v52 = vpack.c.bf16 %v606_v42, %v605_v53  ;;  %v4578_v57 = vpack.c.bf16 %v624_v49, %v623_v48  ;;  %v584_v53 = vld [vmem:[%s5362_s8 + $0xa68] sm:$0xff]  ;;  %v633_v48 = vld [vmem:[%s5362_s8 + $0xbf0] sm:$0xff]  ;;  %v634_v49 = vld [vmem:[%s5362_s8 + $0xbf8] sm:$0xff] }
  0xd5   : > { %v671_v33 = vld [vmem:[%s5362_s8 + $0xd20] sm:$0xff] }
  0xd6   : > { %4497 = vmatpush3.bf16.msra.mxu0 %v4496_v60  ;;  %v593_v60 = vld [vmem:[%s5362_s8 + $0xab0] sm:$0xff] }
  0xd7   : > { %4529 = vmatpush3.bf16.msra.mxu1 %v4528_v61  ;;  %4499 = vmatprep.subr.bf16.mxu0 %v4498_v46  ;;  %v594_v61 = vld [vmem:[%s5362_s8 + $0xab8] sm:$0xff] }
  0xd8   : > { %4531 = vmatprep.subr.bf16.mxu1 %v4530_v1  ;;  %v626_v46 = vld [vmem:[%s5362_s8 + $0xbb8] sm:$0xff]  ;;  %v4550_v0 = vpack.c.bf16 %v594_v61, %v593_v60  ;;  %v577_v1 = vld [vmem:[%s5362_s8 + $0xa30] sm:$0xff]  ;;  %v651_v60 = vld [vmem:[%s5362_s8 + $0xc80] sm:$0xff] }
  0xd9   : > { %v652_v61 = vld [vmem:[%s5362_s8 + $0xc88] sm:$0xff] }
  0xda   : > { %4501 = vmatpush3.bf16.msra.mxu0 %v4500_v7  ;;  %v596_v7 = vld [vmem:[%s5362_s8 + $0xac8] sm:$0xff] }
  0xdb   : > { %4533 = vmatpush3.bf16.msra.mxu1 %v4532_v9  ;;  %4503 = vmatprep.subr.bf16.mxu0 %v4502_v10  ;;  %v628_v9 = vld [vmem:[%s5362_s8 + $0xbc8] sm:$0xff]  ;;  %v4552_v10 = vpack.c.bf16 %v578_v2, %v577_v1  ;;  %v4554_v12 = vpack.c.bf16 %v596_v7, %v595_v6  ;;  %v4602_v1 = vpack.c.bf16 %v652_v61, %v651_v60  ;;  %v635_v2 = vld [vmem:[%s5362_s8 + $0xc00] sm:$0xff]  ;;  %v653_v7 = vld [vmem:[%s5362_s8 + $0xc90] sm:$0xff] }
  0xdc   : > { %4535 = vmatprep.subr.bf16.mxu1 %v4534_v15  ;;  %v580_v15 = vld [vmem:[%s5362_s8 + $0xa48] sm:$0xff]  ;;  %v4586_v18 = vpack.c.bf16 %v628_v9, %v627_v8  ;;  %v654_v8 = vld [vmem:[%s5362_s8 + $0xc98] sm:$0xff] }
  0xdd   : > { %v668_v6 = vld [vmem:[%s5362_s8 + $0xd08] sm:$0xff] }
  0xde   : > { %4505 = vmatpush3.bf16.msra.mxu0 %v4504_v22  ;;  %v630_v22 = vld [vmem:[%s5362_s8 + $0xbd8] sm:$0xff]  ;;  %v676_v61 = vld [vmem:[%s5362_s8 + $0xd48] sm:$0xff] }
  0xdf   : > { %4537 = vmatpush3.bf16.msra.mxu1 %v4536_v23  ;;  %4539 = vmatprep.subr.bf16.mxu0 %v4538_v24  ;;  %v4556_v23 = vpack.c.bf16 %v580_v15, %v579_v13  ;;  %v4588_v24 = vpack.c.bf16 %v612_v19, %v611_v17  ;;  %v4590_v29 = vpack.c.bf16 %v630_v22, %v629_v21  ;;  %v638_v19 = vld [vmem:[%s5362_s8 + $0xc18] sm:$0xff]  ;;  %v655_v22 = vld [vmem:[%s5362_s8 + $0xca0] sm:$0xff] }
  0xe0   : > { %4571 = vmatprep.subr.bf16.mxu1 %v4570_v28  ;;  %v613_v28 = vld [vmem:[%s5362_s8 + $0xb50] sm:$0xff]  ;;  %v4604_v13 = vpack.c.bf16 %v636_v3, %v635_v2  ;;  %v4606_v17 = vpack.c.bf16 %v654_v8, %v653_v7  ;;  %v670_v21 = vld [vmem:[%s5362_s8 + $0xd18] sm:$0xff]  ;;  %v663_v8 = vld [vmem:[%s5362_s8 + $0xce0] sm:$0xff] }
  0xe1   : > { %1994 = vmatmul.mubr.f32.vlgmr.msra.gmra.mrb[8].mxu0 %v5685_v55  ;;  %v576_v55 = vld [vmem:[%s5362_s8 + $0xa28] sm:$0xff]  ;;  %v645_v3 = vld [vmem:[%s5362_s8 + $0xc50] sm:$0xff]  ;;  %v678_v7 = vld [vmem:[%s5362_s8 + $0xd58] sm:$0xff] }
  0xe2   : > { %4541 = vmatpush3.bf16.msra.mxu0 %v4540_v36  ;;  %2064 = vmatmul.mubr.f32.vlgmr.msra.gmra.mrb[8].mxu1 %v5690_v58  ;;  %v625_v58 = vld [vmem:[%s5362_s8 + $0xbb0] sm:$0xff]  ;;  %v4548_v62 = vpack.c.bf16 %v576_v55, %v575_v34  ;;  %v632_v36 = vld [vmem:[%s5362_s8 + $0xbe8] sm:$0xff]  ;;  %v586_v55 = vld [vmem:[%s5362_s8 + $0xa78] sm:$0xff] }
  0xe3   : > { %4573 = vmatpush3.bf16.msra.mxu1 %v4572_v37  ;;  %4543 = vmatprep.subr.bf16.mxu0 %v4542_v38  ;;  %v4582_v4 = vpack.c.bf16 %v626_v46, %v625_v58  ;;  %v4560_v37 = vpack.c.bf16 %v582_v27, %v581_v26  ;;  %v4592_v38 = vpack.c.bf16 %v614_v30, %v613_v28  ;;  %v585_v34 = vld [vmem:[%s5362_s8 + $0xa70] sm:$0xff]  ;;  %v683_v58 = vld [vmem:[%s5362_s8 + $0xd80] sm:$0xff]  ;;  %v684_v46 = vld [vmem:[%s5362_s8 + $0xd88] sm:$0xff] }
  0xe4   : > { %4575 = vmatprep.subr.bf16.mxu1 %v4574_v41  ;;  %2133 = vmatprep.mubr.f32.mxu0 %v1196_v47  ;;  %v615_v41 = vld [vmem:[%s5362_s8 + $0xb60] sm:$0xff]  ;;  %v4594_v42 = vpack.c.bf16 %v632_v36, %v631_v35  ;;  %v602_v47 = vld [vmem:[%s5362_s8 + $0xaf8] sm:$0xff]  ;;  %v4634_v5 = vpack.c.bf16 %v684_v46, %v683_v58  ;;  %v688_v26 = vld [vmem:[%s5362_s8 + $0xda8] sm:$0xff] }
  0xe5   : > { %2203 = vmatprep.mubr.f32.mxu1 %v1197_v50  ;;  %v4564_v50 = vpack.c.bf16 %v584_v53, %v583_v40  ;;  %v672_v36 = vld [vmem:[%s5362_s8 + $0xd28] sm:$0xff]  ;;  %v661_v58 = vld [vmem:[%s5362_s8 + $0xcd0] sm:$0xff]  ;;  %v662_v46 = vld [vmem:[%s5362_s8 + $0xcd8] sm:$0xff] }
  0xe6   : > { %4545 = vmatpush3.bf16.msra.mxu0 %v4544_v51  ;;  %v244_v51 = vld [vmem:[%s5372_s6 + $0x30] sm:$0xff]  ;;  %v4644_v53 = vpack.c.bf16 %v672_v36, %v671_v33  ;;  %v4622_v2 = vpack.c.bf16 %v662_v46, %v661_v58  ;;  %v682_v36 = vld [vmem:[%s5362_s8 + $0xd78] sm:$0xff] }
  0xe7   : > { %4577 = vmatpush3.bf16.msra.mxu1 %v4576_v52  ;;  %4547 = vmatprep.subr.bf16.mxu0 %v4546_v54  ;;  %v4596_v52 = vpack.c.bf16 %v616_v44, %v615_v41  ;;  %v4566_v54 = vpack.c.bf16 %v602_v47, %v601_v45  ;;  %v5839_v9 = vrot.slane %v244_v51, %v5425_v14  ;;  %v642_v44 = vld [vmem:[%s5362_s8 + $0xc38] sm:$0xff]  ;;  %v673_v45 = vld [vmem:[%s5362_s8 + $0xd30] sm:$0xff] }
  0xe8   : > { %4579 = vmatprep.subr.bf16.mxu1 %v4578_v57  ;;  %v4598_v57 = vpack.c.bf16 %v634_v49, %v633_v48  ;;  %v674_v48 = vld [vmem:[%s5362_s8 + $0xd38] sm:$0xff]  ;;  %v659_v49 = vld [vmem:[%s5362_s8 + $0xcc0] sm:$0xff]  ;;  %v681_v33 = vld [vmem:[%s5362_s8 + $0xd70] sm:$0xff] }
  0xe9   : > { %v733_v58 = vld [vmem:[%s5362_s8 + $0xf10] sm:$0xff] }
  0xea   : > { %4549 = vmatpush3.bf16.msra.mxu0 %v4548_v62  ;;  %v1198_v62 = vcombine.high %v244_v51, %v244_v51  ;;  %v691_v51 = vld [vmem:[%s5362_s8 + $0xdc0] sm:$0xff] }
  0xeb   : > { %4581 = vmatpush3.bf16.msra.mxu1 %v4580_v63  ;;  %4551 = vmatprep.subr.bf16.mxu0 %v4550_v0  ;;  %v4568_v63 = vpack.c.bf16 %v586_v55, %v585_v34  ;;  %v4600_v0 = vpack.c.bf16 %v618_v59, %v617_v56  ;;  %v4648_v34 = vpack.c.bf16 %v674_v48, %v673_v45  ;;  %v643_v56 = vld [vmem:[%s5362_s8 + $0xc40] sm:$0xff]  ;;  %v700_v45 = vld [vmem:[%s5362_s8 + $0xe08] sm:$0xff] }
  0xec   : > { %4583 = vmatprep.subr.bf16.mxu1 %v4582_v4  ;;  %v667_v4 = vld [vmem:[%s5362_s8 + $0xd00] sm:$0xff] }
  0xed   : > { %v4636_v15 = vpack.c.bf16 %v668_v6, %v667_v4  ;;  %v675_v59 = vld [vmem:[%s5362_s8 + $0xd40] sm:$0xff]  ;;  %v646_v4 = vld [vmem:[%s5362_s8 + $0xc58] sm:$0xff] }
  0xee   : > { %4553 = vmatpush3.bf16.msra.mxu0 %v4552_v10  ;;  %v685_v10 = vld [vmem:[%s5362_s8 + $0xd90] sm:$0xff] }
  0xef   : > { %4585 = vmatpush3.bf16.msra.mxu1 %v4584_v11  ;;  %4555 = vmatprep.subr.bf16.mxu0 %v4554_v12  ;;  %v686_v11 = vld [vmem:[%s5362_s8 + $0xd98] sm:$0xff]  ;;  %v5844_v12 = vrot.slane %v1198_v62, %v5425_v14  ;;  %v693_v62 = vld [vmem:[%s5362_s8 + $0xdd0] sm:$0xff] }
  0xf0   : > { %4587 = vmatprep.subr.bf16.mxu1 %v4586_v18  ;;  %v637_v18 = vld [vmem:[%s5362_s8 + $0xc10] sm:$0xff]  ;;  %v4638_v20 = vpack.c.bf16 %v686_v11, %v685_v10  ;;  %v664_v10 = vld [vmem:[%s5362_s8 + $0xce8] sm:$0xff]  ;;  %v695_v11 = vld [vmem:[%s5362_s8 + $0xde0] sm:$0xff] }
  0xf1   : > { %v1214_v27 = vcombine.high %v5844_v12, %v5844_v12  ;;  %v4608_v28 = vpack.c.bf16 %v638_v19, %v637_v18  ;;  %v4626_v18 = vpack.c.bf16 %v664_v10, %v663_v8  ;;  %v647_v19 = vld [vmem:[%s5362_s8 + $0xc60] sm:$0xff] }
  0xf2   : > { %4557 = vmatpush3.bf16.msra.mxu0 %v4556_v23  ;;  %v656_v23 = vld [vmem:[%s5362_s8 + $0xca8] sm:$0xff]  ;;  %v703_v8 = vld [vmem:[%s5362_s8 + $0xe20] sm:$0xff] }
  0xf3   : > { %4589 = vmatpush3.bf16.msra.mxu1 %v4588_v24  ;;  %4559 = vmatprep.subr.bf16.mxu0 %v4558_v25  ;;  %v1213_v24 = vcombine.high %v5839_v9, %v5839_v9  ;;  %v687_v25 = vld [vmem:[%s5362_s8 + $0xda0] sm:$0xff]  ;;  %v4610_v30 = vpack.c.bf16 %v656_v23, %v655_v22  ;;  %v680_v22 = vld [vmem:[%s5362_s8 + $0xd68] sm:$0xff]  ;;  %v665_v23 = vld [vmem:[%s5362_s8 + $0xcf0] sm:$0xff] }
  0xf4   : > { %4591 = vmatprep.subr.bf16.mxu1 %v4590_v29  ;;  %v4640_v29 = vpack.c.bf16 %v670_v21, %v669_v16  ;;  %v4642_v35 = vpack.c.bf16 %v688_v26, %v687_v25  ;;  %v648_v16 = vld [vmem:[%s5362_s8 + $0xc68] sm:$0xff]  ;;  %v697_v25 = vld [vmem:[%s5362_s8 + $0xdf0] sm:$0xff]  ;;  %v698_v26 = vld [vmem:[%s5362_s8 + $0xdf8] sm:$0xff] }
  0xf5   : > { %v735_v10 = vld [vmem:[%s5362_s8 + $0xf20] sm:$0xff] }
  0xf6   : > { %4561 = vmatpush3.bf16.msra.mxu0 %v4560_v37  ;;  %v657_v37 = vld [vmem:[%s5362_s8 + $0xcb0] sm:$0xff] }
  0xf7   : > { %4593 = vmatpush3.bf16.msra.mxu1 %v4592_v38  ;;  %4563 = vmatprep.subr.bf16.mxu0 %v4562_v39  ;;  %v658_v38 = vld [vmem:[%s5362_s8 + $0xcb8] sm:$0xff] }
  0xf8   : > { %4595 = vmatprep.subr.bf16.mxu1 %v4594_v42  ;;  %v690_v39 = vld [vmem:[%s5362_s8 + $0xdb8] sm:$0xff]  ;;  %v4614_v41 = vpack.c.bf16 %v658_v38, %v657_v37  ;;  %v641_v42 = vld [vmem:[%s5362_s8 + $0xc30] sm:$0xff]  ;;  %v715_v37 = vld [vmem:[%s5362_s8 + $0xe80] sm:$0xff] }
  0xf9   : > { %v716_v38 = vld [vmem:[%s5362_s8 + $0xe88] sm:$0xff] }
  0xfa   : > { %4565 = vmatpush3.bf16.msra.mxu0 %v4564_v50  ;;  %v660_v50 = vld [vmem:[%s5362_s8 + $0xcc8] sm:$0xff] }
  0xfb   : > { %4597 = vmatpush3.bf16.msra.mxu1 %v4596_v52  ;;  %4567 = vmatprep.subr.bf16.mxu0 %v4566_v54  ;;  %v692_v52 = vld [vmem:[%s5362_s8 + $0xdc8] sm:$0xff]  ;;  %v4616_v54 = vpack.c.bf16 %v642_v44, %v641_v42  ;;  %v4618_v55 = vpack.c.bf16 %v660_v50, %v659_v49  ;;  %v4666_v42 = vpack.c.bf16 %v716_v38, %v715_v37  ;;  %v699_v44 = vld [vmem:[%s5362_s8 + $0xe00] sm:$0xff]  ;;  %v717_v50 = vld [vmem:[%s5362_s8 + $0xe90] sm:$0xff] }
  0xfc   : > { %4599 = vmatprep.subr.bf16.mxu1 %v4598_v57  ;;  %v644_v57 = vld [vmem:[%s5362_s8 + $0xc48] sm:$0xff]  ;;  %v4650_v60 = vpack.c.bf16 %v692_v52, %v691_v51  ;;  %v718_v51 = vld [vmem:[%s5362_s8 + $0xe98] sm:$0xff] }
  0xfd   : > { %v732_v49 = vld [vmem:[%s5362_s8 + $0xf08] sm:$0xff] }
  0xfe   : > { %4569 = vmatpush3.bf16.msra.mxu0 %v4568_v63  ;;  %v694_v63 = vld [vmem:[%s5362_s8 + $0xdd8] sm:$0xff]  ;;  %v740_v38 = vld [vmem:[%s5362_s8 + $0xf48] sm:$0xff] }
  0xff   : > { %4601 = vmatpush3.bf16.msra.mxu1 %v4600_v0  ;;  %4603 = vmatprep.subr.bf16.mxu0 %v4602_v1  ;;  %v4620_v0 = vpack.c.bf16 %v644_v57, %v643_v56  ;;  %v4652_v1 = vpack.c.bf16 %v676_v61, %v675_v59  ;;  %v4654_v6 = vpack.c.bf16 %v694_v63, %v693_v62  ;;  %v702_v61 = vld [vmem:[%s5362_s8 + $0xe18] sm:$0xff]  ;;  %v719_v63 = vld [vmem:[%s5362_s8 + $0xea0] sm:$0xff] }
 0x100   : > { %4635 = vmatprep.subr.bf16.mxu1 %v4634_v5  ;;  %v677_v5 = vld [vmem:[%s5362_s8 + $0xd50] sm:$0xff]  ;;  %v4668_v56 = vpack.c.bf16 %v700_v45, %v699_v44  ;;  %v4670_v59 = vpack.c.bf16 %v718_v51, %v717_v50  ;;  %v734_v62 = vld [vmem:[%s5362_s8 + $0xf18] sm:$0xff]  ;;  %v727_v51 = vld [vmem:[%s5362_s8 + $0xee0] sm:$0xff] }
 0x101   : > { %2134 = vmatmul.mubr.f32.vlgmr.msra.gmra.mrb[10].mxu0 %v5762_v32  ;;  %v640_v32 = vld [vmem:[%s5362_s8 + $0xc28] sm:$0xff]  ;;  %v709_v45 = vld [vmem:[%s5362_s8 + $0xe50] sm:$0xff]  ;;  %v742_v50 = vld [vmem:[%s5362_s8 + $0xf58] sm:$0xff] }
 0x102   : > { %4605 = vmatpush3.bf16.msra.mxu0 %v4604_v13  ;;  %2204 = vmatmul.mubr.f32.vlgmr.msra.gmra.mrb[10].mxu1 %v5767_v43  ;;  %v689_v43 = vld [vmem:[%s5362_s8 + $0xdb0] sm:$0xff]  ;;  %v4612_v40 = vpack.c.bf16 %v640_v32, %v639_v31  ;;  %v696_v13 = vld [vmem:[%s5362_s8 + $0xde8] sm:$0xff]  ;;  %v650_v32 = vld [vmem:[%s5362_s8 + $0xc78] sm:$0xff] }
 0x103   : > { %4637 = vmatpush3.bf16.msra.mxu1 %v4636_v15  ;;  %4607 = vmatprep.subr.bf16.mxu0 %v4606_v17  ;;  %v4646_v47 = vpack.c.bf16 %v690_v39, %v689_v43  ;;  %v4624_v15 = vpack.c.bf16 %v646_v4, %v645_v3  ;;  %v4656_v17 = vpack.c.bf16 %v678_v7, %v677_v5  ;;  %v649_v31 = vld [vmem:[%s5362_s8 + $0xc70] sm:$0xff]  ;;  %v747_v43 = vld [vmem:[%s5362_s8 + $0xf80] sm:$0xff]  ;;  %v748_v39 = vld [vmem:[%s5362_s8 + $0xf88] sm:$0xff] }
 0x104   : > { %4639 = vmatprep.subr.bf16.mxu1 %v4638_v20  ;;  %2273 = vmatprep.mubr.f32.mxu0 %v1213_v24  ;;  %v679_v20 = vld [vmem:[%s5362_s8 + $0xd60] sm:$0xff]  ;;  %v4658_v21 = vpack.c.bf16 %v696_v13, %v695_v11  ;;  %v666_v24 = vld [vmem:[%s5362_s8 + $0xcf8] sm:$0xff]  ;;  %v4698_v48 = vpack.c.bf16 %v748_v39, %v747_v43  ;;  %v752_v3 = vld [vmem:[%s5362_s8 + $0xfa8] sm:$0xff] }
 0x105   : > { %2343 = vmatprep.mubr.f32.mxu1 %v1214_v27  ;;  %v4628_v27 = vpack.c.bf16 %v648_v16, %v647_v19  ;;  %v736_v13 = vld [vmem:[%s5362_s8 + $0xf28] sm:$0xff]  ;;  %v725_v43 = vld [vmem:[%s5362_s8 + $0xed0] sm:$0xff]  ;;  %v726_v39 = vld [vmem:[%s5362_s8 + $0xed8] sm:$0xff] }
 0x106   : > { %4609 = vmatpush3.bf16.msra.mxu0 %v4608_v28  ;;  %v245_v28 = vld [vmem:[%s5372_s6 + $0x38] sm:$0xff]  ;;  %v4708_v16 = vpack.c.bf16 %v736_v13, %v735_v10  ;;  %v4686_v44 = vpack.c.bf16 %v726_v39, %v725_v43  ;;  %v246_v10 = vld [vmem:[%s5372_s6 + $0x40] sm:$0xff] }
 0x107   : > { %4641 = vmatpush3.bf16.msra.mxu1 %v4640_v29  ;;  %4611 = vmatprep.subr.bf16.mxu0 %v4610_v30  ;;  %v4660_v29 = vpack.c.bf16 %v680_v22, %v679_v20  ;;  %v4630_v30 = vpack.c.bf16 %v666_v24, %v665_v23  ;;  %v5916_v52 = vrot.slane %v245_v28, %v5425_v14  ;;  %v706_v22 = vld [vmem:[%s5362_s8 + $0xe38] sm:$0xff]  ;;  %v737_v23 = vld [vmem:[%s5362_s8 + $0xf30] sm:$0xff] }
 0x108   : > { %4643 = vmatprep.subr.bf16.mxu1 %v4642_v35  ;;  %v4662_v35 = vpack.c.bf16 %v698_v26, %v697_v25  ;;  %v738_v25 = vld [vmem:[%s5362_s8 + $0xf38] sm:$0xff]  ;;  %v723_v26 = vld [vmem:[%s5362_s8 + $0xec0] sm:$0xff] }
 0x109   : > { %v814_v43 = vld [vmem:[%s5362_s8 + $0x1198] sm:$0xff] }
 0x10a   : > { %4613 = vmatpush3.bf16.msra.mxu0 %v4612_v40  ;;  %v1215_v40 = vcombine.high %v245_v28, %v245_v28  ;;  %v755_v28 = vld [vmem:[%s5362_s8 + $0xfc0] sm:$0xff] }
 0x10b   : > { %4645 = vmatpush3.bf16.msra.mxu1 %v4644_v53  ;;  %4615 = vmatprep.subr.bf16.mxu0 %v4614_v41  ;;  %v4632_v53 = vpack.c.bf16 %v650_v32, %v649_v31  ;;  %v4664_v41 = vpack.c.bf16 %v682_v36, %v681_v33  ;;  %v4712_v31 = vpack.c.bf16 %v738_v25, %v737_v23  ;;  %v707_v33 = vld [vmem:[%s5362_s8 + $0xe40] sm:$0xff] }
 0x10c   : > { %4647 = vmatprep.subr.bf16.mxu1 %v4646_v47  ;;  %v731_v47 = vld [vmem:[%s5362_s8 + $0xf00] sm:$0xff]  ;;  %v1232_v25 = vcombine.high %v246_v10, %v246_v10 }
 0x10d   : > { %v4700_v57 = vpack.c.bf16 %v732_v49, %v731_v47  ;;  %v739_v36 = vld [vmem:[%s5362_s8 + $0xf40] sm:$0xff]  ;;  %v710_v47 = vld [vmem:[%s5362_s8 + $0xe58] sm:$0xff] }
 0x10e   : > { %4617 = vmatpush3.bf16.msra.mxu0 %v4616_v54  ;;  %v749_v54 = vld [vmem:[%s5362_s8 + $0xf90] sm:$0xff]  ;;  %v811_v23 = vld [vmem:[%s5362_s8 + $0x1180] sm:$0xff]  ;;  %v6000_v39 = vrot.slane %v1232_v25, %v5425_v14  ;;  %v790_v25 = vld [vmem:[%s5362_s8 + $0x10d8] sm:$0xff] }
 0x10f   : > { %4649 = vmatpush3.bf16.msra.mxu1 %v4648_v34  ;;  %4619 = vmatprep.subr.bf16.mxu0 %v4618_v55  ;;  %v750_v34 = vld [vmem:[%s5362_s8 + $0xf98] sm:$0xff]  ;;  %v5921_v55 = vrot.slane %v1215_v40, %v5425_v14  ;;  %v757_v40 = vld [vmem:[%s5362_s8 + $0xfd0] sm:$0xff] }
 0x110   : > { %4651 = vmatprep.subr.bf16.mxu1 %v4650_v60  ;;  %v701_v60 = vld [vmem:[%s5362_s8 + $0xe10] sm:$0xff]  ;;  %v4702_v46 = vpack.c.bf16 %v750_v34, %v749_v54  ;;  %v728_v54 = vld [vmem:[%s5362_s8 + $0xee8] sm:$0xff]  ;;  %v759_v34 = vld [vmem:[%s5362_s8 + $0xfe0] sm:$0xff] }
 0x111   : > { %v1231_v4 = vcombine.high %v5921_v55, %v5921_v55  ;;  %v4672_v5 = vpack.c.bf16 %v702_v61, %v701_v60  ;;  %v4690_v60 = vpack.c.bf16 %v728_v54, %v727_v51  ;;  %v711_v61 = vld [vmem:[%s5362_s8 + $0xe60] sm:$0xff] }
 0x112   : > { %4621 = vmatpush3.bf16.msra.mxu0 %v4620_v0  ;;  %v720_v0 = vld [vmem:[%s5362_s8 + $0xea8] sm:$0xff]  ;;  %v815_v54 = vld [vmem:[%s5362_s8 + $0x11a0] sm:$0xff] }
 0x113   : > { %4653 = vmatpush3.bf16.msra.mxu1 %v4652_v1  ;;  %4623 = vmatprep.subr.bf16.mxu0 %v4622_v2  ;;  %v1230_v1 = vcombine.high %v5916_v52, %v5916_v52  ;;  %v751_v2 = vld [vmem:[%s5362_s8 + $0xfa0] sm:$0xff]  ;;  %v4674_v7 = vpack.c.bf16 %v720_v0, %v719_v63  ;;  %v744_v0 = vld [vmem:[%s5362_s8 + $0xf68] sm:$0xff] }
 0x114   : > { %4655 = vmatprep.subr.bf16.mxu1 %v4654_v6  ;;  %v4704_v6 = vpack.c.bf16 %v734_v62, %v733_v58  ;;  %v4706_v11 = vpack.c.bf16 %v752_v3, %v751_v2  ;;  %v712_v58 = vld [vmem:[%s5362_s8 + $0xe68] sm:$0xff]  ;;  %v730_v2 = vld [vmem:[%s5362_s8 + $0xef8] sm:$0xff] }
 0x116   : > { %4625 = vmatpush3.bf16.msra.mxu0 %v4624_v15  ;;  %v721_v15 = vld [vmem:[%s5362_s8 + $0xeb0] sm:$0xff] }
 0x117   : > { %4657 = vmatpush3.bf16.msra.mxu1 %v4656_v17  ;;  %4627 = vmatprep.subr.bf16.mxu0 %v4626_v18  ;;  %v722_v17 = vld [vmem:[%s5362_s8 + $0xeb8] sm:$0xff] }
 0x118   : > { %4659 = vmatprep.subr.bf16.mxu1 %v4658_v21  ;;  %v754_v18 = vld [vmem:[%s5362_s8 + $0xfb8] sm:$0xff]  ;;  %v4678_v20 = vpack.c.bf16 %v722_v17, %v721_v15  ;;  %v705_v21 = vld [vmem:[%s5362_s8 + $0xe30] sm:$0xff] }
 0x119   : > { %v713_v17 = vld [vmem:[%s5362_s8 + $0xe70] sm:$0xff] }
 0x11a   : > { %4629 = vmatpush3.bf16.msra.mxu0 %v4628_v27  ;;  %v724_v27 = vld [vmem:[%s5362_s8 + $0xec8] sm:$0xff] }
 0x11b   : > { %4661 = vmatpush3.bf16.msra.mxu1 %v4660_v29  ;;  %4631 = vmatprep.subr.bf16.mxu0 %v4630_v30  ;;  %v756_v29 = vld [vmem:[%s5362_s8 + $0xfc8] sm:$0xff]  ;;  %v4680_v30 = vpack.c.bf16 %v706_v22, %v705_v21  ;;  %v4682_v32 = vpack.c.bf16 %v724_v27, %v723_v26 }
 0x11c   : > { %4663 = vmatprep.subr.bf16.mxu1 %v4662_v35  ;;  %v708_v35 = vld [vmem:[%s5362_s8 + $0xe48] sm:$0xff]  ;;  %v4714_v37 = vpack.c.bf16 %v756_v29, %v755_v28  ;;  %v763_v29 = vld [vmem:[%s5362_s8 + $0x1000] sm:$0xff] }
 0x11d   : > { %v780_v21 = vld [vmem:[%s5362_s8 + $0x1088] sm:$0xff] }
 0x11e   : > { %4633 = vmatpush3.bf16.msra.mxu0 %v4632_v53  ;;  %v758_v53 = vld [vmem:[%s5362_s8 + $0xfd8] sm:$0xff] }
 0x11f   : > { %4665 = vmatpush3.bf16.msra.mxu1 %v4664_v41  ;;  %4667 = vmatprep.subr.bf16.mxu0 %v4666_v42  ;;  %v4684_v41 = vpack.c.bf16 %v708_v35, %v707_v33  ;;  %v4716_v42 = vpack.c.bf16 %v740_v38, %v739_v36  ;;  %v4718_v49 = vpack.c.bf16 %v758_v53, %v757_v40  ;;  %v796_v33 = vld [vmem:[%s5362_s8 + $0x1108] sm:$0xff]  ;;  %v781_v35 = vld [vmem:[%s5362_s8 + $0x1090] sm:$0xff]  ;;  %v782_v36 = vld [vmem:[%s5362_s8 + $0x1098] sm:$0xff] }
 0x120   : > { %4699 = vmatprep.subr.bf16.mxu1 %v4698_v48  ;;  %v741_v48 = vld [vmem:[%s5362_s8 + $0xf50] sm:$0xff] }
 0x121   : > { %2274 = vmatmul.mubr.f32.vlgmr.msra.gmra.mrb[12].mxu0 %v5839_v9  ;;  %v704_v9 = vld [vmem:[%s5362_s8 + $0xe28] sm:$0xff]  ;;  %v813_v38 = vld [vmem:[%s5362_s8 + $0x1190] sm:$0xff] }
 0x122   : > { %4669 = vmatpush3.bf16.msra.mxu0 %v4668_v56  ;;  %2344 = vmatmul.mubr.f32.vlgmr.msra.gmra.mrb[12].mxu1 %v5844_v12  ;;  %v753_v12 = vld [vmem:[%s5362_s8 + $0xfb0] sm:$0xff]  ;;  %v4676_v19 = vpack.c.bf16 %v704_v9, %v703_v8  ;;  %v760_v56 = vld [vmem:[%s5362_s8 + $0xfe8] sm:$0xff]  ;;  %v4692_v9 = vpack.c.bf16 %v712_v58, %v711_v61  ;;  %v767_v61 = vld [vmem:[%s5362_s8 + $0x1020] sm:$0xff] }
 0x123   : > { %4701 = vmatpush3.bf16.msra.mxu1 %v4700_v57  ;;  %4671 = vmatprep.subr.bf16.mxu0 %v4670_v59  ;;  %v4710_v24 = vpack.c.bf16 %v754_v18, %v753_v12  ;;  %v4688_v57 = vpack.c.bf16 %v710_v47, %v709_v45  ;;  %v4720_v59 = vpack.c.bf16 %v742_v50, %v741_v48  ;;  %v714_v12 = vld [vmem:[%s5362_s8 + $0xe78] sm:$0xff]  ;;  %v745_v18 = vld [vmem:[%s5362_s8 + $0xf70] sm:$0xff]  ;;  %v784_v50 = vld [vmem:[%s5362_s8 + $0x10a8] sm:$0xff] }
 0x124   : > { %4703 = vmatprep.subr.bf16.mxu1 %v4702_v46  ;;  %2413 = vmatprep.mubr.f32.mxu0 %v1230_v1  ;;  %v743_v46 = vld [vmem:[%s5362_s8 + $0xf60] sm:$0xff]  ;;  %v4722_v63 = vpack.c.bf16 %v760_v56, %v759_v34  ;;  %v729_v1 = vld [vmem:[%s5362_s8 + $0xef0] sm:$0xff]  ;;  %v4696_v26 = vpack.c.bf16 %v714_v12, %v713_v17  ;;  %v4766_v47 = vpack.c.bf16 %v814_v43, %v813_v38  ;;  %v798_v48 = vld [vmem:[%s5362_s8 + $0x1118] sm:$0xff] }
 0x125   : > { %2483 = vmatprep.mubr.f32.mxu1 %v1231_v4  ;;  %v4724_v13 = vpack.c.bf16 %v744_v0, %v743_v46  ;;  %v4694_v15 = vpack.c.bf16 %v730_v2, %v729_v1  ;;  %v797_v45 = vld [vmem:[%s5362_s8 + $0x1110] sm:$0xff]  ;;  %v816_v34 = vld [vmem:[%s5362_s8 + $0x11a8] sm:$0xff]  ;;  %v1248_v56 = vcombine.high %v6000_v39, %v6000_v39  ;;  %v799_v58 = vld [vmem:[%s5362_s8 + $0x1120] sm:$0xff] }
 0x126   : > { %4673 = vmatpush3.bf16.msra.mxu0 %v4672_v5  ;;  %v761_v5 = vld [vmem:[%s5362_s8 + $0xff0] sm:$0xff]  ;;  %v4770_v46 = vpack.c.bf16 %v816_v34, %v815_v54  ;;  %v786_v0 = vld [vmem:[%s5362_s8 + $0x10b8] sm:$0xff]  ;;  %v791_v38 = vld [vmem:[%s5362_s8 + $0x10e0] sm:$0xff] }
 0x127   : > { %4705 = vmatpush3.bf16.msra.mxu1 %v4704_v6  ;;  %4675 = vmatprep.subr.bf16.mxu0 %v4674_v7  ;;  %v762_v6 = vld [vmem:[%s5362_s8 + $0xff8] sm:$0xff]  ;;  %v792_v43 = vld [vmem:[%s5362_s8 + $0x10e8] sm:$0xff]  ;;  %v793_v54 = vld [vmem:[%s5362_s8 + $0x10f0] sm:$0xff] }
 0x128   : > { %4707 = vmatprep.subr.bf16.mxu1 %v4706_v11  ;;  %v818_v1 = vld [vmem:[%s5362_s8 + $0x11b8] sm:$0xff] }
 0x129   : > { %v794_v34 = vld [vmem:[%s5362_s8 + $0x10f8] sm:$0xff] }
 0x12a   : > { %4677 = vmatpush3.bf16.msra.mxu0 %v4676_v19  ;;  %v4726_v19 = vpack.c.bf16 %v762_v6, %v761_v5  ;;  %v769_v5 = vld [vmem:[%s5362_s8 + $0x1030] sm:$0xff]  ;;  %v770_v6 = vld [vmem:[%s5362_s8 + $0x1038] sm:$0xff] }
 0x12b   : > { %4709 = vmatpush3.bf16.msra.mxu1 %v4708_v16  ;;  %4679 = vmatprep.subr.bf16.mxu0 %v4678_v20  ;;  %v746_v16 = vld [vmem:[%s5362_s8 + $0xf78] sm:$0xff]  ;;  %v779_v20 = vld [vmem:[%s5362_s8 + $0x1080] sm:$0xff]  ;;  %v4744_v17 = vpack.c.bf16 %v770_v6, %v769_v5 }
 0x12c   : > { %4711 = vmatprep.subr.bf16.mxu1 %v4710_v24  ;;  %v812_v24 = vld [vmem:[%s5362_s8 + $0x1188] sm:$0xff]  ;;  %v4728_v27 = vpack.c.bf16 %v746_v16, %v745_v18  ;;  %v4730_v28 = vpack.c.bf16 %v780_v21, %v779_v20  ;;  %v803_v20 = vld [vmem:[%s5362_s8 + $0x1140] sm:$0xff]  ;;  %v810_v5 = vld [vmem:[%s5362_s8 + $0x1178] sm:$0xff] }
 0x12d   : > { %v772_v16 = vld [vmem:[%s5362_s8 + $0x1048] sm:$0xff]  ;;  %v843_v6 = vld [vmem:[%s5362_s8 + $0x1280] sm:$0xff] }
 0x12e   : > { %4681 = vmatpush3.bf16.msra.mxu0 %v4680_v30  ;;  %v764_v30 = vld [vmem:[%s5362_s8 + $0x1008] sm:$0xff] }
 0x12f   : > { %4713 = vmatpush3.bf16.msra.mxu1 %v4712_v31  ;;  %4683 = vmatprep.subr.bf16.mxu0 %v4682_v32  ;;  %v795_v31 = vld [vmem:[%s5362_s8 + $0x1100] sm:$0xff]  ;;  %v4762_v32 = vpack.c.bf16 %v812_v24, %v811_v23  ;;  %v4732_v40 = vpack.c.bf16 %v764_v30, %v763_v29  ;;  %v804_v23 = vld [vmem:[%s5362_s8 + $0x1148] sm:$0xff]  ;;  %v789_v24 = vld [vmem:[%s5362_s8 + $0x10d0] sm:$0xff] }
 0x130   : > { %4715 = vmatprep.subr.bf16.mxu1 %v4714_v37  ;;  %v5995_v37 = vrot.slane %v246_v10, %v5425_v14  ;;  %v4764_v53 = vpack.c.bf16 %v796_v33, %v795_v31  ;;  %v787_v10 = vld [vmem:[%s5362_s8 + $0x10c0] sm:$0xff]  ;;  %v4780_v29 = vpack.c.bf16 %v804_v23, %v803_v20  ;;  %v4750_v30 = vpack.c.bf16 %v790_v25, %v789_v24  ;;  %v773_v31 = vld [vmem:[%s5362_s8 + $0x1050] sm:$0xff]  ;;  %v878_v25 = vld [vmem:[%s5362_s8 + $0x1398] sm:$0xff] }
 0x131   : > { %v805_v33 = vld [vmem:[%s5362_s8 + $0x1150] sm:$0xff] }
 0x132   : > { %4685 = vmatpush3.bf16.msra.mxu0 %v4684_v41  ;;  %v4734_v41 = vpack.c.bf16 %v782_v36, %v781_v35  ;;  %v1247_v51 = vcombine.high %v5995_v37, %v5995_v37  ;;  %v806_v36 = vld [vmem:[%s5362_s8 + $0x1158] sm:$0xff]  ;;  %v845_v20 = vld [vmem:[%s5362_s8 + $0x1290] sm:$0xff] }
 0x133   : > { %4717 = vmatpush3.bf16.msra.mxu1 %v4716_v42  ;;  %4687 = vmatprep.subr.bf16.mxu0 %v4686_v44  ;;  %v765_v42 = vld [vmem:[%s5362_s8 + $0x1010] sm:$0xff]  ;;  %v766_v44 = vld [vmem:[%s5362_s8 + $0x1018] sm:$0xff] }
 0x134   : > { %v3340_v62 = vpop.f32.mrb[0].mxu0  ;;  %4719 = vmatprep.subr.bf16.mxu1 %v4718_v49  ;;  %v783_v49 = vld [vmem:[%s5362_s8 + $0x10a0] sm:$0xff]  ;;  %v877_v24 = vld [vmem:[%s5362_s8 + $0x1390] sm:$0xff] }
 0x135   : > { %v3375_v3 = vpop.f32.mrb[0].mxu1  ;;  %v3341_v4 = vpop.f32.mrb[1].mxu0 }
 0x136   : > { %v3342_v7 = vadd.f32 %v3341_v4, %v3340_v62  ;;  %v3376_v8 = vpop.f32.mrb[1].mxu1  ;;  %4689 = vmatpush3.bf16.msra.mxu0 %v4688_v57  ;;  %v4736_v57 = vpack.c.bf16 %v766_v44, %v765_v42  ;;  %v800_v62 = vld [vmem:[%s5362_s8 + $0x1128] sm:$0xff]  ;;  %v4784_v42 = vpack.c.bf16 %v806_v36, %v805_v33  ;;  %v4754_v44 = vpack.c.bf16 %v792_v43, %v791_v38  ;;  %v847_v36 = vld [vmem:[%s5362_s8 + $0x12a0] sm:$0xff] }
 0x137   : > { %v3377_v11 = vadd.f32 %v3376_v8, %v3375_v3  ;;  %4721 = vmatpush3.bf16.msra.mxu1 %v4720_v59  ;;  %4691 = vmatprep.subr.bf16.mxu0 %v4690_v60  ;;  %v4768_v59 = vpack.c.bf16 %v798_v48, %v797_v45  ;;  %v4738_v60 = vpack.c.bf16 %v784_v50, %v783_v49  ;;  %v775_v45 = vld [vmem:[%s5362_s8 + $0x1060] sm:$0xff]  ;;  %v848_v38 = vld [vmem:[%s5362_s8 + $0x12a8] sm:$0xff] }
 0x138   : > { %4723 = vmatprep.subr.bf16.mxu1 %v4722_v63  ;;  %v785_v63 = vld [vmem:[%s5362_s8 + $0x10b0] sm:$0xff]  ;;  %v4772_v3 = vpack.c.bf16 %v800_v62, %v799_v58  ;;  %v807_v48 = vld [vmem:[%s5362_s8 + $0x1160] sm:$0xff]  ;;  %v4830_v33 = vpack.c.bf16 %v878_v25, %v877_v24  ;;  %v856_v25 = vld [vmem:[%s5362_s8 + $0x12e8] sm:$0xff] }
 0x139   : > { %v5984_v22 = vadd.f32 %v3377_v11, %v3342_v7  ;;  %v4742_v4 = vpack.c.bf16 %v786_v0, %v785_v63  ;;  %v801_v7 = vld [vmem:[%s5362_s8 + $0x1130] sm:$0xff]  ;;  %v788_v11 = vld [vmem:[%s5362_s8 + $0x10c8] sm:$0xff]  ;;  %v4758_v0 = vpack.c.bf16 %v794_v34, %v793_v54  ;;  %v850_v54 = vld [vmem:[%s5362_s8 + $0x12b8] sm:$0xff] }
 0x13a   : > { %4693 = vmatpush3.bf16.msra.mxu0 %v4692_v9  ;;  %v802_v9 = vld [vmem:[%s5362_s8 + $0x1138] sm:$0xff]  ;;  %v4746_v18 = vpack.c.bf16 %v788_v11, %v787_v10  ;;  %v855_v24 = vld [vmem:[%s5362_s8 + $0x12e0] sm:$0xff] }
 0x13b   : > { %4725 = vmatpush3.bf16.msra.mxu1 %v4724_v13  ;;  %4695 = vmatprep.subr.bf16.mxu0 %v4694_v15  ;;  %v819_v13 = vld [vmem:[%s5362_s8 + $0x11c0] sm:$0xff]  ;;  %v820_v15 = vld [vmem:[%s5362_s8 + $0x11c8] sm:$0xff]  ;;  %v4776_v12 = vpack.c.bf16 %v802_v9, %v801_v7  ;;  %v882_v34 = vld [vmem:[%s5362_s8 + $0x13b8] sm:$0xff] }
 0x13c   : > { %4727 = vmatprep.subr.bf16.mxu1 %v4726_v19  ;;  %v771_v19 = vld [vmem:[%s5362_s8 + $0x1040] sm:$0xff]  ;;  %v4778_v21 = vpack.c.bf16 %v820_v15, %v819_v13  ;;  %v844_v7 = vld [vmem:[%s5362_s8 + $0x1288] sm:$0xff] }
 0x13d   : > { %v876_v9 = vld [vmem:[%s5362_s8 + $0x1388] sm:$0xff]  ;;  %v4794_v15 = vpack.c.bf16 %v844_v7, %v843_v6  ;;  %v867_v6 = vld [vmem:[%s5362_s8 + $0x1340] sm:$0xff] }
 0x13e   : > { %4697 = vmatpush3.bf16.msra.mxu0 %v4696_v26  ;;  %v821_v26 = vld [vmem:[%s5362_s8 + $0x11d0] sm:$0xff] }
 0x13f   : > { %4729 = vmatpush3.bf16.msra.mxu1 %v4728_v27  ;;  %4731 = vmatprep.subr.bf16.mxu0 %v4730_v28  ;;  %v822_v27 = vld [vmem:[%s5362_s8 + $0x11d8] sm:$0xff]  ;;  %v4748_v28 = vpack.c.bf16 %v772_v16, %v771_v19  ;;  %v860_v16 = vld [vmem:[%s5362_s8 + $0x1308] sm:$0xff] }
 0x140   : > { %4763 = vmatprep.subr.bf16.mxu1 %v4762_v32  ;;  %v774_v32 = vld [vmem:[%s5362_s8 + $0x1058] sm:$0xff]  ;;  %v4782_v35 = vpack.c.bf16 %v822_v27, %v821_v26 }
 0x141   : > { %2414 = vmatmul.mubr.f32.vlgmr.msra.gmra.mrb[14].mxu0 %v5916_v52  ;;  %v768_v52 = vld [vmem:[%s5362_s8 + $0x1028] sm:$0xff] }
 0x142   : > { %4733 = vmatpush3.bf16.msra.mxu0 %v4732_v40  ;;  %2484 = vmatmul.mubr.f32.vlgmr.msra.gmra.mrb[14].mxu1 %v5921_v55  ;;  %v817_v55 = vld [vmem:[%s5362_s8 + $0x11b0] sm:$0xff]  ;;  %v4740_v2 = vpack.c.bf16 %v768_v52, %v767_v61  ;;  %v823_v40 = vld [vmem:[%s5362_s8 + $0x11e0] sm:$0xff] }
 0x143   : > { %4765 = vmatpush3.bf16.msra.mxu1 %v4764_v53  ;;  %4735 = vmatprep.subr.bf16.mxu0 %v4734_v41  ;;  %v4774_v8 = vpack.c.bf16 %v818_v1, %v817_v55  ;;  %v824_v53 = vld [vmem:[%s5362_s8 + $0x11e8] sm:$0xff]  ;;  %v4752_v41 = vpack.c.bf16 %v774_v32, %v773_v31  ;;  %v777_v55 = vld [vmem:[%s5362_s8 + $0x1070] sm:$0xff]  ;;  %v778_v1 = vld [vmem:[%s5362_s8 + $0x1078] sm:$0xff] }
 0x144   : > { %4767 = vmatprep.subr.bf16.mxu1 %v4766_v47  ;;  %2553 = vmatprep.mubr.f32.mxu0 %v1247_v51  ;;  %v776_v47 = vld [vmem:[%s5362_s8 + $0x1068] sm:$0xff]  ;;  %v4786_v50 = vpack.c.bf16 %v824_v53, %v823_v40  ;;  %v830_v31 = vld [vmem:[%s5362_s8 + $0x1218] sm:$0xff]  ;;  %v861_v32 = vld [vmem:[%s5362_s8 + $0x1310] sm:$0xff] }
 0x145   : > { %2623 = vmatprep.mubr.f32.mxu1 %v1248_v56  ;;  %v808_v51 = vld [vmem:[%s5362_s8 + $0x1168] sm:$0xff]  ;;  %v4756_v58 = vpack.c.bf16 %v776_v47, %v775_v45  ;;  %v879_v40 = vld [vmem:[%s5362_s8 + $0x13a0] sm:$0xff]  ;;  %v4802_v45 = vpack.c.bf16 %v848_v38, %v847_v36 }
 0x146   : > { %4737 = vmatpush3.bf16.msra.mxu0 %v4736_v57  ;;  %v4788_v63 = vpack.c.bf16 %v808_v51, %v807_v48  ;;  %v880_v53 = vld [vmem:[%s5362_s8 + $0x13a8] sm:$0xff]  ;;  %v831_v47 = vld [vmem:[%s5362_s8 + $0x1220] sm:$0xff]  ;;  %v849_v51 = vld [vmem:[%s5362_s8 + $0x12b0] sm:$0xff] }
 0x147   : > { %4769 = vmatpush3.bf16.msra.mxu1 %v4768_v59  ;;  %4739 = vmatprep.subr.bf16.mxu0 %v4738_v60  ;;  %v825_v59 = vld [vmem:[%s5362_s8 + $0x11f0] sm:$0xff]  ;;  %v826_v60 = vld [vmem:[%s5362_s8 + $0x11f8] sm:$0xff]  ;;  %v863_v48 = vld [vmem:[%s5362_s8 + $0x1320] sm:$0xff] }
 0x148   : > { %4771 = vmatprep.subr.bf16.mxu1 %v4770_v46  ;;  %v247_v46 = vld [vmem:[%s5372_s6 + $0x48] sm:$0xff] }
 0x149   : > { %v1249_v10 = vcombine.high %v247_v46, %v247_v46  ;;  %v6075_v23 = vrot.slane %v247_v46, %v5425_v14  ;;  %v866_v46 = vld [vmem:[%s5362_s8 + $0x1338] sm:$0xff] }
 0x14a   : > { %4741 = vmatpush3.bf16.msra.mxu0 %v4740_v2  ;;  %v809_v2 = vld [vmem:[%s5362_s8 + $0x1170] sm:$0xff] }
 0x14b   : > { %4773 = vmatpush3.bf16.msra.mxu1 %v4772_v3  ;;  %4743 = vmatprep.subr.bf16.mxu0 %v4742_v4  ;;  %v4790_v4 = vpack.c.bf16 %v826_v60, %v825_v59  ;;  %v4792_v13 = vpack.c.bf16 %v810_v5, %v809_v2  ;;  %v6080_v26 = vrot.slane %v1249_v10, %v5425_v14  ;;  %v833_v60 = vld [vmem:[%s5362_s8 + $0x1230] sm:$0xff]  ;;  %v836_v5 = vld [vmem:[%s5362_s8 + $0x1248] sm:$0xff]  ;;  %v854_v10 = vld [vmem:[%s5362_s8 + $0x12d8] sm:$0xff] }
 0x14c   : > { %4775 = vmatprep.subr.bf16.mxu1 %v4774_v8  ;;  %v875_v8 = vld [vmem:[%s5362_s8 + $0x1380] sm:$0xff]  ;;  %v1264_v43 = vcombine.high %v6075_v23, %v6075_v23  ;;  %v4806_v59 = vpack.c.bf16 %v850_v54, %v849_v51 }
 0x14d   : > { %v4826_v19 = vpack.c.bf16 %v876_v9, %v875_v8  ;;  %v868_v8 = vld [vmem:[%s5362_s8 + $0x1348] sm:$0xff]  ;;  %v853_v9 = vld [vmem:[%s5362_s8 + $0x12d0] sm:$0xff] }
 0x14e   : > { %4745 = vmatpush3.bf16.msra.mxu0 %v4744_v17  ;;  %v827_v17 = vld [vmem:[%s5362_s8 + $0x1200] sm:$0xff] }
 0x14f   : > { %4777 = vmatpush3.bf16.msra.mxu1 %v4776_v12  ;;  %4747 = vmatprep.subr.bf16.mxu0 %v4746_v18  ;;  %v828_v12 = vld [vmem:[%s5362_s8 + $0x1208] sm:$0xff]  ;;  %v859_v18 = vld [vmem:[%s5362_s8 + $0x1300] sm:$0xff] }
 0x150   : > { %4779 = vmatprep.subr.bf16.mxu1 %v4778_v21  ;;  %v846_v21 = vld [vmem:[%s5362_s8 + $0x1298] sm:$0xff]  ;;  %v4796_v27 = vpack.c.bf16 %v828_v12, %v827_v17  ;;  %v4844_v17 = vpack.c.bf16 %v868_v8, %v867_v6  ;;  %v4814_v12 = vpack.c.bf16 %v854_v10, %v853_v9  ;;  %v909_v6 = vld [vmem:[%s5362_s8 + $0x1490] sm:$0xff] }
 0x151   : > { %v941_v9 = vld [vmem:[%s5362_s8 + $0x1590] sm:$0xff]  ;;  %v942_v10 = vld [vmem:[%s5362_s8 + $0x1598] sm:$0xff] }
 0x152   : > { %4749 = vmatpush3.bf16.msra.mxu0 %v4748_v28  ;;  %v4828_v28 = vpack.c.bf16 %v860_v16, %v859_v18  ;;  %v837_v18 = vld [vmem:[%s5362_s8 + $0x1250] sm:$0xff] }
 0x153   : > { %4781 = vmatpush3.bf16.msra.mxu1 %v4780_v29  ;;  %4751 = vmatprep.subr.bf16.mxu0 %v4750_v30  ;;  %v4798_v29 = vpack.c.bf16 %v846_v21, %v845_v20  ;;  %v829_v30 = vld [vmem:[%s5362_s8 + $0x1210] sm:$0xff]  ;;  %v870_v21 = vld [vmem:[%s5362_s8 + $0x1358] sm:$0xff] }
 0x154   : > { %v3410_v49 = vpop.f32.mrb[2].mxu0  ;;  %4783 = vmatprep.subr.bf16.mxu1 %v4782_v35  ;;  %v862_v35 = vld [vmem:[%s5362_s8 + $0x1318] sm:$0xff]  ;;  %v869_v16 = vld [vmem:[%s5362_s8 + $0x1350] sm:$0xff] }
 0x155   : > { %v3411_v56 = vpop.f32.mrb[3].mxu0  ;;  %v3445_v57 = vpop.f32.mrb[2].mxu1 }
 0x156   : > { %v3412_v61 = vadd.f32 %v3411_v56, %v3410_v49  ;;  %4753 = vmatpush3.bf16.msra.mxu0 %v4752_v41  ;;  %v3446_v52 = vpop.f32.mrb[3].mxu1  ;;  %v1265_v41 = vcombine.high %v6080_v26, %v6080_v26  ;;  %v4834_v49 = vpack.c.bf16 %v880_v53, %v879_v40  ;;  %v857_v40 = vld [vmem:[%s5362_s8 + $0x12f0] sm:$0xff]  ;;  %v858_v53 = vld [vmem:[%s5362_s8 + $0x12f8] sm:$0xff] }
 0x157   : > { %v3447_v62 = vadd.f32 %v3446_v52, %v3445_v57  ;;  %4785 = vmatpush3.bf16.msra.mxu1 %v4784_v42  ;;  %4755 = vmatprep.subr.bf16.mxu0 %v4754_v44  ;;  %v4800_v42 = vpack.c.bf16 %v830_v31, %v829_v30  ;;  %v4832_v44 = vpack.c.bf16 %v862_v35, %v861_v32  ;;  %v865_v52 = vld [vmem:[%s5362_s8 + $0x1330] sm:$0xff]  ;;  %v839_v32 = vld [vmem:[%s5362_s8 + $0x1260] sm:$0xff] }
 0x158   : > { %v1576_v3 = vadd.f32 %v3412_v61, %v5984_v22  ;;  %4787 = vmatprep.subr.bf16.mxu1 %v4786_v50  ;;  %v4760_v22 = vpack.c.bf16 %v778_v1, %v777_v55  ;;  %v864_v50 = vld [vmem:[%s5362_s8 + $0x1328] sm:$0xff]  ;;  %v834_v61 = vld [vmem:[%s5362_s8 + $0x1238] sm:$0xff]  ;;  %v4840_v2 = vpack.c.bf16 %v866_v46, %v865_v52  ;;  %v4848_v30 = vpack.c.bf16 %v870_v21, %v869_v16  ;;  %v871_v35 = vld [vmem:[%s5362_s8 + $0x1360] sm:$0xff] }
 0x159   : > { %v4836_v57 = vpack.c.bf16 %v864_v50, %v863_v48  ;;  %v884_v55 = vld [vmem:[%s5362_s8 + $0x13c8] sm:$0xff]  ;;  %v4808_v1 = vpack.c.bf16 %v834_v61, %v833_v60  ;;  %v4818_v31 = vpack.c.bf16 %v856_v25, %v855_v24  ;;  %v4822_v54 = vpack.c.bf16 %v858_v53, %v857_v40  ;;  %v874_v60 = vld [vmem:[%s5362_s8 + $0x1378] sm:$0xff]  ;;  %v907_v61 = vld [vmem:[%s5362_s8 + $0x1480] sm:$0xff] }
 0x15a   : > { %v6066_v11 = vadd.f32 %v3447_v62, %v1576_v3  ;;  %4757 = vmatpush3.bf16.msra.mxu0 %v4756_v58  ;;  %v851_v62 = vld [vmem:[%s5362_s8 + $0x12c0] sm:$0xff]  ;;  %v908_v52 = vld [vmem:[%s5362_s8 + $0x1488] sm:$0xff]  ;;  %v4894_v16 = vpack.c.bf16 %v942_v10, %v941_v9  ;;  %v914_v40 = vld [vmem:[%s5362_s8 + $0x14b8] sm:$0xff] }
 0x15b   : > { %4789 = vmatpush3.bf16.msra.mxu1 %v4788_v63  ;;  %4759 = vmatprep.subr.bf16.mxu0 %v4758_v0  ;;  %v852_v63 = vld [vmem:[%s5362_s8 + $0x12c8] sm:$0xff]  ;;  %v883_v0 = vld [vmem:[%s5362_s8 + $0x13c0] sm:$0xff]  ;;  %v946_v53 = vld [vmem:[%s5362_s8 + $0x15b8] sm:$0xff] }
 0x15c   : > { %4791 = vmatprep.subr.bf16.mxu1 %v4790_v4  ;;  %v4810_v3 = vpack.c.bf16 %v852_v63, %v851_v62  ;;  %v835_v4 = vld [vmem:[%s5362_s8 + $0x1240] sm:$0xff]  ;;  %v4842_v7 = vpack.c.bf16 %v884_v55, %v883_v0  ;;  %v940_v46 = vld [vmem:[%s5362_s8 + $0x1588] sm:$0xff]  ;;  %v4858_v55 = vpack.c.bf16 %v908_v52, %v907_v61 }
 0x15d   : > { %v911_v21 = vld [vmem:[%s5362_s8 + $0x14a0] sm:$0xff]  ;;  %v912_v24 = vld [vmem:[%s5362_s8 + $0x14a8] sm:$0xff] }
 0x15e   : > { %4761 = vmatpush3.bf16.msra.mxu0 %v4760_v22  ;;  %v885_v22 = vld [vmem:[%s5362_s8 + $0x13d0] sm:$0xff]  ;;  %v931_v61 = vld [vmem:[%s5362_s8 + $0x1540] sm:$0xff]  ;;  %v920_v10 = vld [vmem:[%s5362_s8 + $0x14e8] sm:$0xff] }
 0x15f   : > { %4793 = vmatpush3.bf16.msra.mxu1 %v4792_v13  ;;  %4795 = vmatprep.subr.bf16.mxu0 %v4794_v15  ;;  %v886_v13 = vld [vmem:[%s5362_s8 + $0x13d8] sm:$0xff]  ;;  %v4812_v15 = vpack.c.bf16 %v836_v5, %v835_v4  ;;  %v924_v5 = vld [vmem:[%s5362_s8 + $0x1508] sm:$0xff]  ;;  %v919_v9 = vld [vmem:[%s5362_s8 + $0x14e0] sm:$0xff] }
 0x160   : > { %4827 = vmatprep.subr.bf16.mxu1 %v4826_v19  ;;  %v838_v19 = vld [vmem:[%s5362_s8 + $0x1258] sm:$0xff]  ;;  %v4846_v20 = vpack.c.bf16 %v886_v13, %v885_v22 }
 0x161   : > { %2554 = vmatmul.mubr.f32.vlgmr.msra.gmra.mrb[16].mxu0 %v5995_v37  ;;  %v832_v37 = vld [vmem:[%s5362_s8 + $0x1228] sm:$0xff] }
 0x162   : > { %4797 = vmatpush3.bf16.msra.mxu0 %v4796_v27  ;;  %2624 = vmatmul.mubr.f32.vlgmr.msra.gmra.mrb[16].mxu1 %v6000_v39  ;;  %v881_v39 = vld [vmem:[%s5362_s8 + $0x13b0] sm:$0xff]  ;;  %v4804_v56 = vpack.c.bf16 %v832_v37, %v831_v47  ;;  %v887_v27 = vld [vmem:[%s5362_s8 + $0x13e0] sm:$0xff] }
 0x163   : > { %4829 = vmatpush3.bf16.msra.mxu1 %v4828_v28  ;;  %4799 = vmatprep.subr.bf16.mxu0 %v4798_v29  ;;  %v4838_v58 = vpack.c.bf16 %v882_v34, %v881_v39  ;;  %v888_v28 = vld [vmem:[%s5362_s8 + $0x13e8] sm:$0xff]  ;;  %v4816_v29 = vpack.c.bf16 %v838_v19, %v837_v18  ;;  %v841_v39 = vld [vmem:[%s5362_s8 + $0x1270] sm:$0xff]  ;;  %v842_v34 = vld [vmem:[%s5362_s8 + $0x1278] sm:$0xff] }
 0x164   : > { %4831 = vmatprep.subr.bf16.mxu1 %v4830_v33  ;;  %2693 = vmatprep.mubr.f32.mxu0 %v1264_v43  ;;  %v840_v33 = vld [vmem:[%s5362_s8 + $0x1268] sm:$0xff]  ;;  %v4850_v38 = vpack.c.bf16 %v888_v28, %v887_v27  ;;  %v894_v18 = vld [vmem:[%s5362_s8 + $0x1418] sm:$0xff]  ;;  %v925_v19 = vld [vmem:[%s5362_s8 + $0x1510] sm:$0xff] }
 0x165   : > { %2763 = vmatprep.mubr.f32.mxu1 %v1265_v41  ;;  %v872_v43 = vld [vmem:[%s5362_s8 + $0x1368] sm:$0xff]  ;;  %v4820_v48 = vpack.c.bf16 %v840_v33, %v839_v32  ;;  %v943_v27 = vld [vmem:[%s5362_s8 + $0x15a0] sm:$0xff]  ;;  %v4866_v32 = vpack.c.bf16 %v912_v24, %v911_v21 }
 0x166   : > { %4801 = vmatpush3.bf16.msra.mxu0 %v4800_v42  ;;  %v4852_v51 = vpack.c.bf16 %v872_v43, %v871_v35  ;;  %v944_v28 = vld [vmem:[%s5362_s8 + $0x15a8] sm:$0xff]  ;;  %v895_v33 = vld [vmem:[%s5362_s8 + $0x1420] sm:$0xff]  ;;  %v913_v43 = vld [vmem:[%s5362_s8 + $0x14b0] sm:$0xff] }
 0x167   : > { %4833 = vmatpush3.bf16.msra.mxu1 %v4832_v44  ;;  %4803 = vmatprep.subr.bf16.mxu0 %v4802_v45  ;;  %v889_v44 = vld [vmem:[%s5362_s8 + $0x13f0] sm:$0xff]  ;;  %v890_v45 = vld [vmem:[%s5362_s8 + $0x13f8] sm:$0xff]  ;;  %v927_v35 = vld [vmem:[%s5362_s8 + $0x1520] sm:$0xff] }
 0x168   : > { %4835 = vmatprep.subr.bf16.mxu1 %v4834_v49  ;;  %v248_v49 = vld [vmem:[%s5372_s6 + $0x50] sm:$0xff] }
 0x169   : > { %v1266_v62 = vcombine.high %v248_v49, %v248_v49  ;;  %v6155_v8 = vrot.slane %v248_v49, %v5425_v14  ;;  %v930_v49 = vld [vmem:[%s5362_s8 + $0x1538] sm:$0xff] }
 0x16a   : > { %4805 = vmatpush3.bf16.msra.mxu0 %v4804_v56  ;;  %v873_v56 = vld [vmem:[%s5362_s8 + $0x1370] sm:$0xff] }
 0x16b   : > { %4837 = vmatpush3.bf16.msra.mxu1 %v4836_v57  ;;  %4807 = vmatprep.subr.bf16.mxu0 %v4806_v59  ;;  %v4854_v59 = vpack.c.bf16 %v890_v45, %v889_v44  ;;  %v4856_v0 = vpack.c.bf16 %v874_v60, %v873_v56  ;;  %v6160_v22 = vrot.slane %v1266_v62, %v5425_v14  ;;  %v897_v45 = vld [vmem:[%s5362_s8 + $0x1430] sm:$0xff]  ;;  %v900_v60 = vld [vmem:[%s5362_s8 + $0x1448] sm:$0xff]  ;;  %v918_v62 = vld [vmem:[%s5362_s8 + $0x14d8] sm:$0xff] }
 0x16c   : > { %4839 = vmatprep.subr.bf16.mxu1 %v4838_v58  ;;  %v939_v58 = vld [vmem:[%s5362_s8 + $0x1580] sm:$0xff]  ;;  %v1281_v25 = vcombine.high %v6155_v8, %v6155_v8  ;;  %v4870_v44 = vpack.c.bf16 %v914_v40, %v913_v43 }
 0x16d   : > { %v4890_v4 = vpack.c.bf16 %v940_v46, %v939_v58  ;;  %v932_v58 = vld [vmem:[%s5362_s8 + $0x1548] sm:$0xff]  ;;  %v917_v46 = vld [vmem:[%s5362_s8 + $0x14d0] sm:$0xff] }
 0x16e   : > { %4809 = vmatpush3.bf16.msra.mxu0 %v4808_v1  ;;  %v891_v1 = vld [vmem:[%s5362_s8 + $0x1400] sm:$0xff] }
 0x16f   : > { %4841 = vmatpush3.bf16.msra.mxu1 %v4840_v2  ;;  %4811 = vmatprep.subr.bf16.mxu0 %v4810_v3  ;;  %v892_v2 = vld [vmem:[%s5362_s8 + $0x1408] sm:$0xff]  ;;  %v923_v3 = vld [vmem:[%s5362_s8 + $0x1500] sm:$0xff] }
 0x170   : > { %4843 = vmatprep.subr.bf16.mxu1 %v4842_v7  ;;  %v910_v7 = vld [vmem:[%s5362_s8 + $0x1498] sm:$0xff]  ;;  %v4860_v13 = vpack.c.bf16 %v892_v2, %v891_v1  ;;  %v4908_v1 = vpack.c.bf16 %v932_v58, %v931_v61  ;;  %v4878_v2 = vpack.c.bf16 %v918_v62, %v917_v46  ;;  %v973_v61 = vld [vmem:[%s5362_s8 + $0x1690] sm:$0xff] }
 0x171   : > { %v1005_v46 = vld [vmem:[%s5362_s8 + $0x1790] sm:$0xff]  ;;  %v1006_v62 = vld [vmem:[%s5362_s8 + $0x1798] sm:$0xff] }
 0x172   : > { %4813 = vmatpush3.bf16.msra.mxu0 %v4812_v15  ;;  %v4892_v15 = vpack.c.bf16 %v924_v5, %v923_v3  ;;  %v901_v3 = vld [vmem:[%s5362_s8 + $0x1450] sm:$0xff] }
 0x173   : > { %4845 = vmatpush3.bf16.msra.mxu1 %v4844_v17  ;;  %4815 = vmatprep.subr.bf16.mxu0 %v4814_v12  ;;  %v4862_v17 = vpack.c.bf16 %v910_v7, %v909_v6  ;;  %v893_v12 = vld [vmem:[%s5362_s8 + $0x1410] sm:$0xff]  ;;  %v934_v7 = vld [vmem:[%s5362_s8 + $0x1558] sm:$0xff] }
 0x174   : > { %v3480_v36 = vpop.f32.mrb[4].mxu0  ;;  %4847 = vmatprep.subr.bf16.mxu1 %v4846_v20  ;;  %v926_v20 = vld [vmem:[%s5362_s8 + $0x1518] sm:$0xff]  ;;  %v933_v5 = vld [vmem:[%s5362_s8 + $0x1550] sm:$0xff] }
 0x175   : > { %v3481_v41 = vpop.f32.mrb[5].mxu0  ;;  %v3515_v42 = vpop.f32.mrb[4].mxu1 }
 0x176   : > { %v3482_v47 = vadd.f32 %v3481_v41, %v3480_v36  ;;  %4817 = vmatpush3.bf16.msra.mxu0 %v4816_v29  ;;  %v3516_v37 = vpop.f32.mrb[5].mxu1  ;;  %v1282_v29 = vcombine.high %v6160_v22, %v6160_v22  ;;  %v4898_v36 = vpack.c.bf16 %v944_v28, %v943_v27  ;;  %v921_v27 = vld [vmem:[%s5362_s8 + $0x14f0] sm:$0xff]  ;;  %v922_v28 = vld [vmem:[%s5362_s8 + $0x14f8] sm:$0xff] }
 0x177   : > { %v3517_v50 = vadd.f32 %v3516_v37, %v3515_v42  ;;  %4849 = vmatpush3.bf16.msra.mxu1 %v4848_v30  ;;  %4819 = vmatprep.subr.bf16.mxu0 %v4818_v31  ;;  %v4864_v30 = vpack.c.bf16 %v894_v18, %v893_v12  ;;  %v4896_v31 = vpack.c.bf16 %v926_v20, %v925_v19  ;;  %v929_v37 = vld [vmem:[%s5362_s8 + $0x1530] sm:$0xff]  ;;  %v903_v19 = vld [vmem:[%s5362_s8 + $0x1460] sm:$0xff] }
 0x178   : > { %v1716_v57 = vadd.f32 %v3482_v47, %v6066_v11  ;;  %4851 = vmatprep.subr.bf16.mxu1 %v4850_v38  ;;  %v4824_v11 = vpack.c.bf16 %v842_v34, %v841_v39  ;;  %v928_v38 = vld [vmem:[%s5362_s8 + $0x1528] sm:$0xff]  ;;  %v898_v47 = vld [vmem:[%s5362_s8 + $0x1438] sm:$0xff]  ;;  %v4904_v56 = vpack.c.bf16 %v930_v49, %v929_v37  ;;  %v4912_v12 = vpack.c.bf16 %v934_v7, %v933_v5  ;;  %v935_v20 = vld [vmem:[%s5362_s8 + $0x1560] sm:$0xff] }
 0x179   : > { %v4900_v42 = vpack.c.bf16 %v928_v38, %v927_v35  ;;  %v948_v39 = vld [vmem:[%s5362_s8 + $0x15c8] sm:$0xff]  ;;  %v4872_v34 = vpack.c.bf16 %v898_v47, %v897_v45  ;;  %v4882_v18 = vpack.c.bf16 %v920_v10, %v919_v9  ;;  %v4886_v40 = vpack.c.bf16 %v922_v28, %v921_v27  ;;  %v938_v45 = vld [vmem:[%s5362_s8 + $0x1578] sm:$0xff]  ;;  %v971_v47 = vld [vmem:[%s5362_s8 + $0x1680] sm:$0xff] }
 0x17a   : > { %v6146_v63 = vadd.f32 %v3517_v50, %v1716_v57  ;;  %4821 = vmatpush3.bf16.msra.mxu0 %v4820_v48  ;;  %v915_v50 = vld [vmem:[%s5362_s8 + $0x14c0] sm:$0xff]  ;;  %v972_v37 = vld [vmem:[%s5362_s8 + $0x1688] sm:$0xff]  ;;  %v4958_v5 = vpack.c.bf16 %v1006_v62, %v1005_v46  ;;  %v978_v27 = vld [vmem:[%s5362_s8 + $0x16b8] sm:$0xff] }
 0x17b   : > { %4853 = vmatpush3.bf16.msra.mxu1 %v4852_v51  ;;  %4823 = vmatprep.subr.bf16.mxu0 %v4822_v54  ;;  %v916_v51 = vld [vmem:[%s5362_s8 + $0x14c8] sm:$0xff]  ;;  %v947_v54 = vld [vmem:[%s5362_s8 + $0x15c0] sm:$0xff]  ;;  %v1010_v28 = vld [vmem:[%s5362_s8 + $0x17b8] sm:$0xff] }
 0x17c   : > { %4855 = vmatprep.subr.bf16.mxu1 %v4854_v59  ;;  %v4874_v57 = vpack.c.bf16 %v916_v51, %v915_v50  ;;  %v899_v59 = vld [vmem:[%s5362_s8 + $0x1440] sm:$0xff]  ;;  %v4906_v52 = vpack.c.bf16 %v948_v39, %v947_v54  ;;  %v1004_v49 = vld [vmem:[%s5362_s8 + $0x1788] sm:$0xff]  ;;  %v4922_v39 = vpack.c.bf16 %v972_v37, %v971_v47 }
 0x17d   : > { %v975_v7 = vld [vmem:[%s5362_s8 + $0x16a0] sm:$0xff]  ;;  %v976_v9 = vld [vmem:[%s5362_s8 + $0x16a8] sm:$0xff] }
 0x17e   : > { %4825 = vmatpush3.bf16.msra.mxu0 %v4824_v11  ;;  %v949_v11 = vld [vmem:[%s5362_s8 + $0x15d0] sm:$0xff]  ;;  %v995_v47 = vld [vmem:[%s5362_s8 + $0x1740] sm:$0xff]  ;;  %v984_v62 = vld [vmem:[%s5362_s8 + $0x16e8] sm:$0xff] }
 0x17f   : > { %4857 = vmatpush3.bf16.msra.mxu1 %v4856_v0  ;;  %4859 = vmatprep.subr.bf16.mxu0 %v4858_v55  ;;  %v950_v0 = vld [vmem:[%s5362_s8 + $0x15d8] sm:$0xff]  ;;  %v4876_v55 = vpack.c.bf16 %v900_v60, %v899_v59  ;;  %v988_v60 = vld [vmem:[%s5362_s8 + $0x1708] sm:$0xff]  ;;  %v983_v46 = vld [vmem:[%s5362_s8 + $0x16e0] sm:$0xff] }
 0x180   : > { %4891 = vmatprep.subr.bf16.mxu1 %v4890_v4  ;;  %v902_v4 = vld [vmem:[%s5362_s8 + $0x1458] sm:$0xff]  ;;  %v4910_v6 = vpack.c.bf16 %v950_v0, %v949_v11 }
 0x181   : > { %2694 = vmatmul.mubr.f32.vlgmr.msra.gmra.mrb[18].mxu0 %v6075_v23  ;;  %v896_v23 = vld [vmem:[%s5362_s8 + $0x1428] sm:$0xff] }
 0x182   : > { %4861 = vmatpush3.bf16.msra.mxu0 %v4860_v13  ;;  %2764 = vmatmul.mubr.f32.vlgmr.msra.gmra.mrb[18].mxu1 %v6080_v26  ;;  %v945_v26 = vld [vmem:[%s5362_s8 + $0x15b0] sm:$0xff]  ;;  %v4868_v41 = vpack.c.bf16 %v896_v23, %v895_v33  ;;  %v951_v13 = vld [vmem:[%s5362_s8 + $0x15e0] sm:$0xff] }
 0x183   : > { %4893 = vmatpush3.bf16.msra.mxu1 %v4892_v15  ;;  %4863 = vmatprep.subr.bf16.mxu0 %v4862_v17  ;;  %v4902_v48 = vpack.c.bf16 %v946_v53, %v945_v26  ;;  %v952_v15 = vld [vmem:[%s5362_s8 + $0x15e8] sm:$0xff]  ;;  %v4880_v17 = vpack.c.bf16 %v902_v4, %v901_v3  ;;  %v905_v26 = vld [vmem:[%s5362_s8 + $0x1470] sm:$0xff]  ;;  %v906_v53 = vld [vmem:[%s5362_s8 + $0x1478] sm:$0xff] }
 0x184   : > { %4895 = vmatprep.subr.bf16.mxu1 %v4894_v16  ;;  %2833 = vmatprep.mubr.f32.mxu0 %v1281_v25  ;;  %v904_v16 = vld [vmem:[%s5362_s8 + $0x1468] sm:$0xff]  ;;  %v4914_v24 = vpack.c.bf16 %v952_v15, %v951_v13  ;;  %v958_v3 = vld [vmem:[%s5362_s8 + $0x1618] sm:$0xff]  ;;  %v989_v4 = vld [vmem:[%s5362_s8 + $0x1710] sm:$0xff] }
 0x185   : > { %2903 = vmatprep.mubr.f32.mxu1 %v1282_v29  ;;  %v936_v25 = vld [vmem:[%s5362_s8 + $0x1568] sm:$0xff]  ;;  %v4884_v35 = vpack.c.bf16 %v904_v16, %v903_v19  ;;  %v1007_v13 = vld [vmem:[%s5362_s8 + $0x17a0] sm:$0xff]  ;;  %v4930_v19 = vpack.c.bf16 %v976_v9, %v975_v7 }
 0x186   : > { %4865 = vmatpush3.bf16.msra.mxu0 %v4864_v30  ;;  %v4916_v43 = vpack.c.bf16 %v936_v25, %v935_v20  ;;  %v1008_v15 = vld [vmem:[%s5362_s8 + $0x17a8] sm:$0xff]  ;;  %v959_v16 = vld [vmem:[%s5362_s8 + $0x1620] sm:$0xff]  ;;  %v977_v25 = vld [vmem:[%s5362_s8 + $0x16b0] sm:$0xff] }
 0x187   : > { %4897 = vmatpush3.bf16.msra.mxu1 %v4896_v31  ;;  %4867 = vmatprep.subr.bf16.mxu0 %v4866_v32  ;;  %v953_v31 = vld [vmem:[%s5362_s8 + $0x15f0] sm:$0xff]  ;;  %v954_v32 = vld [vmem:[%s5362_s8 + $0x15f8] sm:$0xff]  ;;  %v991_v20 = vld [vmem:[%s5362_s8 + $0x1720] sm:$0xff] }
 0x188   : > { %4899 = vmatprep.subr.bf16.mxu1 %v4898_v36  ;;  %v249_v36 = vld [vmem:[%s5372_s6 + $0x58] sm:$0xff] }
 0x189   : > { %v1283_v50 = vcombine.high %v249_v36, %v249_v36  ;;  %v6235_v58 = vrot.slane %v249_v36, %v5425_v14  ;;  %v994_v36 = vld [vmem:[%s5362_s8 + $0x1738] sm:$0xff] }
 0x18a   : > { %4869 = vmatpush3.bf16.msra.mxu0 %v4868_v41  ;;  %v937_v41 = vld [vmem:[%s5362_s8 + $0x1570] sm:$0xff] }
 0x18b   : > { %4901 = vmatpush3.bf16.msra.mxu1 %v4900_v42  ;;  %4871 = vmatprep.subr.bf16.mxu0 %v4870_v44  ;;  %v4918_v44 = vpack.c.bf16 %v954_v32, %v953_v31  ;;  %v4920_v54 = vpack.c.bf16 %v938_v45, %v937_v41  ;;  %v6240_v11 = vrot.slane %v1283_v50, %v5425_v14  ;;  %v961_v32 = vld [vmem:[%s5362_s8 + $0x1630] sm:$0xff]  ;;  %v964_v45 = vld [vmem:[%s5362_s8 + $0x1648] sm:$0xff]  ;;  %v982_v50 = vld [vmem:[%s5362_s8 + $0x16d8] sm:$0xff] }
 0x18c   : > { %4903 = vmatprep.subr.bf16.mxu1 %v4902_v48  ;;  %v1003_v48 = vld [vmem:[%s5362_s8 + $0x1780] sm:$0xff]  ;;  %v1298_v10 = vcombine.high %v6235_v58, %v6235_v58  ;;  %v4934_v31 = vpack.c.bf16 %v978_v27, %v977_v25 }
 0x18d   : > { %v4954_v59 = vpack.c.bf16 %v1004_v49, %v1003_v48  ;;  %v996_v48 = vld [vmem:[%s5362_s8 + $0x1748] sm:$0xff]  ;;  %v981_v49 = vld [vmem:[%s5362_s8 + $0x16d0] sm:$0xff] }
 0x18e   : > { %4873 = vmatpush3.bf16.msra.mxu0 %v4872_v34  ;;  %v955_v34 = vld [vmem:[%s5362_s8 + $0x1600] sm:$0xff] }
 0x18f   : > { %4905 = vmatpush3.bf16.msra.mxu1 %v4904_v56  ;;  %4875 = vmatprep.subr.bf16.mxu0 %v4874_v57  ;;  %v956_v56 = vld [vmem:[%s5362_s8 + $0x1608] sm:$0xff]  ;;  %v987_v57 = vld [vmem:[%s5362_s8 + $0x1700] sm:$0xff] }
 0x190   : > { %4907 = vmatprep.subr.bf16.mxu1 %v4906_v52  ;;  %v974_v52 = vld [vmem:[%s5362_s8 + $0x1698] sm:$0xff]  ;;  %v4924_v0 = vpack.c.bf16 %v956_v56, %v955_v34  ;;  %v4972_v34 = vpack.c.bf16 %v996_v48, %v995_v47  ;;  %v4942_v56 = vpack.c.bf16 %v982_v50, %v981_v49  ;;  %v1037_v47 = vld [vmem:[%s5362_s8 + $0x1890] sm:$0xff] }
 0x191   : > { %v1069_v49 = vld [vmem:[%s5362_s8 + $0x1990] sm:$0xff]  ;;  %v1070_v50 = vld [vmem:[%s5362_s8 + $0x1998] sm:$0xff] }
 0x192   : > { %4877 = vmatpush3.bf16.msra.mxu0 %v4876_v55  ;;  %v4956_v55 = vpack.c.bf16 %v988_v60, %v987_v57  ;;  %v965_v57 = vld [vmem:[%s5362_s8 + $0x1650] sm:$0xff] }
 0x193   : > { %4909 = vmatpush3.bf16.msra.mxu1 %v4908_v1  ;;  %4879 = vmatprep.subr.bf16.mxu0 %v4878_v2  ;;  %v4926_v1 = vpack.c.bf16 %v974_v52, %v973_v61  ;;  %v957_v2 = vld [vmem:[%s5362_s8 + $0x1610] sm:$0xff]  ;;  %v998_v52 = vld [vmem:[%s5362_s8 + $0x1758] sm:$0xff] }
 0x194   : > { %v3550_v21 = vpop.f32.mrb[6].mxu0  ;;  %4911 = vmatprep.subr.bf16.mxu1 %v4910_v6  ;;  %v990_v6 = vld [vmem:[%s5362_s8 + $0x1718] sm:$0xff]  ;;  %v997_v60 = vld [vmem:[%s5362_s8 + $0x1750] sm:$0xff] }
 0x195   : > { %v3551_v29 = vpop.f32.mrb[7].mxu0  ;;  %v3585_v30 = vpop.f32.mrb[6].mxu1 }
 0x196   : > { %v3552_v33 = vadd.f32 %v3551_v29, %v3550_v21  ;;  %4881 = vmatpush3.bf16.msra.mxu0 %v4880_v17  ;;  %v3586_v23 = vpop.f32.mrb[7].mxu1  ;;  %v1299_v17 = vcombine.high %v6240_v11, %v6240_v11  ;;  %v4962_v21 = vpack.c.bf16 %v1008_v15, %v1007_v13  ;;  %v985_v13 = vld [vmem:[%s5362_s8 + $0x16f0] sm:$0xff]  ;;  %v986_v15 = vld [vmem:[%s5362_s8 + $0x16f8] sm:$0xff] }
 0x197   : > { %v3587_v38 = vadd.f32 %v3586_v23, %v3585_v30  ;;  %4913 = vmatpush3.bf16.msra.mxu1 %v4912_v12  ;;  %4883 = vmatprep.subr.bf16.mxu0 %v4882_v18  ;;  %v4928_v12 = vpack.c.bf16 %v958_v3, %v957_v2  ;;  %v4960_v18 = vpack.c.bf16 %v990_v6, %v989_v4  ;;  %v993_v23 = vld [vmem:[%s5362_s8 + $0x1730] sm:$0xff]  ;;  %v967_v4 = vld [vmem:[%s5362_s8 + $0x1660] sm:$0xff] }
 0x198   : > { %v1856_v42 = vadd.f32 %v3552_v33, %v6146_v63  ;;  %4915 = vmatprep.subr.bf16.mxu1 %v4914_v24  ;;  %v4888_v63 = vpack.c.bf16 %v906_v53, %v905_v26  ;;  %v992_v24 = vld [vmem:[%s5362_s8 + $0x1728] sm:$0xff]  ;;  %v962_v33 = vld [vmem:[%s5362_s8 + $0x1638] sm:$0xff]  ;;  %v4968_v41 = vpack.c.bf16 %v994_v36, %v993_v23  ;;  %v4976_v2 = vpack.c.bf16 %v998_v52, %v997_v60  ;;  %v999_v6 = vld [vmem:[%s5362_s8 + $0x1760] sm:$0xff] }
 0x199   : > { %v4964_v30 = vpack.c.bf16 %v992_v24, %v991_v20  ;;  %v1012_v26 = vld [vmem:[%s5362_s8 + $0x17c8] sm:$0xff]  ;;  %v4936_v53 = vpack.c.bf16 %v962_v33, %v961_v32  ;;  %v4946_v3 = vpack.c.bf16 %v984_v62, %v983_v46  ;;  %v4950_v27 = vpack.c.bf16 %v986_v15, %v985_v13  ;;  %v1002_v32 = vld [vmem:[%s5362_s8 + $0x1778] sm:$0xff]  ;;  %v1035_v33 = vld [vmem:[%s5362_s8 + $0x1880] sm:$0xff] }
 0x19a   : > { %v6226_v51 = vadd.f32 %v3587_v38, %v1856_v42  ;;  %4885 = vmatpush3.bf16.msra.mxu0 %v4884_v35  ;;  %v979_v38 = vld [vmem:[%s5362_s8 + $0x16c0] sm:$0xff]  ;;  %v1036_v23 = vld [vmem:[%s5362_s8 + $0x1888] sm:$0xff]  ;;  %v5022_v60 = vpack.c.bf16 %v1070_v50, %v1069_v49  ;;  %v1074_v13 = vld [vmem:[%s5362_s8 + $0x19b8] sm:$0xff] }
 0x19b   : > { %4917 = vmatpush3.bf16.msra.mxu1 %v4916_v43  ;;  %4887 = vmatprep.subr.bf16.mxu0 %v4886_v40  ;;  %v980_v43 = vld [vmem:[%s5362_s8 + $0x16c8] sm:$0xff]  ;;  %v1011_v40 = vld [vmem:[%s5362_s8 + $0x17c0] sm:$0xff] }
 0x19c   : > { %4919 = vmatprep.subr.bf16.mxu1 %v4918_v44  ;;  %v4938_v42 = vpack.c.bf16 %v980_v43, %v979_v38  ;;  %v963_v44 = vld [vmem:[%s5362_s8 + $0x1640] sm:$0xff]  ;;  %v4970_v37 = vpack.c.bf16 %v1012_v26, %v1011_v40  ;;  %v1068_v36 = vld [vmem:[%s5362_s8 + $0x1988] sm:$0xff]  ;;  %v4986_v26 = vpack.c.bf16 %v1036_v23, %v1035_v33 }
 0x19d   : > { %v1039_v52 = vld [vmem:[%s5362_s8 + $0x18a0] sm:$0xff]  ;;  %v1060_v23 = vld [vmem:[%s5362_s8 + $0x1948] sm:$0xff] }
 0x19e   : > { %4889 = vmatpush3.bf16.msra.mxu0 %v4888_v63  ;;  %v1013_v63 = vld [vmem:[%s5362_s8 + $0x17d0] sm:$0xff]  ;;  %v1071_v62 = vld [vmem:[%s5362_s8 + $0x19a0] sm:$0xff]  ;;  %v1048_v49 = vld [vmem:[%s5362_s8 + $0x18e8] sm:$0xff] }
 0x19f   : > { %4921 = vmatpush3.bf16.msra.mxu1 %v4920_v54  ;;  %4923 = vmatprep.subr.bf16.mxu0 %v4922_v39  ;;  %v1014_v54 = vld [vmem:[%s5362_s8 + $0x17d8] sm:$0xff]  ;;  %v4940_v39 = vpack.c.bf16 %v964_v45, %v963_v44  ;;  %v1052_v45 = vld [vmem:[%s5362_s8 + $0x1908] sm:$0xff]  ;;  %v1079_v50 = vld [vmem:[%s5362_s8 + $0x19e0] sm:$0xff] }
 0x1a0   : > { %4955 = vmatprep.subr.bf16.mxu1 %v4954_v59  ;;  %v966_v59 = vld [vmem:[%s5362_s8 + $0x1658] sm:$0xff]  ;;  %v4974_v61 = vpack.c.bf16 %v1014_v54, %v1013_v63 }
 0x1a1   : > { %2834 = vmatmul.mubr.f32.vlgmr.msra.gmra.mrb[20].mxu0 %v6155_v8  ;;  %v960_v8 = vld [vmem:[%s5362_s8 + $0x1628] sm:$0xff] }
 0x1a2   : > { %4925 = vmatpush3.bf16.msra.mxu0 %v4924_v0  ;;  %2904 = vmatmul.mubr.f32.vlgmr.msra.gmra.mrb[20].mxu1 %v6160_v22  ;;  %v1009_v22 = vld [vmem:[%s5362_s8 + $0x17b0] sm:$0xff]  ;;  %v4932_v29 = vpack.c.bf16 %v960_v8, %v959_v16  ;;  %v1015_v0 = vld [vmem:[%s5362_s8 + $0x17e0] sm:$0xff] }
 0x1a3   : > { %4957 = vmatpush3.bf16.msra.mxu1 %v4956_v55  ;;  %4927 = vmatprep.subr.bf16.mxu0 %v4926_v1  ;;  %v4966_v35 = vpack.c.bf16 %v1010_v28, %v1009_v22  ;;  %v1016_v55 = vld [vmem:[%s5362_s8 + $0x17e8] sm:$0xff]  ;;  %v4944_v1 = vpack.c.bf16 %v966_v59, %v965_v57  ;;  %v969_v22 = vld [vmem:[%s5362_s8 + $0x1670] sm:$0xff]  ;;  %v970_v28 = vld [vmem:[%s5362_s8 + $0x1678] sm:$0xff] }
 0x1a4   : > { %4959 = vmatprep.subr.bf16.mxu1 %v4958_v5  ;;  %2973 = vmatprep.mubr.f32.mxu0 %v1298_v10  ;;  %v968_v5 = vld [vmem:[%s5362_s8 + $0x1668] sm:$0xff]  ;;  %v4978_v9 = vpack.c.bf16 %v1016_v55, %v1015_v0  ;;  %v1022_v57 = vld [vmem:[%s5362_s8 + $0x1818] sm:$0xff]  ;;  %v1053_v59 = vld [vmem:[%s5362_s8 + $0x1910] sm:$0xff] }
 0x1a5   : > { %3043 = vmatprep.mubr.f32.mxu1 %v1299_v17  ;;  %v1000_v10 = vld [vmem:[%s5362_s8 + $0x1768] sm:$0xff]  ;;  %v4948_v20 = vpack.c.bf16 %v968_v5, %v967_v4  ;;  %v1023_v4 = vld [vmem:[%s5362_s8 + $0x1820] sm:$0xff] }
 0x1a6   : > { %4929 = vmatpush3.bf16.msra.mxu0 %v4928_v12  ;;  %v4980_v25 = vpack.c.bf16 %v1000_v10, %v999_v6  ;;  %v1072_v0 = vld [vmem:[%s5362_s8 + $0x19a8] sm:$0xff]  ;;  %v1055_v5 = vld [vmem:[%s5362_s8 + $0x1920] sm:$0xff]  ;;  %v1042_v10 = vld [vmem:[%s5362_s8 + $0x18b8] sm:$0xff] }
 0x1a7   : > { %4961 = vmatpush3.bf16.msra.mxu1 %v4960_v18  ;;  %4931 = vmatprep.subr.bf16.mxu0 %v4930_v19  ;;  %v1017_v18 = vld [vmem:[%s5362_s8 + $0x17f0] sm:$0xff]  ;;  %v1018_v19 = vld [vmem:[%s5362_s8 + $0x17f8] sm:$0xff]  ;;  %v5026_v6 = vpack.c.bf16 %v1072_v0, %v1071_v62 }
 0x1a8   : > { %4963 = vmatprep.subr.bf16.mxu1 %v4962_v21  ;;  %v250_v21 = vld [vmem:[%s5372_s6 + $0x60] sm:$0xff] }
 0x1a9   : > { %v1300_v38 = vcombine.high %v250_v21, %v250_v21  ;;  %v6315_v48 = vrot.slane %v250_v21, %v5425_v14  ;;  %v1043_v21 = vld [vmem:[%s5362_s8 + $0x18c0] sm:$0xff]  ;;  %v1050_v62 = vld [vmem:[%s5362_s8 + $0x18f8] sm:$0xff] }
 0x1aa   : > { %4933 = vmatpush3.bf16.msra.mxu0 %v4932_v29  ;;  %v1001_v29 = vld [vmem:[%s5362_s8 + $0x1770] sm:$0xff] }
 0x1ab   : > { %4965 = vmatpush3.bf16.msra.mxu1 %v4964_v30  ;;  %4935 = vmatprep.subr.bf16.mxu0 %v4934_v31  ;;  %v4982_v31 = vpack.c.bf16 %v1018_v19, %v1017_v18  ;;  %v4984_v40 = vpack.c.bf16 %v1002_v32, %v1001_v29  ;;  %v6320_v63 = vrot.slane %v1300_v38, %v5425_v14  ;;  %v1040_v14 = vld [vmem:[%s5362_s8 + $0x18a8] sm:$0xff]  ;;  %v1025_v18 = vld [vmem:[%s5362_s8 + $0x1830] sm:$0xff]  ;;  %v1026_v19 = vld [vmem:[%s5362_s8 + $0x1838] sm:$0xff] }
 0x1ac   : > { %4967 = vmatprep.subr.bf16.mxu1 %v4966_v35  ;;  %v1067_v35 = vld [vmem:[%s5362_s8 + $0x1980] sm:$0xff]  ;;  %v1315_v46 = vcombine.high %v6315_v48, %v6315_v48  ;;  %v1077_v38 = vld [vmem:[%s5362_s8 + $0x19d0] sm:$0xff] }
 0x1ad   : > { %v5018_v44 = vpack.c.bf16 %v1068_v36, %v1067_v35  ;;  %v1316_v55 = vcombine.high %v6320_v63, %v6320_v63  ;;  %v1059_v32 = vld [vmem:[%s5362_s8 + $0x1940] sm:$0xff]  ;;  %v1045_v35 = vld [vmem:[%s5362_s8 + $0x18d0] sm:$0xff]  ;;  %v1046_v36 = vld [vmem:[%s5362_s8 + $0x18d8] sm:$0xff] }
 0x1ae   : > { %4937 = vmatpush3.bf16.msra.mxu0 %v4936_v53  ;;  %v1019_v53 = vld [vmem:[%s5362_s8 + $0x1800] sm:$0xff] }
 0x1af   : > { %4969 = vmatpush3.bf16.msra.mxu1 %v4968_v41  ;;  %4939 = vmatprep.subr.bf16.mxu0 %v4938_v42  ;;  %v1020_v41 = vld [vmem:[%s5362_s8 + $0x1808] sm:$0xff]  ;;  %v1051_v42 = vld [vmem:[%s5362_s8 + $0x1900] sm:$0xff] }
 0x1b0   : > { %4971 = vmatprep.subr.bf16.mxu1 %v4970_v37  ;;  %v1038_v37 = vld [vmem:[%s5362_s8 + $0x1898] sm:$0xff]  ;;  %v4988_v54 = vpack.c.bf16 %v1020_v41, %v1019_v53  ;;  %v5006_v53 = vpack.c.bf16 %v1046_v36, %v1045_v35  ;;  %v1029_v41 = vld [vmem:[%s5362_s8 + $0x1850] sm:$0xff] }
 0x1b2   : > { %4941 = vmatpush3.bf16.msra.mxu0 %v4940_v39  ;;  %v5020_v39 = vpack.c.bf16 %v1052_v45, %v1051_v42  ;;  %v1030_v42 = vld [vmem:[%s5362_s8 + $0x1858] sm:$0xff] }
 0x1b3   : > { %4973 = vmatpush3.bf16.msra.mxu1 %v4972_v34  ;;  %4943 = vmatprep.subr.bf16.mxu0 %v4942_v56  ;;  %v4990_v34 = vpack.c.bf16 %v1038_v37, %v1037_v47  ;;  %v1021_v56 = vld [vmem:[%s5362_s8 + $0x1810] sm:$0xff]  ;;  %v1062_v47 = vld [vmem:[%s5362_s8 + $0x1958] sm:$0xff]  ;;  %v1047_v37 = vld [vmem:[%s5362_s8 + $0x18e0] sm:$0xff] }
 0x1b4   : > { %v3620_v7 = vpop.f32.mrb[8].mxu0  ;;  %4975 = vmatprep.subr.bf16.mxu1 %v4974_v61  ;;  %v1054_v61 = vld [vmem:[%s5362_s8 + $0x1918] sm:$0xff] }
 0x1b5   : > { %v3621_v17 = vpop.f32.mrb[9].mxu0  ;;  %v3655_v12 = vpop.f32.mrb[8].mxu1 }
 0x1b6   : > { %v3622_v16 = vadd.f32 %v3621_v17, %v3620_v7  ;;  %4945 = vmatpush3.bf16.msra.mxu0 %v4944_v1  ;;  %v3656_v8 = vpop.f32.mrb[9].mxu1  ;;  %v4992_v1 = vpack.c.bf16 %v1022_v57, %v1021_v56  ;;  %v1056_v7 = vld [vmem:[%s5362_s8 + $0x1928] sm:$0xff]  ;;  %v5010_v56 = vpack.c.bf16 %v1048_v49, %v1047_v37  ;;  %v1031_v57 = vld [vmem:[%s5362_s8 + $0x1860] sm:$0xff] }
 0x1b7   : > { %v3657_v24 = vadd.f32 %v3656_v8, %v3655_v12  ;;  %4977 = vmatpush3.bf16.msra.mxu1 %v4976_v2  ;;  %4947 = vmatprep.subr.bf16.mxu0 %v4946_v3  ;;  %v5024_v2 = vpack.c.bf16 %v1054_v61, %v1053_v59  ;;  %v4994_v3 = vpack.c.bf16 %v1040_v14, %v1039_v52  ;;  %v1032_v59 = vld [vmem:[%s5362_s8 + $0x1868] sm:$0xff] }
 0x1b8   : > { %v1996_v30 = vadd.f32 %v3622_v16, %v6226_v51  ;;  %4979 = vmatprep.subr.bf16.mxu1 %v4978_v9  ;;  %v4952_v51 = vpack.c.bf16 %v970_v28, %v969_v22  ;;  %v1041_v9 = vld [vmem:[%s5362_s8 + $0x18b0] sm:$0xff]  ;;  %v5028_v17 = vpack.c.bf16 %v1056_v7, %v1055_v5  ;;  %v5000_v22 = vpack.c.bf16 %v1026_v19, %v1025_v18  ;;  %v1064_v14 = vld [vmem:[%s5362_s8 + $0x1968] sm:$0xff] }
 0x1b9   : > { %v4998_v12 = vpack.c.bf16 %v1042_v10, %v1041_v9  ;;  %v1057_v16 = vld [vmem:[%s5362_s8 + $0x1930] sm:$0xff]  ;;  %v1034_v10 = vld [vmem:[%s5362_s8 + $0x1878] sm:$0xff] }
 0x1ba   : > { %v6306_v43 = vadd.f32 %v3657_v24, %v1996_v30  ;;  %4949 = vmatpush3.bf16.msra.mxu0 %v4948_v20  ;;  %v1058_v20 = vld [vmem:[%s5362_s8 + $0x1938] sm:$0xff]  ;;  %v1044_v24 = vld [vmem:[%s5362_s8 + $0x18c8] sm:$0xff]  ;;  %v1027_v30 = vld [vmem:[%s5362_s8 + $0x1840] sm:$0xff] }
 0x1bb   : > { %4981 = vmatpush3.bf16.msra.mxu1 %v4980_v25  ;;  %4951 = vmatprep.subr.bf16.mxu0 %v4950_v27  ;;  %v1075_v25 = vld [vmem:[%s5362_s8 + $0x19c0] sm:$0xff]  ;;  %v1076_v27 = vld [vmem:[%s5362_s8 + $0x19c8] sm:$0xff]  ;;  %v5032_v28 = vpack.c.bf16 %v1058_v20, %v1057_v16  ;;  %v5002_v29 = vpack.c.bf16 %v1044_v24, %v1043_v21  ;;  %v1033_v9 = vld [vmem:[%s5362_s8 + $0x1870] sm:$0xff] }
 0x1bc   : > { %4983 = vmatprep.subr.bf16.mxu1 %v4982_v31  ;;  %v1028_v31 = vld [vmem:[%s5362_s8 + $0x1848] sm:$0xff]  ;;  %v5034_v33 = vpack.c.bf16 %v1076_v27, %v1075_v25  ;;  %v5016_v18 = vpack.c.bf16 %v1034_v10, %v1033_v9  ;;  %v237_v9 = vld [vmem:[#allocation2] sm:$0x3] }
 0x1be   : > { %4953 = vmatpush3.bf16.msra.mxu0 %v4952_v51  ;;  %v1078_v51 = vld [vmem:[%s5362_s8 + $0x19d8] sm:$0xff] }
 0x1bf   : > { %4985 = vmatpush3.bf16.msra.mxu1 %v4984_v40  ;;  %4987 = vmatprep.subr.bf16.mxu0 %v4986_v26  ;;  %v5004_v40 = vpack.c.bf16 %v1028_v31, %v1027_v30  ;;  %v5036_v26 = vpack.c.bf16 %v1060_v23, %v1059_v32  ;;  %v5038_v45 = vpack.c.bf16 %v1078_v51, %v1077_v38 }
 0x1c0   : > { %5019 = vmatprep.subr.bf16.mxu1 %v5018_v44  ;;  %v1061_v44 = vld [vmem:[%s5362_s8 + $0x1950] sm:$0xff] }
 0x1c1   : > { %2974 = vmatmul.mubr.f32.vlgmr.msra.gmra.mrb[22].mxu0 %v6235_v58  ;;  %v1024_v58 = vld [vmem:[%s5362_s8 + $0x1828] sm:$0xff] }
 0x1c2   : > { %4989 = vmatpush3.bf16.msra.mxu0 %v4988_v54  ;;  %3044 = vmatmul.mubr.f32.vlgmr.msra.gmra.mrb[22].mxu1 %v6240_v11  ;;  %v1073_v11 = vld [vmem:[%s5362_s8 + $0x19b0] sm:$0xff]  ;;  %v4996_v15 = vpack.c.bf16 %v1024_v58, %v1023_v4  ;;  %v1080_v54 = vld [vmem:[%s5362_s8 + $0x19e8] sm:$0xff]  ;;  %v5012_v58 = vpack.c.bf16 %v1032_v59, %v1031_v57 }
 0x1c3   : > { %5021 = vmatpush3.bf16.msra.mxu1 %v5020_v39  ;;  %4991 = vmatprep.subr.bf16.mxu0 %v4990_v34  ;;  %v5030_v8 = vpack.c.bf16 %v1074_v13, %v1073_v11  ;;  %v5008_v39 = vpack.c.bf16 %v1030_v42, %v1029_v41  ;;  %v5040_v34 = vpack.c.bf16 %v1062_v47, %v1061_v44 }
 0x1c4   : > { %5023 = vmatprep.subr.bf16.mxu1 %v5022_v60  ;;  %3113 = vmatprep.mubr.f32.mxu0 %v1315_v46  ;;  %v1063_v60 = vld [vmem:[%s5362_s8 + $0x1960] sm:$0xff]  ;;  %v5042_v52 = vpack.c.bf16 %v1080_v54, %v1079_v50  ;;  %v1049_v46 = vld [vmem:[%s5362_s8 + $0x18f0] sm:$0xff] }
 0x1c5   : > { %3183 = vmatprep.mubr.f32.mxu1 %v1316_v55  ;;  %v5014_v7 = vpack.c.bf16 %v1050_v62, %v1049_v46 }
 0x1c6   : > { %4993 = vmatpush3.bf16.msra.mxu0 %v4992_v1  ;;  %v1081_v1 = vld [vmem:[%s5362_s8 + $0x19f0] sm:$0xff] }
 0x1c7   : > { %5025 = vmatpush3.bf16.msra.mxu1 %v5024_v2  ;;  %4995 = vmatprep.subr.bf16.mxu0 %v4994_v3  ;;  %v1082_v2 = vld [vmem:[%s5362_s8 + $0x19f8] sm:$0xff] }
 0x1c8   : > { %5027 = vmatprep.subr.bf16.mxu1 %v5026_v6  ;;  %v5044_v6 = vpack.c.bf16 %v1064_v14, %v1063_v60  ;;  %v5046_v13 = vpack.c.bf16 %v1082_v2, %v1081_v1 }
 0x1ca   : > { %4997 = vmatpush3.bf16.msra.mxu0 %v4996_v15  ;;  %v1065_v15 = vld [vmem:[%s5362_s8 + $0x1970] sm:$0xff] }
 0x1cb   : > { %5029 = vmatpush3.bf16.msra.mxu1 %v5028_v17  ;;  %4999 = vmatprep.subr.bf16.mxu0 %v4998_v12  ;;  %v1066_v17 = vld [vmem:[%s5362_s8 + $0x1978] sm:$0xff] }
 0x1cc   : > { %5031 = vmatprep.subr.bf16.mxu1 %v5030_v8  ;;  %v5048_v19 = vpack.c.bf16 %v1066_v17, %v1065_v15  ;;  %v3302_v15 = vld [vmem:[%s6435_s2] ss:$0 sm:$0xff] (!%p3301_p7) }
 0x1ce   : > { %5001 = vmatpush3.bf16.msra.mxu0 %v5000_v22 }
 0x1cf   : > { %5033 = vmatpush3.bf16.msra.mxu1 %v5032_v28  ;;  %5003 = vmatprep.subr.bf16.mxu0 %v5002_v29 }
 0x1d0   : > { %5035 = vmatprep.subr.bf16.mxu1 %v5034_v33 }
 0x1d2   : > { %5005 = vmatpush3.bf16.msra.mxu0 %v5004_v40 }
 0x1d3   : > { %5037 = vmatpush3.bf16.msra.mxu1 %v5036_v26  ;;  %5007 = vmatprep.subr.bf16.mxu0 %v5006_v53 }
 0x1d4   : > { %v3690_v61 = vpop.f32.mrb[10].mxu0  ;;  %5039 = vmatprep.subr.bf16.mxu1 %v5038_v45 }
 0x1d5   : > { %v3691_v0 = vpop.f32.mrb[11].mxu0  ;;  %v3725_v55 = vpop.f32.mrb[10].mxu1 }
 0x1d6   : > { %v3692_v3 = vadd.f32 %v3691_v0, %v3690_v61  ;;  %5009 = vmatpush3.bf16.msra.mxu0 %v5008_v39  ;;  %v3726_v4 = vpop.f32.mrb[11].mxu1 }
 0x1d7   : > { %v3727_v5 = vadd.f32 %v3726_v4, %v3725_v55  ;;  %5041 = vmatpush3.bf16.msra.mxu1 %v5040_v34  ;;  %5011 = vmatprep.subr.bf16.mxu0 %v5010_v56 }
 0x1d8   : > { %v2136_v11 = vadd.f32 %v3692_v3, %v6306_v43  ;;  %5043 = vmatprep.subr.bf16.mxu1 %v5042_v52 }
 0x1da   : > { %v2206_v12 = vadd.f32 %v3727_v5, %v2136_v11  ;;  %5013 = vmatpush3.bf16.msra.mxu0 %v5012_v58 }
 0x1db   : > { %5045 = vmatpush3.bf16.msra.mxu1 %v5044_v6  ;;  %5015 = vmatprep.subr.bf16.mxu0 %v5014_v7 }
 0x1dc   : > { %5047 = vmatprep.subr.bf16.mxu1 %v5046_v13 }
 0x1de   : > { %5017 = vmatpush3.bf16.msra.mxu0 %v5016_v18 }
 0x1df   : > { %5049 = vmatpush3.bf16.msra.mxu1 %v5048_v19 }
 0x1e1   : > { %3114 = vmatmul.mubr.f32.vlgmr.msra.gmra.mrb[24].mxu0 %v6315_v48 }
 0x1e2   : > { %3184 = vmatmul.mubr.f32.vlgmr.msra.gmra.mrb[24].mxu1 %v6320_v63 }
 0x1f4   : > { %v3760_v16 = vpop.f32.mrb[12].mxu0 }
 0x1f5   : > { %v3761_v8 = vpop.f32.mrb[13].mxu0  ;;  %v3795_v43 = vpop.f32.mrb[12].mxu1 }
 0x1f6   : > { %v3762_v20 = vadd.f32 %v3761_v8, %v3760_v16  ;;  %v3796_v21 = vpop.f32.mrb[13].mxu1 }
 0x1f7   : > { %v3797_v24 = vadd.f32 %v3796_v21, %v3795_v43 }
 0x1f8   : > { %v2276_v25 = vadd.f32 %v3762_v20, %v2206_v12 }
 0x1fa   : > { %v2346_v27 = vadd.f32 %v3797_v24, %v2276_v25 }
 0x214   : > { %v3830_v22 = vpop.f32.mrb[14].mxu0 }
 0x215   : > { %v3831_v28 = vpop.f32.mrb[15].mxu0  ;;  %v3865_v29 = vpop.f32.mrb[14].mxu1 }
 0x216   : > { %v3832_v30 = vadd.f32 %v3831_v28, %v3830_v22  ;;  %v3866_v31 = vpop.f32.mrb[15].mxu1 }
 0x217   : > { %v3867_v32 = vadd.f32 %v3866_v31, %v3865_v29 }
 0x218   : > { %v2416_v33 = vadd.f32 %v3832_v30, %v2346_v27 }
 0x21a   : > { %v2486_v23 = vadd.f32 %v3867_v32, %v2416_v33 }
 0x234   : > { %v3900_v35 = vpop.f32.mrb[16].mxu0 }
 0x235   : > { %v3901_v48 = vpop.f32.mrb[17].mxu0  ;;  %v3935_v36 = vpop.f32.mrb[16].mxu1 }
 0x236   : > { %v3902_v63 = vadd.f32 %v3901_v48, %v3900_v35  ;;  %v3936_v38 = vpop.f32.mrb[17].mxu1 }
 0x237   : > { %v3937_v51 = vadd.f32 %v3936_v38, %v3935_v36 }
 0x238   : > { %v2556_v40 = vadd.f32 %v3902_v63, %v2486_v23 }
 0x23a   : > { %v2626_v26 = vadd.f32 %v3937_v51, %v2556_v40 }
 0x254   : > { %v3970_v53 = vpop.f32.mrb[18].mxu0 }
 0x255   : > { %v3971_v41 = vpop.f32.mrb[19].mxu0  ;;  %v4005_v42 = vpop.f32.mrb[18].mxu1 }
 0x256   : > { %v3972_v44 = vadd.f32 %v3971_v41, %v3970_v53  ;;  %v4006_v45 = vpop.f32.mrb[19].mxu1 }
 0x257   : > { %v4007_v47 = vadd.f32 %v4006_v45, %v4005_v42 }
 0x258   : > { %v2696_v37 = vadd.f32 %v3972_v44, %v2626_v26 }
 0x25a   : > { %v2766_v49 = vadd.f32 %v4007_v47, %v2696_v37 }
 0x274   : > { %v4040_v50 = vpop.f32.mrb[20].mxu0 }
 0x275   : > { %v4041_v54 = vpop.f32.mrb[21].mxu0  ;;  %v4075_v39 = vpop.f32.mrb[20].mxu1 }
 0x276   : > { %v4042_v34 = vadd.f32 %v4041_v54, %v4040_v50  ;;  %v4076_v56 = vpop.f32.mrb[21].mxu1 }
 0x277   : > { %v4077_v57 = vadd.f32 %v4076_v56, %v4075_v39 }
 0x278   : > { %v2836_v59 = vadd.f32 %v4042_v34, %v2766_v49 }
 0x27a   : > { %v2906_v60 = vadd.f32 %v4077_v57, %v2836_v59 }
 0x294   : > { %v4110_v61 = vpop.f32.mrb[22].mxu0 }
 0x295   : > { %v4111_v52 = vpop.f32.mrb[23].mxu0  ;;  %v4145_v14 = vpop.f32.mrb[22].mxu1 }
 0x296   : > { %v4112_v46 = vadd.f32 %v4111_v52, %v4110_v61  ;;  %v4146_v62 = vpop.f32.mrb[23].mxu1 }
 0x297   : > { %v4147_v0 = vadd.f32 %v4146_v62, %v4145_v14 }
 0x298   : > { %v2976_v55 = vadd.f32 %v4112_v46, %v2906_v60 }
 0x29a   : > { %v3046_v1 = vadd.f32 %v4147_v0, %v2976_v55 }
 0x2b4   : > { %v4180_v2 = vpop.f32.mrb[24].mxu0 }
 0x2b5   : > { %v4181_v3 = vpop.f32.mrb[25].mxu0  ;;  %v4215_v4 = vpop.f32.mrb[24].mxu1 }
 0x2b6   : > { %v4182_v58 = vadd.f32 %v4181_v3, %v4180_v2  ;;  %v4216_v5 = vpop.f32.mrb[25].mxu1 }
 0x2b7   : > { %v4217_v6 = vadd.f32 %v4216_v5, %v4215_v4 }
 0x2b8   : > { %v3116_v7 = vadd.f32 %v4182_v58, %v3046_v1  ;;  %3195 = sbr.rel (%p3301_p7) target bundleno = 713 (0x2c9), region = 44 }
 0x2ba   : > { %v3186_v10 = vadd.f32 %v4217_v6, %v3116_v7 }
 0x2bc   : > { %v3189_v11 = vadd.f32 %v3186_v10, %v237_v9 }
 0x2be   : > { %3191 = vst.msk [vmem:[#allocation2] sm:$0x3] %vm3190_vm1, %v3189_v11 }
 0x2c5   : > { %v3196_v13 = vld [vmem:[#allocation2] sm:$0x3] }
 0x2c6   : > { %v3204_v17 = vadd.f32 %v3302_v15, %v3196_v13 }
 0x2c8   : > { %3205 = vst.msk [vmem:[#allocation6] sm:$0x3] %vm3190_vm1, %v3204_v17 }
 0x2c9 PF: > { %p6389_p5 = scmp.eq.s32.totalorder %s3294_s18, 12  ;;  %s5248_s12 = smov [#allocation6]  }
 0x2ca   : > { %s3215_s20 = sshll.u32 %s5248_s12, 4  ;;  %s3216_s20 = int_to_ptr.vmem [resolvable:$true] %s3215_s20 }
 0x2cb   : > { %s5161_s15 = scalar_lea.vmem %s3216_s20, 32  ;;  %p5168_p12 = scmp.lt.s32.totalorder %s3216_s20, %s3216_s20 }
 0x2cc   : > { %p5162_p6 = scmp.ne.s32.totalorder %s3216_s20, %s5161_s15  ;;  %p5169_p0 = scmp.lt.s32.totalorder %s5161_s15, %s5161_s15 }
 0x2ce   : > { %p5163_p8 = pnand %p5162_p6, %p6389_p5  ;;  %p5170_p1 = por %p5169_p0, %p5168_p12 }
 0x2d0   : > { %p5164_p10 = pneg %p5163_p8 }
 0x2d2   : > { %p5171_p2 = pnand %p5170_p1, %p5164_p10 }
 0x2d4   : > { %5174 = shalt.err (!%p5171_p2)
}
 0x2d5   : > { %s5175_s18 = scalar_lea.hbm %s6436_s3, 32 }
 0x2d6   : > { %p5176_p11 = scmp.ne.s32.totalorder %s6436_s3, %s5175_s18  ;;  %p5181_p4 = scmp.lt.u32.totalorder %s5175_s18, %s6436_s3 }
 0x2d8   : > { %p5177_p13 = pnand %p5176_p11, %p6389_p5 }
 0x2da   : > { %p5178_p3 = pneg %p5177_p13 }
 0x2dc   : > { %p5183_p9 = pnand %p5181_p4, %p5178_p3 }
 0x2de   : > { %5186 = shalt.err (!%p5183_p9)
}
 0x2df   : > { %5055 = dma.vmem_to_hbm [thread:$0]  (%p6389_p5), %s3216_s20, 32, %s6436_s3, [#allocation5]  }
 0x2e0   : > { %5216 = dma.done.wait (%p6389_p5), [#allocation5], 32  }
 0x2e1   : > { %5218 = vsyncadd (%p6389_p5), [#allocation5], 4294967264 }
 0x2e2 PF: > { %s17_s17 = sadd.s32 1, %s5241_s17   ;;  %s6440_s12 = smov %s5225_s13 }
 0x2e3   : > { %p14_p7 = scmp.ge.s32.totalorder %s17_s17, 15   ;;  %s6441_s13 = smov %s5229_s14 }
 0x2e4   : > { %s6442_s14 = smov %s5316_s23  ;;  %s6443_s15 = smov %s5237_s16 }
 0x2e5   : > { %s6444_s16 = smov %s6446_s19  ;;  %16 = sbr.rel (!%p14_p7) target bundleno = 5 (0x5), region = 81 }
 0x2ec   :  { %3228 = vsyncpa [#allocation4], 1 }
 0x2ed   :  { %3230 = vsyncpa [#allocation4 + $0x1], 1 }
 0x2ee   :  { %3231 = vsyncpa [#allocation5], 1 }
 0x2ef   :  { %3233 = vsyncpa [#allocation5 + $0x1], 1 }

</bundles_post_ra>
